<compile_context>
chip_gen: v7x
topology: tpu7x:2x2x1
jax: 0.10.0
libtpu: 0.0.40
codegen_flags: <defaults>
</compile_context>

<pallas_src>
import math

import jax
import jax.numpy as jnp
from jax.experimental import pallas as pl
from jax.experimental.pallas import tpu as pltpu

# ----- scaled-down BART-like config (reference: BartConfig(vocab_size=50264)) -----
VOCAB = 50264            # kept identical to the reference config
LM_TILE = 2048           # LM-head vocab tile (multiple of 128, lane-dense stores)
VOCAB_PAD = ((VOCAB + LM_TILE - 1) // LM_TILE) * LM_TILE   # 51200
HIDDEN = 32              # bart-large uses 1024; scaled down
NUM_HEADS = 4
HEAD_DIM = HIDDEN // NUM_HEADS
FFN = 64
N_ENC_LAYERS = 2         # bart-large-cnn has 12; scaled down for the synthetic kernel
N_DEC_LAYERS = 2
MAX_POS = 64
EPS = 1e-5


# =====================  fused transformer-body kernel  ============================

def fused_transformer_body(h_enc, h_dec, causal, p):
    """h_enc, h_dec: [B*S, H] embedded inputs; causal: [S, S] additive mask.

    Runs emb-LN + all encoder and decoder layers inside ONE Pallas kernel with all
    weights resident in VMEM. Returns decoder output [B*S, H] (float32)."""
    BS, H = h_enc.shape
    S = causal.shape[0]
    B = BS // S

    weights = [
        p["enc_ln_emb_g"], p["enc_ln_emb_b"], p["dec_ln_emb_g"], p["dec_ln_emb_b"],
        p["e_qkv_w"], p["e_qkv_b"], p["e_wo_w"], p["e_wo_b"],
        p["e_ln1_g"], p["e_ln1_b"],
        p["e_fc1_w"], p["e_fc1_b"], p["e_fc2_w"], p["e_fc2_b"],
        p["e_ln2_g"], p["e_ln2_b"],
        p["d_qkv_w"], p["d_qkv_b"], p["d_wo_w"], p["d_wo_b"],
        p["d_ln1_g"], p["d_ln1_b"],
        p["d_cq_w"], p["d_cq_b"], p["d_ckv_w"], p["d_ckv_b"],
        p["d_cwo_w"], p["d_cwo_b"], p["d_ln2_g"], p["d_ln2_b"],
        p["d_fc1_w"], p["d_fc1_b"], p["d_fc2_w"], p["d_fc2_b"],
        p["d_ln3_g"], p["d_ln3_b"],
    ]

    def kernel(henc_ref, hdec_ref, causal_ref,
               enc_lne_g, enc_lne_b, dec_lne_g, dec_lne_b,
               e_qkv_w, e_qkv_b, e_wo_w, e_wo_b, e_ln1_g, e_ln1_b,
               e_fc1_w, e_fc1_b, e_fc2_w, e_fc2_b, e_ln2_g, e_ln2_b,
               d_qkv_w, d_qkv_b, d_wo_w, d_wo_b, d_ln1_g, d_ln1_b,
               d_cq_w, d_cq_b, d_ckv_w, d_ckv_b, d_cwo_w, d_cwo_b,
               d_ln2_g, d_ln2_b,
               d_fc1_w, d_fc1_b, d_fc2_w, d_fc2_b, d_ln3_g, d_ln3_b,
               out_ref, attn_scr):

        causal = causal_ref[...]
        zero_mask = jnp.zeros_like(causal)
        scale = 1.0 / math.sqrt(HEAD_DIM)

        def layer_norm(x, g, b):
            mu = jnp.mean(x, axis=-1, keepdims=True)
            var = jnp.mean(jnp.square(x - mu), axis=-1, keepdims=True)
            return (x - mu) * jax.lax.rsqrt(var + EPS) * g + b

        def mha(q, k, v, mask):
            # q, k, v: [B*S, H] values.  Per (batch, head) attention with static
            # slices; avoids materializing K^T (dot_general contracts last axes).
            for b in range(B):
                rows = slice(b * S, (b + 1) * S)
                for h in range(NUM_HEADS):
                    cols = slice(h * HEAD_DIM, (h + 1) * HEAD_DIM)
                    qh = q[rows, cols]
                    kh = k[rows, cols]
                    vh = v[rows, cols]
                    s = jax.lax.dot_general(
                        qh, kh, (((1,), (1,)), ((), ())),
                        preferred_element_type=jnp.float32) * scale + mask
                    s = s - jnp.max(s, axis=-1, keepdims=True)
                    pexp = jnp.exp(s)
                    pexp = pexp * pl.reciprocal(
                        jnp.sum(pexp, axis=-1, keepdims=True), approx=False)
                    attn_scr[rows, cols] = jnp.dot(
                        pexp, vh, preferred_element_type=jnp.float32)
            return attn_scr[...]

        def self_attn_block(h, qkv_w, qkv_b, wo_w, wo_b, ln_g, ln_b, mask):
            qkv = jnp.dot(h, qkv_w, preferred_element_type=jnp.float32) + qkv_b
            q = qkv[:, :HIDDEN]
            k = qkv[:, HIDDEN:2 * HIDDEN]
            v = qkv[:, 2 * HIDDEN:]
            a = mha(q, k, v, mask)
            a = jnp.dot(a, wo_w, preferred_element_type=jnp.float32) + wo_b
            return layer_norm(h + a, ln_g, ln_b)

        def ffn_block(h, fc1_w, fc1_b, fc2_w, fc2_b, ln_g, ln_b):
            f = jnp.dot(h, fc1_w, preferred_element_type=jnp.float32) + fc1_b
            # TODO(synk): HF BART uses exact (erf) GELU; tanh approximation used here.
            f = jax.nn.gelu(f, approximate=True)
            f = jnp.dot(f, fc2_w, preferred_element_type=jnp.float32) + fc2_b
            return layer_norm(h + f, ln_g, ln_b)

        # ---------------- encoder ----------------
        h = layer_norm(henc_ref[...], enc_lne_g[...], enc_lne_b[...])
        for l in range(N_ENC_LAYERS):
            h = self_attn_block(h, e_qkv_w[l], e_qkv_b[l], e_wo_w[l], e_wo_b[l],
                                e_ln1_g[l], e_ln1_b[l], zero_mask)
            h = ffn_block(h, e_fc1_w[l], e_fc1_b[l], e_fc2_w[l], e_fc2_b[l],
                          e_ln2_g[l], e_ln2_b[l])
        enc_out = h

        # ---------------- decoder ----------------
        hd = layer_norm(hdec_ref[...], dec_lne_g[...], dec_lne_b[...])
        for l in range(N_DEC_LAYERS):
            hd = self_attn_block(hd, d_qkv_w[l], d_qkv_b[l], d_wo_w[l], d_wo_b[l],
                                 d_ln1_g[l], d_ln1_b[l], causal)
            # cross-attention (K/V from encoder output, fused KV projection)
            q = jnp.dot(hd, d_cq_w[l], preferred_element_type=jnp.float32) + d_cq_b[l]
            kv = jnp.dot(enc_out, d_ckv_w[l],
                         preferred_element_type=jnp.float32) + d_ckv_b[l]
            k = kv[:, :HIDDEN]
            v = kv[:, HIDDEN:]
            c = mha(q, k, v, zero_mask)
            c = jnp.dot(c, d_cwo_w[l], preferred_element_type=jnp.float32) + d_cwo_b[l]
            hd = layer_norm(hd + c, d_ln2_g[l], d_ln2_b[l])
            hd = ffn_block(hd, d_fc1_w[l], d_fc1_b[l], d_fc2_w[l], d_fc2_b[l],
                           d_ln3_g[l], d_ln3_b[l])

        out_ref[...] = hd

    return pl.pallas_call(
        kernel,
        out_shape=jax.ShapeDtypeStruct((BS, H), jnp.float32),
        scratch_shapes=[pltpu.VMEM((BS, H), jnp.float32)],
    )(h_enc, h_dec, causal, *weights)


# =====================  tiled LM-head kernel (vocab axis)  ========================

def _lm_head_kernel(x_ref, w_ref, b_ref, o_ref):
    o_ref[...] = (
        jnp.dot(x_ref[...].astype(jnp.bfloat16), w_ref[...],
                preferred_element_type=jnp.float32)
        + b_ref[...]
    )


def lm_head(x, w_bf16, bias):
    """x: [M, H] f32, w_bf16: [H, VOCAB_PAD] bf16, bias: [1, VOCAB_PAD] f32."""
    M, K = x.shape
    Npad = w_bf16.shape[1]
    grid = (Npad // LM_TILE,)
    return pl.pallas_call(
        _lm_head_kernel,
        out_shape=jax.ShapeDtypeStruct((M, Npad), jnp.float32),
        grid=grid,
        in_specs=[
            pl.BlockSpec((M, K), lambda j: (0, 0)),
            pl.BlockSpec((K, LM_TILE), lambda j: (0, j)),
            pl.BlockSpec((1, LM_TILE), lambda j: (0, j)),
        ],
        out_specs=pl.BlockSpec((M, LM_TILE), lambda j: (0, j)),
        compiler_params=pltpu.CompilerParams(
            dimension_semantics=("parallel",)),
    )(x, w_bf16, bias)


# =====================  BART forward (FastaiWrapper.forward)  =====================

def bart_forward(params, input_ids):
    """Equivalent of FastaiWrapper.forward: returns LM logits [B, S, VOCAB]."""
    B, S = input_ids.shape

    # decoder_input_ids = shift_tokens_right(input_ids)
    # TODO(synk): synthetic shift (last token to position 0) rather than BART's
    #             decoder_start_token_id behaviour (no pad/eos tokens here).
    dec_ids = jnp.concatenate([input_ids[:, -1:], input_ids[:, :-1]], axis=1)

    pos = jnp.arange(S) + 2  # BART learned-positional-embedding offset

    # embedding gathers + positional add stay in plain JAX (gather has no clean
    # Pallas equivalent at this vocab size).
    h_enc = (jnp.take(params["emb"], input_ids, axis=0)
             + params["enc_pos"][pos][None]).reshape(B * S, HIDDEN)
    h_dec = (jnp.take(params["emb"], dec_ids, axis=0)
             + params["dec_pos"][pos][None]).reshape(B * S, HIDDEN)

    causal = jnp.where(
        jnp.arange(S)[:, None] >= jnp.arange(S)[None, :], 0.0, -1e9
    ).astype(jnp.float32)

    # one fused kernel for the whole encoder-decoder body
    hd = fused_transformer_body(h_enc, h_dec, causal, params)

    # tied LM head, tiled over the (padded) vocab axis, bf16 weight stream
    logits_pad = lm_head(hd, params["lm_head_w"], params["final_logits_bias"])
    return logits_pad[:, :VOCAB].reshape(B, S, VOCAB)


# =====================  deterministic init  ========================================

def init_params(key):
    keys = iter(jax.random.split(key, 64))

    def nrm(shape):
        return 0.02 * jax.random.normal(next(keys), shape, dtype=jnp.float32)

    def ones(shape):
        return jnp.ones(shape, jnp.float32)

    def zeros(shape):
        return jnp.zeros(shape, jnp.float32)

    Le, Ld = N_ENC_LAYERS, N_DEC_LAYERS
    emb = nrm((VOCAB, HIDDEN))
    # tied LM head, zero-padded to VOCAB_PAD and stored bf16 for halved HBM traffic
    lm_w = jnp.zeros((HIDDEN, VOCAB_PAD), jnp.float32).at[:, :VOCAB].set(emb.T)

    return {
        "emb": emb,
        "lm_head_w": lm_w.astype(jnp.bfloat16),
        "final_logits_bias": zeros((1, VOCAB_PAD)),
        "enc_pos": nrm((MAX_POS, HIDDEN)),
        "dec_pos": nrm((MAX_POS, HIDDEN)),
        "enc_ln_emb_g": ones((1, HIDDEN)), "enc_ln_emb_b": zeros((1, HIDDEN)),
        "dec_ln_emb_g": ones((1, HIDDEN)), "dec_ln_emb_b": zeros((1, HIDDEN)),
        # ---------------- encoder layer stacks ----------------
        "e_qkv_w": nrm((Le, HIDDEN, 3 * HIDDEN)),
        "e_qkv_b": zeros((Le, 1, 3 * HIDDEN)),
        "e_wo_w": nrm((Le, HIDDEN, HIDDEN)), "e_wo_b": zeros((Le, 1, HIDDEN)),
        "e_ln1_g": ones((Le, 1, HIDDEN)), "e_ln1_b": zeros((Le, 1, HIDDEN)),
        "e_fc1_w": nrm((Le, HIDDEN, FFN)), "e_fc1_b": zeros((Le, 1, FFN)),
        "e_fc2_w": nrm((Le, FFN, HIDDEN)), "e_fc2_b": zeros((Le, 1, HIDDEN)),
        "e_ln2_g": ones((Le, 1, HIDDEN)), "e_ln2_b": zeros((Le, 1, HIDDEN)),
        # ---------------- decoder layer stacks ----------------
        "d_qkv_w": nrm((Ld, HIDDEN, 3 * HIDDEN)),
        "d_qkv_b": zeros((Ld, 1, 3 * HIDDEN)),
        "d_wo_w": nrm((Ld, HIDDEN, HIDDEN)), "d_wo_b": zeros((Ld, 1, HIDDEN)),
        "d_ln1_g": ones((Ld, 1, HIDDEN)), "d_ln1_b": zeros((Ld, 1, HIDDEN)),
        "d_cq_w": nrm((Ld, HIDDEN, HIDDEN)), "d_cq_b": zeros((Ld, 1, HIDDEN)),
        "d_ckv_w": nrm((Ld, HIDDEN, 2 * HIDDEN)),
        "d_ckv_b": zeros((Ld, 1, 2 * HIDDEN)),
        "d_cwo_w": nrm((Ld, HIDDEN, HIDDEN)), "d_cwo_b": zeros((Ld, 1, HIDDEN)),
        "d_ln2_g": ones((Ld, 1, HIDDEN)), "d_ln2_b": zeros((Ld, 1, HIDDEN)),
        "d_fc1_w": nrm((Ld, HIDDEN, FFN)), "d_fc1_b": zeros((Ld, 1, FFN)),
        "d_fc2_w": nrm((Ld, FFN, HIDDEN)), "d_fc2_b": zeros((Ld, 1, HIDDEN)),
        "d_ln3_g": ones((Ld, 1, HIDDEN)), "d_ln3_b": zeros((Ld, 1, HIDDEN)),
    }


# =====================  main  ======================================================

if __name__ == "__main__":
    key = jax.random.PRNGKey(0)
    pkey, xkey = jax.random.split(key)

    params = init_params(pkey)

    B, S = 2, 8
    x = jax.random.randint(xkey, (B, S), 0, VOCAB, dtype=jnp.int32)

    fwd = jax.jit(bart_forward)
    logits = jax.block_until_ready(fwd(params, x))

    assert logits.shape == (B, S, VOCAB), logits.shape
    assert logits.dtype == jnp.float32
    assert bool(jnp.isfinite(logits).all())

    print("KERNEL_OK")
</pallas_src>

<mosaic_0001>
module attributes {stable_mosaic.version = 11 : i64} {
  func.func @_lm_head_kernel(%arg0: i32, %arg1: memref<16x32xf32, #tpu.memory_space<vmem>>, %arg2: memref<32x2048xbf16, #tpu.memory_space<vmem>>, %arg3: memref<1x2048xf32, #tpu.memory_space<vmem>>, %arg4: memref<16x2048xf32, #tpu.memory_space<vmem>>) attributes {dimension_semantics = [#tpu.dimension_semantics<parallel>], iteration_bounds = array<i64: 25>, scalar_prefetch = 0 : i64, scratch_operands = 0 : i64, tpu.core_type = #tpu.core_type<tc>, window_params = [{pipeline_mode = #tpu.pipeline_mode<synchronous>, transform_indices = @transform_0, window_bounds = array<i64: 16, 32>}, {transform_indices = @transform_1, window_bounds = array<i64: 32, 2048>}, {transform_indices = @transform_2, window_bounds = array<i64: 1, 2048>}, {transform_indices = @transform_3, window_bounds = array<i64: 16, 2048>}]} {
    %c0 = arith.constant 0 : index
    %c0_0 = arith.constant 0 : index
    %0 = vector.load %arg1[%c0, %c0_0] : memref<16x32xf32, #tpu.memory_space<vmem>>, vector<16x32xf32>
    %1 = arith.truncf %0 : vector<16x32xf32> to vector<16x32xbf16>
    %c0_1 = arith.constant 0 : index
    %c0_2 = arith.constant 0 : index
    %2 = vector.load %arg2[%c0_1, %c0_2] : memref<32x2048xbf16, #tpu.memory_space<vmem>>, vector<32x2048xbf16>
    %cst = arith.constant dense<0.000000e+00> : vector<16x2048xf32>
    %3 = tpu.matmul %1, %2, %cst {dimension_numbers = #tpu.dot_dimension_numbers<[1], [0], [0], [1], [0, 0, 1, 1], [], []>} : vector<16x32xbf16>, vector<32x2048xbf16>, vector<16x2048xf32> -> vector<16x2048xf32>
    %c0_3 = arith.constant 0 : index
    %c0_4 = arith.constant 0 : index
    %4 = vector.load %arg3[%c0_3, %c0_4] : memref<1x2048xf32, #tpu.memory_space<vmem>>, vector<1x2048xf32>
    %5 = vector.broadcast %4 : vector<1x2048xf32> to vector<16x2048xf32>
    %6 = arith.addf %3, %5 : vector<16x2048xf32>
    %c0_5 = arith.constant 0 : index
    %c0_6 = arith.constant 0 : index
    %7 = vector.load %arg4[%c0_5, %c0_6] : memref<16x2048xf32, #tpu.memory_space<vmem>>, vector<16x2048xf32>
    tpu.vector_store %arg4[%c0_5, %c0_6], %6 {strides = array<i32>} : memref<16x2048xf32, #tpu.memory_space<vmem>>, vector<16x2048xf32>,
    return
  }
  func.func @transform_0(%arg0: i32) -> (i32, i32) {
    %c0_i32 = arith.constant 0 : i32
    %c0_i32_0 = arith.constant 0 : i32
    %c0_i32_1 = arith.constant 0 : i32
    return %c0_i32, %c0_i32_0 : i32, i32
  }
  func.func @transform_1(%arg0: i32) -> (i32, i32) {
    %c0_i32 = arith.constant 0 : i32
    %c0_i32_0 = arith.constant 0 : i32
    return %c0_i32, %arg0 : i32, i32
  }
  func.func @transform_2(%arg0: i32) -> (i32, i32) {
    %c0_i32 = arith.constant 0 : i32
    %c0_i32_0 = arith.constant 0 : i32
    return %c0_i32, %arg0 : i32, i32
  }
  func.func @transform_3(%arg0: i32) -> (i32, i32) {
    %c0_i32 = arith.constant 0 : i32
    %c0_i32_0 = arith.constant 0 : i32
    return %c0_i32, %arg0 : i32, i32
  }
}

module attributes {stable_mosaic.version = 11 : i64} {
  func.func @kernel(%arg0: memref<16x32xf32, #tpu.memory_space<vmem>>, %arg1: memref<16x32xf32, #tpu.memory_space<vmem>>, %arg2: memref<8x8xf32, #tpu.memory_space<vmem>>, %arg3: memref<1x32xf32, #tpu.memory_space<vmem>>, %arg4: memref<1x32xf32, #tpu.memory_space<vmem>>, %arg5: memref<1x32xf32, #tpu.memory_space<vmem>>, %arg6: memref<1x32xf32, #tpu.memory_space<vmem>>, %arg7: memref<2x32x96xf32, #tpu.memory_space<vmem>>, %arg8: memref<2x1x96xf32, #tpu.memory_space<vmem>>, %arg9: memref<2x32x32xf32, #tpu.memory_space<vmem>>, %arg10: memref<2x1x32xf32, #tpu.memory_space<vmem>>, %arg11: memref<2x1x32xf32, #tpu.memory_space<vmem>>, %arg12: memref<2x1x32xf32, #tpu.memory_space<vmem>>, %arg13: memref<2x32x64xf32, #tpu.memory_space<vmem>>, %arg14: memref<2x1x64xf32, #tpu.memory_space<vmem>>, %arg15: memref<2x64x32xf32, #tpu.memory_space<vmem>>, %arg16: memref<2x1x32xf32, #tpu.memory_space<vmem>>, %arg17: memref<2x1x32xf32, #tpu.memory_space<vmem>>, %arg18: memref<2x1x32xf32, #tpu.memory_space<vmem>>, %arg19: memref<2x32x96xf32, #tpu.memory_space<vmem>>, %arg20: memref<2x1x96xf32, #tpu.memory_space<vmem>>, %arg21: memref<2x32x32xf32, #tpu.memory_space<vmem>>, %arg22: memref<2x1x32xf32, #tpu.memory_space<vmem>>, %arg23: memref<2x1x32xf32, #tpu.memory_space<vmem>>, %arg24: memref<2x1x32xf32, #tpu.memory_space<vmem>>, %arg25: memref<2x32x32xf32, #tpu.memory_space<vmem>>, %arg26: memref<2x1x32xf32, #tpu.memory_space<vmem>>, %arg27: memref<2x32x64xf32, #tpu.memory_space<vmem>>, %arg28: memref<2x1x64xf32, #tpu.memory_space<vmem>>, %arg29: memref<2x32x32xf32, #tpu.memory_space<vmem>>, %arg30: memref<2x1x32xf32, #tpu.memory_space<vmem>>, %arg31: memref<2x1x32xf32, #tpu.memory_space<vmem>>, %arg32: memref<2x1x32xf32, #tpu.memory_space<vmem>>, %arg33: memref<2x32x64xf32, #tpu.memory_space<vmem>>, %arg34: memref<2x1x64xf32, #tpu.memory_space<vmem>>, %arg35: memref<2x64x32xf32, #tpu.memory_space<vmem>>, %arg36: memref<2x1x32xf32, #tpu.memory_space<vmem>>, %arg37: memref<2x1x32xf32, #tpu.memory_space<vmem>>, %arg38: memref<2x1x32xf32, #tpu.memory_space<vmem>>, %arg39: memref<16x32xf32, #tpu.memory_space<vmem>>, %arg40: memref<16x32xf32, #tpu.memory_space<vmem>>) attributes {dimension_semantics = [], scalar_prefetch = 0 : i64, scratch_operands = 1 : i64, tpu.core_type = #tpu.core_type<tc>} {
    %c0 = arith.constant 0 : index
    %c0_0 = arith.constant 0 : index
    %0 = vector.load %arg2[%c0, %c0_0] : memref<8x8xf32, #tpu.memory_space<vmem>>, vector<8x8xf32>
    %cst = arith.constant 0.000000e+00 : f32
    %1 = vector.broadcast %cst : f32 to vector<8x8xf32>
    %c0_1 = arith.constant 0 : index
    %c0_2 = arith.constant 0 : index
    %2 = vector.load %arg0[%c0_1, %c0_2] : memref<16x32xf32, #tpu.memory_space<vmem>>, vector<16x32xf32>
    %c0_3 = arith.constant 0 : index
    %c0_4 = arith.constant 0 : index
    %3 = vector.load %arg3[%c0_3, %c0_4] : memref<1x32xf32, #tpu.memory_space<vmem>>, vector<1x32xf32>
    %c0_5 = arith.constant 0 : index
    %c0_6 = arith.constant 0 : index
    %4 = vector.load %arg4[%c0_5, %c0_6] : memref<1x32xf32, #tpu.memory_space<vmem>>, vector<1x32xf32>
    %cst_7 = arith.constant dense<0.000000e+00> : vector<16xf32>
    %5 = vector.multi_reduction <add>, %2, %cst_7 [1] : vector<16x32xf32> to vector<16xf32>
    %6 = vector.shape_cast %5 : vector<16xf32> to vector<16x1xf32>
    %cst_8 = arith.constant 3.200000e+01 : f32
    %7 = vector.broadcast %cst_8 : f32 to vector<16x1xf32>
    %8 = arith.divf %6, %7 : vector<16x1xf32>
    %9 = vector.broadcast %8 : vector<16x1xf32> to vector<16x32xf32>
    %10 = arith.subf %2, %9 : vector<16x32xf32>
    %11 = arith.mulf %10, %10 : vector<16x32xf32>
    %cst_9 = arith.constant dense<0.000000e+00> : vector<16xf32>
    %12 = vector.multi_reduction <add>, %11, %cst_9 [1] : vector<16x32xf32> to vector<16xf32>
    %13 = vector.shape_cast %12 : vector<16xf32> to vector<16x1xf32>
    %cst_10 = arith.constant 3.200000e+01 : f32
    %14 = vector.broadcast %cst_10 : f32 to vector<16x1xf32>
    %15 = arith.divf %13, %14 : vector<16x1xf32>
    %16 = vector.broadcast %8 : vector<16x1xf32> to vector<16x32xf32>
    %17 = arith.subf %2, %16 : vector<16x32xf32>
    %cst_11 = arith.constant 9.99999974E-6 : f32
    %18 = vector.broadcast %cst_11 : f32 to vector<16x1xf32>
    %19 = arith.addf %15, %18 : vector<16x1xf32>
    %20 = math.rsqrt %19 : vector<16x1xf32>
    %21 = vector.broadcast %20 : vector<16x1xf32> to vector<16x32xf32>
    %22 = arith.mulf %17, %21 : vector<16x32xf32>
    %23 = vector.broadcast %3 : vector<1x32xf32> to vector<16x32xf32>
    %24 = arith.mulf %22, %23 : vector<16x32xf32>
    %25 = vector.broadcast %4 : vector<1x32xf32> to vector<16x32xf32>
    %26 = arith.addf %24, %25 : vector<16x32xf32>
    %c0_12 = arith.constant 0 : index
    %c0_13 = arith.constant 0 : index
    %c0_14 = arith.constant 0 : index
    %27 = vector.load %arg7[%c0_12, %c0_13, %c0_14] : memref<2x32x96xf32, #tpu.memory_space<vmem>>, vector<1x32x96xf32>
    %28 = vector.shape_cast %27 : vector<1x32x96xf32> to vector<32x96xf32>
    %c0_15 = arith.constant 0 : index
    %c0_16 = arith.constant 0 : index
    %c0_17 = arith.constant 0 : index
    %29 = vector.load %arg8[%c0_15, %c0_16, %c0_17] : memref<2x1x96xf32, #tpu.memory_space<vmem>>, vector<1x1x96xf32>
    %30 = vector.shape_cast %29 : vector<1x1x96xf32> to vector<1x96xf32>
    %c0_18 = arith.constant 0 : index
    %c0_19 = arith.constant 0 : index
    %c0_20 = arith.constant 0 : index
    %31 = vector.load %arg9[%c0_18, %c0_19, %c0_20] : memref<2x32x32xf32, #tpu.memory_space<vmem>>, vector<1x32x32xf32>
    %32 = vector.shape_cast %31 : vector<1x32x32xf32> to vector<32x32xf32>
    %c0_21 = arith.constant 0 : index
    %c0_22 = arith.constant 0 : index
    %c0_23 = arith.constant 0 : index
    %33 = vector.load %arg10[%c0_21, %c0_22, %c0_23] : memref<2x1x32xf32, #tpu.memory_space<vmem>>, vector<1x1x32xf32>
    %34 = vector.shape_cast %33 : vector<1x1x32xf32> to vector<1x32xf32>
    %c0_24 = arith.constant 0 : index
    %c0_25 = arith.constant 0 : index
    %c0_26 = arith.constant 0 : index
    %35 = vector.load %arg11[%c0_24, %c0_25, %c0_26] : memref<2x1x32xf32, #tpu.memory_space<vmem>>, vector<1x1x32xf32>
    %36 = vector.shape_cast %35 : vector<1x1x32xf32> to vector<1x32xf32>
    %c0_27 = arith.constant 0 : index
    %c0_28 = arith.constant 0 : index
    %c0_29 = arith.constant 0 : index
    %37 = vector.load %arg12[%c0_27, %c0_28, %c0_29] : memref<2x1x32xf32, #tpu.memory_space<vmem>>, vector<1x1x32xf32>
    %38 = vector.shape_cast %37 : vector<1x1x32xf32> to vector<1x32xf32>
    %cst_30 = arith.constant dense<0.000000e+00> : vector<16x96xf32>
    %39 = tpu.matmul %26, %28, %cst_30 {dimension_numbers = #tpu.dot_dimension_numbers<[1], [0], [0], [1], [0, 0, 1, 1], [], []>} : vector<16x32xf32>, vector<32x96xf32>, vector<16x96xf32> -> vector<16x96xf32>
    %40 = vector.broadcast %30 : vector<1x96xf32> to vector<16x96xf32>
    %41 = arith.addf %39, %40 : vector<16x96xf32>
    %42 = vector.extract_strided_slice %41 {offsets = [0, 0], sizes = [16, 32], strides = [1, 1]} : vector<16x96xf32> to vector<16x32xf32>
    %43 = vector.extract_strided_slice %41 {offsets = [0, 32], sizes = [16, 32], strides = [1, 1]} : vector<16x96xf32> to vector<16x32xf32>
    %44 = vector.extract_strided_slice %41 {offsets = [0, 64], sizes = [16, 32], strides = [1, 1]} : vector<16x96xf32> to vector<16x32xf32>
    %45 = vector.extract_strided_slice %42 {offsets = [0, 0], sizes = [8, 8], strides = [1, 1]} : vector<16x32xf32> to vector<8x8xf32>
    %46 = vector.extract_strided_slice %43 {offsets = [0, 0], sizes = [8, 8], strides = [1, 1]} : vector<16x32xf32> to vector<8x8xf32>
    %47 = vector.extract_strided_slice %44 {offsets = [0, 0], sizes = [8, 8], strides = [1, 1]} : vector<16x32xf32> to vector<8x8xf32>
    %cst_31 = arith.constant dense<0.000000e+00> : vector<8x8xf32>
    %48 = tpu.matmul %45, %46, %cst_31 {dimension_numbers = #tpu.dot_dimension_numbers<[1], [1], [0], [0], [0, 0, 1, 0], [], []>} : vector<8x8xf32>, vector<8x8xf32>, vector<8x8xf32> -> vector<8x8xf32>
    %cst_32 = arith.constant 0.353553385 : f32
    %49 = vector.broadcast %cst_32 : f32 to vector<8x8xf32>
    %50 = arith.mulf %48, %49 : vector<8x8xf32>
    %51 = arith.addf %50, %1 : vector<8x8xf32>
    %cst_33 = arith.constant dense<0xFF800000> : vector<8xf32>
    %52 = vector.multi_reduction <maximumf>, %51, %cst_33 [1] : vector<8x8xf32> to vector<8xf32>
    %53 = vector.shape_cast %52 : vector<8xf32> to vector<8x1xf32>
    %54 = vector.broadcast %53 : vector<8x1xf32> to vector<8x8xf32>
    %55 = arith.subf %51, %54 : vector<8x8xf32>
    %56 = math.exp %55 : vector<8x8xf32>
    %cst_34 = arith.constant dense<0.000000e+00> : vector<8xf32>
    %57 = vector.multi_reduction <add>, %56, %cst_34 [1] : vector<8x8xf32> to vector<8xf32>
    %58 = vector.shape_cast %57 : vector<8xf32> to vector<8x1xf32>
    %59 = tpu.reciprocal %58 : vector<8x1xf32> -> vector<8x1xf32>
    %60 = vector.broadcast %59 : vector<8x1xf32> to vector<8x8xf32>
    %61 = arith.mulf %56, %60 : vector<8x8xf32>
    %cst_35 = arith.constant dense<0.000000e+00> : vector<8x8xf32>
    %62 = tpu.matmul %61, %47, %cst_35 {dimension_numbers = #tpu.dot_dimension_numbers<[1], [0], [0], [1], [0, 0, 1, 1], [], []>} : vector<8x8xf32>, vector<8x8xf32>, vector<8x8xf32> -> vector<8x8xf32>
    %c0_36 = arith.constant 0 : index
    %c0_37 = arith.constant 0 : index
    %63 = vector.load %arg40[%c0_36, %c0_37] : memref<16x32xf32, #tpu.memory_space<vmem>>, vector<8x8xf32>
    tpu.vector_store %arg40[%c0_36, %c0_37], %62 {strides = array<i32>} : memref<16x32xf32, #tpu.memory_space<vmem>>, vector<8x8xf32>,
    %64 = vector.extract_strided_slice %42 {offsets = [0, 8], sizes = [8, 8], strides = [1, 1]} : vector<16x32xf32> to vector<8x8xf32>
    %65 = vector.extract_strided_slice %43 {offsets = [0, 8], sizes = [8, 8], strides = [1, 1]} : vector<16x32xf32> to vector<8x8xf32>
    %66 = vector.extract_strided_slice %44 {offsets = [0, 8], sizes = [8, 8], strides = [1, 1]} : vector<16x32xf32> to vector<8x8xf32>
    %cst_38 = arith.constant dense<0.000000e+00> : vector<8x8xf32>
    %67 = tpu.matmul %64, %65, %cst_38 {dimension_numbers = #tpu.dot_dimension_numbers<[1], [1], [0], [0], [0, 0, 1, 0], [], []>} : vector<8x8xf32>, vector<8x8xf32>, vector<8x8xf32> -> vector<8x8xf32>
    %cst_39 = arith.constant 0.353553385 : f32
    %68 = vector.broadcast %cst_39 : f32 to vector<8x8xf32>
    %69 = arith.mulf %67, %68 : vector<8x8xf32>
    %70 = arith.addf %69, %1 : vector<8x8xf32>
    %cst_40 = arith.constant dense<0xFF800000> : vector<8xf32>
    %71 = vector.multi_reduction <maximumf>, %70, %cst_40 [1] : vector<8x8xf32> to vector<8xf32>
    %72 = vector.shape_cast %71 : vector<8xf32> to vector<8x1xf32>
    %73 = vector.broadcast %72 : vector<8x1xf32> to vector<8x8xf32>
    %74 = arith.subf %70, %73 : vector<8x8xf32>
    %75 = math.exp %74 : vector<8x8xf32>
    %cst_41 = arith.constant dense<0.000000e+00> : vector<8xf32>
    %76 = vector.multi_reduction <add>, %75, %cst_41 [1] : vector<8x8xf32> to vector<8xf32>
    %77 = vector.shape_cast %76 : vector<8xf32> to vector<8x1xf32>
    %78 = tpu.reciprocal %77 : vector<8x1xf32> -> vector<8x1xf32>
    %79 = vector.broadcast %78 : vector<8x1xf32> to vector<8x8xf32>
    %80 = arith.mulf %75, %79 : vector<8x8xf32>
    %cst_42 = arith.constant dense<0.000000e+00> : vector<8x8xf32>
    %81 = tpu.matmul %80, %66, %cst_42 {dimension_numbers = #tpu.dot_dimension_numbers<[1], [0], [0], [1], [0, 0, 1, 1], [], []>} : vector<8x8xf32>, vector<8x8xf32>, vector<8x8xf32> -> vector<8x8xf32>
    %c0_43 = arith.constant 0 : index
    %c8 = arith.constant 8 : index
    %82 = vector.load %arg40[%c0_43, %c8] : memref<16x32xf32, #tpu.memory_space<vmem>>, vector<8x8xf32>
    tpu.vector_store %arg40[%c0_43, %c8], %81 {strides = array<i32>} : memref<16x32xf32, #tpu.memory_space<vmem>>, vector<8x8xf32>,
    %83 = vector.extract_strided_slice %42 {offsets = [0, 16], sizes = [8, 8], strides = [1, 1]} : vector<16x32xf32> to vector<8x8xf32>
    %84 = vector.extract_strided_slice %43 {offsets = [0, 16], sizes = [8, 8], strides = [1, 1]} : vector<16x32xf32> to vector<8x8xf32>
    %85 = vector.extract_strided_slice %44 {offsets = [0, 16], sizes = [8, 8], strides = [1, 1]} : vector<16x32xf32> to vector<8x8xf32>
    %cst_44 = arith.constant dense<0.000000e+00> : vector<8x8xf32>
    %86 = tpu.matmul %83, %84, %cst_44 {dimension_numbers = #tpu.dot_dimension_numbers<[1], [1], [0], [0], [0, 0, 1, 0], [], []>} : vector<8x8xf32>, vector<8x8xf32>, vector<8x8xf32> -> vector<8x8xf32>
    %cst_45 = arith.constant 0.353553385 : f32
    %87 = vector.broadcast %cst_45 : f32 to vector<8x8xf32>
    %88 = arith.mulf %86, %87 : vector<8x8xf32>
    %89 = arith.addf %88, %1 : vector<8x8xf32>
    %cst_46 = arith.constant dense<0xFF800000> : vector<8xf32>
    %90 = vector.multi_reduction <maximumf>, %89, %cst_46 [1] : vector<8x8xf32> to vector<8xf32>
    %91 = vector.shape_cast %90 : vector<8xf32> to vector<8x1xf32>
    %92 = vector.broadcast %91 : vector<8x1xf32> to vector<8x8xf32>
    %93 = arith.subf %89, %92 : vector<8x8xf32>
    %94 = math.exp %93 : vector<8x8xf32>
    %cst_47 = arith.constant dense<0.000000e+00> : vector<8xf32>
    %95 = vector.multi_reduction <add>, %94, %cst_47 [1] : vector<8x8xf32> to vector<8xf32>
    %96 = vector.shape_cast %95 : vector<8xf32> to vector<8x1xf32>
    %97 = tpu.reciprocal %96 : vector<8x1xf32> -> vector<8x1xf32>
    %98 = vector.broadcast %97 : vector<8x1xf32> to vector<8x8xf32>
    %99 = arith.mulf %94, %98 : vector<8x8xf32>
    %cst_48 = arith.constant dense<0.000000e+00> : vector<8x8xf32>
    %100 = tpu.matmul %99, %85, %cst_48 {dimension_numbers = #tpu.dot_dimension_numbers<[1], [0], [0], [1], [0, 0, 1, 1], [], []>} : vector<8x8xf32>, vector<8x8xf32>, vector<8x8xf32> -> vector<8x8xf32>
    %c0_49 = arith.constant 0 : index
    %c16 = arith.constant 16 : index
    %101 = vector.load %arg40[%c0_49, %c16] : memref<16x32xf32, #tpu.memory_space<vmem>>, vector<8x8xf32>
    tpu.vector_store %arg40[%c0_49, %c16], %100 {strides = array<i32>} : memref<16x32xf32, #tpu.memory_space<vmem>>, vector<8x8xf32>,
    %102 = vector.extract_strided_slice %42 {offsets = [0, 24], sizes = [8, 8], strides = [1, 1]} : vector<16x32xf32> to vector<8x8xf32>
    %103 = vector.extract_strided_slice %43 {offsets = [0, 24], sizes = [8, 8], strides = [1, 1]} : vector<16x32xf32> to vector<8x8xf32>
    %104 = vector.extract_strided_slice %44 {offsets = [0, 24], sizes = [8, 8], strides = [1, 1]} : vector<16x32xf32> to vector<8x8xf32>
    %cst_50 = arith.constant dense<0.000000e+00> : vector<8x8xf32>
    %105 = tpu.matmul %102, %103, %cst_50 {dimension_numbers = #tpu.dot_dimension_numbers<[1], [1], [0], [0], [0, 0, 1, 0], [], []>} : vector<8x8xf32>, vector<8x8xf32>, vector<8x8xf32> -> vector<8x8xf32>
    %cst_51 = arith.constant 0.353553385 : f32
    %106 = vector.broadcast %cst_51 : f32 to vector<8x8xf32>
    %107 = arith.mulf %105, %106 : vector<8x8xf32>
    %108 = arith.addf %107, %1 : vector<8x8xf32>
    %cst_52 = arith.constant dense<0xFF800000> : vector<8xf32>
    %109 = vector.multi_reduction <maximumf>, %108, %cst_52 [1] : vector<8x8xf32> to vector<8xf32>
    %110 = vector.shape_cast %109 : vector<8xf32> to vector<8x1xf32>
    %111 = vector.broadcast %110 : vector<8x1xf32> to vector<8x8xf32>
    %112 = arith.subf %108, %111 : vector<8x8xf32>
    %113 = math.exp %112 : vector<8x8xf32>
    %cst_53 = arith.constant dense<0.000000e+00> : vector<8xf32>
    %114 = vector.multi_reduction <add>, %113, %cst_53 [1] : vector<8x8xf32> to vector<8xf32>
    %115 = vector.shape_cast %114 : vector<8xf32> to vector<8x1xf32>
    %116 = tpu.reciprocal %115 : vector<8x1xf32> -> vector<8x1xf32>
    %117 = vector.broadcast %116 : vector<8x1xf32> to vector<8x8xf32>
    %118 = arith.mulf %113, %117 : vector<8x8xf32>
    %cst_54 = arith.constant dense<0.000000e+00> : vector<8x8xf32>
    %119 = tpu.matmul %118, %104, %cst_54 {dimension_numbers = #tpu.dot_dimension_numbers<[1], [0], [0], [1], [0, 0, 1, 1], [], []>} : vector<8x8xf32>, vector<8x8xf32>, vector<8x8xf32> -> vector<8x8xf32>
    %c0_55 = arith.constant 0 : index
    %c24 = arith.constant 24 : index
    %120 = vector.load %arg40[%c0_55, %c24] : memref<16x32xf32, #tpu.memory_space<vmem>>, vector<8x8xf32>
    tpu.vector_store %arg40[%c0_55, %c24], %119 {strides = array<i32>} : memref<16x32xf32, #tpu.memory_space<vmem>>, vector<8x8xf32>,
    %121 = vector.extract_strided_slice %42 {offsets = [8, 0], sizes = [8, 8], strides = [1, 1]} : vector<16x32xf32> to vector<8x8xf32>
    %122 = vector.extract_strided_slice %43 {offsets = [8, 0], sizes = [8, 8], strides = [1, 1]} : vector<16x32xf32> to vector<8x8xf32>
    %123 = vector.extract_strided_slice %44 {offsets = [8, 0], sizes = [8, 8], strides = [1, 1]} : vector<16x32xf32> to vector<8x8xf32>
    %cst_56 = arith.constant dense<0.000000e+00> : vector<8x8xf32>
    %124 = tpu.matmul %121, %122, %cst_56 {dimension_numbers = #tpu.dot_dimension_numbers<[1], [1], [0], [0], [0, 0, 1, 0], [], []>} : vector<8x8xf32>, vector<8x8xf32>, vector<8x8xf32> -> vector<8x8xf32>
    %cst_57 = arith.constant 0.353553385 : f32
    %125 = vector.broadcast %cst_57 : f32 to vector<8x8xf32>
    %126 = arith.mulf %124, %125 : vector<8x8xf32>
    %127 = arith.addf %126, %1 : vector<8x8xf32>
    %cst_58 = arith.constant dense<0xFF800000> : vector<8xf32>
    %128 = vector.multi_reduction <maximumf>, %127, %cst_58 [1] : vector<8x8xf32> to vector<8xf32>
    %129 = vector.shape_cast %128 : vector<8xf32> to vector<8x1xf32>
    %130 = vector.broadcast %129 : vector<8x1xf32> to vector<8x8xf32>
    %131 = arith.subf %127, %130 : vector<8x8xf32>
    %132 = math.exp %131 : vector<8x8xf32>
    %cst_59 = arith.constant dense<0.000000e+00> : vector<8xf32>
    %133 = vector.multi_reduction <add>, %132, %cst_59 [1] : vector<8x8xf32> to vector<8xf32>
    %134 = vector.shape_cast %133 : vector<8xf32> to vector<8x1xf32>
    %135 = tpu.reciprocal %134 : vector<8x1xf32> -> vector<8x1xf32>
    %136 = vector.broadcast %135 : vector<8x1xf32> to vector<8x8xf32>
    %137 = arith.mulf %132, %136 : vector<8x8xf32>
    %cst_60 = arith.constant dense<0.000000e+00> : vector<8x8xf32>
    %138 = tpu.matmul %137, %123, %cst_60 {dimension_numbers = #tpu.dot_dimension_numbers<[1], [0], [0], [1], [0, 0, 1, 1], [], []>} : vector<8x8xf32>, vector<8x8xf32>, vector<8x8xf32> -> vector<8x8xf32>
    %c8_61 = arith.constant 8 : index
    %c0_62 = arith.constant 0 : index
    %139 = vector.load %arg40[%c8_61, %c0_62] : memref<16x32xf32, #tpu.memory_space<vmem>>, vector<8x8xf32>
    tpu.vector_store %arg40[%c8_61, %c0_62], %138 {strides = array<i32>} : memref<16x32xf32, #tpu.memory_space<vmem>>, vector<8x8xf32>,
    %140 = vector.extract_strided_slice %42 {offsets = [8, 8], sizes = [8, 8], strides = [1, 1]} : vector<16x32xf32> to vector<8x8xf32>
    %141 = vector.extract_strided_slice %43 {offsets = [8, 8], sizes = [8, 8], strides = [1, 1]} : vector<16x32xf32> to vector<8x8xf32>
    %142 = vector.extract_strided_slice %44 {offsets = [8, 8], sizes = [8, 8], strides = [1, 1]} : vector<16x32xf32> to vector<8x8xf32>
    %cst_63 = arith.constant dense<0.000000e+00> : vector<8x8xf32>
    %143 = tpu.matmul %140, %141, %cst_63 {dimension_numbers = #tpu.dot_dimension_numbers<[1], [1], [0], [0], [0, 0, 1, 0], [], []>} : vector<8x8xf32>, vector<8x8xf32>, vector<8x8xf32> -> vector<8x8xf32>
    %cst_64 = arith.constant 0.353553385 : f32
    %144 = vector.broadcast %cst_64 : f32 to vector<8x8xf32>
    %145 = arith.mulf %143, %144 : vector<8x8xf32>
    %146 = arith.addf %145, %1 : vector<8x8xf32>
    %cst_65 = arith.constant dense<0xFF800000> : vector<8xf32>
    %147 = vector.multi_reduction <maximumf>, %146, %cst_65 [1] : vector<8x8xf32> to vector<8xf32>
    %148 = vector.shape_cast %147 : vector<8xf32> to vector<8x1xf32>
    %149 = vector.broadcast %148 : vector<8x1xf32> to vector<8x8xf32>
    %150 = arith.subf %146, %149 : vector<8x8xf32>
    %151 = math.exp %150 : vector<8x8xf32>
    %cst_66 = arith.constant dense<0.000000e+00> : vector<8xf32>
    %152 = vector.multi_reduction <add>, %151, %cst_66 [1] : vector<8x8xf32> to vector<8xf32>
    %153 = vector.shape_cast %152 : vector<8xf32> to vector<8x1xf32>
    %154 = tpu.reciprocal %153 : vector<8x1xf32> -> vector<8x1xf32>
    %155 = vector.broadcast %154 : vector<8x1xf32> to vector<8x8xf32>
    %156 = arith.mulf %151, %155 : vector<8x8xf32>
    %cst_67 = arith.constant dense<0.000000e+00> : vector<8x8xf32>
    %157 = tpu.matmul %156, %142, %cst_67 {dimension_numbers = #tpu.dot_dimension_numbers<[1], [0], [0], [1], [0, 0, 1, 1], [], []>} : vector<8x8xf32>, vector<8x8xf32>, vector<8x8xf32> -> vector<8x8xf32>
    %c8_68 = arith.constant 8 : index
    %c8_69 = arith.constant 8 : index
    %158 = vector.load %arg40[%c8_68, %c8_69] : memref<16x32xf32, #tpu.memory_space<vmem>>, vector<8x8xf32>
    tpu.vector_store %arg40[%c8_68, %c8_69], %157 {strides = array<i32>} : memref<16x32xf32, #tpu.memory_space<vmem>>, vector<8x8xf32>,
    %159 = vector.extract_strided_slice %42 {offsets = [8, 16], sizes = [8, 8], strides = [1, 1]} : vector<16x32xf32> to vector<8x8xf32>
    %160 = vector.extract_strided_slice %43 {offsets = [8, 16], sizes = [8, 8], strides = [1, 1]} : vector<16x32xf32> to vector<8x8xf32>
    %161 = vector.extract_strided_slice %44 {offsets = [8, 16], sizes = [8, 8], strides = [1, 1]} : vector<16x32xf32> to vector<8x8xf32>
    %cst_70 = arith.constant dense<0.000000e+00> : vector<8x8xf32>
    %162 = tpu.matmul %159, %160, %cst_70 {dimension_numbers = #tpu.dot_dimension_numbers<[1], [1], [0], [0], [0, 0, 1, 0], [], []>} : vector<8x8xf32>, vector<8x8xf32>, vector<8x8xf32> -> vector<8x8xf32>
    %cst_71 = arith.constant 0.353553385 : f32
    %163 = vector.broadcast %cst_71 : f32 to vector<8x8xf32>
    %164 = arith.mulf %162, %163 : vector<8x8xf32>
    %165 = arith.addf %164, %1 : vector<8x8xf32>
    %cst_72 = arith.constant dense<0xFF800000> : vector<8xf32>
    %166 = vector.multi_reduction <maximumf>, %165, %cst_72 [1] : vector<8x8xf32> to vector<8xf32>
    %167 = vector.shape_cast %166 : vector<8xf32> to vector<8x1xf32>
    %168 = vector.broadcast %167 : vector<8x1xf32> to vector<8x8xf32>
    %169 = arith.subf %165, %168 : vector<8x8xf32>
    %170 = math.exp %169 : vector<8x8xf32>
    %cst_73 = arith.constant dense<0.000000e+00> : vector<8xf32>
    %171 = vector.multi_reduction <add>, %170, %cst_73 [1] : vector<8x8xf32> to vector<8xf32>
    %172 = vector.shape_cast %171 : vector<8xf32> to vector<8x1xf32>
    %173 = tpu.reciprocal %172 : vector<8x1xf32> -> vector<8x1xf32>
    %174 = vector.broadcast %173 : vector<8x1xf32> to vector<8x8xf32>
    %175 = arith.mulf %170, %174 : vector<8x8xf32>
    %cst_74 = arith.constant dense<0.000000e+00> : vector<8x8xf32>
    %176 = tpu.matmul %175, %161, %cst_74 {dimension_numbers = #tpu.dot_dimension_numbers<[1], [0], [0], [1], [0, 0, 1, 1], [], []>} : vector<8x8xf32>, vector<8x8xf32>, vector<8x8xf32> -> vector<8x8xf32>
    %c8_75 = arith.constant 8 : index
    %c16_76 = arith.constant 16 : index
    %177 = vector.load %arg40[%c8_75, %c16_76] : memref<16x32xf32, #tpu.memory_space<vmem>>, vector<8x8xf32>
    tpu.vector_store %arg40[%c8_75, %c16_76], %176 {strides = array<i32>} : memref<16x32xf32, #tpu.memory_space<vmem>>, vector<8x8xf32>,
    %178 = vector.extract_strided_slice %42 {offsets = [8, 24], sizes = [8, 8], strides = [1, 1]} : vector<16x32xf32> to vector<8x8xf32>
    %179 = vector.extract_strided_slice %43 {offsets = [8, 24], sizes = [8, 8], strides = [1, 1]} : vector<16x32xf32> to vector<8x8xf32>
    %180 = vector.extract_strided_slice %44 {offsets = [8, 24], sizes = [8, 8], strides = [1, 1]} : vector<16x32xf32> to vector<8x8xf32>
    %cst_77 = arith.constant dense<0.000000e+00> : vector<8x8xf32>
    %181 = tpu.matmul %178, %179, %cst_77 {dimension_numbers = #tpu.dot_dimension_numbers<[1], [1], [0], [0], [0, 0, 1, 0], [], []>} : vector<8x8xf32>, vector<8x8xf32>, vector<8x8xf32> -> vector<8x8xf32>
    %cst_78 = arith.constant 0.353553385 : f32
    %182 = vector.broadcast %cst_78 : f32 to vector<8x8xf32>
    %183 = arith.mulf %181, %182 : vector<8x8xf32>
    %184 = arith.addf %183, %1 : vector<8x8xf32>
    %cst_79 = arith.constant dense<0xFF800000> : vector<8xf32>
    %185 = vector.multi_reduction <maximumf>, %184, %cst_79 [1] : vector<8x8xf32> to vector<8xf32>
    %186 = vector.shape_cast %185 : vector<8xf32> to vector<8x1xf32>
    %187 = vector.broadcast %186 : vector<8x1xf32> to vector<8x8xf32>
    %188 = arith.subf %184, %187 : vector<8x8xf32>
    %189 = math.exp %188 : vector<8x8xf32>
    %cst_80 = arith.constant dense<0.000000e+00> : vector<8xf32>
    %190 = vector.multi_reduction <add>, %189, %cst_80 [1] : vector<8x8xf32> to vector<8xf32>
    %191 = vector.shape_cast %190 : vector<8xf32> to vector<8x1xf32>
    %192 = tpu.reciprocal %191 : vector<8x1xf32> -> vector<8x1xf32>
    %193 = vector.broadcast %192 : vector<8x1xf32> to vector<8x8xf32>
    %194 = arith.mulf %189, %193 : vector<8x8xf32>
    %cst_81 = arith.constant dense<0.000000e+00> : vector<8x8xf32>
    %195 = tpu.matmul %194, %180, %cst_81 {dimension_numbers = #tpu.dot_dimension_numbers<[1], [0], [0], [1], [0, 0, 1, 1], [], []>} : vector<8x8xf32>, vector<8x8xf32>, vector<8x8xf32> -> vector<8x8xf32>
    %c8_82 = arith.constant 8 : index
    %c24_83 = arith.constant 24 : index
    %196 = vector.load %arg40[%c8_82, %c24_83] : memref<16x32xf32, #tpu.memory_space<vmem>>, vector<8x8xf32>
    tpu.vector_store %arg40[%c8_82, %c24_83], %195 {strides = array<i32>} : memref<16x32xf32, #tpu.memory_space<vmem>>, vector<8x8xf32>,
    %c0_84 = arith.constant 0 : index
    %c0_85 = arith.constant 0 : index
    %197 = vector.load %arg40[%c0_84, %c0_85] : memref<16x32xf32, #tpu.memory_space<vmem>>, vector<16x32xf32>
    %cst_86 = arith.constant dense<0.000000e+00> : vector<16x32xf32>
    %198 = tpu.matmul %197, %32, %cst_86 {dimension_numbers = #tpu.dot_dimension_numbers<[1], [0], [0], [1], [0, 0, 1, 1], [], []>} : vector<16x32xf32>, vector<32x32xf32>, vector<16x32xf32> -> vector<16x32xf32>
    %199 = vector.broadcast %34 : vector<1x32xf32> to vector<16x32xf32>
    %200 = arith.addf %198, %199 : vector<16x32xf32>
    %201 = arith.addf %26, %200 : vector<16x32xf32>
    %cst_87 = arith.constant dense<0.000000e+00> : vector<16xf32>
    %202 = vector.multi_reduction <add>, %201, %cst_87 [1] : vector<16x32xf32> to vector<16xf32>
    %203 = vector.shape_cast %202 : vector<16xf32> to vector<16x1xf32>
    %cst_88 = arith.constant 3.200000e+01 : f32
    %204 = vector.broadcast %cst_88 : f32 to vector<16x1xf32>
    %205 = arith.divf %203, %204 : vector<16x1xf32>
    %206 = vector.broadcast %205 : vector<16x1xf32> to vector<16x32xf32>
    %207 = arith.subf %201, %206 : vector<16x32xf32>
    %208 = arith.mulf %207, %207 : vector<16x32xf32>
    %cst_89 = arith.constant dense<0.000000e+00> : vector<16xf32>
    %209 = vector.multi_reduction <add>, %208, %cst_89 [1] : vector<16x32xf32> to vector<16xf32>
    %210 = vector.shape_cast %209 : vector<16xf32> to vector<16x1xf32>
    %cst_90 = arith.constant 3.200000e+01 : f32
    %211 = vector.broadcast %cst_90 : f32 to vector<16x1xf32>
    %212 = arith.divf %210, %211 : vector<16x1xf32>
    %213 = vector.broadcast %205 : vector<16x1xf32> to vector<16x32xf32>
    %214 = arith.subf %201, %213 : vector<16x32xf32>
    %cst_91 = arith.constant 9.99999974E-6 : f32
    %215 = vector.broadcast %cst_91 : f32 to vector<16x1xf32>
    %216 = arith.addf %212, %215 : vector<16x1xf32>
    %217 = math.rsqrt %216 : vector<16x1xf32>
    %218 = vector.broadcast %217 : vector<16x1xf32> to vector<16x32xf32>
    %219 = arith.mulf %214, %218 : vector<16x32xf32>
    %220 = vector.broadcast %36 : vector<1x32xf32> to vector<16x32xf32>
    %221 = arith.mulf %219, %220 : vector<16x32xf32>
    %222 = vector.broadcast %38 : vector<1x32xf32> to vector<16x32xf32>
    %223 = arith.addf %221, %222 : vector<16x32xf32>
    %c0_92 = arith.constant 0 : index
    %c0_93 = arith.constant 0 : index
    %c0_94 = arith.constant 0 : index
    %224 = vector.load %arg13[%c0_92, %c0_93, %c0_94] : memref<2x32x64xf32, #tpu.memory_space<vmem>>, vector<1x32x64xf32>
    %225 = vector.shape_cast %224 : vector<1x32x64xf32> to vector<32x64xf32>
    %c0_95 = arith.constant 0 : index
    %c0_96 = arith.constant 0 : index
    %c0_97 = arith.constant 0 : index
    %226 = vector.load %arg14[%c0_95, %c0_96, %c0_97] : memref<2x1x64xf32, #tpu.memory_space<vmem>>, vector<1x1x64xf32>
    %227 = vector.shape_cast %226 : vector<1x1x64xf32> to vector<1x64xf32>
    %c0_98 = arith.constant 0 : index
    %c0_99 = arith.constant 0 : index
    %c0_100 = arith.constant 0 : index
    %228 = vector.load %arg15[%c0_98, %c0_99, %c0_100] : memref<2x64x32xf32, #tpu.memory_space<vmem>>, vector<1x64x32xf32>
    %229 = vector.shape_cast %228 : vector<1x64x32xf32> to vector<64x32xf32>
    %c0_101 = arith.constant 0 : index
    %c0_102 = arith.constant 0 : index
    %c0_103 = arith.constant 0 : index
    %230 = vector.load %arg16[%c0_101, %c0_102, %c0_103] : memref<2x1x32xf32, #tpu.memory_space<vmem>>, vector<1x1x32xf32>
    %231 = vector.shape_cast %230 : vector<1x1x32xf32> to vector<1x32xf32>
    %c0_104 = arith.constant 0 : index
    %c0_105 = arith.constant 0 : index
    %c0_106 = arith.constant 0 : index
    %232 = vector.load %arg17[%c0_104, %c0_105, %c0_106] : memref<2x1x32xf32, #tpu.memory_space<vmem>>, vector<1x1x32xf32>
    %233 = vector.shape_cast %232 : vector<1x1x32xf32> to vector<1x32xf32>
    %c0_107 = arith.constant 0 : index
    %c0_108 = arith.constant 0 : index
    %c0_109 = arith.constant 0 : index
    %234 = vector.load %arg18[%c0_107, %c0_108, %c0_109] : memref<2x1x32xf32, #tpu.memory_space<vmem>>, vector<1x1x32xf32>
    %235 = vector.shape_cast %234 : vector<1x1x32xf32> to vector<1x32xf32>
    %cst_110 = arith.constant dense<0.000000e+00> : vector<16x64xf32>
    %236 = tpu.matmul %223, %225, %cst_110 {dimension_numbers = #tpu.dot_dimension_numbers<[1], [0], [0], [1], [0, 0, 1, 1], [], []>} : vector<16x32xf32>, vector<32x64xf32>, vector<16x64xf32> -> vector<16x64xf32>
    %237 = vector.broadcast %227 : vector<1x64xf32> to vector<16x64xf32>
    %238 = arith.addf %236, %237 : vector<16x64xf32>
    %239 = arith.mulf %238, %238 : vector<16x64xf32>
    %240 = arith.mulf %238, %239 : vector<16x64xf32>
    %cst_111 = arith.constant 4.471500e-02 : f32
    %241 = vector.broadcast %cst_111 : f32 to vector<16x64xf32>
    %242 = arith.mulf %241, %240 : vector<16x64xf32>
    %243 = arith.addf %238, %242 : vector<16x64xf32>
    %cst_112 = arith.constant 0.797884583 : f32
    %244 = vector.broadcast %cst_112 : f32 to vector<16x64xf32>
    %245 = arith.mulf %244, %243 : vector<16x64xf32>
    %246 = math.tanh %245 : vector<16x64xf32>
    %cst_113 = arith.constant 1.000000e+00 : f32
    %247 = vector.broadcast %cst_113 : f32 to vector<16x64xf32>
    %248 = arith.addf %247, %246 : vector<16x64xf32>
    %cst_114 = arith.constant 5.000000e-01 : f32
    %249 = vector.broadcast %cst_114 : f32 to vector<16x64xf32>
    %250 = arith.mulf %249, %248 : vector<16x64xf32>
    %251 = arith.mulf %238, %250 : vector<16x64xf32>
    %cst_115 = arith.constant dense<0.000000e+00> : vector<16x32xf32>
    %252 = tpu.matmul %251, %229, %cst_115 {dimension_numbers = #tpu.dot_dimension_numbers<[1], [0], [0], [1], [0, 0, 1, 1], [], []>} : vector<16x64xf32>, vector<64x32xf32>, vector<16x32xf32> -> vector<16x32xf32>
    %253 = vector.broadcast %231 : vector<1x32xf32> to vector<16x32xf32>
    %254 = arith.addf %252, %253 : vector<16x32xf32>
    %255 = arith.addf %223, %254 : vector<16x32xf32>
    %cst_116 = arith.constant dense<0.000000e+00> : vector<16xf32>
    %256 = vector.multi_reduction <add>, %255, %cst_116 [1] : vector<16x32xf32> to vector<16xf32>
    %257 = vector.shape_cast %256 : vector<16xf32> to vector<16x1xf32>
    %cst_117 = arith.constant 3.200000e+01 : f32
    %258 = vector.broadcast %cst_117 : f32 to vector<16x1xf32>
    %259 = arith.divf %257, %258 : vector<16x1xf32>
    %260 = vector.broadcast %259 : vector<16x1xf32> to vector<16x32xf32>
    %261 = arith.subf %255, %260 : vector<16x32xf32>
    %262 = arith.mulf %261, %261 : vector<16x32xf32>
    %cst_118 = arith.constant dense<0.000000e+00> : vector<16xf32>
    %263 = vector.multi_reduction <add>, %262, %cst_118 [1] : vector<16x32xf32> to vector<16xf32>
    %264 = vector.shape_cast %263 : vector<16xf32> to vector<16x1xf32>
    %cst_119 = arith.constant 3.200000e+01 : f32
    %265 = vector.broadcast %cst_119 : f32 to vector<16x1xf32>
    %266 = arith.divf %264, %265 : vector<16x1xf32>
    %267 = vector.broadcast %259 : vector<16x1xf32> to vector<16x32xf32>
    %268 = arith.subf %255, %267 : vector<16x32xf32>
    %cst_120 = arith.constant 9.99999974E-6 : f32
    %269 = vector.broadcast %cst_120 : f32 to vector<16x1xf32>
    %270 = arith.addf %266, %269 : vector<16x1xf32>
    %271 = math.rsqrt %270 : vector<16x1xf32>
    %272 = vector.broadcast %271 : vector<16x1xf32> to vector<16x32xf32>
    %273 = arith.mulf %268, %272 : vector<16x32xf32>
    %274 = vector.broadcast %233 : vector<1x32xf32> to vector<16x32xf32>
    %275 = arith.mulf %273, %274 : vector<16x32xf32>
    %276 = vector.broadcast %235 : vector<1x32xf32> to vector<16x32xf32>
    %277 = arith.addf %275, %276 : vector<16x32xf32>
    %c1 = arith.constant 1 : index
    %c0_121 = arith.constant 0 : index
    %c0_122 = arith.constant 0 : index
    %278 = vector.load %arg7[%c1, %c0_121, %c0_122] : memref<2x32x96xf32, #tpu.memory_space<vmem>>, vector<1x32x96xf32>
    %279 = vector.shape_cast %278 : vector<1x32x96xf32> to vector<32x96xf32>
    %c1_123 = arith.constant 1 : index
    %c0_124 = arith.constant 0 : index
    %c0_125 = arith.constant 0 : index
    %280 = vector.load %arg8[%c1_123, %c0_124, %c0_125] : memref<2x1x96xf32, #tpu.memory_space<vmem>>, vector<1x1x96xf32>
    %281 = vector.shape_cast %280 : vector<1x1x96xf32> to vector<1x96xf32>
    %c1_126 = arith.constant 1 : index
    %c0_127 = arith.constant 0 : index
    %c0_128 = arith.constant 0 : index
    %282 = vector.load %arg9[%c1_126, %c0_127, %c0_128] : memref<2x32x32xf32, #tpu.memory_space<vmem>>, vector<1x32x32xf32>
    %283 = vector.shape_cast %282 : vector<1x32x32xf32> to vector<32x32xf32>
    %c1_129 = arith.constant 1 : index
    %c0_130 = arith.constant 0 : index
    %c0_131 = arith.constant 0 : index
    %284 = vector.load %arg10[%c1_129, %c0_130, %c0_131] : memref<2x1x32xf32, #tpu.memory_space<vmem>>, vector<1x1x32xf32>
    %285 = vector.shape_cast %284 : vector<1x1x32xf32> to vector<1x32xf32>
    %c1_132 = arith.constant 1 : index
    %c0_133 = arith.constant 0 : index
    %c0_134 = arith.constant 0 : index
    %286 = vector.load %arg11[%c1_132, %c0_133, %c0_134] : memref<2x1x32xf32, #tpu.memory_space<vmem>>, vector<1x1x32xf32>
    %287 = vector.shape_cast %286 : vector<1x1x32xf32> to vector<1x32xf32>
    %c1_135 = arith.constant 1 : index
    %c0_136 = arith.constant 0 : index
    %c0_137 = arith.constant 0 : index
    %288 = vector.load %arg12[%c1_135, %c0_136, %c0_137] : memref<2x1x32xf32, #tpu.memory_space<vmem>>, vector<1x1x32xf32>
    %289 = vector.shape_cast %288 : vector<1x1x32xf32> to vector<1x32xf32>
    %cst_138 = arith.constant dense<0.000000e+00> : vector<16x96xf32>
    %290 = tpu.matmul %277, %279, %cst_138 {dimension_numbers = #tpu.dot_dimension_numbers<[1], [0], [0], [1], [0, 0, 1, 1], [], []>} : vector<16x32xf32>, vector<32x96xf32>, vector<16x96xf32> -> vector<16x96xf32>
    %291 = vector.broadcast %281 : vector<1x96xf32> to vector<16x96xf32>
    %292 = arith.addf %290, %291 : vector<16x96xf32>
    %293 = vector.extract_strided_slice %292 {offsets = [0, 0], sizes = [16, 32], strides = [1, 1]} : vector<16x96xf32> to vector<16x32xf32>
    %294 = vector.extract_strided_slice %292 {offsets = [0, 32], sizes = [16, 32], strides = [1, 1]} : vector<16x96xf32> to vector<16x32xf32>
    %295 = vector.extract_strided_slice %292 {offsets = [0, 64], sizes = [16, 32], strides = [1, 1]} : vector<16x96xf32> to vector<16x32xf32>
    %296 = vector.extract_strided_slice %293 {offsets = [0, 0], sizes = [8, 8], strides = [1, 1]} : vector<16x32xf32> to vector<8x8xf32>
    %297 = vector.extract_strided_slice %294 {offsets = [0, 0], sizes = [8, 8], strides = [1, 1]} : vector<16x32xf32> to vector<8x8xf32>
    %298 = vector.extract_strided_slice %295 {offsets = [0, 0], sizes = [8, 8], strides = [1, 1]} : vector<16x32xf32> to vector<8x8xf32>
    %cst_139 = arith.constant dense<0.000000e+00> : vector<8x8xf32>
    %299 = tpu.matmul %296, %297, %cst_139 {dimension_numbers = #tpu.dot_dimension_numbers<[1], [1], [0], [0], [0, 0, 1, 0], [], []>} : vector<8x8xf32>, vector<8x8xf32>, vector<8x8xf32> -> vector<8x8xf32>
    %cst_140 = arith.constant 0.353553385 : f32
    %300 = vector.broadcast %cst_140 : f32 to vector<8x8xf32>
    %301 = arith.mulf %299, %300 : vector<8x8xf32>
    %302 = arith.addf %301, %1 : vector<8x8xf32>
    %cst_141 = arith.constant dense<0xFF800000> : vector<8xf32>
    %303 = vector.multi_reduction <maximumf>, %302, %cst_141 [1] : vector<8x8xf32> to vector<8xf32>
    %304 = vector.shape_cast %303 : vector<8xf32> to vector<8x1xf32>
    %305 = vector.broadcast %304 : vector<8x1xf32> to vector<8x8xf32>
    %306 = arith.subf %302, %305 : vector<8x8xf32>
    %307 = math.exp %306 : vector<8x8xf32>
    %cst_142 = arith.constant dense<0.000000e+00> : vector<8xf32>
    %308 = vector.multi_reduction <add>, %307, %cst_142 [1] : vector<8x8xf32> to vector<8xf32>
    %309 = vector.shape_cast %308 : vector<8xf32> to vector<8x1xf32>
    %310 = tpu.reciprocal %309 : vector<8x1xf32> -> vector<8x1xf32>
    %311 = vector.broadcast %310 : vector<8x1xf32> to vector<8x8xf32>
    %312 = arith.mulf %307, %311 : vector<8x8xf32>
    %cst_143 = arith.constant dense<0.000000e+00> : vector<8x8xf32>
    %313 = tpu.matmul %312, %298, %cst_143 {dimension_numbers = #tpu.dot_dimension_numbers<[1], [0], [0], [1], [0, 0, 1, 1], [], []>} : vector<8x8xf32>, vector<8x8xf32>, vector<8x8xf32> -> vector<8x8xf32>
    %c0_144 = arith.constant 0 : index
    %c0_145 = arith.constant 0 : index
    %314 = vector.load %arg40[%c0_144, %c0_145] : memref<16x32xf32, #tpu.memory_space<vmem>>, vector<8x8xf32>
    tpu.vector_store %arg40[%c0_144, %c0_145], %313 {strides = array<i32>} : memref<16x32xf32, #tpu.memory_space<vmem>>, vector<8x8xf32>,
    %315 = vector.extract_strided_slice %293 {offsets = [0, 8], sizes = [8, 8], strides = [1, 1]} : vector<16x32xf32> to vector<8x8xf32>
    %316 = vector.extract_strided_slice %294 {offsets = [0, 8], sizes = [8, 8], strides = [1, 1]} : vector<16x32xf32> to vector<8x8xf32>
    %317 = vector.extract_strided_slice %295 {offsets = [0, 8], sizes = [8, 8], strides = [1, 1]} : vector<16x32xf32> to vector<8x8xf32>
    %cst_146 = arith.constant dense<0.000000e+00> : vector<8x8xf32>
    %318 = tpu.matmul %315, %316, %cst_146 {dimension_numbers = #tpu.dot_dimension_numbers<[1], [1], [0], [0], [0, 0, 1, 0], [], []>} : vector<8x8xf32>, vector<8x8xf32>, vector<8x8xf32> -> vector<8x8xf32>
    %cst_147 = arith.constant 0.353553385 : f32
    %319 = vector.broadcast %cst_147 : f32 to vector<8x8xf32>
    %320 = arith.mulf %318, %319 : vector<8x8xf32>
    %321 = arith.addf %320, %1 : vector<8x8xf32>
    %cst_148 = arith.constant dense<0xFF800000> : vector<8xf32>
    %322 = vector.multi_reduction <maximumf>, %321, %cst_148 [1] : vector<8x8xf32> to vector<8xf32>
    %323 = vector.shape_cast %322 : vector<8xf32> to vector<8x1xf32>
    %324 = vector.broadcast %323 : vector<8x1xf32> to vector<8x8xf32>
    %325 = arith.subf %321, %324 : vector<8x8xf32>
    %326 = math.exp %325 : vector<8x8xf32>
    %cst_149 = arith.constant dense<0.000000e+00> : vector<8xf32>
    %327 = vector.multi_reduction <add>, %326, %cst_149 [1] : vector<8x8xf32> to vector<8xf32>
    %328 = vector.shape_cast %327 : vector<8xf32> to vector<8x1xf32>
    %329 = tpu.reciprocal %328 : vector<8x1xf32> -> vector<8x1xf32>
    %330 = vector.broadcast %329 : vector<8x1xf32> to vector<8x8xf32>
    %331 = arith.mulf %326, %330 : vector<8x8xf32>
    %cst_150 = arith.constant dense<0.000000e+00> : vector<8x8xf32>
    %332 = tpu.matmul %331, %317, %cst_150 {dimension_numbers = #tpu.dot_dimension_numbers<[1], [0], [0], [1], [0, 0, 1, 1], [], []>} : vector<8x8xf32>, vector<8x8xf32>, vector<8x8xf32> -> vector<8x8xf32>
    %c0_151 = arith.constant 0 : index
    %c8_152 = arith.constant 8 : index
    %333 = vector.load %arg40[%c0_151, %c8_152] : memref<16x32xf32, #tpu.memory_space<vmem>>, vector<8x8xf32>
    tpu.vector_store %arg40[%c0_151, %c8_152], %332 {strides = array<i32>} : memref<16x32xf32, #tpu.memory_space<vmem>>, vector<8x8xf32>,
    %334 = vector.extract_strided_slice %293 {offsets = [0, 16], sizes = [8, 8], strides = [1, 1]} : vector<16x32xf32> to vector<8x8xf32>
    %335 = vector.extract_strided_slice %294 {offsets = [0, 16], sizes = [8, 8], strides = [1, 1]} : vector<16x32xf32> to vector<8x8xf32>
    %336 = vector.extract_strided_slice %295 {offsets = [0, 16], sizes = [8, 8], strides = [1, 1]} : vector<16x32xf32> to vector<8x8xf32>
    %cst_153 = arith.constant dense<0.000000e+00> : vector<8x8xf32>
    %337 = tpu.matmul %334, %335, %cst_153 {dimension_numbers = #tpu.dot_dimension_numbers<[1], [1], [0], [0], [0, 0, 1, 0], [], []>} : vector<8x8xf32>, vector<8x8xf32>, vector<8x8xf32> -> vector<8x8xf32>
    %cst_154 = arith.constant 0.353553385 : f32
    %338 = vector.broadcast %cst_154 : f32 to vector<8x8xf32>
    %339 = arith.mulf %337, %338 : vector<8x8xf32>
    %340 = arith.addf %339, %1 : vector<8x8xf32>
    %cst_155 = arith.constant dense<0xFF800000> : vector<8xf32>
    %341 = vector.multi_reduction <maximumf>, %340, %cst_155 [1] : vector<8x8xf32> to vector<8xf32>
    %342 = vector.shape_cast %341 : vector<8xf32> to vector<8x1xf32>
    %343 = vector.broadcast %342 : vector<8x1xf32> to vector<8x8xf32>
    %344 = arith.subf %340, %343 : vector<8x8xf32>
    %345 = math.exp %344 : vector<8x8xf32>
    %cst_156 = arith.constant dense<0.000000e+00> : vector<8xf32>
    %346 = vector.multi_reduction <add>, %345, %cst_156 [1] : vector<8x8xf32> to vector<8xf32>
    %347 = vector.shape_cast %346 : vector<8xf32> to vector<8x1xf32>
    %348 = tpu.reciprocal %347 : vector<8x1xf32> -> vector<8x1xf32>
    %349 = vector.broadcast %348 : vector<8x1xf32> to vector<8x8xf32>
    %350 = arith.mulf %345, %349 : vector<8x8xf32>
    %cst_157 = arith.constant dense<0.000000e+00> : vector<8x8xf32>
    %351 = tpu.matmul %350, %336, %cst_157 {dimension_numbers = #tpu.dot_dimension_numbers<[1], [0], [0], [1], [0, 0, 1, 1], [], []>} : vector<8x8xf32>, vector<8x8xf32>, vector<8x8xf32> -> vector<8x8xf32>
    %c0_158 = arith.constant 0 : index
    %c16_159 = arith.constant 16 : index
    %352 = vector.load %arg40[%c0_158, %c16_159] : memref<16x32xf32, #tpu.memory_space<vmem>>, vector<8x8xf32>
    tpu.vector_store %arg40[%c0_158, %c16_159], %351 {strides = array<i32>} : memref<16x32xf32, #tpu.memory_space<vmem>>, vector<8x8xf32>,
    %353 = vector.extract_strided_slice %293 {offsets = [0, 24], sizes = [8, 8], strides = [1, 1]} : vector<16x32xf32> to vector<8x8xf32>
    %354 = vector.extract_strided_slice %294 {offsets = [0, 24], sizes = [8, 8], strides = [1, 1]} : vector<16x32xf32> to vector<8x8xf32>
    %355 = vector.extract_strided_slice %295 {offsets = [0, 24], sizes = [8, 8], strides = [1, 1]} : vector<16x32xf32> to vector<8x8xf32>
    %cst_160 = arith.constant dense<0.000000e+00> : vector<8x8xf32>
    %356 = tpu.matmul %353, %354, %cst_160 {dimension_numbers = #tpu.dot_dimension_numbers<[1], [1], [0], [0], [0, 0, 1, 0], [], []>} : vector<8x8xf32>, vector<8x8xf32>, vector<8x8xf32> -> vector<8x8xf32>
    %cst_161 = arith.constant 0.353553385 : f32
    %357 = vector.broadcast %cst_161 : f32 to vector<8x8xf32>
    %358 = arith.mulf %356, %357 : vector<8x8xf32>
    %359 = arith.addf %358, %1 : vector<8x8xf32>
    %cst_162 = arith.constant dense<0xFF800000> : vector<8xf32>
    %360 = vector.multi_reduction <maximumf>, %359, %cst_162 [1] : vector<8x8xf32> to vector<8xf32>
    %361 = vector.shape_cast %360 : vector<8xf32> to vector<8x1xf32>
    %362 = vector.broadcast %361 : vector<8x1xf32> to vector<8x8xf32>
    %363 = arith.subf %359, %362 : vector<8x8xf32>
    %364 = math.exp %363 : vector<8x8xf32>
    %cst_163 = arith.constant dense<0.000000e+00> : vector<8xf32>
    %365 = vector.multi_reduction <add>, %364, %cst_163 [1] : vector<8x8xf32> to vector<8xf32>
    %366 = vector.shape_cast %365 : vector<8xf32> to vector<8x1xf32>
    %367 = tpu.reciprocal %366 : vector<8x1xf32> -> vector<8x1xf32>
    %368 = vector.broadcast %367 : vector<8x1xf32> to vector<8x8xf32>
    %369 = arith.mulf %364, %368 : vector<8x8xf32>
    %cst_164 = arith.constant dense<0.000000e+00> : vector<8x8xf32>
    %370 = tpu.matmul %369, %355, %cst_164 {dimension_numbers = #tpu.dot_dimension_numbers<[1], [0], [0], [1], [0, 0, 1, 1], [], []>} : vector<8x8xf32>, vector<8x8xf32>, vector<8x8xf32> -> vector<8x8xf32>
    %c0_165 = arith.constant 0 : index
    %c24_166 = arith.constant 24 : index
    %371 = vector.load %arg40[%c0_165, %c24_166] : memref<16x32xf32, #tpu.memory_space<vmem>>, vector<8x8xf32>
    tpu.vector_store %arg40[%c0_165, %c24_166], %370 {strides = array<i32>} : memref<16x32xf32, #tpu.memory_space<vmem>>, vector<8x8xf32>,
    %372 = vector.extract_strided_slice %293 {offsets = [8, 0], sizes = [8, 8], strides = [1, 1]} : vector<16x32xf32> to vector<8x8xf32>
    %373 = vector.extract_strided_slice %294 {offsets = [8, 0], sizes = [8, 8], strides = [1, 1]} : vector<16x32xf32> to vector<8x8xf32>
    %374 = vector.extract_strided_slice %295 {offsets = [8, 0], sizes = [8, 8], strides = [1, 1]} : vector<16x32xf32> to vector<8x8xf32>
    %cst_167 = arith.constant dense<0.000000e+00> : vector<8x8xf32>
    %375 = tpu.matmul %372, %373, %cst_167 {dimension_numbers = #tpu.dot_dimension_numbers<[1], [1], [0], [0], [0, 0, 1, 0], [], []>} : vector<8x8xf32>, vector<8x8xf32>, vector<8x8xf32> -> vector<8x8xf32>
    %cst_168 = arith.constant 0.353553385 : f32
    %376 = vector.broadcast %cst_168 : f32 to vector<8x8xf32>
    %377 = arith.mulf %375, %376 : vector<8x8xf32>
    %378 = arith.addf %377, %1 : vector<8x8xf32>
    %cst_169 = arith.constant dense<0xFF800000> : vector<8xf32>
    %379 = vector.multi_reduction <maximumf>, %378, %cst_169 [1] : vector<8x8xf32> to vector<8xf32>
    %380 = vector.shape_cast %379 : vector<8xf32> to vector<8x1xf32>
    %381 = vector.broadcast %380 : vector<8x1xf32> to vector<8x8xf32>
    %382 = arith.subf %378, %381 : vector<8x8xf32>
    %383 = math.exp %382 : vector<8x8xf32>
    %cst_170 = arith.constant dense<0.000000e+00> : vector<8xf32>
    %384 = vector.multi_reduction <add>, %383, %cst_170 [1] : vector<8x8xf32> to vector<8xf32>
    %385 = vector.shape_cast %384 : vector<8xf32> to vector<8x1xf32>
    %386 = tpu.reciprocal %385 : vector<8x1xf32> -> vector<8x1xf32>
    %387 = vector.broadcast %386 : vector<8x1xf32> to vector<8x8xf32>
    %388 = arith.mulf %383, %387 : vector<8x8xf32>
    %cst_171 = arith.constant dense<0.000000e+00> : vector<8x8xf32>
    %389 = tpu.matmul %388, %374, %cst_171 {dimension_numbers = #tpu.dot_dimension_numbers<[1], [0], [0], [1], [0, 0, 1, 1], [], []>} : vector<8x8xf32>, vector<8x8xf32>, vector<8x8xf32> -> vector<8x8xf32>
    %c8_172 = arith.constant 8 : index
    %c0_173 = arith.constant 0 : index
    %390 = vector.load %arg40[%c8_172, %c0_173] : memref<16x32xf32, #tpu.memory_space<vmem>>, vector<8x8xf32>
    tpu.vector_store %arg40[%c8_172, %c0_173], %389 {strides = array<i32>} : memref<16x32xf32, #tpu.memory_space<vmem>>, vector<8x8xf32>,
    %391 = vector.extract_strided_slice %293 {offsets = [8, 8], sizes = [8, 8], strides = [1, 1]} : vector<16x32xf32> to vector<8x8xf32>
    %392 = vector.extract_strided_slice %294 {offsets = [8, 8], sizes = [8, 8], strides = [1, 1]} : vector<16x32xf32> to vector<8x8xf32>
    %393 = vector.extract_strided_slice %295 {offsets = [8, 8], sizes = [8, 8], strides = [1, 1]} : vector<16x32xf32> to vector<8x8xf32>
    %cst_174 = arith.constant dense<0.000000e+00> : vector<8x8xf32>
    %394 = tpu.matmul %391, %392, %cst_174 {dimension_numbers = #tpu.dot_dimension_numbers<[1], [1], [0], [0], [0, 0, 1, 0], [], []>} : vector<8x8xf32>, vector<8x8xf32>, vector<8x8xf32> -> vector<8x8xf32>
    %cst_175 = arith.constant 0.353553385 : f32
    %395 = vector.broadcast %cst_175 : f32 to vector<8x8xf32>
    %396 = arith.mulf %394, %395 : vector<8x8xf32>
    %397 = arith.addf %396, %1 : vector<8x8xf32>
    %cst_176 = arith.constant dense<0xFF800000> : vector<8xf32>
    %398 = vector.multi_reduction <maximumf>, %397, %cst_176 [1] : vector<8x8xf32> to vector<8xf32>
    %399 = vector.shape_cast %398 : vector<8xf32> to vector<8x1xf32>
    %400 = vector.broadcast %399 : vector<8x1xf32> to vector<8x8xf32>
    %401 = arith.subf %397, %400 : vector<8x8xf32>
    %402 = math.exp %401 : vector<8x8xf32>
    %cst_177 = arith.constant dense<0.000000e+00> : vector<8xf32>
    %403 = vector.multi_reduction <add>, %402, %cst_177 [1] : vector<8x8xf32> to vector<8xf32>
    %404 = vector.shape_cast %403 : vector<8xf32> to vector<8x1xf32>
    %405 = tpu.reciprocal %404 : vector<8x1xf32> -> vector<8x1xf32>
    %406 = vector.broadcast %405 : vector<8x1xf32> to vector<8x8xf32>
    %407 = arith.mulf %402, %406 : vector<8x8xf32>
    %cst_178 = arith.constant dense<0.000000e+00> : vector<8x8xf32>
    %408 = tpu.matmul %407, %393, %cst_178 {dimension_numbers = #tpu.dot_dimension_numbers<[1], [0], [0], [1], [0, 0, 1, 1], [], []>} : vector<8x8xf32>, vector<8x8xf32>, vector<8x8xf32> -> vector<8x8xf32>
    %c8_179 = arith.constant 8 : index
    %c8_180 = arith.constant 8 : index
    %409 = vector.load %arg40[%c8_179, %c8_180] : memref<16x32xf32, #tpu.memory_space<vmem>>, vector<8x8xf32>
    tpu.vector_store %arg40[%c8_179, %c8_180], %408 {strides = array<i32>} : memref<16x32xf32, #tpu.memory_space<vmem>>, vector<8x8xf32>,
    %410 = vector.extract_strided_slice %293 {offsets = [8, 16], sizes = [8, 8], strides = [1, 1]} : vector<16x32xf32> to vector<8x8xf32>
    %411 = vector.extract_strided_slice %294 {offsets = [8, 16], sizes = [8, 8], strides = [1, 1]} : vector<16x32xf32> to vector<8x8xf32>
    %412 = vector.extract_strided_slice %295 {offsets = [8, 16], sizes = [8, 8], strides = [1, 1]} : vector<16x32xf32> to vector<8x8xf32>
    %cst_181 = arith.constant dense<0.000000e+00> : vector<8x8xf32>
    %413 = tpu.matmul %410, %411, %cst_181 {dimension_numbers = #tpu.dot_dimension_numbers<[1], [1], [0], [0], [0, 0, 1, 0], [], []>} : vector<8x8xf32>, vector<8x8xf32>, vector<8x8xf32> -> vector<8x8xf32>
    %cst_182 = arith.constant 0.353553385 : f32
    %414 = vector.broadcast %cst_182 : f32 to vector<8x8xf32>
    %415 = arith.mulf %413, %414 : vector<8x8xf32>
    %416 = arith.addf %415, %1 : vector<8x8xf32>
    %cst_183 = arith.constant dense<0xFF800000> : vector<8xf32>
    %417 = vector.multi_reduction <maximumf>, %416, %cst_183 [1] : vector<8x8xf32> to vector<8xf32>
    %418 = vector.shape_cast %417 : vector<8xf32> to vector<8x1xf32>
    %419 = vector.broadcast %418 : vector<8x1xf32> to vector<8x8xf32>
    %420 = arith.subf %416, %419 : vector<8x8xf32>
    %421 = math.exp %420 : vector<8x8xf32>
    %cst_184 = arith.constant dense<0.000000e+00> : vector<8xf32>
    %422 = vector.multi_reduction <add>, %421, %cst_184 [1] : vector<8x8xf32> to vector<8xf32>
    %423 = vector.shape_cast %422 : vector<8xf32> to vector<8x1xf32>
    %424 = tpu.reciprocal %423 : vector<8x1xf32> -> vector<8x1xf32>
    %425 = vector.broadcast %424 : vector<8x1xf32> to vector<8x8xf32>
    %426 = arith.mulf %421, %425 : vector<8x8xf32>
    %cst_185 = arith.constant dense<0.000000e+00> : vector<8x8xf32>
    %427 = tpu.matmul %426, %412, %cst_185 {dimension_numbers = #tpu.dot_dimension_numbers<[1], [0], [0], [1], [0, 0, 1, 1], [], []>} : vector<8x8xf32>, vector<8x8xf32>, vector<8x8xf32> -> vector<8x8xf32>
    %c8_186 = arith.constant 8 : index
    %c16_187 = arith.constant 16 : index
    %428 = vector.load %arg40[%c8_186, %c16_187] : memref<16x32xf32, #tpu.memory_space<vmem>>, vector<8x8xf32>
    tpu.vector_store %arg40[%c8_186, %c16_187], %427 {strides = array<i32>} : memref<16x32xf32, #tpu.memory_space<vmem>>, vector<8x8xf32>,
    %429 = vector.extract_strided_slice %293 {offsets = [8, 24], sizes = [8, 8], strides = [1, 1]} : vector<16x32xf32> to vector<8x8xf32>
    %430 = vector.extract_strided_slice %294 {offsets = [8, 24], sizes = [8, 8], strides = [1, 1]} : vector<16x32xf32> to vector<8x8xf32>
    %431 = vector.extract_strided_slice %295 {offsets = [8, 24], sizes = [8, 8], strides = [1, 1]} : vector<16x32xf32> to vector<8x8xf32>
    %cst_188 = arith.constant dense<0.000000e+00> : vector<8x8xf32>
    %432 = tpu.matmul %429, %430, %cst_188 {dimension_numbers = #tpu.dot_dimension_numbers<[1], [1], [0], [0], [0, 0, 1, 0], [], []>} : vector<8x8xf32>, vector<8x8xf32>, vector<8x8xf32> -> vector<8x8xf32>
    %cst_189 = arith.constant 0.353553385 : f32
    %433 = vector.broadcast %cst_189 : f32 to vector<8x8xf32>
    %434 = arith.mulf %432, %433 : vector<8x8xf32>
    %435 = arith.addf %434, %1 : vector<8x8xf32>
    %cst_190 = arith.constant dense<0xFF800000> : vector<8xf32>
    %436 = vector.multi_reduction <maximumf>, %435, %cst_190 [1] : vector<8x8xf32> to vector<8xf32>
    %437 = vector.shape_cast %436 : vector<8xf32> to vector<8x1xf32>
    %438 = vector.broadcast %437 : vector<8x1xf32> to vector<8x8xf32>
    %439 = arith.subf %435, %438 : vector<8x8xf32>
    %440 = math.exp %439 : vector<8x8xf32>
    %cst_191 = arith.constant dense<0.000000e+00> : vector<8xf32>
    %441 = vector.multi_reduction <add>, %440, %cst_191 [1] : vector<8x8xf32> to vector<8xf32>
    %442 = vector.shape_cast %441 : vector<8xf32> to vector<8x1xf32>
    %443 = tpu.reciprocal %442 : vector<8x1xf32> -> vector<8x1xf32>
    %444 = vector.broadcast %443 : vector<8x1xf32> to vector<8x8xf32>
    %445 = arith.mulf %440, %444 : vector<8x8xf32>
    %cst_192 = arith.constant dense<0.000000e+00> : vector<8x8xf32>
    %446 = tpu.matmul %445, %431, %cst_192 {dimension_numbers = #tpu.dot_dimension_numbers<[1], [0], [0], [1], [0, 0, 1, 1], [], []>} : vector<8x8xf32>, vector<8x8xf32>, vector<8x8xf32> -> vector<8x8xf32>
    %c8_193 = arith.constant 8 : index
    %c24_194 = arith.constant 24 : index
    %447 = vector.load %arg40[%c8_193, %c24_194] : memref<16x32xf32, #tpu.memory_space<vmem>>, vector<8x8xf32>
    tpu.vector_store %arg40[%c8_193, %c24_194], %446 {strides = array<i32>} : memref<16x32xf32, #tpu.memory_space<vmem>>, vector<8x8xf32>,
    %c0_195 = arith.constant 0 : index
    %c0_196 = arith.constant 0 : index
    %448 = vector.load %arg40[%c0_195, %c0_196] : memref<16x32xf32, #tpu.memory_space<vmem>>, vector<16x32xf32>
    %cst_197 = arith.constant dense<0.000000e+00> : vector<16x32xf32>
    %449 = tpu.matmul %448, %283, %cst_197 {dimension_numbers = #tpu.dot_dimension_numbers<[1], [0], [0], [1], [0, 0, 1, 1], [], []>} : vector<16x32xf32>, vector<32x32xf32>, vector<16x32xf32> -> vector<16x32xf32>
    %450 = vector.broadcast %285 : vector<1x32xf32> to vector<16x32xf32>
    %451 = arith.addf %449, %450 : vector<16x32xf32>
    %452 = arith.addf %277, %451 : vector<16x32xf32>
    %cst_198 = arith.constant dense<0.000000e+00> : vector<16xf32>
    %453 = vector.multi_reduction <add>, %452, %cst_198 [1] : vector<16x32xf32> to vector<16xf32>
    %454 = vector.shape_cast %453 : vector<16xf32> to vector<16x1xf32>
    %cst_199 = arith.constant 3.200000e+01 : f32
    %455 = vector.broadcast %cst_199 : f32 to vector<16x1xf32>
    %456 = arith.divf %454, %455 : vector<16x1xf32>
    %457 = vector.broadcast %456 : vector<16x1xf32> to vector<16x32xf32>
    %458 = arith.subf %452, %457 : vector<16x32xf32>
    %459 = arith.mulf %458, %458 : vector<16x32xf32>
    %cst_200 = arith.constant dense<0.000000e+00> : vector<16xf32>
    %460 = vector.multi_reduction <add>, %459, %cst_200 [1] : vector<16x32xf32> to vector<16xf32>
    %461 = vector.shape_cast %460 : vector<16xf32> to vector<16x1xf32>
    %cst_201 = arith.constant 3.200000e+01 : f32
    %462 = vector.broadcast %cst_201 : f32 to vector<16x1xf32>
    %463 = arith.divf %461, %462 : vector<16x1xf32>
    %464 = vector.broadcast %456 : vector<16x1xf32> to vector<16x32xf32>
    %465 = arith.subf %452, %464 : vector<16x32xf32>
    %cst_202 = arith.constant 9.99999974E-6 : f32
    %466 = vector.broadcast %cst_202 : f32 to vector<16x1xf32>
    %467 = arith.addf %463, %466 : vector<16x1xf32>
    %468 = math.rsqrt %467 : vector<16x1xf32>
    %469 = vector.broadcast %468 : vector<16x1xf32> to vector<16x32xf32>
    %470 = arith.mulf %465, %469 : vector<16x32xf32>
    %471 = vector.broadcast %287 : vector<1x32xf32> to vector<16x32xf32>
    %472 = arith.mulf %470, %471 : vector<16x32xf32>
    %473 = vector.broadcast %289 : vector<1x32xf32> to vector<16x32xf32>
    %474 = arith.addf %472, %473 : vector<16x32xf32>
    %c1_203 = arith.constant 1 : index
    %c0_204 = arith.constant 0 : index
    %c0_205 = arith.constant 0 : index
    %475 = vector.load %arg13[%c1_203, %c0_204, %c0_205] : memref<2x32x64xf32, #tpu.memory_space<vmem>>, vector<1x32x64xf32>
    %476 = vector.shape_cast %475 : vector<1x32x64xf32> to vector<32x64xf32>
    %c1_206 = arith.constant 1 : index
    %c0_207 = arith.constant 0 : index
    %c0_208 = arith.constant 0 : index
    %477 = vector.load %arg14[%c1_206, %c0_207, %c0_208] : memref<2x1x64xf32, #tpu.memory_space<vmem>>, vector<1x1x64xf32>
    %478 = vector.shape_cast %477 : vector<1x1x64xf32> to vector<1x64xf32>
    %c1_209 = arith.constant 1 : index
    %c0_210 = arith.constant 0 : index
    %c0_211 = arith.constant 0 : index
    %479 = vector.load %arg15[%c1_209, %c0_210, %c0_211] : memref<2x64x32xf32, #tpu.memory_space<vmem>>, vector<1x64x32xf32>
    %480 = vector.shape_cast %479 : vector<1x64x32xf32> to vector<64x32xf32>
    %c1_212 = arith.constant 1 : index
    %c0_213 = arith.constant 0 : index
    %c0_214 = arith.constant 0 : index
    %481 = vector.load %arg16[%c1_212, %c0_213, %c0_214] : memref<2x1x32xf32, #tpu.memory_space<vmem>>, vector<1x1x32xf32>
    %482 = vector.shape_cast %481 : vector<1x1x32xf32> to vector<1x32xf32>
    %c1_215 = arith.constant 1 : index
    %c0_216 = arith.constant 0 : index
    %c0_217 = arith.constant 0 : index
    %483 = vector.load %arg17[%c1_215, %c0_216, %c0_217] : memref<2x1x32xf32, #tpu.memory_space<vmem>>, vector<1x1x32xf32>
    %484 = vector.shape_cast %483 : vector<1x1x32xf32> to vector<1x32xf32>
    %c1_218 = arith.constant 1 : index
    %c0_219 = arith.constant 0 : index
    %c0_220 = arith.constant 0 : index
    %485 = vector.load %arg18[%c1_218, %c0_219, %c0_220] : memref<2x1x32xf32, #tpu.memory_space<vmem>>, vector<1x1x32xf32>
    %486 = vector.shape_cast %485 : vector<1x1x32xf32> to vector<1x32xf32>
    %cst_221 = arith.constant dense<0.000000e+00> : vector<16x64xf32>
    %487 = tpu.matmul %474, %476, %cst_221 {dimension_numbers = #tpu.dot_dimension_numbers<[1], [0], [0], [1], [0, 0, 1, 1], [], []>} : vector<16x32xf32>, vector<32x64xf32>, vector<16x64xf32> -> vector<16x64xf32>
    %488 = vector.broadcast %478 : vector<1x64xf32> to vector<16x64xf32>
    %489 = arith.addf %487, %488 : vector<16x64xf32>
    %490 = arith.mulf %489, %489 : vector<16x64xf32>
    %491 = arith.mulf %489, %490 : vector<16x64xf32>
    %cst_222 = arith.constant 4.471500e-02 : f32
    %492 = vector.broadcast %cst_222 : f32 to vector<16x64xf32>
    %493 = arith.mulf %492, %491 : vector<16x64xf32>
    %494 = arith.addf %489, %493 : vector<16x64xf32>
    %cst_223 = arith.constant 0.797884583 : f32
    %495 = vector.broadcast %cst_223 : f32 to vector<16x64xf32>
    %496 = arith.mulf %495, %494 : vector<16x64xf32>
    %497 = math.tanh %496 : vector<16x64xf32>
    %cst_224 = arith.constant 1.000000e+00 : f32
    %498 = vector.broadcast %cst_224 : f32 to vector<16x64xf32>
    %499 = arith.addf %498, %497 : vector<16x64xf32>
    %cst_225 = arith.constant 5.000000e-01 : f32
    %500 = vector.broadcast %cst_225 : f32 to vector<16x64xf32>
    %501 = arith.mulf %500, %499 : vector<16x64xf32>
    %502 = arith.mulf %489, %501 : vector<16x64xf32>
    %cst_226 = arith.constant dense<0.000000e+00> : vector<16x32xf32>
    %503 = tpu.matmul %502, %480, %cst_226 {dimension_numbers = #tpu.dot_dimension_numbers<[1], [0], [0], [1], [0, 0, 1, 1], [], []>} : vector<16x64xf32>, vector<64x32xf32>, vector<16x32xf32> -> vector<16x32xf32>
    %504 = vector.broadcast %482 : vector<1x32xf32> to vector<16x32xf32>
    %505 = arith.addf %503, %504 : vector<16x32xf32>
    %506 = arith.addf %474, %505 : vector<16x32xf32>
    %cst_227 = arith.constant dense<0.000000e+00> : vector<16xf32>
    %507 = vector.multi_reduction <add>, %506, %cst_227 [1] : vector<16x32xf32> to vector<16xf32>
    %508 = vector.shape_cast %507 : vector<16xf32> to vector<16x1xf32>
    %cst_228 = arith.constant 3.200000e+01 : f32
    %509 = vector.broadcast %cst_228 : f32 to vector<16x1xf32>
    %510 = arith.divf %508, %509 : vector<16x1xf32>
    %511 = vector.broadcast %510 : vector<16x1xf32> to vector<16x32xf32>
    %512 = arith.subf %506, %511 : vector<16x32xf32>
    %513 = arith.mulf %512, %512 : vector<16x32xf32>
    %cst_229 = arith.constant dense<0.000000e+00> : vector<16xf32>
    %514 = vector.multi_reduction <add>, %513, %cst_229 [1] : vector<16x32xf32> to vector<16xf32>
    %515 = vector.shape_cast %514 : vector<16xf32> to vector<16x1xf32>
    %cst_230 = arith.constant 3.200000e+01 : f32
    %516 = vector.broadcast %cst_230 : f32 to vector<16x1xf32>
    %517 = arith.divf %515, %516 : vector<16x1xf32>
    %518 = vector.broadcast %510 : vector<16x1xf32> to vector<16x32xf32>
    %519 = arith.subf %506, %518 : vector<16x32xf32>
    %cst_231 = arith.constant 9.99999974E-6 : f32
    %520 = vector.broadcast %cst_231 : f32 to vector<16x1xf32>
    %521 = arith.addf %517, %520 : vector<16x1xf32>
    %522 = math.rsqrt %521 : vector<16x1xf32>
    %523 = vector.broadcast %522 : vector<16x1xf32> to vector<16x32xf32>
    %524 = arith.mulf %519, %523 : vector<16x32xf32>
    %525 = vector.broadcast %484 : vector<1x32xf32> to vector<16x32xf32>
    %526 = arith.mulf %524, %525 : vector<16x32xf32>
    %527 = vector.broadcast %486 : vector<1x32xf32> to vector<16x32xf32>
    %528 = arith.addf %526, %527 : vector<16x32xf32>
    %c0_232 = arith.constant 0 : index
    %c0_233 = arith.constant 0 : index
    %529 = vector.load %arg1[%c0_232, %c0_233] : memref<16x32xf32, #tpu.memory_space<vmem>>, vector<16x32xf32>
    %c0_234 = arith.constant 0 : index
    %c0_235 = arith.constant 0 : index
    %530 = vector.load %arg5[%c0_234, %c0_235] : memref<1x32xf32, #tpu.memory_space<vmem>>, vector<1x32xf32>
    %c0_236 = arith.constant 0 : index
    %c0_237 = arith.constant 0 : index
    %531 = vector.load %arg6[%c0_236, %c0_237] : memref<1x32xf32, #tpu.memory_space<vmem>>, vector<1x32xf32>
    %cst_238 = arith.constant dense<0.000000e+00> : vector<16xf32>
    %532 = vector.multi_reduction <add>, %529, %cst_238 [1] : vector<16x32xf32> to vector<16xf32>
    %533 = vector.shape_cast %532 : vector<16xf32> to vector<16x1xf32>
    %cst_239 = arith.constant 3.200000e+01 : f32
    %534 = vector.broadcast %cst_239 : f32 to vector<16x1xf32>
    %535 = arith.divf %533, %534 : vector<16x1xf32>
    %536 = vector.broadcast %535 : vector<16x1xf32> to vector<16x32xf32>
    %537 = arith.subf %529, %536 : vector<16x32xf32>
    %538 = arith.mulf %537, %537 : vector<16x32xf32>
    %cst_240 = arith.constant dense<0.000000e+00> : vector<16xf32>
    %539 = vector.multi_reduction <add>, %538, %cst_240 [1] : vector<16x32xf32> to vector<16xf32>
    %540 = vector.shape_cast %539 : vector<16xf32> to vector<16x1xf32>
    %cst_241 = arith.constant 3.200000e+01 : f32
    %541 = vector.broadcast %cst_241 : f32 to vector<16x1xf32>
    %542 = arith.divf %540, %541 : vector<16x1xf32>
    %543 = vector.broadcast %535 : vector<16x1xf32> to vector<16x32xf32>
    %544 = arith.subf %529, %543 : vector<16x32xf32>
    %cst_242 = arith.constant 9.99999974E-6 : f32
    %545 = vector.broadcast %cst_242 : f32 to vector<16x1xf32>
    %546 = arith.addf %542, %545 : vector<16x1xf32>
    %547 = math.rsqrt %546 : vector<16x1xf32>
    %548 = vector.broadcast %547 : vector<16x1xf32> to vector<16x32xf32>
    %549 = arith.mulf %544, %548 : vector<16x32xf32>
    %550 = vector.broadcast %530 : vector<1x32xf32> to vector<16x32xf32>
    %551 = arith.mulf %549, %550 : vector<16x32xf32>
    %552 = vector.broadcast %531 : vector<1x32xf32> to vector<16x32xf32>
    %553 = arith.addf %551, %552 : vector<16x32xf32>
    %c0_243 = arith.constant 0 : index
    %c0_244 = arith.constant 0 : index
    %c0_245 = arith.constant 0 : index
    %554 = vector.load %arg19[%c0_243, %c0_244, %c0_245] : memref<2x32x96xf32, #tpu.memory_space<vmem>>, vector<1x32x96xf32>
    %555 = vector.shape_cast %554 : vector<1x32x96xf32> to vector<32x96xf32>
    %c0_246 = arith.constant 0 : index
    %c0_247 = arith.constant 0 : index
    %c0_248 = arith.constant 0 : index
    %556 = vector.load %arg20[%c0_246, %c0_247, %c0_248] : memref<2x1x96xf32, #tpu.memory_space<vmem>>, vector<1x1x96xf32>
    %557 = vector.shape_cast %556 : vector<1x1x96xf32> to vector<1x96xf32>
    %c0_249 = arith.constant 0 : index
    %c0_250 = arith.constant 0 : index
    %c0_251 = arith.constant 0 : index
    %558 = vector.load %arg21[%c0_249, %c0_250, %c0_251] : memref<2x32x32xf32, #tpu.memory_space<vmem>>, vector<1x32x32xf32>
    %559 = vector.shape_cast %558 : vector<1x32x32xf32> to vector<32x32xf32>
    %c0_252 = arith.constant 0 : index
    %c0_253 = arith.constant 0 : index
    %c0_254 = arith.constant 0 : index
    %560 = vector.load %arg22[%c0_252, %c0_253, %c0_254] : memref<2x1x32xf32, #tpu.memory_space<vmem>>, vector<1x1x32xf32>
    %561 = vector.shape_cast %560 : vector<1x1x32xf32> to vector<1x32xf32>
    %c0_255 = arith.constant 0 : index
    %c0_256 = arith.constant 0 : index
    %c0_257 = arith.constant 0 : index
    %562 = vector.load %arg23[%c0_255, %c0_256, %c0_257] : memref<2x1x32xf32, #tpu.memory_space<vmem>>, vector<1x1x32xf32>
    %563 = vector.shape_cast %562 : vector<1x1x32xf32> to vector<1x32xf32>
    %c0_258 = arith.constant 0 : index
    %c0_259 = arith.constant 0 : index
    %c0_260 = arith.constant 0 : index
    %564 = vector.load %arg24[%c0_258, %c0_259, %c0_260] : memref<2x1x32xf32, #tpu.memory_space<vmem>>, vector<1x1x32xf32>
    %565 = vector.shape_cast %564 : vector<1x1x32xf32> to vector<1x32xf32>
    %cst_261 = arith.constant dense<0.000000e+00> : vector<16x96xf32>
    %566 = tpu.matmul %553, %555, %cst_261 {dimension_numbers = #tpu.dot_dimension_numbers<[1], [0], [0], [1], [0, 0, 1, 1], [], []>} : vector<16x32xf32>, vector<32x96xf32>, vector<16x96xf32> -> vector<16x96xf32>
    %567 = vector.broadcast %557 : vector<1x96xf32> to vector<16x96xf32>
    %568 = arith.addf %566, %567 : vector<16x96xf32>
    %569 = vector.extract_strided_slice %568 {offsets = [0, 0], sizes = [16, 32], strides = [1, 1]} : vector<16x96xf32> to vector<16x32xf32>
    %570 = vector.extract_strided_slice %568 {offsets = [0, 32], sizes = [16, 32], strides = [1, 1]} : vector<16x96xf32> to vector<16x32xf32>
    %571 = vector.extract_strided_slice %568 {offsets = [0, 64], sizes = [16, 32], strides = [1, 1]} : vector<16x96xf32> to vector<16x32xf32>
    %572 = vector.extract_strided_slice %569 {offsets = [0, 0], sizes = [8, 8], strides = [1, 1]} : vector<16x32xf32> to vector<8x8xf32>
    %573 = vector.extract_strided_slice %570 {offsets = [0, 0], sizes = [8, 8], strides = [1, 1]} : vector<16x32xf32> to vector<8x8xf32>
    %574 = vector.extract_strided_slice %571 {offsets = [0, 0], sizes = [8, 8], strides = [1, 1]} : vector<16x32xf32> to vector<8x8xf32>
    %cst_262 = arith.constant dense<0.000000e+00> : vector<8x8xf32>
    %575 = tpu.matmul %572, %573, %cst_262 {dimension_numbers = #tpu.dot_dimension_numbers<[1], [1], [0], [0], [0, 0, 1, 0], [], []>} : vector<8x8xf32>, vector<8x8xf32>, vector<8x8xf32> -> vector<8x8xf32>
    %cst_263 = arith.constant 0.353553385 : f32
    %576 = vector.broadcast %cst_263 : f32 to vector<8x8xf32>
    %577 = arith.mulf %575, %576 : vector<8x8xf32>
    %578 = arith.addf %577, %0 : vector<8x8xf32>
    %cst_264 = arith.constant dense<0xFF800000> : vector<8xf32>
    %579 = vector.multi_reduction <maximumf>, %578, %cst_264 [1] : vector<8x8xf32> to vector<8xf32>
    %580 = vector.shape_cast %579 : vector<8xf32> to vector<8x1xf32>
    %581 = vector.broadcast %580 : vector<8x1xf32> to vector<8x8xf32>
    %582 = arith.subf %578, %581 : vector<8x8xf32>
    %583 = math.exp %582 : vector<8x8xf32>
    %cst_265 = arith.constant dense<0.000000e+00> : vector<8xf32>
    %584 = vector.multi_reduction <add>, %583, %cst_265 [1] : vector<8x8xf32> to vector<8xf32>
    %585 = vector.shape_cast %584 : vector<8xf32> to vector<8x1xf32>
    %586 = tpu.reciprocal %585 : vector<8x1xf32> -> vector<8x1xf32>
    %587 = vector.broadcast %586 : vector<8x1xf32> to vector<8x8xf32>
    %588 = arith.mulf %583, %587 : vector<8x8xf32>
    %cst_266 = arith.constant dense<0.000000e+00> : vector<8x8xf32>
    %589 = tpu.matmul %588, %574, %cst_266 {dimension_numbers = #tpu.dot_dimension_numbers<[1], [0], [0], [1], [0, 0, 1, 1], [], []>} : vector<8x8xf32>, vector<8x8xf32>, vector<8x8xf32> -> vector<8x8xf32>
    %c0_267 = arith.constant 0 : index
    %c0_268 = arith.constant 0 : index
    %590 = vector.load %arg40[%c0_267, %c0_268] : memref<16x32xf32, #tpu.memory_space<vmem>>, vector<8x8xf32>
    tpu.vector_store %arg40[%c0_267, %c0_268], %589 {strides = array<i32>} : memref<16x32xf32, #tpu.memory_space<vmem>>, vector<8x8xf32>,
    %591 = vector.extract_strided_slice %569 {offsets = [0, 8], sizes = [8, 8], strides = [1, 1]} : vector<16x32xf32> to vector<8x8xf32>
    %592 = vector.extract_strided_slice %570 {offsets = [0, 8], sizes = [8, 8], strides = [1, 1]} : vector<16x32xf32> to vector<8x8xf32>
    %593 = vector.extract_strided_slice %571 {offsets = [0, 8], sizes = [8, 8], strides = [1, 1]} : vector<16x32xf32> to vector<8x8xf32>
    %cst_269 = arith.constant dense<0.000000e+00> : vector<8x8xf32>
    %594 = tpu.matmul %591, %592, %cst_269 {dimension_numbers = #tpu.dot_dimension_numbers<[1], [1], [0], [0], [0, 0, 1, 0], [], []>} : vector<8x8xf32>, vector<8x8xf32>, vector<8x8xf32> -> vector<8x8xf32>
    %cst_270 = arith.constant 0.353553385 : f32
    %595 = vector.broadcast %cst_270 : f32 to vector<8x8xf32>
    %596 = arith.mulf %594, %595 : vector<8x8xf32>
    %597 = arith.addf %596, %0 : vector<8x8xf32>
    %cst_271 = arith.constant dense<0xFF800000> : vector<8xf32>
    %598 = vector.multi_reduction <maximumf>, %597, %cst_271 [1] : vector<8x8xf32> to vector<8xf32>
    %599 = vector.shape_cast %598 : vector<8xf32> to vector<8x1xf32>
    %600 = vector.broadcast %599 : vector<8x1xf32> to vector<8x8xf32>
    %601 = arith.subf %597, %600 : vector<8x8xf32>
    %602 = math.exp %601 : vector<8x8xf32>
    %cst_272 = arith.constant dense<0.000000e+00> : vector<8xf32>
    %603 = vector.multi_reduction <add>, %602, %cst_272 [1] : vector<8x8xf32> to vector<8xf32>
    %604 = vector.shape_cast %603 : vector<8xf32> to vector<8x1xf32>
    %605 = tpu.reciprocal %604 : vector<8x1xf32> -> vector<8x1xf32>
    %606 = vector.broadcast %605 : vector<8x1xf32> to vector<8x8xf32>
    %607 = arith.mulf %602, %606 : vector<8x8xf32>
    %cst_273 = arith.constant dense<0.000000e+00> : vector<8x8xf32>
    %608 = tpu.matmul %607, %593, %cst_273 {dimension_numbers = #tpu.dot_dimension_numbers<[1], [0], [0], [1], [0, 0, 1, 1], [], []>} : vector<8x8xf32>, vector<8x8xf32>, vector<8x8xf32> -> vector<8x8xf32>
    %c0_274 = arith.constant 0 : index
    %c8_275 = arith.constant 8 : index
    %609 = vector.load %arg40[%c0_274, %c8_275] : memref<16x32xf32, #tpu.memory_space<vmem>>, vector<8x8xf32>
    tpu.vector_store %arg40[%c0_274, %c8_275], %608 {strides = array<i32>} : memref<16x32xf32, #tpu.memory_space<vmem>>, vector<8x8xf32>,
    %610 = vector.extract_strided_slice %569 {offsets = [0, 16], sizes = [8, 8], strides = [1, 1]} : vector<16x32xf32> to vector<8x8xf32>
    %611 = vector.extract_strided_slice %570 {offsets = [0, 16], sizes = [8, 8], strides = [1, 1]} : vector<16x32xf32> to vector<8x8xf32>
    %612 = vector.extract_strided_slice %571 {offsets = [0, 16], sizes = [8, 8], strides = [1, 1]} : vector<16x32xf32> to vector<8x8xf32>
    %cst_276 = arith.constant dense<0.000000e+00> : vector<8x8xf32>
    %613 = tpu.matmul %610, %611, %cst_276 {dimension_numbers = #tpu.dot_dimension_numbers<[1], [1], [0], [0], [0, 0, 1, 0], [], []>} : vector<8x8xf32>, vector<8x8xf32>, vector<8x8xf32> -> vector<8x8xf32>
    %cst_277 = arith.constant 0.353553385 : f32
    %614 = vector.broadcast %cst_277 : f32 to vector<8x8xf32>
    %615 = arith.mulf %613, %614 : vector<8x8xf32>
    %616 = arith.addf %615, %0 : vector<8x8xf32>
    %cst_278 = arith.constant dense<0xFF800000> : vector<8xf32>
    %617 = vector.multi_reduction <maximumf>, %616, %cst_278 [1] : vector<8x8xf32> to vector<8xf32>
    %618 = vector.shape_cast %617 : vector<8xf32> to vector<8x1xf32>
    %619 = vector.broadcast %618 : vector<8x1xf32> to vector<8x8xf32>
    %620 = arith.subf %616, %619 : vector<8x8xf32>
    %621 = math.exp %620 : vector<8x8xf32>
    %cst_279 = arith.constant dense<0.000000e+00> : vector<8xf32>
    %622 = vector.multi_reduction <add>, %621, %cst_279 [1] : vector<8x8xf32> to vector<8xf32>
    %623 = vector.shape_cast %622 : vector<8xf32> to vector<8x1xf32>
    %624 = tpu.reciprocal %623 : vector<8x1xf32> -> vector<8x1xf32>
    %625 = vector.broadcast %624 : vector<8x1xf32> to vector<8x8xf32>
    %626 = arith.mulf %621, %625 : vector<8x8xf32>
    %cst_280 = arith.constant dense<0.000000e+00> : vector<8x8xf32>
    %627 = tpu.matmul %626, %612, %cst_280 {dimension_numbers = #tpu.dot_dimension_numbers<[1], [0], [0], [1], [0, 0, 1, 1], [], []>} : vector<8x8xf32>, vector<8x8xf32>, vector<8x8xf32> -> vector<8x8xf32>
    %c0_281 = arith.constant 0 : index
    %c16_282 = arith.constant 16 : index
    %628 = vector.load %arg40[%c0_281, %c16_282] : memref<16x32xf32, #tpu.memory_space<vmem>>, vector<8x8xf32>
    tpu.vector_store %arg40[%c0_281, %c16_282], %627 {strides = array<i32>} : memref<16x32xf32, #tpu.memory_space<vmem>>, vector<8x8xf32>,
    %629 = vector.extract_strided_slice %569 {offsets = [0, 24], sizes = [8, 8], strides = [1, 1]} : vector<16x32xf32> to vector<8x8xf32>
    %630 = vector.extract_strided_slice %570 {offsets = [0, 24], sizes = [8, 8], strides = [1, 1]} : vector<16x32xf32> to vector<8x8xf32>
    %631 = vector.extract_strided_slice %571 {offsets = [0, 24], sizes = [8, 8], strides = [1, 1]} : vector<16x32xf32> to vector<8x8xf32>
    %cst_283 = arith.constant dense<0.000000e+00> : vector<8x8xf32>
    %632 = tpu.matmul %629, %630, %cst_283 {dimension_numbers = #tpu.dot_dimension_numbers<[1], [1], [0], [0], [0, 0, 1, 0], [], []>} : vector<8x8xf32>, vector<8x8xf32>, vector<8x8xf32> -> vector<8x8xf32>
    %cst_284 = arith.constant 0.353553385 : f32
    %633 = vector.broadcast %cst_284 : f32 to vector<8x8xf32>
    %634 = arith.mulf %632, %633 : vector<8x8xf32>
    %635 = arith.addf %634, %0 : vector<8x8xf32>
    %cst_285 = arith.constant dense<0xFF800000> : vector<8xf32>
    %636 = vector.multi_reduction <maximumf>, %635, %cst_285 [1] : vector<8x8xf32> to vector<8xf32>
    %637 = vector.shape_cast %636 : vector<8xf32> to vector<8x1xf32>
    %638 = vector.broadcast %637 : vector<8x1xf32> to vector<8x8xf32>
    %639 = arith.subf %635, %638 : vector<8x8xf32>
    %640 = math.exp %639 : vector<8x8xf32>
    %cst_286 = arith.constant dense<0.000000e+00> : vector<8xf32>
    %641 = vector.multi_reduction <add>, %640, %cst_286 [1] : vector<8x8xf32> to vector<8xf32>
    %642 = vector.shape_cast %641 : vector<8xf32> to vector<8x1xf32>
    %643 = tpu.reciprocal %642 : vector<8x1xf32> -> vector<8x1xf32>
    %644 = vector.broadcast %643 : vector<8x1xf32> to vector<8x8xf32>
    %645 = arith.mulf %640, %644 : vector<8x8xf32>
    %cst_287 = arith.constant dense<0.000000e+00> : vector<8x8xf32>
    %646 = tpu.matmul %645, %631, %cst_287 {dimension_numbers = #tpu.dot_dimension_numbers<[1], [0], [0], [1], [0, 0, 1, 1], [], []>} : vector<8x8xf32>, vector<8x8xf32>, vector<8x8xf32> -> vector<8x8xf32>
    %c0_288 = arith.constant 0 : index
    %c24_289 = arith.constant 24 : index
    %647 = vector.load %arg40[%c0_288, %c24_289] : memref<16x32xf32, #tpu.memory_space<vmem>>, vector<8x8xf32>
    tpu.vector_store %arg40[%c0_288, %c24_289], %646 {strides = array<i32>} : memref<16x32xf32, #tpu.memory_space<vmem>>, vector<8x8xf32>,
    %648 = vector.extract_strided_slice %569 {offsets = [8, 0], sizes = [8, 8], strides = [1, 1]} : vector<16x32xf32> to vector<8x8xf32>
    %649 = vector.extract_strided_slice %570 {offsets = [8, 0], sizes = [8, 8], strides = [1, 1]} : vector<16x32xf32> to vector<8x8xf32>
    %650 = vector.extract_strided_slice %571 {offsets = [8, 0], sizes = [8, 8], strides = [1, 1]} : vector<16x32xf32> to vector<8x8xf32>
    %cst_290 = arith.constant dense<0.000000e+00> : vector<8x8xf32>
    %651 = tpu.matmul %648, %649, %cst_290 {dimension_numbers = #tpu.dot_dimension_numbers<[1], [1], [0], [0], [0, 0, 1, 0], [], []>} : vector<8x8xf32>, vector<8x8xf32>, vector<8x8xf32> -> vector<8x8xf32>
    %cst_291 = arith.constant 0.353553385 : f32
    %652 = vector.broadcast %cst_291 : f32 to vector<8x8xf32>
    %653 = arith.mulf %651, %652 : vector<8x8xf32>
    %654 = arith.addf %653, %0 : vector<8x8xf32>
    %cst_292 = arith.constant dense<0xFF800000> : vector<8xf32>
    %655 = vector.multi_reduction <maximumf>, %654, %cst_292 [1] : vector<8x8xf32> to vector<8xf32>
    %656 = vector.shape_cast %655 : vector<8xf32> to vector<8x1xf32>
    %657 = vector.broadcast %656 : vector<8x1xf32> to vector<8x8xf32>
    %658 = arith.subf %654, %657 : vector<8x8xf32>
    %659 = math.exp %658 : vector<8x8xf32>
    %cst_293 = arith.constant dense<0.000000e+00> : vector<8xf32>
    %660 = vector.multi_reduction <add>, %659, %cst_293 [1] : vector<8x8xf32> to vector<8xf32>
    %661 = vector.shape_cast %660 : vector<8xf32> to vector<8x1xf32>
    %662 = tpu.reciprocal %661 : vector<8x1xf32> -> vector<8x1xf32>
    %663 = vector.broadcast %662 : vector<8x1xf32> to vector<8x8xf32>
    %664 = arith.mulf %659, %663 : vector<8x8xf32>
    %cst_294 = arith.constant dense<0.000000e+00> : vector<8x8xf32>
    %665 = tpu.matmul %664, %650, %cst_294 {dimension_numbers = #tpu.dot_dimension_numbers<[1], [0], [0], [1], [0, 0, 1, 1], [], []>} : vector<8x8xf32>, vector<8x8xf32>, vector<8x8xf32> -> vector<8x8xf32>
    %c8_295 = arith.constant 8 : index
    %c0_296 = arith.constant 0 : index
    %666 = vector.load %arg40[%c8_295, %c0_296] : memref<16x32xf32, #tpu.memory_space<vmem>>, vector<8x8xf32>
    tpu.vector_store %arg40[%c8_295, %c0_296], %665 {strides = array<i32>} : memref<16x32xf32, #tpu.memory_space<vmem>>, vector<8x8xf32>,
    %667 = vector.extract_strided_slice %569 {offsets = [8, 8], sizes = [8, 8], strides = [1, 1]} : vector<16x32xf32> to vector<8x8xf32>
    %668 = vector.extract_strided_slice %570 {offsets = [8, 8], sizes = [8, 8], strides = [1, 1]} : vector<16x32xf32> to vector<8x8xf32>
    %669 = vector.extract_strided_slice %571 {offsets = [8, 8], sizes = [8, 8], strides = [1, 1]} : vector<16x32xf32> to vector<8x8xf32>
    %cst_297 = arith.constant dense<0.000000e+00> : vector<8x8xf32>
    %670 = tpu.matmul %667, %668, %cst_297 {dimension_numbers = #tpu.dot_dimension_numbers<[1], [1], [0], [0], [0, 0, 1, 0], [], []>} : vector<8x8xf32>, vector<8x8xf32>, vector<8x8xf32> -> vector<8x8xf32>
    %cst_298 = arith.constant 0.353553385 : f32
    %671 = vector.broadcast %cst_298 : f32 to vector<8x8xf32>
    %672 = arith.mulf %670, %671 : vector<8x8xf32>
    %673 = arith.addf %672, %0 : vector<8x8xf32>
    %cst_299 = arith.constant dense<0xFF800000> : vector<8xf32>
    %674 = vector.multi_reduction <maximumf>, %673, %cst_299 [1] : vector<8x8xf32> to vector<8xf32>
    %675 = vector.shape_cast %674 : vector<8xf32> to vector<8x1xf32>
    %676 = vector.broadcast %675 : vector<8x1xf32> to vector<8x8xf32>
    %677 = arith.subf %673, %676 : vector<8x8xf32>
    %678 = math.exp %677 : vector<8x8xf32>
    %cst_300 = arith.constant dense<0.000000e+00> : vector<8xf32>
    %679 = vector.multi_reduction <add>, %678, %cst_300 [1] : vector<8x8xf32> to vector<8xf32>
    %680 = vector.shape_cast %679 : vector<8xf32> to vector<8x1xf32>
    %681 = tpu.reciprocal %680 : vector<8x1xf32> -> vector<8x1xf32>
    %682 = vector.broadcast %681 : vector<8x1xf32> to vector<8x8xf32>
    %683 = arith.mulf %678, %682 : vector<8x8xf32>
    %cst_301 = arith.constant dense<0.000000e+00> : vector<8x8xf32>
    %684 = tpu.matmul %683, %669, %cst_301 {dimension_numbers = #tpu.dot_dimension_numbers<[1], [0], [0], [1], [0, 0, 1, 1], [], []>} : vector<8x8xf32>, vector<8x8xf32>, vector<8x8xf32> -> vector<8x8xf32>
    %c8_302 = arith.constant 8 : index
    %c8_303 = arith.constant 8 : index
    %685 = vector.load %arg40[%c8_302, %c8_303] : memref<16x32xf32, #tpu.memory_space<vmem>>, vector<8x8xf32>
    tpu.vector_store %arg40[%c8_302, %c8_303], %684 {strides = array<i32>} : memref<16x32xf32, #tpu.memory_space<vmem>>, vector<8x8xf32>,
    %686 = vector.extract_strided_slice %569 {offsets = [8, 16], sizes = [8, 8], strides = [1, 1]} : vector<16x32xf32> to vector<8x8xf32>
    %687 = vector.extract_strided_slice %570 {offsets = [8, 16], sizes = [8, 8], strides = [1, 1]} : vector<16x32xf32> to vector<8x8xf32>
    %688 = vector.extract_strided_slice %571 {offsets = [8, 16], sizes = [8, 8], strides = [1, 1]} : vector<16x32xf32> to vector<8x8xf32>
    %cst_304 = arith.constant dense<0.000000e+00> : vector<8x8xf32>
    %689 = tpu.matmul %686, %687, %cst_304 {dimension_numbers = #tpu.dot_dimension_numbers<[1], [1], [0], [0], [0, 0, 1, 0], [], []>} : vector<8x8xf32>, vector<8x8xf32>, vector<8x8xf32> -> vector<8x8xf32>
    %cst_305 = arith.constant 0.353553385 : f32
    %690 = vector.broadcast %cst_305 : f32 to vector<8x8xf32>
    %691 = arith.mulf %689, %690 : vector<8x8xf32>
    %692 = arith.addf %691, %0 : vector<8x8xf32>
    %cst_306 = arith.constant dense<0xFF800000> : vector<8xf32>
    %693 = vector.multi_reduction <maximumf>, %692, %cst_306 [1] : vector<8x8xf32> to vector<8xf32>
    %694 = vector.shape_cast %693 : vector<8xf32> to vector<8x1xf32>
    %695 = vector.broadcast %694 : vector<8x1xf32> to vector<8x8xf32>
    %696 = arith.subf %692, %695 : vector<8x8xf32>
    %697 = math.exp %696 : vector<8x8xf32>
    %cst_307 = arith.constant dense<0.000000e+00> : vector<8xf32>
    %698 = vector.multi_reduction <add>, %697, %cst_307 [1] : vector<8x8xf32> to vector<8xf32>
    %699 = vector.shape_cast %698 : vector<8xf32> to vector<8x1xf32>
    %700 = tpu.reciprocal %699 : vector<8x1xf32> -> vector<8x1xf32>
    %701 = vector.broadcast %700 : vector<8x1xf32> to vector<8x8xf32>
    %702 = arith.mulf %697, %701 : vector<8x8xf32>
    %cst_308 = arith.constant dense<0.000000e+00> : vector<8x8xf32>
    %703 = tpu.matmul %702, %688, %cst_308 {dimension_numbers = #tpu.dot_dimension_numbers<[1], [0], [0], [1], [0, 0, 1, 1], [], []>} : vector<8x8xf32>, vector<8x8xf32>, vector<8x8xf32> -> vector<8x8xf32>
    %c8_309 = arith.constant 8 : index
    %c16_310 = arith.constant 16 : index
    %704 = vector.load %arg40[%c8_309, %c16_310] : memref<16x32xf32, #tpu.memory_space<vmem>>, vector<8x8xf32>
    tpu.vector_store %arg40[%c8_309, %c16_310], %703 {strides = array<i32>} : memref<16x32xf32, #tpu.memory_space<vmem>>, vector<8x8xf32>,
    %705 = vector.extract_strided_slice %569 {offsets = [8, 24], sizes = [8, 8], strides = [1, 1]} : vector<16x32xf32> to vector<8x8xf32>
    %706 = vector.extract_strided_slice %570 {offsets = [8, 24], sizes = [8, 8], strides = [1, 1]} : vector<16x32xf32> to vector<8x8xf32>
    %707 = vector.extract_strided_slice %571 {offsets = [8, 24], sizes = [8, 8], strides = [1, 1]} : vector<16x32xf32> to vector<8x8xf32>
    %cst_311 = arith.constant dense<0.000000e+00> : vector<8x8xf32>
    %708 = tpu.matmul %705, %706, %cst_311 {dimension_numbers = #tpu.dot_dimension_numbers<[1], [1], [0], [0], [0, 0, 1, 0], [], []>} : vector<8x8xf32>, vector<8x8xf32>, vector<8x8xf32> -> vector<8x8xf32>
    %cst_312 = arith.constant 0.353553385 : f32
    %709 = vector.broadcast %cst_312 : f32 to vector<8x8xf32>
    %710 = arith.mulf %708, %709 : vector<8x8xf32>
    %711 = arith.addf %710, %0 : vector<8x8xf32>
    %cst_313 = arith.constant dense<0xFF800000> : vector<8xf32>
    %712 = vector.multi_reduction <maximumf>, %711, %cst_313 [1] : vector<8x8xf32> to vector<8xf32>
    %713 = vector.shape_cast %712 : vector<8xf32> to vector<8x1xf32>
    %714 = vector.broadcast %713 : vector<8x1xf32> to vector<8x8xf32>
    %715 = arith.subf %711, %714 : vector<8x8xf32>
    %716 = math.exp %715 : vector<8x8xf32>
    %cst_314 = arith.constant dense<0.000000e+00> : vector<8xf32>
    %717 = vector.multi_reduction <add>, %716, %cst_314 [1] : vector<8x8xf32> to vector<8xf32>
    %718 = vector.shape_cast %717 : vector<8xf32> to vector<8x1xf32>
    %719 = tpu.reciprocal %718 : vector<8x1xf32> -> vector<8x1xf32>
    %720 = vector.broadcast %719 : vector<8x1xf32> to vector<8x8xf32>
    %721 = arith.mulf %716, %720 : vector<8x8xf32>
    %cst_315 = arith.constant dense<0.000000e+00> : vector<8x8xf32>
    %722 = tpu.matmul %721, %707, %cst_315 {dimension_numbers = #tpu.dot_dimension_numbers<[1], [0], [0], [1], [0, 0, 1, 1], [], []>} : vector<8x8xf32>, vector<8x8xf32>, vector<8x8xf32> -> vector<8x8xf32>
    %c8_316 = arith.constant 8 : index
    %c24_317 = arith.constant 24 : index
    %723 = vector.load %arg40[%c8_316, %c24_317] : memref<16x32xf32, #tpu.memory_space<vmem>>, vector<8x8xf32>
    tpu.vector_store %arg40[%c8_316, %c24_317], %722 {strides = array<i32>} : memref<16x32xf32, #tpu.memory_space<vmem>>, vector<8x8xf32>,
    %c0_318 = arith.constant 0 : index
    %c0_319 = arith.constant 0 : index
    %724 = vector.load %arg40[%c0_318, %c0_319] : memref<16x32xf32, #tpu.memory_space<vmem>>, vector<16x32xf32>
    %cst_320 = arith.constant dense<0.000000e+00> : vector<16x32xf32>
    %725 = tpu.matmul %724, %559, %cst_320 {dimension_numbers = #tpu.dot_dimension_numbers<[1], [0], [0], [1], [0, 0, 1, 1], [], []>} : vector<16x32xf32>, vector<32x32xf32>, vector<16x32xf32> -> vector<16x32xf32>
    %726 = vector.broadcast %561 : vector<1x32xf32> to vector<16x32xf32>
    %727 = arith.addf %725, %726 : vector<16x32xf32>
    %728 = arith.addf %553, %727 : vector<16x32xf32>
    %cst_321 = arith.constant dense<0.000000e+00> : vector<16xf32>
    %729 = vector.multi_reduction <add>, %728, %cst_321 [1] : vector<16x32xf32> to vector<16xf32>
    %730 = vector.shape_cast %729 : vector<16xf32> to vector<16x1xf32>
    %cst_322 = arith.constant 3.200000e+01 : f32
    %731 = vector.broadcast %cst_322 : f32 to vector<16x1xf32>
    %732 = arith.divf %730, %731 : vector<16x1xf32>
    %733 = vector.broadcast %732 : vector<16x1xf32> to vector<16x32xf32>
    %734 = arith.subf %728, %733 : vector<16x32xf32>
    %735 = arith.mulf %734, %734 : vector<16x32xf32>
    %cst_323 = arith.constant dense<0.000000e+00> : vector<16xf32>
    %736 = vector.multi_reduction <add>, %735, %cst_323 [1] : vector<16x32xf32> to vector<16xf32>
    %737 = vector.shape_cast %736 : vector<16xf32> to vector<16x1xf32>
    %cst_324 = arith.constant 3.200000e+01 : f32
    %738 = vector.broadcast %cst_324 : f32 to vector<16x1xf32>
    %739 = arith.divf %737, %738 : vector<16x1xf32>
    %740 = vector.broadcast %732 : vector<16x1xf32> to vector<16x32xf32>
    %741 = arith.subf %728, %740 : vector<16x32xf32>
    %cst_325 = arith.constant 9.99999974E-6 : f32
    %742 = vector.broadcast %cst_325 : f32 to vector<16x1xf32>
    %743 = arith.addf %739, %742 : vector<16x1xf32>
    %744 = math.rsqrt %743 : vector<16x1xf32>
    %745 = vector.broadcast %744 : vector<16x1xf32> to vector<16x32xf32>
    %746 = arith.mulf %741, %745 : vector<16x32xf32>
    %747 = vector.broadcast %563 : vector<1x32xf32> to vector<16x32xf32>
    %748 = arith.mulf %746, %747 : vector<16x32xf32>
    %749 = vector.broadcast %565 : vector<1x32xf32> to vector<16x32xf32>
    %750 = arith.addf %748, %749 : vector<16x32xf32>
    %c0_326 = arith.constant 0 : index
    %c0_327 = arith.constant 0 : index
    %c0_328 = arith.constant 0 : index
    %751 = vector.load %arg25[%c0_326, %c0_327, %c0_328] : memref<2x32x32xf32, #tpu.memory_space<vmem>>, vector<1x32x32xf32>
    %752 = vector.shape_cast %751 : vector<1x32x32xf32> to vector<32x32xf32>
    %cst_329 = arith.constant dense<0.000000e+00> : vector<16x32xf32>
    %753 = tpu.matmul %750, %752, %cst_329 {dimension_numbers = #tpu.dot_dimension_numbers<[1], [0], [0], [1], [0, 0, 1, 1], [], []>} : vector<16x32xf32>, vector<32x32xf32>, vector<16x32xf32> -> vector<16x32xf32>
    %c0_330 = arith.constant 0 : index
    %c0_331 = arith.constant 0 : index
    %c0_332 = arith.constant 0 : index
    %754 = vector.load %arg26[%c0_330, %c0_331, %c0_332] : memref<2x1x32xf32, #tpu.memory_space<vmem>>, vector<1x1x32xf32>
    %755 = vector.shape_cast %754 : vector<1x1x32xf32> to vector<1x32xf32>
    %756 = vector.broadcast %755 : vector<1x32xf32> to vector<16x32xf32>
    %757 = arith.addf %753, %756 : vector<16x32xf32>
    %c0_333 = arith.constant 0 : index
    %c0_334 = arith.constant 0 : index
    %c0_335 = arith.constant 0 : index
    %758 = vector.load %arg27[%c0_333, %c0_334, %c0_335] : memref<2x32x64xf32, #tpu.memory_space<vmem>>, vector<1x32x64xf32>
    %759 = vector.shape_cast %758 : vector<1x32x64xf32> to vector<32x64xf32>
    %cst_336 = arith.constant dense<0.000000e+00> : vector<16x64xf32>
    %760 = tpu.matmul %528, %759, %cst_336 {dimension_numbers = #tpu.dot_dimension_numbers<[1], [0], [0], [1], [0, 0, 1, 1], [], []>} : vector<16x32xf32>, vector<32x64xf32>, vector<16x64xf32> -> vector<16x64xf32>
    %c0_337 = arith.constant 0 : index
    %c0_338 = arith.constant 0 : index
    %c0_339 = arith.constant 0 : index
    %761 = vector.load %arg28[%c0_337, %c0_338, %c0_339] : memref<2x1x64xf32, #tpu.memory_space<vmem>>, vector<1x1x64xf32>
    %762 = vector.shape_cast %761 : vector<1x1x64xf32> to vector<1x64xf32>
    %763 = vector.broadcast %762 : vector<1x64xf32> to vector<16x64xf32>
    %764 = arith.addf %760, %763 : vector<16x64xf32>
    %765 = vector.extract_strided_slice %764 {offsets = [0, 0], sizes = [16, 32], strides = [1, 1]} : vector<16x64xf32> to vector<16x32xf32>
    %766 = vector.extract_strided_slice %764 {offsets = [0, 32], sizes = [16, 32], strides = [1, 1]} : vector<16x64xf32> to vector<16x32xf32>
    %767 = vector.extract_strided_slice %757 {offsets = [0, 0], sizes = [8, 8], strides = [1, 1]} : vector<16x32xf32> to vector<8x8xf32>
    %768 = vector.extract_strided_slice %765 {offsets = [0, 0], sizes = [8, 8], strides = [1, 1]} : vector<16x32xf32> to vector<8x8xf32>
    %769 = vector.extract_strided_slice %766 {offsets = [0, 0], sizes = [8, 8], strides = [1, 1]} : vector<16x32xf32> to vector<8x8xf32>
    %cst_340 = arith.constant dense<0.000000e+00> : vector<8x8xf32>
    %770 = tpu.matmul %767, %768, %cst_340 {dimension_numbers = #tpu.dot_dimension_numbers<[1], [1], [0], [0], [0, 0, 1, 0], [], []>} : vector<8x8xf32>, vector<8x8xf32>, vector<8x8xf32> -> vector<8x8xf32>
    %cst_341 = arith.constant 0.353553385 : f32
    %771 = vector.broadcast %cst_341 : f32 to vector<8x8xf32>
    %772 = arith.mulf %770, %771 : vector<8x8xf32>
    %773 = arith.addf %772, %1 : vector<8x8xf32>
    %cst_342 = arith.constant dense<0xFF800000> : vector<8xf32>
    %774 = vector.multi_reduction <maximumf>, %773, %cst_342 [1] : vector<8x8xf32> to vector<8xf32>
    %775 = vector.shape_cast %774 : vector<8xf32> to vector<8x1xf32>
    %776 = vector.broadcast %775 : vector<8x1xf32> to vector<8x8xf32>
    %777 = arith.subf %773, %776 : vector<8x8xf32>
    %778 = math.exp %777 : vector<8x8xf32>
    %cst_343 = arith.constant dense<0.000000e+00> : vector<8xf32>
    %779 = vector.multi_reduction <add>, %778, %cst_343 [1] : vector<8x8xf32> to vector<8xf32>
    %780 = vector.shape_cast %779 : vector<8xf32> to vector<8x1xf32>
    %781 = tpu.reciprocal %780 : vector<8x1xf32> -> vector<8x1xf32>
    %782 = vector.broadcast %781 : vector<8x1xf32> to vector<8x8xf32>
    %783 = arith.mulf %778, %782 : vector<8x8xf32>
    %cst_344 = arith.constant dense<0.000000e+00> : vector<8x8xf32>
    %784 = tpu.matmul %783, %769, %cst_344 {dimension_numbers = #tpu.dot_dimension_numbers<[1], [0], [0], [1], [0, 0, 1, 1], [], []>} : vector<8x8xf32>, vector<8x8xf32>, vector<8x8xf32> -> vector<8x8xf32>
    %c0_345 = arith.constant 0 : index
    %c0_346 = arith.constant 0 : index
    %785 = vector.load %arg40[%c0_345, %c0_346] : memref<16x32xf32, #tpu.memory_space<vmem>>, vector<8x8xf32>
    tpu.vector_store %arg40[%c0_345, %c0_346], %784 {strides = array<i32>} : memref<16x32xf32, #tpu.memory_space<vmem>>, vector<8x8xf32>,
    %786 = vector.extract_strided_slice %757 {offsets = [0, 8], sizes = [8, 8], strides = [1, 1]} : vector<16x32xf32> to vector<8x8xf32>
    %787 = vector.extract_strided_slice %765 {offsets = [0, 8], sizes = [8, 8], strides = [1, 1]} : vector<16x32xf32> to vector<8x8xf32>
    %788 = vector.extract_strided_slice %766 {offsets = [0, 8], sizes = [8, 8], strides = [1, 1]} : vector<16x32xf32> to vector<8x8xf32>
    %cst_347 = arith.constant dense<0.000000e+00> : vector<8x8xf32>
    %789 = tpu.matmul %786, %787, %cst_347 {dimension_numbers = #tpu.dot_dimension_numbers<[1], [1], [0], [0], [0, 0, 1, 0], [], []>} : vector<8x8xf32>, vector<8x8xf32>, vector<8x8xf32> -> vector<8x8xf32>
    %cst_348 = arith.constant 0.353553385 : f32
    %790 = vector.broadcast %cst_348 : f32 to vector<8x8xf32>
    %791 = arith.mulf %789, %790 : vector<8x8xf32>
    %792 = arith.addf %791, %1 : vector<8x8xf32>
    %cst_349 = arith.constant dense<0xFF800000> : vector<8xf32>
    %793 = vector.multi_reduction <maximumf>, %792, %cst_349 [1] : vector<8x8xf32> to vector<8xf32>
    %794 = vector.shape_cast %793 : vector<8xf32> to vector<8x1xf32>
    %795 = vector.broadcast %794 : vector<8x1xf32> to vector<8x8xf32>
    %796 = arith.subf %792, %795 : vector<8x8xf32>
    %797 = math.exp %796 : vector<8x8xf32>
    %cst_350 = arith.constant dense<0.000000e+00> : vector<8xf32>
    %798 = vector.multi_reduction <add>, %797, %cst_350 [1] : vector<8x8xf32> to vector<8xf32>
    %799 = vector.shape_cast %798 : vector<8xf32> to vector<8x1xf32>
    %800 = tpu.reciprocal %799 : vector<8x1xf32> -> vector<8x1xf32>
    %801 = vector.broadcast %800 : vector<8x1xf32> to vector<8x8xf32>
    %802 = arith.mulf %797, %801 : vector<8x8xf32>
    %cst_351 = arith.constant dense<0.000000e+00> : vector<8x8xf32>
    %803 = tpu.matmul %802, %788, %cst_351 {dimension_numbers = #tpu.dot_dimension_numbers<[1], [0], [0], [1], [0, 0, 1, 1], [], []>} : vector<8x8xf32>, vector<8x8xf32>, vector<8x8xf32> -> vector<8x8xf32>
    %c0_352 = arith.constant 0 : index
    %c8_353 = arith.constant 8 : index
    %804 = vector.load %arg40[%c0_352, %c8_353] : memref<16x32xf32, #tpu.memory_space<vmem>>, vector<8x8xf32>
    tpu.vector_store %arg40[%c0_352, %c8_353], %803 {strides = array<i32>} : memref<16x32xf32, #tpu.memory_space<vmem>>, vector<8x8xf32>,
    %805 = vector.extract_strided_slice %757 {offsets = [0, 16], sizes = [8, 8], strides = [1, 1]} : vector<16x32xf32> to vector<8x8xf32>
    %806 = vector.extract_strided_slice %765 {offsets = [0, 16], sizes = [8, 8], strides = [1, 1]} : vector<16x32xf32> to vector<8x8xf32>
    %807 = vector.extract_strided_slice %766 {offsets = [0, 16], sizes = [8, 8], strides = [1, 1]} : vector<16x32xf32> to vector<8x8xf32>
    %cst_354 = arith.constant dense<0.000000e+00> : vector<8x8xf32>
    %808 = tpu.matmul %805, %806, %cst_354 {dimension_numbers = #tpu.dot_dimension_numbers<[1], [1], [0], [0], [0, 0, 1, 0], [], []>} : vector<8x8xf32>, vector<8x8xf32>, vector<8x8xf32> -> vector<8x8xf32>
    %cst_355 = arith.constant 0.353553385 : f32
    %809 = vector.broadcast %cst_355 : f32 to vector<8x8xf32>
    %810 = arith.mulf %808, %809 : vector<8x8xf32>
    %811 = arith.addf %810, %1 : vector<8x8xf32>
    %cst_356 = arith.constant dense<0xFF800000> : vector<8xf32>
    %812 = vector.multi_reduction <maximumf>, %811, %cst_356 [1] : vector<8x8xf32> to vector<8xf32>
    %813 = vector.shape_cast %812 : vector<8xf32> to vector<8x1xf32>
    %814 = vector.broadcast %813 : vector<8x1xf32> to vector<8x8xf32>
    %815 = arith.subf %811, %814 : vector<8x8xf32>
    %816 = math.exp %815 : vector<8x8xf32>
    %cst_357 = arith.constant dense<0.000000e+00> : vector<8xf32>
    %817 = vector.multi_reduction <add>, %816, %cst_357 [1] : vector<8x8xf32> to vector<8xf32>
    %818 = vector.shape_cast %817 : vector<8xf32> to vector<8x1xf32>
    %819 = tpu.reciprocal %818 : vector<8x1xf32> -> vector<8x1xf32>
    %820 = vector.broadcast %819 : vector<8x1xf32> to vector<8x8xf32>
    %821 = arith.mulf %816, %820 : vector<8x8xf32>
    %cst_358 = arith.constant dense<0.000000e+00> : vector<8x8xf32>
    %822 = tpu.matmul %821, %807, %cst_358 {dimension_numbers = #tpu.dot_dimension_numbers<[1], [0], [0], [1], [0, 0, 1, 1], [], []>} : vector<8x8xf32>, vector<8x8xf32>, vector<8x8xf32> -> vector<8x8xf32>
    %c0_359 = arith.constant 0 : index
    %c16_360 = arith.constant 16 : index
    %823 = vector.load %arg40[%c0_359, %c16_360] : memref<16x32xf32, #tpu.memory_space<vmem>>, vector<8x8xf32>
    tpu.vector_store %arg40[%c0_359, %c16_360], %822 {strides = array<i32>} : memref<16x32xf32, #tpu.memory_space<vmem>>, vector<8x8xf32>,
    %824 = vector.extract_strided_slice %757 {offsets = [0, 24], sizes = [8, 8], strides = [1, 1]} : vector<16x32xf32> to vector<8x8xf32>
    %825 = vector.extract_strided_slice %765 {offsets = [0, 24], sizes = [8, 8], strides = [1, 1]} : vector<16x32xf32> to vector<8x8xf32>
    %826 = vector.extract_strided_slice %766 {offsets = [0, 24], sizes = [8, 8], strides = [1, 1]} : vector<16x32xf32> to vector<8x8xf32>
    %cst_361 = arith.constant dense<0.000000e+00> : vector<8x8xf32>
    %827 = tpu.matmul %824, %825, %cst_361 {dimension_numbers = #tpu.dot_dimension_numbers<[1], [1], [0], [0], [0, 0, 1, 0], [], []>} : vector<8x8xf32>, vector<8x8xf32>, vector<8x8xf32> -> vector<8x8xf32>
    %cst_362 = arith.constant 0.353553385 : f32
    %828 = vector.broadcast %cst_362 : f32 to vector<8x8xf32>
    %829 = arith.mulf %827, %828 : vector<8x8xf32>
    %830 = arith.addf %829, %1 : vector<8x8xf32>
    %cst_363 = arith.constant dense<0xFF800000> : vector<8xf32>
    %831 = vector.multi_reduction <maximumf>, %830, %cst_363 [1] : vector<8x8xf32> to vector<8xf32>
    %832 = vector.shape_cast %831 : vector<8xf32> to vector<8x1xf32>
    %833 = vector.broadcast %832 : vector<8x1xf32> to vector<8x8xf32>
    %834 = arith.subf %830, %833 : vector<8x8xf32>
    %835 = math.exp %834 : vector<8x8xf32>
    %cst_364 = arith.constant dense<0.000000e+00> : vector<8xf32>
    %836 = vector.multi_reduction <add>, %835, %cst_364 [1] : vector<8x8xf32> to vector<8xf32>
    %837 = vector.shape_cast %836 : vector<8xf32> to vector<8x1xf32>
    %838 = tpu.reciprocal %837 : vector<8x1xf32> -> vector<8x1xf32>
    %839 = vector.broadcast %838 : vector<8x1xf32> to vector<8x8xf32>
    %840 = arith.mulf %835, %839 : vector<8x8xf32>
    %cst_365 = arith.constant dense<0.000000e+00> : vector<8x8xf32>
    %841 = tpu.matmul %840, %826, %cst_365 {dimension_numbers = #tpu.dot_dimension_numbers<[1], [0], [0], [1], [0, 0, 1, 1], [], []>} : vector<8x8xf32>, vector<8x8xf32>, vector<8x8xf32> -> vector<8x8xf32>
    %c0_366 = arith.constant 0 : index
    %c24_367 = arith.constant 24 : index
    %842 = vector.load %arg40[%c0_366, %c24_367] : memref<16x32xf32, #tpu.memory_space<vmem>>, vector<8x8xf32>
    tpu.vector_store %arg40[%c0_366, %c24_367], %841 {strides = array<i32>} : memref<16x32xf32, #tpu.memory_space<vmem>>, vector<8x8xf32>,
    %843 = vector.extract_strided_slice %757 {offsets = [8, 0], sizes = [8, 8], strides = [1, 1]} : vector<16x32xf32> to vector<8x8xf32>
    %844 = vector.extract_strided_slice %765 {offsets = [8, 0], sizes = [8, 8], strides = [1, 1]} : vector<16x32xf32> to vector<8x8xf32>
    %845 = vector.extract_strided_slice %766 {offsets = [8, 0], sizes = [8, 8], strides = [1, 1]} : vector<16x32xf32> to vector<8x8xf32>
    %cst_368 = arith.constant dense<0.000000e+00> : vector<8x8xf32>
    %846 = tpu.matmul %843, %844, %cst_368 {dimension_numbers = #tpu.dot_dimension_numbers<[1], [1], [0], [0], [0, 0, 1, 0], [], []>} : vector<8x8xf32>, vector<8x8xf32>, vector<8x8xf32> -> vector<8x8xf32>
    %cst_369 = arith.constant 0.353553385 : f32
    %847 = vector.broadcast %cst_369 : f32 to vector<8x8xf32>
    %848 = arith.mulf %846, %847 : vector<8x8xf32>
    %849 = arith.addf %848, %1 : vector<8x8xf32>
    %cst_370 = arith.constant dense<0xFF800000> : vector<8xf32>
    %850 = vector.multi_reduction <maximumf>, %849, %cst_370 [1] : vector<8x8xf32> to vector<8xf32>
    %851 = vector.shape_cast %850 : vector<8xf32> to vector<8x1xf32>
    %852 = vector.broadcast %851 : vector<8x1xf32> to vector<8x8xf32>
    %853 = arith.subf %849, %852 : vector<8x8xf32>
    %854 = math.exp %853 : vector<8x8xf32>
    %cst_371 = arith.constant dense<0.000000e+00> : vector<8xf32>
    %855 = vector.multi_reduction <add>, %854, %cst_371 [1] : vector<8x8xf32> to vector<8xf32>
    %856 = vector.shape_cast %855 : vector<8xf32> to vector<8x1xf32>
    %857 = tpu.reciprocal %856 : vector<8x1xf32> -> vector<8x1xf32>
    %858 = vector.broadcast %857 : vector<8x1xf32> to vector<8x8xf32>
    %859 = arith.mulf %854, %858 : vector<8x8xf32>
    %cst_372 = arith.constant dense<0.000000e+00> : vector<8x8xf32>
    %860 = tpu.matmul %859, %845, %cst_372 {dimension_numbers = #tpu.dot_dimension_numbers<[1], [0], [0], [1], [0, 0, 1, 1], [], []>} : vector<8x8xf32>, vector<8x8xf32>, vector<8x8xf32> -> vector<8x8xf32>
    %c8_373 = arith.constant 8 : index
    %c0_374 = arith.constant 0 : index
    %861 = vector.load %arg40[%c8_373, %c0_374] : memref<16x32xf32, #tpu.memory_space<vmem>>, vector<8x8xf32>
    tpu.vector_store %arg40[%c8_373, %c0_374], %860 {strides = array<i32>} : memref<16x32xf32, #tpu.memory_space<vmem>>, vector<8x8xf32>,
    %862 = vector.extract_strided_slice %757 {offsets = [8, 8], sizes = [8, 8], strides = [1, 1]} : vector<16x32xf32> to vector<8x8xf32>
    %863 = vector.extract_strided_slice %765 {offsets = [8, 8], sizes = [8, 8], strides = [1, 1]} : vector<16x32xf32> to vector<8x8xf32>
    %864 = vector.extract_strided_slice %766 {offsets = [8, 8], sizes = [8, 8], strides = [1, 1]} : vector<16x32xf32> to vector<8x8xf32>
    %cst_375 = arith.constant dense<0.000000e+00> : vector<8x8xf32>
    %865 = tpu.matmul %862, %863, %cst_375 {dimension_numbers = #tpu.dot_dimension_numbers<[1], [1], [0], [0], [0, 0, 1, 0], [], []>} : vector<8x8xf32>, vector<8x8xf32>, vector<8x8xf32> -> vector<8x8xf32>
    %cst_376 = arith.constant 0.353553385 : f32
    %866 = vector.broadcast %cst_376 : f32 to vector<8x8xf32>
    %867 = arith.mulf %865, %866 : vector<8x8xf32>
    %868 = arith.addf %867, %1 : vector<8x8xf32>
    %cst_377 = arith.constant dense<0xFF800000> : vector<8xf32>
    %869 = vector.multi_reduction <maximumf>, %868, %cst_377 [1] : vector<8x8xf32> to vector<8xf32>
    %870 = vector.shape_cast %869 : vector<8xf32> to vector<8x1xf32>
    %871 = vector.broadcast %870 : vector<8x1xf32> to vector<8x8xf32>
    %872 = arith.subf %868, %871 : vector<8x8xf32>
    %873 = math.exp %872 : vector<8x8xf32>
    %cst_378 = arith.constant dense<0.000000e+00> : vector<8xf32>
    %874 = vector.multi_reduction <add>, %873, %cst_378 [1] : vector<8x8xf32> to vector<8xf32>
    %875 = vector.shape_cast %874 : vector<8xf32> to vector<8x1xf32>
    %876 = tpu.reciprocal %875 : vector<8x1xf32> -> vector<8x1xf32>
    %877 = vector.broadcast %876 : vector<8x1xf32> to vector<8x8xf32>
    %878 = arith.mulf %873, %877 : vector<8x8xf32>
    %cst_379 = arith.constant dense<0.000000e+00> : vector<8x8xf32>
    %879 = tpu.matmul %878, %864, %cst_379 {dimension_numbers = #tpu.dot_dimension_numbers<[1], [0], [0], [1], [0, 0, 1, 1], [], []>} : vector<8x8xf32>, vector<8x8xf32>, vector<8x8xf32> -> vector<8x8xf32>
    %c8_380 = arith.constant 8 : index
    %c8_381 = arith.constant 8 : index
    %880 = vector.load %arg40[%c8_380, %c8_381] : memref<16x32xf32, #tpu.memory_space<vmem>>, vector<8x8xf32>
    tpu.vector_store %arg40[%c8_380, %c8_381], %879 {strides = array<i32>} : memref<16x32xf32, #tpu.memory_space<vmem>>, vector<8x8xf32>,
    %881 = vector.extract_strided_slice %757 {offsets = [8, 16], sizes = [8, 8], strides = [1, 1]} : vector<16x32xf32> to vector<8x8xf32>
    %882 = vector.extract_strided_slice %765 {offsets = [8, 16], sizes = [8, 8], strides = [1, 1]} : vector<16x32xf32> to vector<8x8xf32>
    %883 = vector.extract_strided_slice %766 {offsets = [8, 16], sizes = [8, 8], strides = [1, 1]} : vector<16x32xf32> to vector<8x8xf32>
    %cst_382 = arith.constant dense<0.000000e+00> : vector<8x8xf32>
    %884 = tpu.matmul %881, %882, %cst_382 {dimension_numbers = #tpu.dot_dimension_numbers<[1], [1], [0], [0], [0, 0, 1, 0], [], []>} : vector<8x8xf32>, vector<8x8xf32>, vector<8x8xf32> -> vector<8x8xf32>
    %cst_383 = arith.constant 0.353553385 : f32
    %885 = vector.broadcast %cst_383 : f32 to vector<8x8xf32>
    %886 = arith.mulf %884, %885 : vector<8x8xf32>
    %887 = arith.addf %886, %1 : vector<8x8xf32>
    %cst_384 = arith.constant dense<0xFF800000> : vector<8xf32>
    %888 = vector.multi_reduction <maximumf>, %887, %cst_384 [1] : vector<8x8xf32> to vector<8xf32>
    %889 = vector.shape_cast %888 : vector<8xf32> to vector<8x1xf32>
    %890 = vector.broadcast %889 : vector<8x1xf32> to vector<8x8xf32>
    %891 = arith.subf %887, %890 : vector<8x8xf32>
    %892 = math.exp %891 : vector<8x8xf32>
    %cst_385 = arith.constant dense<0.000000e+00> : vector<8xf32>
    %893 = vector.multi_reduction <add>, %892, %cst_385 [1] : vector<8x8xf32> to vector<8xf32>
    %894 = vector.shape_cast %893 : vector<8xf32> to vector<8x1xf32>
    %895 = tpu.reciprocal %894 : vector<8x1xf32> -> vector<8x1xf32>
    %896 = vector.broadcast %895 : vector<8x1xf32> to vector<8x8xf32>
    %897 = arith.mulf %892, %896 : vector<8x8xf32>
    %cst_386 = arith.constant dense<0.000000e+00> : vector<8x8xf32>
    %898 = tpu.matmul %897, %883, %cst_386 {dimension_numbers = #tpu.dot_dimension_numbers<[1], [0], [0], [1], [0, 0, 1, 1], [], []>} : vector<8x8xf32>, vector<8x8xf32>, vector<8x8xf32> -> vector<8x8xf32>
    %c8_387 = arith.constant 8 : index
    %c16_388 = arith.constant 16 : index
    %899 = vector.load %arg40[%c8_387, %c16_388] : memref<16x32xf32, #tpu.memory_space<vmem>>, vector<8x8xf32>
    tpu.vector_store %arg40[%c8_387, %c16_388], %898 {strides = array<i32>} : memref<16x32xf32, #tpu.memory_space<vmem>>, vector<8x8xf32>,
    %900 = vector.extract_strided_slice %757 {offsets = [8, 24], sizes = [8, 8], strides = [1, 1]} : vector<16x32xf32> to vector<8x8xf32>
    %901 = vector.extract_strided_slice %765 {offsets = [8, 24], sizes = [8, 8], strides = [1, 1]} : vector<16x32xf32> to vector<8x8xf32>
    %902 = vector.extract_strided_slice %766 {offsets = [8, 24], sizes = [8, 8], strides = [1, 1]} : vector<16x32xf32> to vector<8x8xf32>
    %cst_389 = arith.constant dense<0.000000e+00> : vector<8x8xf32>
    %903 = tpu.matmul %900, %901, %cst_389 {dimension_numbers = #tpu.dot_dimension_numbers<[1], [1], [0], [0], [0, 0, 1, 0], [], []>} : vector<8x8xf32>, vector<8x8xf32>, vector<8x8xf32> -> vector<8x8xf32>
    %cst_390 = arith.constant 0.353553385 : f32
    %904 = vector.broadcast %cst_390 : f32 to vector<8x8xf32>
    %905 = arith.mulf %903, %904 : vector<8x8xf32>
    %906 = arith.addf %905, %1 : vector<8x8xf32>
    %cst_391 = arith.constant dense<0xFF800000> : vector<8xf32>
    %907 = vector.multi_reduction <maximumf>, %906, %cst_391 [1] : vector<8x8xf32> to vector<8xf32>
    %908 = vector.shape_cast %907 : vector<8xf32> to vector<8x1xf32>
    %909 = vector.broadcast %908 : vector<8x1xf32> to vector<8x8xf32>
    %910 = arith.subf %906, %909 : vector<8x8xf32>
    %911 = math.exp %910 : vector<8x8xf32>
    %cst_392 = arith.constant dense<0.000000e+00> : vector<8xf32>
    %912 = vector.multi_reduction <add>, %911, %cst_392 [1] : vector<8x8xf32> to vector<8xf32>
    %913 = vector.shape_cast %912 : vector<8xf32> to vector<8x1xf32>
    %914 = tpu.reciprocal %913 : vector<8x1xf32> -> vector<8x1xf32>
    %915 = vector.broadcast %914 : vector<8x1xf32> to vector<8x8xf32>
    %916 = arith.mulf %911, %915 : vector<8x8xf32>
    %cst_393 = arith.constant dense<0.000000e+00> : vector<8x8xf32>
    %917 = tpu.matmul %916, %902, %cst_393 {dimension_numbers = #tpu.dot_dimension_numbers<[1], [0], [0], [1], [0, 0, 1, 1], [], []>} : vector<8x8xf32>, vector<8x8xf32>, vector<8x8xf32> -> vector<8x8xf32>
    %c8_394 = arith.constant 8 : index
    %c24_395 = arith.constant 24 : index
    %918 = vector.load %arg40[%c8_394, %c24_395] : memref<16x32xf32, #tpu.memory_space<vmem>>, vector<8x8xf32>
    tpu.vector_store %arg40[%c8_394, %c24_395], %917 {strides = array<i32>} : memref<16x32xf32, #tpu.memory_space<vmem>>, vector<8x8xf32>,
    %c0_396 = arith.constant 0 : index
    %c0_397 = arith.constant 0 : index
    %919 = vector.load %arg40[%c0_396, %c0_397] : memref<16x32xf32, #tpu.memory_space<vmem>>, vector<16x32xf32>
    %c0_398 = arith.constant 0 : index
    %c0_399 = arith.constant 0 : index
    %c0_400 = arith.constant 0 : index
    %920 = vector.load %arg29[%c0_398, %c0_399, %c0_400] : memref<2x32x32xf32, #tpu.memory_space<vmem>>, vector<1x32x32xf32>
    %921 = vector.shape_cast %920 : vector<1x32x32xf32> to vector<32x32xf32>
    %cst_401 = arith.constant dense<0.000000e+00> : vector<16x32xf32>
    %922 = tpu.matmul %919, %921, %cst_401 {dimension_numbers = #tpu.dot_dimension_numbers<[1], [0], [0], [1], [0, 0, 1, 1], [], []>} : vector<16x32xf32>, vector<32x32xf32>, vector<16x32xf32> -> vector<16x32xf32>
    %c0_402 = arith.constant 0 : index
    %c0_403 = arith.constant 0 : index
    %c0_404 = arith.constant 0 : index
    %923 = vector.load %arg30[%c0_402, %c0_403, %c0_404] : memref<2x1x32xf32, #tpu.memory_space<vmem>>, vector<1x1x32xf32>
    %924 = vector.shape_cast %923 : vector<1x1x32xf32> to vector<1x32xf32>
    %925 = vector.broadcast %924 : vector<1x32xf32> to vector<16x32xf32>
    %926 = arith.addf %922, %925 : vector<16x32xf32>
    %927 = arith.addf %750, %926 : vector<16x32xf32>
    %c0_405 = arith.constant 0 : index
    %c0_406 = arith.constant 0 : index
    %c0_407 = arith.constant 0 : index
    %928 = vector.load %arg31[%c0_405, %c0_406, %c0_407] : memref<2x1x32xf32, #tpu.memory_space<vmem>>, vector<1x1x32xf32>
    %929 = vector.shape_cast %928 : vector<1x1x32xf32> to vector<1x32xf32>
    %c0_408 = arith.constant 0 : index
    %c0_409 = arith.constant 0 : index
    %c0_410 = arith.constant 0 : index
    %930 = vector.load %arg32[%c0_408, %c0_409, %c0_410] : memref<2x1x32xf32, #tpu.memory_space<vmem>>, vector<1x1x32xf32>
    %931 = vector.shape_cast %930 : vector<1x1x32xf32> to vector<1x32xf32>
    %cst_411 = arith.constant dense<0.000000e+00> : vector<16xf32>
    %932 = vector.multi_reduction <add>, %927, %cst_411 [1] : vector<16x32xf32> to vector<16xf32>
    %933 = vector.shape_cast %932 : vector<16xf32> to vector<16x1xf32>
    %cst_412 = arith.constant 3.200000e+01 : f32
    %934 = vector.broadcast %cst_412 : f32 to vector<16x1xf32>
    %935 = arith.divf %933, %934 : vector<16x1xf32>
    %936 = vector.broadcast %935 : vector<16x1xf32> to vector<16x32xf32>
    %937 = arith.subf %927, %936 : vector<16x32xf32>
    %938 = arith.mulf %937, %937 : vector<16x32xf32>
    %cst_413 = arith.constant dense<0.000000e+00> : vector<16xf32>
    %939 = vector.multi_reduction <add>, %938, %cst_413 [1] : vector<16x32xf32> to vector<16xf32>
    %940 = vector.shape_cast %939 : vector<16xf32> to vector<16x1xf32>
    %cst_414 = arith.constant 3.200000e+01 : f32
    %941 = vector.broadcast %cst_414 : f32 to vector<16x1xf32>
    %942 = arith.divf %940, %941 : vector<16x1xf32>
    %943 = vector.broadcast %935 : vector<16x1xf32> to vector<16x32xf32>
    %944 = arith.subf %927, %943 : vector<16x32xf32>
    %cst_415 = arith.constant 9.99999974E-6 : f32
    %945 = vector.broadcast %cst_415 : f32 to vector<16x1xf32>
    %946 = arith.addf %942, %945 : vector<16x1xf32>
    %947 = math.rsqrt %946 : vector<16x1xf32>
    %948 = vector.broadcast %947 : vector<16x1xf32> to vector<16x32xf32>
    %949 = arith.mulf %944, %948 : vector<16x32xf32>
    %950 = vector.broadcast %929 : vector<1x32xf32> to vector<16x32xf32>
    %951 = arith.mulf %949, %950 : vector<16x32xf32>
    %952 = vector.broadcast %931 : vector<1x32xf32> to vector<16x32xf32>
    %953 = arith.addf %951, %952 : vector<16x32xf32>
    %c0_416 = arith.constant 0 : index
    %c0_417 = arith.constant 0 : index
    %c0_418 = arith.constant 0 : index
    %954 = vector.load %arg33[%c0_416, %c0_417, %c0_418] : memref<2x32x64xf32, #tpu.memory_space<vmem>>, vector<1x32x64xf32>
    %955 = vector.shape_cast %954 : vector<1x32x64xf32> to vector<32x64xf32>
    %c0_419 = arith.constant 0 : index
    %c0_420 = arith.constant 0 : index
    %c0_421 = arith.constant 0 : index
    %956 = vector.load %arg34[%c0_419, %c0_420, %c0_421] : memref<2x1x64xf32, #tpu.memory_space<vmem>>, vector<1x1x64xf32>
    %957 = vector.shape_cast %956 : vector<1x1x64xf32> to vector<1x64xf32>
    %c0_422 = arith.constant 0 : index
    %c0_423 = arith.constant 0 : index
    %c0_424 = arith.constant 0 : index
    %958 = vector.load %arg35[%c0_422, %c0_423, %c0_424] : memref<2x64x32xf32, #tpu.memory_space<vmem>>, vector<1x64x32xf32>
    %959 = vector.shape_cast %958 : vector<1x64x32xf32> to vector<64x32xf32>
    %c0_425 = arith.constant 0 : index
    %c0_426 = arith.constant 0 : index
    %c0_427 = arith.constant 0 : index
    %960 = vector.load %arg36[%c0_425, %c0_426, %c0_427] : memref<2x1x32xf32, #tpu.memory_space<vmem>>, vector<1x1x32xf32>
    %961 = vector.shape_cast %960 : vector<1x1x32xf32> to vector<1x32xf32>
    %c0_428 = arith.constant 0 : index
    %c0_429 = arith.constant 0 : index
    %c0_430 = arith.constant 0 : index
    %962 = vector.load %arg37[%c0_428, %c0_429, %c0_430] : memref<2x1x32xf32, #tpu.memory_space<vmem>>, vector<1x1x32xf32>
    %963 = vector.shape_cast %962 : vector<1x1x32xf32> to vector<1x32xf32>
    %c0_431 = arith.constant 0 : index
    %c0_432 = arith.constant 0 : index
    %c0_433 = arith.constant 0 : index
    %964 = vector.load %arg38[%c0_431, %c0_432, %c0_433] : memref<2x1x32xf32, #tpu.memory_space<vmem>>, vector<1x1x32xf32>
    %965 = vector.shape_cast %964 : vector<1x1x32xf32> to vector<1x32xf32>
    %cst_434 = arith.constant dense<0.000000e+00> : vector<16x64xf32>
    %966 = tpu.matmul %953, %955, %cst_434 {dimension_numbers = #tpu.dot_dimension_numbers<[1], [0], [0], [1], [0, 0, 1, 1], [], []>} : vector<16x32xf32>, vector<32x64xf32>, vector<16x64xf32> -> vector<16x64xf32>
    %967 = vector.broadcast %957 : vector<1x64xf32> to vector<16x64xf32>
    %968 = arith.addf %966, %967 : vector<16x64xf32>
    %969 = arith.mulf %968, %968 : vector<16x64xf32>
    %970 = arith.mulf %968, %969 : vector<16x64xf32>
    %cst_435 = arith.constant 4.471500e-02 : f32
    %971 = vector.broadcast %cst_435 : f32 to vector<16x64xf32>
    %972 = arith.mulf %971, %970 : vector<16x64xf32>
    %973 = arith.addf %968, %972 : vector<16x64xf32>
    %cst_436 = arith.constant 0.797884583 : f32
    %974 = vector.broadcast %cst_436 : f32 to vector<16x64xf32>
    %975 = arith.mulf %974, %973 : vector<16x64xf32>
    %976 = math.tanh %975 : vector<16x64xf32>
    %cst_437 = arith.constant 1.000000e+00 : f32
    %977 = vector.broadcast %cst_437 : f32 to vector<16x64xf32>
    %978 = arith.addf %977, %976 : vector<16x64xf32>
    %cst_438 = arith.constant 5.000000e-01 : f32
    %979 = vector.broadcast %cst_438 : f32 to vector<16x64xf32>
    %980 = arith.mulf %979, %978 : vector<16x64xf32>
    %981 = arith.mulf %968, %980 : vector<16x64xf32>
    %cst_439 = arith.constant dense<0.000000e+00> : vector<16x32xf32>
    %982 = tpu.matmul %981, %959, %cst_439 {dimension_numbers = #tpu.dot_dimension_numbers<[1], [0], [0], [1], [0, 0, 1, 1], [], []>} : vector<16x64xf32>, vector<64x32xf32>, vector<16x32xf32> -> vector<16x32xf32>
    %983 = vector.broadcast %961 : vector<1x32xf32> to vector<16x32xf32>
    %984 = arith.addf %982, %983 : vector<16x32xf32>
    %985 = arith.addf %953, %984 : vector<16x32xf32>
    %cst_440 = arith.constant dense<0.000000e+00> : vector<16xf32>
    %986 = vector.multi_reduction <add>, %985, %cst_440 [1] : vector<16x32xf32> to vector<16xf32>
    %987 = vector.shape_cast %986 : vector<16xf32> to vector<16x1xf32>
    %cst_441 = arith.constant 3.200000e+01 : f32
    %988 = vector.broadcast %cst_441 : f32 to vector<16x1xf32>
    %989 = arith.divf %987, %988 : vector<16x1xf32>
    %990 = vector.broadcast %989 : vector<16x1xf32> to vector<16x32xf32>
    %991 = arith.subf %985, %990 : vector<16x32xf32>
    %992 = arith.mulf %991, %991 : vector<16x32xf32>
    %cst_442 = arith.constant dense<0.000000e+00> : vector<16xf32>
    %993 = vector.multi_reduction <add>, %992, %cst_442 [1] : vector<16x32xf32> to vector<16xf32>
    %994 = vector.shape_cast %993 : vector<16xf32> to vector<16x1xf32>
    %cst_443 = arith.constant 3.200000e+01 : f32
    %995 = vector.broadcast %cst_443 : f32 to vector<16x1xf32>
    %996 = arith.divf %994, %995 : vector<16x1xf32>
    %997 = vector.broadcast %989 : vector<16x1xf32> to vector<16x32xf32>
    %998 = arith.subf %985, %997 : vector<16x32xf32>
    %cst_444 = arith.constant 9.99999974E-6 : f32
    %999 = vector.broadcast %cst_444 : f32 to vector<16x1xf32>
    %1000 = arith.addf %996, %999 : vector<16x1xf32>
    %1001 = math.rsqrt %1000 : vector<16x1xf32>
    %1002 = vector.broadcast %1001 : vector<16x1xf32> to vector<16x32xf32>
    %1003 = arith.mulf %998, %1002 : vector<16x32xf32>
    %1004 = vector.broadcast %963 : vector<1x32xf32> to vector<16x32xf32>
    %1005 = arith.mulf %1003, %1004 : vector<16x32xf32>
    %1006 = vector.broadcast %965 : vector<1x32xf32> to vector<16x32xf32>
    %1007 = arith.addf %1005, %1006 : vector<16x32xf32>
    %c1_445 = arith.constant 1 : index
    %c0_446 = arith.constant 0 : index
    %c0_447 = arith.constant 0 : index
    %1008 = vector.load %arg19[%c1_445, %c0_446, %c0_447] : memref<2x32x96xf32, #tpu.memory_space<vmem>>, vector<1x32x96xf32>
    %1009 = vector.shape_cast %1008 : vector<1x32x96xf32> to vector<32x96xf32>
    %c1_448 = arith.constant 1 : index
    %c0_449 = arith.constant 0 : index
    %c0_450 = arith.constant 0 : index
    %1010 = vector.load %arg20[%c1_448, %c0_449, %c0_450] : memref<2x1x96xf32, #tpu.memory_space<vmem>>, vector<1x1x96xf32>
    %1011 = vector.shape_cast %1010 : vector<1x1x96xf32> to vector<1x96xf32>
    %c1_451 = arith.constant 1 : index
    %c0_452 = arith.constant 0 : index
    %c0_453 = arith.constant 0 : index
    %1012 = vector.load %arg21[%c1_451, %c0_452, %c0_453] : memref<2x32x32xf32, #tpu.memory_space<vmem>>, vector<1x32x32xf32>
    %1013 = vector.shape_cast %1012 : vector<1x32x32xf32> to vector<32x32xf32>
    %c1_454 = arith.constant 1 : index
    %c0_455 = arith.constant 0 : index
    %c0_456 = arith.constant 0 : index
    %1014 = vector.load %arg22[%c1_454, %c0_455, %c0_456] : memref<2x1x32xf32, #tpu.memory_space<vmem>>, vector<1x1x32xf32>
    %1015 = vector.shape_cast %1014 : vector<1x1x32xf32> to vector<1x32xf32>
    %c1_457 = arith.constant 1 : index
    %c0_458 = arith.constant 0 : index
    %c0_459 = arith.constant 0 : index
    %1016 = vector.load %arg23[%c1_457, %c0_458, %c0_459] : memref<2x1x32xf32, #tpu.memory_space<vmem>>, vector<1x1x32xf32>
    %1017 = vector.shape_cast %1016 : vector<1x1x32xf32> to vector<1x32xf32>
    %c1_460 = arith.constant 1 : index
    %c0_461 = arith.constant 0 : index
    %c0_462 = arith.constant 0 : index
    %1018 = vector.load %arg24[%c1_460, %c0_461, %c0_462] : memref<2x1x32xf32, #tpu.memory_space<vmem>>, vector<1x1x32xf32>
    %1019 = vector.shape_cast %1018 : vector<1x1x32xf32> to vector<1x32xf32>
    %cst_463 = arith.constant dense<0.000000e+00> : vector<16x96xf32>
    %1020 = tpu.matmul %1007, %1009, %cst_463 {dimension_numbers = #tpu.dot_dimension_numbers<[1], [0], [0], [1], [0, 0, 1, 1], [], []>} : vector<16x32xf32>, vector<32x96xf32>, vector<16x96xf32> -> vector<16x96xf32>
    %1021 = vector.broadcast %1011 : vector<1x96xf32> to vector<16x96xf32>
    %1022 = arith.addf %1020, %1021 : vector<16x96xf32>
    %1023 = vector.extract_strided_slice %1022 {offsets = [0, 0], sizes = [16, 32], strides = [1, 1]} : vector<16x96xf32> to vector<16x32xf32>
    %1024 = vector.extract_strided_slice %1022 {offsets = [0, 32], sizes = [16, 32], strides = [1, 1]} : vector<16x96xf32> to vector<16x32xf32>
    %1025 = vector.extract_strided_slice %1022 {offsets = [0, 64], sizes = [16, 32], strides = [1, 1]} : vector<16x96xf32> to vector<16x32xf32>
    %1026 = vector.extract_strided_slice %1023 {offsets = [0, 0], sizes = [8, 8], strides = [1, 1]} : vector<16x32xf32> to vector<8x8xf32>
    %1027 = vector.extract_strided_slice %1024 {offsets = [0, 0], sizes = [8, 8], strides = [1, 1]} : vector<16x32xf32> to vector<8x8xf32>
    %1028 = vector.extract_strided_slice %1025 {offsets = [0, 0], sizes = [8, 8], strides = [1, 1]} : vector<16x32xf32> to vector<8x8xf32>
    %cst_464 = arith.constant dense<0.000000e+00> : vector<8x8xf32>
    %1029 = tpu.matmul %1026, %1027, %cst_464 {dimension_numbers = #tpu.dot_dimension_numbers<[1], [1], [0], [0], [0, 0, 1, 0], [], []>} : vector<8x8xf32>, vector<8x8xf32>, vector<8x8xf32> -> vector<8x8xf32>
    %cst_465 = arith.constant 0.353553385 : f32
    %1030 = vector.broadcast %cst_465 : f32 to vector<8x8xf32>
    %1031 = arith.mulf %1029, %1030 : vector<8x8xf32>
    %1032 = arith.addf %1031, %0 : vector<8x8xf32>
    %cst_466 = arith.constant dense<0xFF800000> : vector<8xf32>
    %1033 = vector.multi_reduction <maximumf>, %1032, %cst_466 [1] : vector<8x8xf32> to vector<8xf32>
    %1034 = vector.shape_cast %1033 : vector<8xf32> to vector<8x1xf32>
    %1035 = vector.broadcast %1034 : vector<8x1xf32> to vector<8x8xf32>
    %1036 = arith.subf %1032, %1035 : vector<8x8xf32>
    %1037 = math.exp %1036 : vector<8x8xf32>
    %cst_467 = arith.constant dense<0.000000e+00> : vector<8xf32>
    %1038 = vector.multi_reduction <add>, %1037, %cst_467 [1] : vector<8x8xf32> to vector<8xf32>
    %1039 = vector.shape_cast %1038 : vector<8xf32> to vector<8x1xf32>
    %1040 = tpu.reciprocal %1039 : vector<8x1xf32> -> vector<8x1xf32>
    %1041 = vector.broadcast %1040 : vector<8x1xf32> to vector<8x8xf32>
    %1042 = arith.mulf %1037, %1041 : vector<8x8xf32>
    %cst_468 = arith.constant dense<0.000000e+00> : vector<8x8xf32>
    %1043 = tpu.matmul %1042, %1028, %cst_468 {dimension_numbers = #tpu.dot_dimension_numbers<[1], [0], [0], [1], [0, 0, 1, 1], [], []>} : vector<8x8xf32>, vector<8x8xf32>, vector<8x8xf32> -> vector<8x8xf32>
    %c0_469 = arith.constant 0 : index
    %c0_470 = arith.constant 0 : index
    %1044 = vector.load %arg40[%c0_469, %c0_470] : memref<16x32xf32, #tpu.memory_space<vmem>>, vector<8x8xf32>
    tpu.vector_store %arg40[%c0_469, %c0_470], %1043 {strides = array<i32>} : memref<16x32xf32, #tpu.memory_space<vmem>>, vector<8x8xf32>,
    %1045 = vector.extract_strided_slice %1023 {offsets = [0, 8], sizes = [8, 8], strides = [1, 1]} : vector<16x32xf32> to vector<8x8xf32>
    %1046 = vector.extract_strided_slice %1024 {offsets = [0, 8], sizes = [8, 8], strides = [1, 1]} : vector<16x32xf32> to vector<8x8xf32>
    %1047 = vector.extract_strided_slice %1025 {offsets = [0, 8], sizes = [8, 8], strides = [1, 1]} : vector<16x32xf32> to vector<8x8xf32>
    %cst_471 = arith.constant dense<0.000000e+00> : vector<8x8xf32>
    %1048 = tpu.matmul %1045, %1046, %cst_471 {dimension_numbers = #tpu.dot_dimension_numbers<[1], [1], [0], [0], [0, 0, 1, 0], [], []>} : vector<8x8xf32>, vector<8x8xf32>, vector<8x8xf32> -> vector<8x8xf32>
    %cst_472 = arith.constant 0.353553385 : f32
    %1049 = vector.broadcast %cst_472 : f32 to vector<8x8xf32>
    %1050 = arith.mulf %1048, %1049 : vector<8x8xf32>
    %1051 = arith.addf %1050, %0 : vector<8x8xf32>
    %cst_473 = arith.constant dense<0xFF800000> : vector<8xf32>
    %1052 = vector.multi_reduction <maximumf>, %1051, %cst_473 [1] : vector<8x8xf32> to vector<8xf32>
    %1053 = vector.shape_cast %1052 : vector<8xf32> to vector<8x1xf32>
    %1054 = vector.broadcast %1053 : vector<8x1xf32> to vector<8x8xf32>
    %1055 = arith.subf %1051, %1054 : vector<8x8xf32>
    %1056 = math.exp %1055 : vector<8x8xf32>
    %cst_474 = arith.constant dense<0.000000e+00> : vector<8xf32>
    %1057 = vector.multi_reduction <add>, %1056, %cst_474 [1] : vector<8x8xf32> to vector<8xf32>
    %1058 = vector.shape_cast %1057 : vector<8xf32> to vector<8x1xf32>
    %1059 = tpu.reciprocal %1058 : vector<8x1xf32> -> vector<8x1xf32>
    %1060 = vector.broadcast %1059 : vector<8x1xf32> to vector<8x8xf32>
    %1061 = arith.mulf %1056, %1060 : vector<8x8xf32>
    %cst_475 = arith.constant dense<0.000000e+00> : vector<8x8xf32>
    %1062 = tpu.matmul %1061, %1047, %cst_475 {dimension_numbers = #tpu.dot_dimension_numbers<[1], [0], [0], [1], [0, 0, 1, 1], [], []>} : vector<8x8xf32>, vector<8x8xf32>, vector<8x8xf32> -> vector<8x8xf32>
    %c0_476 = arith.constant 0 : index
    %c8_477 = arith.constant 8 : index
    %1063 = vector.load %arg40[%c0_476, %c8_477] : memref<16x32xf32, #tpu.memory_space<vmem>>, vector<8x8xf32>
    tpu.vector_store %arg40[%c0_476, %c8_477], %1062 {strides = array<i32>} : memref<16x32xf32, #tpu.memory_space<vmem>>, vector<8x8xf32>,
    %1064 = vector.extract_strided_slice %1023 {offsets = [0, 16], sizes = [8, 8], strides = [1, 1]} : vector<16x32xf32> to vector<8x8xf32>
    %1065 = vector.extract_strided_slice %1024 {offsets = [0, 16], sizes = [8, 8], strides = [1, 1]} : vector<16x32xf32> to vector<8x8xf32>
    %1066 = vector.extract_strided_slice %1025 {offsets = [0, 16], sizes = [8, 8], strides = [1, 1]} : vector<16x32xf32> to vector<8x8xf32>
    %cst_478 = arith.constant dense<0.000000e+00> : vector<8x8xf32>
    %1067 = tpu.matmul %1064, %1065, %cst_478 {dimension_numbers = #tpu.dot_dimension_numbers<[1], [1], [0], [0], [0, 0, 1, 0], [], []>} : vector<8x8xf32>, vector<8x8xf32>, vector<8x8xf32> -> vector<8x8xf32>
    %cst_479 = arith.constant 0.353553385 : f32
    %1068 = vector.broadcast %cst_479 : f32 to vector<8x8xf32>
    %1069 = arith.mulf %1067, %1068 : vector<8x8xf32>
    %1070 = arith.addf %1069, %0 : vector<8x8xf32>
    %cst_480 = arith.constant dense<0xFF800000> : vector<8xf32>
    %1071 = vector.multi_reduction <maximumf>, %1070, %cst_480 [1] : vector<8x8xf32> to vector<8xf32>
    %1072 = vector.shape_cast %1071 : vector<8xf32> to vector<8x1xf32>
    %1073 = vector.broadcast %1072 : vector<8x1xf32> to vector<8x8xf32>
    %1074 = arith.subf %1070, %1073 : vector<8x8xf32>
    %1075 = math.exp %1074 : vector<8x8xf32>
    %cst_481 = arith.constant dense<0.000000e+00> : vector<8xf32>
    %1076 = vector.multi_reduction <add>, %1075, %cst_481 [1] : vector<8x8xf32> to vector<8xf32>
    %1077 = vector.shape_cast %1076 : vector<8xf32> to vector<8x1xf32>
    %1078 = tpu.reciprocal %1077 : vector<8x1xf32> -> vector<8x1xf32>
    %1079 = vector.broadcast %1078 : vector<8x1xf32> to vector<8x8xf32>
    %1080 = arith.mulf %1075, %1079 : vector<8x8xf32>
    %cst_482 = arith.constant dense<0.000000e+00> : vector<8x8xf32>
    %1081 = tpu.matmul %1080, %1066, %cst_482 {dimension_numbers = #tpu.dot_dimension_numbers<[1], [0], [0], [1], [0, 0, 1, 1], [], []>} : vector<8x8xf32>, vector<8x8xf32>, vector<8x8xf32> -> vector<8x8xf32>
    %c0_483 = arith.constant 0 : index
    %c16_484 = arith.constant 16 : index
    %1082 = vector.load %arg40[%c0_483, %c16_484] : memref<16x32xf32, #tpu.memory_space<vmem>>, vector<8x8xf32>
    tpu.vector_store %arg40[%c0_483, %c16_484], %1081 {strides = array<i32>} : memref<16x32xf32, #tpu.memory_space<vmem>>, vector<8x8xf32>,
    %1083 = vector.extract_strided_slice %1023 {offsets = [0, 24], sizes = [8, 8], strides = [1, 1]} : vector<16x32xf32> to vector<8x8xf32>
    %1084 = vector.extract_strided_slice %1024 {offsets = [0, 24], sizes = [8, 8], strides = [1, 1]} : vector<16x32xf32> to vector<8x8xf32>
    %1085 = vector.extract_strided_slice %1025 {offsets = [0, 24], sizes = [8, 8], strides = [1, 1]} : vector<16x32xf32> to vector<8x8xf32>
    %cst_485 = arith.constant dense<0.000000e+00> : vector<8x8xf32>
    %1086 = tpu.matmul %1083, %1084, %cst_485 {dimension_numbers = #tpu.dot_dimension_numbers<[1], [1], [0], [0], [0, 0, 1, 0], [], []>} : vector<8x8xf32>, vector<8x8xf32>, vector<8x8xf32> -> vector<8x8xf32>
    %cst_486 = arith.constant 0.353553385 : f32
    %1087 = vector.broadcast %cst_486 : f32 to vector<8x8xf32>
    %1088 = arith.mulf %1086, %1087 : vector<8x8xf32>
    %1089 = arith.addf %1088, %0 : vector<8x8xf32>
    %cst_487 = arith.constant dense<0xFF800000> : vector<8xf32>
    %1090 = vector.multi_reduction <maximumf>, %1089, %cst_487 [1] : vector<8x8xf32> to vector<8xf32>
    %1091 = vector.shape_cast %1090 : vector<8xf32> to vector<8x1xf32>
    %1092 = vector.broadcast %1091 : vector<8x1xf32> to vector<8x8xf32>
    %1093 = arith.subf %1089, %1092 : vector<8x8xf32>
    %1094 = math.exp %1093 : vector<8x8xf32>
    %cst_488 = arith.constant dense<0.000000e+00> : vector<8xf32>
    %1095 = vector.multi_reduction <add>, %1094, %cst_488 [1] : vector<8x8xf32> to vector<8xf32>
    %1096 = vector.shape_cast %1095 : vector<8xf32> to vector<8x1xf32>
    %1097 = tpu.reciprocal %1096 : vector<8x1xf32> -> vector<8x1xf32>
    %1098 = vector.broadcast %1097 : vector<8x1xf32> to vector<8x8xf32>
    %1099 = arith.mulf %1094, %1098 : vector<8x8xf32>
    %cst_489 = arith.constant dense<0.000000e+00> : vector<8x8xf32>
    %1100 = tpu.matmul %1099, %1085, %cst_489 {dimension_numbers = #tpu.dot_dimension_numbers<[1], [0], [0], [1], [0, 0, 1, 1], [], []>} : vector<8x8xf32>, vector<8x8xf32>, vector<8x8xf32> -> vector<8x8xf32>
    %c0_490 = arith.constant 0 : index
    %c24_491 = arith.constant 24 : index
    %1101 = vector.load %arg40[%c0_490, %c24_491] : memref<16x32xf32, #tpu.memory_space<vmem>>, vector<8x8xf32>
    tpu.vector_store %arg40[%c0_490, %c24_491], %1100 {strides = array<i32>} : memref<16x32xf32, #tpu.memory_space<vmem>>, vector<8x8xf32>,
    %1102 = vector.extract_strided_slice %1023 {offsets = [8, 0], sizes = [8, 8], strides = [1, 1]} : vector<16x32xf32> to vector<8x8xf32>
    %1103 = vector.extract_strided_slice %1024 {offsets = [8, 0], sizes = [8, 8], strides = [1, 1]} : vector<16x32xf32> to vector<8x8xf32>
    %1104 = vector.extract_strided_slice %1025 {offsets = [8, 0], sizes = [8, 8], strides = [1, 1]} : vector<16x32xf32> to vector<8x8xf32>
    %cst_492 = arith.constant dense<0.000000e+00> : vector<8x8xf32>
    %1105 = tpu.matmul %1102, %1103, %cst_492 {dimension_numbers = #tpu.dot_dimension_numbers<[1], [1], [0], [0], [0, 0, 1, 0], [], []>} : vector<8x8xf32>, vector<8x8xf32>, vector<8x8xf32> -> vector<8x8xf32>
    %cst_493 = arith.constant 0.353553385 : f32
    %1106 = vector.broadcast %cst_493 : f32 to vector<8x8xf32>
    %1107 = arith.mulf %1105, %1106 : vector<8x8xf32>
    %1108 = arith.addf %1107, %0 : vector<8x8xf32>
    %cst_494 = arith.constant dense<0xFF800000> : vector<8xf32>
    %1109 = vector.multi_reduction <maximumf>, %1108, %cst_494 [1] : vector<8x8xf32> to vector<8xf32>
    %1110 = vector.shape_cast %1109 : vector<8xf32> to vector<8x1xf32>
    %1111 = vector.broadcast %1110 : vector<8x1xf32> to vector<8x8xf32>
    %1112 = arith.subf %1108, %1111 : vector<8x8xf32>
    %1113 = math.exp %1112 : vector<8x8xf32>
    %cst_495 = arith.constant dense<0.000000e+00> : vector<8xf32>
    %1114 = vector.multi_reduction <add>, %1113, %cst_495 [1] : vector<8x8xf32> to vector<8xf32>
    %1115 = vector.shape_cast %1114 : vector<8xf32> to vector<8x1xf32>
    %1116 = tpu.reciprocal %1115 : vector<8x1xf32> -> vector<8x1xf32>
    %1117 = vector.broadcast %1116 : vector<8x1xf32> to vector<8x8xf32>
    %1118 = arith.mulf %1113, %1117 : vector<8x8xf32>
    %cst_496 = arith.constant dense<0.000000e+00> : vector<8x8xf32>
    %1119 = tpu.matmul %1118, %1104, %cst_496 {dimension_numbers = #tpu.dot_dimension_numbers<[1], [0], [0], [1], [0, 0, 1, 1], [], []>} : vector<8x8xf32>, vector<8x8xf32>, vector<8x8xf32> -> vector<8x8xf32>
    %c8_497 = arith.constant 8 : index
    %c0_498 = arith.constant 0 : index
    %1120 = vector.load %arg40[%c8_497, %c0_498] : memref<16x32xf32, #tpu.memory_space<vmem>>, vector<8x8xf32>
    tpu.vector_store %arg40[%c8_497, %c0_498], %1119 {strides = array<i32>} : memref<16x32xf32, #tpu.memory_space<vmem>>, vector<8x8xf32>,
    %1121 = vector.extract_strided_slice %1023 {offsets = [8, 8], sizes = [8, 8], strides = [1, 1]} : vector<16x32xf32> to vector<8x8xf32>
    %1122 = vector.extract_strided_slice %1024 {offsets = [8, 8], sizes = [8, 8], strides = [1, 1]} : vector<16x32xf32> to vector<8x8xf32>
    %1123 = vector.extract_strided_slice %1025 {offsets = [8, 8], sizes = [8, 8], strides = [1, 1]} : vector<16x32xf32> to vector<8x8xf32>
    %cst_499 = arith.constant dense<0.000000e+00> : vector<8x8xf32>
    %1124 = tpu.matmul %1121, %1122, %cst_499 {dimension_numbers = #tpu.dot_dimension_numbers<[1], [1], [0], [0], [0, 0, 1, 0], [], []>} : vector<8x8xf32>, vector<8x8xf32>, vector<8x8xf32> -> vector<8x8xf32>
    %cst_500 = arith.constant 0.353553385 : f32
    %1125 = vector.broadcast %cst_500 : f32 to vector<8x8xf32>
    %1126 = arith.mulf %1124, %1125 : vector<8x8xf32>
    %1127 = arith.addf %1126, %0 : vector<8x8xf32>
    %cst_501 = arith.constant dense<0xFF800000> : vector<8xf32>
    %1128 = vector.multi_reduction <maximumf>, %1127, %cst_501 [1] : vector<8x8xf32> to vector<8xf32>
    %1129 = vector.shape_cast %1128 : vector<8xf32> to vector<8x1xf32>
    %1130 = vector.broadcast %1129 : vector<8x1xf32> to vector<8x8xf32>
    %1131 = arith.subf %1127, %1130 : vector<8x8xf32>
    %1132 = math.exp %1131 : vector<8x8xf32>
    %cst_502 = arith.constant dense<0.000000e+00> : vector<8xf32>
    %1133 = vector.multi_reduction <add>, %1132, %cst_502 [1] : vector<8x8xf32> to vector<8xf32>
    %1134 = vector.shape_cast %1133 : vector<8xf32> to vector<8x1xf32>
    %1135 = tpu.reciprocal %1134 : vector<8x1xf32> -> vector<8x1xf32>
    %1136 = vector.broadcast %1135 : vector<8x1xf32> to vector<8x8xf32>
    %1137 = arith.mulf %1132, %1136 : vector<8x8xf32>
    %cst_503 = arith.constant dense<0.000000e+00> : vector<8x8xf32>
    %1138 = tpu.matmul %1137, %1123, %cst_503 {dimension_numbers = #tpu.dot_dimension_numbers<[1], [0], [0], [1], [0, 0, 1, 1], [], []>} : vector<8x8xf32>, vector<8x8xf32>, vector<8x8xf32> -> vector<8x8xf32>
    %c8_504 = arith.constant 8 : index
    %c8_505 = arith.constant 8 : index
    %1139 = vector.load %arg40[%c8_504, %c8_505] : memref<16x32xf32, #tpu.memory_space<vmem>>, vector<8x8xf32>
    tpu.vector_store %arg40[%c8_504, %c8_505], %1138 {strides = array<i32>} : memref<16x32xf32, #tpu.memory_space<vmem>>, vector<8x8xf32>,
    %1140 = vector.extract_strided_slice %1023 {offsets = [8, 16], sizes = [8, 8], strides = [1, 1]} : vector<16x32xf32> to vector<8x8xf32>
    %1141 = vector.extract_strided_slice %1024 {offsets = [8, 16], sizes = [8, 8], strides = [1, 1]} : vector<16x32xf32> to vector<8x8xf32>
    %1142 = vector.extract_strided_slice %1025 {offsets = [8, 16], sizes = [8, 8], strides = [1, 1]} : vector<16x32xf32> to vector<8x8xf32>
    %cst_506 = arith.constant dense<0.000000e+00> : vector<8x8xf32>
    %1143 = tpu.matmul %1140, %1141, %cst_506 {dimension_numbers = #tpu.dot_dimension_numbers<[1], [1], [0], [0], [0, 0, 1, 0], [], []>} : vector<8x8xf32>, vector<8x8xf32>, vector<8x8xf32> -> vector<8x8xf32>
    %cst_507 = arith.constant 0.353553385 : f32
    %1144 = vector.broadcast %cst_507 : f32 to vector<8x8xf32>
    %1145 = arith.mulf %1143, %1144 : vector<8x8xf32>
    %1146 = arith.addf %1145, %0 : vector<8x8xf32>
    %cst_508 = arith.constant dense<0xFF800000> : vector<8xf32>
    %1147 = vector.multi_reduction <maximumf>, %1146, %cst_508 [1] : vector<8x8xf32> to vector<8xf32>
    %1148 = vector.shape_cast %1147 : vector<8xf32> to vector<8x1xf32>
    %1149 = vector.broadcast %1148 : vector<8x1xf32> to vector<8x8xf32>
    %1150 = arith.subf %1146, %1149 : vector<8x8xf32>
    %1151 = math.exp %1150 : vector<8x8xf32>
    %cst_509 = arith.constant dense<0.000000e+00> : vector<8xf32>
    %1152 = vector.multi_reduction <add>, %1151, %cst_509 [1] : vector<8x8xf32> to vector<8xf32>
    %1153 = vector.shape_cast %1152 : vector<8xf32> to vector<8x1xf32>
    %1154 = tpu.reciprocal %1153 : vector<8x1xf32> -> vector<8x1xf32>
    %1155 = vector.broadcast %1154 : vector<8x1xf32> to vector<8x8xf32>
    %1156 = arith.mulf %1151, %1155 : vector<8x8xf32>
    %cst_510 = arith.constant dense<0.000000e+00> : vector<8x8xf32>
    %1157 = tpu.matmul %1156, %1142, %cst_510 {dimension_numbers = #tpu.dot_dimension_numbers<[1], [0], [0], [1], [0, 0, 1, 1], [], []>} : vector<8x8xf32>, vector<8x8xf32>, vector<8x8xf32> -> vector<8x8xf32>
    %c8_511 = arith.constant 8 : index
    %c16_512 = arith.constant 16 : index
    %1158 = vector.load %arg40[%c8_511, %c16_512] : memref<16x32xf32, #tpu.memory_space<vmem>>, vector<8x8xf32>
    tpu.vector_store %arg40[%c8_511, %c16_512], %1157 {strides = array<i32>} : memref<16x32xf32, #tpu.memory_space<vmem>>, vector<8x8xf32>,
    %1159 = vector.extract_strided_slice %1023 {offsets = [8, 24], sizes = [8, 8], strides = [1, 1]} : vector<16x32xf32> to vector<8x8xf32>
    %1160 = vector.extract_strided_slice %1024 {offsets = [8, 24], sizes = [8, 8], strides = [1, 1]} : vector<16x32xf32> to vector<8x8xf32>
    %1161 = vector.extract_strided_slice %1025 {offsets = [8, 24], sizes = [8, 8], strides = [1, 1]} : vector<16x32xf32> to vector<8x8xf32>
    %cst_513 = arith.constant dense<0.000000e+00> : vector<8x8xf32>
    %1162 = tpu.matmul %1159, %1160, %cst_513 {dimension_numbers = #tpu.dot_dimension_numbers<[1], [1], [0], [0], [0, 0, 1, 0], [], []>} : vector<8x8xf32>, vector<8x8xf32>, vector<8x8xf32> -> vector<8x8xf32>
    %cst_514 = arith.constant 0.353553385 : f32
    %1163 = vector.broadcast %cst_514 : f32 to vector<8x8xf32>
    %1164 = arith.mulf %1162, %1163 : vector<8x8xf32>
    %1165 = arith.addf %1164, %0 : vector<8x8xf32>
    %cst_515 = arith.constant dense<0xFF800000> : vector<8xf32>
    %1166 = vector.multi_reduction <maximumf>, %1165, %cst_515 [1] : vector<8x8xf32> to vector<8xf32>
    %1167 = vector.shape_cast %1166 : vector<8xf32> to vector<8x1xf32>
    %1168 = vector.broadcast %1167 : vector<8x1xf32> to vector<8x8xf32>
    %1169 = arith.subf %1165, %1168 : vector<8x8xf32>
    %1170 = math.exp %1169 : vector<8x8xf32>
    %cst_516 = arith.constant dense<0.000000e+00> : vector<8xf32>
    %1171 = vector.multi_reduction <add>, %1170, %cst_516 [1] : vector<8x8xf32> to vector<8xf32>
    %1172 = vector.shape_cast %1171 : vector<8xf32> to vector<8x1xf32>
    %1173 = tpu.reciprocal %1172 : vector<8x1xf32> -> vector<8x1xf32>
    %1174 = vector.broadcast %1173 : vector<8x1xf32> to vector<8x8xf32>
    %1175 = arith.mulf %1170, %1174 : vector<8x8xf32>
    %cst_517 = arith.constant dense<0.000000e+00> : vector<8x8xf32>
    %1176 = tpu.matmul %1175, %1161, %cst_517 {dimension_numbers = #tpu.dot_dimension_numbers<[1], [0], [0], [1], [0, 0, 1, 1], [], []>} : vector<8x8xf32>, vector<8x8xf32>, vector<8x8xf32> -> vector<8x8xf32>
    %c8_518 = arith.constant 8 : index
    %c24_519 = arith.constant 24 : index
    %1177 = vector.load %arg40[%c8_518, %c24_519] : memref<16x32xf32, #tpu.memory_space<vmem>>, vector<8x8xf32>
    tpu.vector_store %arg40[%c8_518, %c24_519], %1176 {strides = array<i32>} : memref<16x32xf32, #tpu.memory_space<vmem>>, vector<8x8xf32>,
    %c0_520 = arith.constant 0 : index
    %c0_521 = arith.constant 0 : index
    %1178 = vector.load %arg40[%c0_520, %c0_521] : memref<16x32xf32, #tpu.memory_space<vmem>>, vector<16x32xf32>
    %cst_522 = arith.constant dense<0.000000e+00> : vector<16x32xf32>
    %1179 = tpu.matmul %1178, %1013, %cst_522 {dimension_numbers = #tpu.dot_dimension_numbers<[1], [0], [0], [1], [0, 0, 1, 1], [], []>} : vector<16x32xf32>, vector<32x32xf32>, vector<16x32xf32> -> vector<16x32xf32>
    %1180 = vector.broadcast %1015 : vector<1x32xf32> to vector<16x32xf32>
    %1181 = arith.addf %1179, %1180 : vector<16x32xf32>
    %1182 = arith.addf %1007, %1181 : vector<16x32xf32>
    %cst_523 = arith.constant dense<0.000000e+00> : vector<16xf32>
    %1183 = vector.multi_reduction <add>, %1182, %cst_523 [1] : vector<16x32xf32> to vector<16xf32>
    %1184 = vector.shape_cast %1183 : vector<16xf32> to vector<16x1xf32>
    %cst_524 = arith.constant 3.200000e+01 : f32
    %1185 = vector.broadcast %cst_524 : f32 to vector<16x1xf32>
    %1186 = arith.divf %1184, %1185 : vector<16x1xf32>
    %1187 = vector.broadcast %1186 : vector<16x1xf32> to vector<16x32xf32>
    %1188 = arith.subf %1182, %1187 : vector<16x32xf32>
    %1189 = arith.mulf %1188, %1188 : vector<16x32xf32>
    %cst_525 = arith.constant dense<0.000000e+00> : vector<16xf32>
    %1190 = vector.multi_reduction <add>, %1189, %cst_525 [1] : vector<16x32xf32> to vector<16xf32>
    %1191 = vector.shape_cast %1190 : vector<16xf32> to vector<16x1xf32>
    %cst_526 = arith.constant 3.200000e+01 : f32
    %1192 = vector.broadcast %cst_526 : f32 to vector<16x1xf32>
    %1193 = arith.divf %1191, %1192 : vector<16x1xf32>
    %1194 = vector.broadcast %1186 : vector<16x1xf32> to vector<16x32xf32>
    %1195 = arith.subf %1182, %1194 : vector<16x32xf32>
    %cst_527 = arith.constant 9.99999974E-6 : f32
    %1196 = vector.broadcast %cst_527 : f32 to vector<16x1xf32>
    %1197 = arith.addf %1193, %1196 : vector<16x1xf32>
    %1198 = math.rsqrt %1197 : vector<16x1xf32>
    %1199 = vector.broadcast %1198 : vector<16x1xf32> to vector<16x32xf32>
    %1200 = arith.mulf %1195, %1199 : vector<16x32xf32>
    %1201 = vector.broadcast %1017 : vector<1x32xf32> to vector<16x32xf32>
    %1202 = arith.mulf %1200, %1201 : vector<16x32xf32>
    %1203 = vector.broadcast %1019 : vector<1x32xf32> to vector<16x32xf32>
    %1204 = arith.addf %1202, %1203 : vector<16x32xf32>
    %c1_528 = arith.constant 1 : index
    %c0_529 = arith.constant 0 : index
    %c0_530 = arith.constant 0 : index
    %1205 = vector.load %arg25[%c1_528, %c0_529, %c0_530] : memref<2x32x32xf32, #tpu.memory_space<vmem>>, vector<1x32x32xf32>
    %1206 = vector.shape_cast %1205 : vector<1x32x32xf32> to vector<32x32xf32>
    %cst_531 = arith.constant dense<0.000000e+00> : vector<16x32xf32>
    %1207 = tpu.matmul %1204, %1206, %cst_531 {dimension_numbers = #tpu.dot_dimension_numbers<[1], [0], [0], [1], [0, 0, 1, 1], [], []>} : vector<16x32xf32>, vector<32x32xf32>, vector<16x32xf32> -> vector<16x32xf32>
    %c1_532 = arith.constant 1 : index
    %c0_533 = arith.constant 0 : index
    %c0_534 = arith.constant 0 : index
    %1208 = vector.load %arg26[%c1_532, %c0_533, %c0_534] : memref<2x1x32xf32, #tpu.memory_space<vmem>>, vector<1x1x32xf32>
    %1209 = vector.shape_cast %1208 : vector<1x1x32xf32> to vector<1x32xf32>
    %1210 = vector.broadcast %1209 : vector<1x32xf32> to vector<16x32xf32>
    %1211 = arith.addf %1207, %1210 : vector<16x32xf32>
    %c1_535 = arith.constant 1 : index
    %c0_536 = arith.constant 0 : index
    %c0_537 = arith.constant 0 : index
    %1212 = vector.load %arg27[%c1_535, %c0_536, %c0_537] : memref<2x32x64xf32, #tpu.memory_space<vmem>>, vector<1x32x64xf32>
    %1213 = vector.shape_cast %1212 : vector<1x32x64xf32> to vector<32x64xf32>
    %cst_538 = arith.constant dense<0.000000e+00> : vector<16x64xf32>
    %1214 = tpu.matmul %528, %1213, %cst_538 {dimension_numbers = #tpu.dot_dimension_numbers<[1], [0], [0], [1], [0, 0, 1, 1], [], []>} : vector<16x32xf32>, vector<32x64xf32>, vector<16x64xf32> -> vector<16x64xf32>
    %c1_539 = arith.constant 1 : index
    %c0_540 = arith.constant 0 : index
    %c0_541 = arith.constant 0 : index
    %1215 = vector.load %arg28[%c1_539, %c0_540, %c0_541] : memref<2x1x64xf32, #tpu.memory_space<vmem>>, vector<1x1x64xf32>
    %1216 = vector.shape_cast %1215 : vector<1x1x64xf32> to vector<1x64xf32>
    %1217 = vector.broadcast %1216 : vector<1x64xf32> to vector<16x64xf32>
    %1218 = arith.addf %1214, %1217 : vector<16x64xf32>
    %1219 = vector.extract_strided_slice %1218 {offsets = [0, 0], sizes = [16, 32], strides = [1, 1]} : vector<16x64xf32> to vector<16x32xf32>
    %1220 = vector.extract_strided_slice %1218 {offsets = [0, 32], sizes = [16, 32], strides = [1, 1]} : vector<16x64xf32> to vector<16x32xf32>
    %1221 = vector.extract_strided_slice %1211 {offsets = [0, 0], sizes = [8, 8], strides = [1, 1]} : vector<16x32xf32> to vector<8x8xf32>
    %1222 = vector.extract_strided_slice %1219 {offsets = [0, 0], sizes = [8, 8], strides = [1, 1]} : vector<16x32xf32> to vector<8x8xf32>
    %1223 = vector.extract_strided_slice %1220 {offsets = [0, 0], sizes = [8, 8], strides = [1, 1]} : vector<16x32xf32> to vector<8x8xf32>
    %cst_542 = arith.constant dense<0.000000e+00> : vector<8x8xf32>
    %1224 = tpu.matmul %1221, %1222, %cst_542 {dimension_numbers = #tpu.dot_dimension_numbers<[1], [1], [0], [0], [0, 0, 1, 0], [], []>} : vector<8x8xf32>, vector<8x8xf32>, vector<8x8xf32> -> vector<8x8xf32>
    %cst_543 = arith.constant 0.353553385 : f32
    %1225 = vector.broadcast %cst_543 : f32 to vector<8x8xf32>
    %1226 = arith.mulf %1224, %1225 : vector<8x8xf32>
    %1227 = arith.addf %1226, %1 : vector<8x8xf32>
    %cst_544 = arith.constant dense<0xFF800000> : vector<8xf32>
    %1228 = vector.multi_reduction <maximumf>, %1227, %cst_544 [1] : vector<8x8xf32> to vector<8xf32>
    %1229 = vector.shape_cast %1228 : vector<8xf32> to vector<8x1xf32>
    %1230 = vector.broadcast %1229 : vector<8x1xf32> to vector<8x8xf32>
    %1231 = arith.subf %1227, %1230 : vector<8x8xf32>
    %1232 = math.exp %1231 : vector<8x8xf32>
    %cst_545 = arith.constant dense<0.000000e+00> : vector<8xf32>
    %1233 = vector.multi_reduction <add>, %1232, %cst_545 [1] : vector<8x8xf32> to vector<8xf32>
    %1234 = vector.shape_cast %1233 : vector<8xf32> to vector<8x1xf32>
    %1235 = tpu.reciprocal %1234 : vector<8x1xf32> -> vector<8x1xf32>
    %1236 = vector.broadcast %1235 : vector<8x1xf32> to vector<8x8xf32>
    %1237 = arith.mulf %1232, %1236 : vector<8x8xf32>
    %cst_546 = arith.constant dense<0.000000e+00> : vector<8x8xf32>
    %1238 = tpu.matmul %1237, %1223, %cst_546 {dimension_numbers = #tpu.dot_dimension_numbers<[1], [0], [0], [1], [0, 0, 1, 1], [], []>} : vector<8x8xf32>, vector<8x8xf32>, vector<8x8xf32> -> vector<8x8xf32>
    %c0_547 = arith.constant 0 : index
    %c0_548 = arith.constant 0 : index
    %1239 = vector.load %arg40[%c0_547, %c0_548] : memref<16x32xf32, #tpu.memory_space<vmem>>, vector<8x8xf32>
    tpu.vector_store %arg40[%c0_547, %c0_548], %1238 {strides = array<i32>} : memref<16x32xf32, #tpu.memory_space<vmem>>, vector<8x8xf32>,
    %1240 = vector.extract_strided_slice %1211 {offsets = [0, 8], sizes = [8, 8], strides = [1, 1]} : vector<16x32xf32> to vector<8x8xf32>
    %1241 = vector.extract_strided_slice %1219 {offsets = [0, 8], sizes = [8, 8], strides = [1, 1]} : vector<16x32xf32> to vector<8x8xf32>
    %1242 = vector.extract_strided_slice %1220 {offsets = [0, 8], sizes = [8, 8], strides = [1, 1]} : vector<16x32xf32> to vector<8x8xf32>
    %cst_549 = arith.constant dense<0.000000e+00> : vector<8x8xf32>
    %1243 = tpu.matmul %1240, %1241, %cst_549 {dimension_numbers = #tpu.dot_dimension_numbers<[1], [1], [0], [0], [0, 0, 1, 0], [], []>} : vector<8x8xf32>, vector<8x8xf32>, vector<8x8xf32> -> vector<8x8xf32>
    %cst_550 = arith.constant 0.353553385 : f32
    %1244 = vector.broadcast %cst_550 : f32 to vector<8x8xf32>
    %1245 = arith.mulf %1243, %1244 : vector<8x8xf32>
    %1246 = arith.addf %1245, %1 : vector<8x8xf32>
    %cst_551 = arith.constant dense<0xFF800000> : vector<8xf32>
    %1247 = vector.multi_reduction <maximumf>, %1246, %cst_551 [1] : vector<8x8xf32> to vector<8xf32>
    %1248 = vector.shape_cast %1247 : vector<8xf32> to vector<8x1xf32>
    %1249 = vector.broadcast %1248 : vector<8x1xf32> to vector<8x8xf32>
    %1250 = arith.subf %1246, %1249 : vector<8x8xf32>
    %1251 = math.exp %1250 : vector<8x8xf32>
    %cst_552 = arith.constant dense<0.000000e+00> : vector<8xf32>
    %1252 = vector.multi_reduction <add>, %1251, %cst_552 [1] : vector<8x8xf32> to vector<8xf32>
    %1253 = vector.shape_cast %1252 : vector<8xf32> to vector<8x1xf32>
    %1254 = tpu.reciprocal %1253 : vector<8x1xf32> -> vector<8x1xf32>
    %1255 = vector.broadcast %1254 : vector<8x1xf32> to vector<8x8xf32>
    %1256 = arith.mulf %1251, %1255 : vector<8x8xf32>
    %cst_553 = arith.constant dense<0.000000e+00> : vector<8x8xf32>
    %1257 = tpu.matmul %1256, %1242, %cst_553 {dimension_numbers = #tpu.dot_dimension_numbers<[1], [0], [0], [1], [0, 0, 1, 1], [], []>} : vector<8x8xf32>, vector<8x8xf32>, vector<8x8xf32> -> vector<8x8xf32>
    %c0_554 = arith.constant 0 : index
    %c8_555 = arith.constant 8 : index
    %1258 = vector.load %arg40[%c0_554, %c8_555] : memref<16x32xf32, #tpu.memory_space<vmem>>, vector<8x8xf32>
    tpu.vector_store %arg40[%c0_554, %c8_555], %1257 {strides = array<i32>} : memref<16x32xf32, #tpu.memory_space<vmem>>, vector<8x8xf32>,
    %1259 = vector.extract_strided_slice %1211 {offsets = [0, 16], sizes = [8, 8], strides = [1, 1]} : vector<16x32xf32> to vector<8x8xf32>
    %1260 = vector.extract_strided_slice %1219 {offsets = [0, 16], sizes = [8, 8], strides = [1, 1]} : vector<16x32xf32> to vector<8x8xf32>
    %1261 = vector.extract_strided_slice %1220 {offsets = [0, 16], sizes = [8, 8], strides = [1, 1]} : vector<16x32xf32> to vector<8x8xf32>
    %cst_556 = arith.constant dense<0.000000e+00> : vector<8x8xf32>
    %1262 = tpu.matmul %1259, %1260, %cst_556 {dimension_numbers = #tpu.dot_dimension_numbers<[1], [1], [0], [0], [0, 0, 1, 0], [], []>} : vector<8x8xf32>, vector<8x8xf32>, vector<8x8xf32> -> vector<8x8xf32>
    %cst_557 = arith.constant 0.353553385 : f32
    %1263 = vector.broadcast %cst_557 : f32 to vector<8x8xf32>
    %1264 = arith.mulf %1262, %1263 : vector<8x8xf32>
    %1265 = arith.addf %1264, %1 : vector<8x8xf32>
    %cst_558 = arith.constant dense<0xFF800000> : vector<8xf32>
    %1266 = vector.multi_reduction <maximumf>, %1265, %cst_558 [1] : vector<8x8xf32> to vector<8xf32>
    %1267 = vector.shape_cast %1266 : vector<8xf32> to vector<8x1xf32>
    %1268 = vector.broadcast %1267 : vector<8x1xf32> to vector<8x8xf32>
    %1269 = arith.subf %1265, %1268 : vector<8x8xf32>
    %1270 = math.exp %1269 : vector<8x8xf32>
    %cst_559 = arith.constant dense<0.000000e+00> : vector<8xf32>
    %1271 = vector.multi_reduction <add>, %1270, %cst_559 [1] : vector<8x8xf32> to vector<8xf32>
    %1272 = vector.shape_cast %1271 : vector<8xf32> to vector<8x1xf32>
    %1273 = tpu.reciprocal %1272 : vector<8x1xf32> -> vector<8x1xf32>
    %1274 = vector.broadcast %1273 : vector<8x1xf32> to vector<8x8xf32>
    %1275 = arith.mulf %1270, %1274 : vector<8x8xf32>
    %cst_560 = arith.constant dense<0.000000e+00> : vector<8x8xf32>
    %1276 = tpu.matmul %1275, %1261, %cst_560 {dimension_numbers = #tpu.dot_dimension_numbers<[1], [0], [0], [1], [0, 0, 1, 1], [], []>} : vector<8x8xf32>, vector<8x8xf32>, vector<8x8xf32> -> vector<8x8xf32>
    %c0_561 = arith.constant 0 : index
    %c16_562 = arith.constant 16 : index
    %1277 = vector.load %arg40[%c0_561, %c16_562] : memref<16x32xf32, #tpu.memory_space<vmem>>, vector<8x8xf32>
    tpu.vector_store %arg40[%c0_561, %c16_562], %1276 {strides = array<i32>} : memref<16x32xf32, #tpu.memory_space<vmem>>, vector<8x8xf32>,
    %1278 = vector.extract_strided_slice %1211 {offsets = [0, 24], sizes = [8, 8], strides = [1, 1]} : vector<16x32xf32> to vector<8x8xf32>
    %1279 = vector.extract_strided_slice %1219 {offsets = [0, 24], sizes = [8, 8], strides = [1, 1]} : vector<16x32xf32> to vector<8x8xf32>
    %1280 = vector.extract_strided_slice %1220 {offsets = [0, 24], sizes = [8, 8], strides = [1, 1]} : vector<16x32xf32> to vector<8x8xf32>
    %cst_563 = arith.constant dense<0.000000e+00> : vector<8x8xf32>
    %1281 = tpu.matmul %1278, %1279, %cst_563 {dimension_numbers = #tpu.dot_dimension_numbers<[1], [1], [0], [0], [0, 0, 1, 0], [], []>} : vector<8x8xf32>, vector<8x8xf32>, vector<8x8xf32> -> vector<8x8xf32>
    %cst_564 = arith.constant 0.353553385 : f32
    %1282 = vector.broadcast %cst_564 : f32 to vector<8x8xf32>
    %1283 = arith.mulf %1281, %1282 : vector<8x8xf32>
    %1284 = arith.addf %1283, %1 : vector<8x8xf32>
    %cst_565 = arith.constant dense<0xFF800000> : vector<8xf32>
    %1285 = vector.multi_reduction <maximumf>, %1284, %cst_565 [1] : vector<8x8xf32> to vector<8xf32>
    %1286 = vector.shape_cast %1285 : vector<8xf32> to vector<8x1xf32>
    %1287 = vector.broadcast %1286 : vector<8x1xf32> to vector<8x8xf32>
    %1288 = arith.subf %1284, %1287 : vector<8x8xf32>
    %1289 = math.exp %1288 : vector<8x8xf32>
    %cst_566 = arith.constant dense<0.000000e+00> : vector<8xf32>
    %1290 = vector.multi_reduction <add>, %1289, %cst_566 [1] : vector<8x8xf32> to vector<8xf32>
    %1291 = vector.shape_cast %1290 : vector<8xf32> to vector<8x1xf32>
    %1292 = tpu.reciprocal %1291 : vector<8x1xf32> -> vector<8x1xf32>
    %1293 = vector.broadcast %1292 : vector<8x1xf32> to vector<8x8xf32>
    %1294 = arith.mulf %1289, %1293 : vector<8x8xf32>
    %cst_567 = arith.constant dense<0.000000e+00> : vector<8x8xf32>
    %1295 = tpu.matmul %1294, %1280, %cst_567 {dimension_numbers = #tpu.dot_dimension_numbers<[1], [0], [0], [1], [0, 0, 1, 1], [], []>} : vector<8x8xf32>, vector<8x8xf32>, vector<8x8xf32> -> vector<8x8xf32>
    %c0_568 = arith.constant 0 : index
    %c24_569 = arith.constant 24 : index
    %1296 = vector.load %arg40[%c0_568, %c24_569] : memref<16x32xf32, #tpu.memory_space<vmem>>, vector<8x8xf32>
    tpu.vector_store %arg40[%c0_568, %c24_569], %1295 {strides = array<i32>} : memref<16x32xf32, #tpu.memory_space<vmem>>, vector<8x8xf32>,
    %1297 = vector.extract_strided_slice %1211 {offsets = [8, 0], sizes = [8, 8], strides = [1, 1]} : vector<16x32xf32> to vector<8x8xf32>
    %1298 = vector.extract_strided_slice %1219 {offsets = [8, 0], sizes = [8, 8], strides = [1, 1]} : vector<16x32xf32> to vector<8x8xf32>
    %1299 = vector.extract_strided_slice %1220 {offsets = [8, 0], sizes = [8, 8], strides = [1, 1]} : vector<16x32xf32> to vector<8x8xf32>
    %cst_570 = arith.constant dense<0.000000e+00> : vector<8x8xf32>
    %1300 = tpu.matmul %1297, %1298, %cst_570 {dimension_numbers = #tpu.dot_dimension_numbers<[1], [1], [0], [0], [0, 0, 1, 0], [], []>} : vector<8x8xf32>, vector<8x8xf32>, vector<8x8xf32> -> vector<8x8xf32>
    %cst_571 = arith.constant 0.353553385 : f32
    %1301 = vector.broadcast %cst_571 : f32 to vector<8x8xf32>
    %1302 = arith.mulf %1300, %1301 : vector<8x8xf32>
    %1303 = arith.addf %1302, %1 : vector<8x8xf32>
    %cst_572 = arith.constant dense<0xFF800000> : vector<8xf32>
    %1304 = vector.multi_reduction <maximumf>, %1303, %cst_572 [1] : vector<8x8xf32> to vector<8xf32>
    %1305 = vector.shape_cast %1304 : vector<8xf32> to vector<8x1xf32>
    %1306 = vector.broadcast %1305 : vector<8x1xf32> to vector<8x8xf32>
    %1307 = arith.subf %1303, %1306 : vector<8x8xf32>
    %1308 = math.exp %1307 : vector<8x8xf32>
    %cst_573 = arith.constant dense<0.000000e+00> : vector<8xf32>
    %1309 = vector.multi_reduction <add>, %1308, %cst_573 [1] : vector<8x8xf32> to vector<8xf32>
    %1310 = vector.shape_cast %1309 : vector<8xf32> to vector<8x1xf32>
    %1311 = tpu.reciprocal %1310 : vector<8x1xf32> -> vector<8x1xf32>
    %1312 = vector.broadcast %1311 : vector<8x1xf32> to vector<8x8xf32>
    %1313 = arith.mulf %1308, %1312 : vector<8x8xf32>
    %cst_574 = arith.constant dense<0.000000e+00> : vector<8x8xf32>
    %1314 = tpu.matmul %1313, %1299, %cst_574 {dimension_numbers = #tpu.dot_dimension_numbers<[1], [0], [0], [1], [0, 0, 1, 1], [], []>} : vector<8x8xf32>, vector<8x8xf32>, vector<8x8xf32> -> vector<8x8xf32>
    %c8_575 = arith.constant 8 : index
    %c0_576 = arith.constant 0 : index
    %1315 = vector.load %arg40[%c8_575, %c0_576] : memref<16x32xf32, #tpu.memory_space<vmem>>, vector<8x8xf32>
    tpu.vector_store %arg40[%c8_575, %c0_576], %1314 {strides = array<i32>} : memref<16x32xf32, #tpu.memory_space<vmem>>, vector<8x8xf32>,
    %1316 = vector.extract_strided_slice %1211 {offsets = [8, 8], sizes = [8, 8], strides = [1, 1]} : vector<16x32xf32> to vector<8x8xf32>
    %1317 = vector.extract_strided_slice %1219 {offsets = [8, 8], sizes = [8, 8], strides = [1, 1]} : vector<16x32xf32> to vector<8x8xf32>
    %1318 = vector.extract_strided_slice %1220 {offsets = [8, 8], sizes = [8, 8], strides = [1, 1]} : vector<16x32xf32> to vector<8x8xf32>
    %cst_577 = arith.constant dense<0.000000e+00> : vector<8x8xf32>
    %1319 = tpu.matmul %1316, %1317, %cst_577 {dimension_numbers = #tpu.dot_dimension_numbers<[1], [1], [0], [0], [0, 0, 1, 0], [], []>} : vector<8x8xf32>, vector<8x8xf32>, vector<8x8xf32> -> vector<8x8xf32>
    %cst_578 = arith.constant 0.353553385 : f32
    %1320 = vector.broadcast %cst_578 : f32 to vector<8x8xf32>
    %1321 = arith.mulf %1319, %1320 : vector<8x8xf32>
    %1322 = arith.addf %1321, %1 : vector<8x8xf32>
    %cst_579 = arith.constant dense<0xFF800000> : vector<8xf32>
    %1323 = vector.multi_reduction <maximumf>, %1322, %cst_579 [1] : vector<8x8xf32> to vector<8xf32>
    %1324 = vector.shape_cast %1323 : vector<8xf32> to vector<8x1xf32>
    %1325 = vector.broadcast %1324 : vector<8x1xf32> to vector<8x8xf32>
    %1326 = arith.subf %1322, %1325 : vector<8x8xf32>
    %1327 = math.exp %1326 : vector<8x8xf32>
    %cst_580 = arith.constant dense<0.000000e+00> : vector<8xf32>
    %1328 = vector.multi_reduction <add>, %1327, %cst_580 [1] : vector<8x8xf32> to vector<8xf32>
    %1329 = vector.shape_cast %1328 : vector<8xf32> to vector<8x1xf32>
    %1330 = tpu.reciprocal %1329 : vector<8x1xf32> -> vector<8x1xf32>
    %1331 = vector.broadcast %1330 : vector<8x1xf32> to vector<8x8xf32>
    %1332 = arith.mulf %1327, %1331 : vector<8x8xf32>
    %cst_581 = arith.constant dense<0.000000e+00> : vector<8x8xf32>
    %1333 = tpu.matmul %1332, %1318, %cst_581 {dimension_numbers = #tpu.dot_dimension_numbers<[1], [0], [0], [1], [0, 0, 1, 1], [], []>} : vector<8x8xf32>, vector<8x8xf32>, vector<8x8xf32> -> vector<8x8xf32>
    %c8_582 = arith.constant 8 : index
    %c8_583 = arith.constant 8 : index
    %1334 = vector.load %arg40[%c8_582, %c8_583] : memref<16x32xf32, #tpu.memory_space<vmem>>, vector<8x8xf32>
    tpu.vector_store %arg40[%c8_582, %c8_583], %1333 {strides = array<i32>} : memref<16x32xf32, #tpu.memory_space<vmem>>, vector<8x8xf32>,
    %1335 = vector.extract_strided_slice %1211 {offsets = [8, 16], sizes = [8, 8], strides = [1, 1]} : vector<16x32xf32> to vector<8x8xf32>
    %1336 = vector.extract_strided_slice %1219 {offsets = [8, 16], sizes = [8, 8], strides = [1, 1]} : vector<16x32xf32> to vector<8x8xf32>
    %1337 = vector.extract_strided_slice %1220 {offsets = [8, 16], sizes = [8, 8], strides = [1, 1]} : vector<16x32xf32> to vector<8x8xf32>
    %cst_584 = arith.constant dense<0.000000e+00> : vector<8x8xf32>
    %1338 = tpu.matmul %1335, %1336, %cst_584 {dimension_numbers = #tpu.dot_dimension_numbers<[1], [1], [0], [0], [0, 0, 1, 0], [], []>} : vector<8x8xf32>, vector<8x8xf32>, vector<8x8xf32> -> vector<8x8xf32>
    %cst_585 = arith.constant 0.353553385 : f32
    %1339 = vector.broadcast %cst_585 : f32 to vector<8x8xf32>
    %1340 = arith.mulf %1338, %1339 : vector<8x8xf32>
    %1341 = arith.addf %1340, %1 : vector<8x8xf32>
    %cst_586 = arith.constant dense<0xFF800000> : vector<8xf32>
    %1342 = vector.multi_reduction <maximumf>, %1341, %cst_586 [1] : vector<8x8xf32> to vector<8xf32>
    %1343 = vector.shape_cast %1342 : vector<8xf32> to vector<8x1xf32>
    %1344 = vector.broadcast %1343 : vector<8x1xf32> to vector<8x8xf32>
    %1345 = arith.subf %1341, %1344 : vector<8x8xf32>
    %1346 = math.exp %1345 : vector<8x8xf32>
    %cst_587 = arith.constant dense<0.000000e+00> : vector<8xf32>
    %1347 = vector.multi_reduction <add>, %1346, %cst_587 [1] : vector<8x8xf32> to vector<8xf32>
    %1348 = vector.shape_cast %1347 : vector<8xf32> to vector<8x1xf32>
    %1349 = tpu.reciprocal %1348 : vector<8x1xf32> -> vector<8x1xf32>
    %1350 = vector.broadcast %1349 : vector<8x1xf32> to vector<8x8xf32>
    %1351 = arith.mulf %1346, %1350 : vector<8x8xf32>
    %cst_588 = arith.constant dense<0.000000e+00> : vector<8x8xf32>
    %1352 = tpu.matmul %1351, %1337, %cst_588 {dimension_numbers = #tpu.dot_dimension_numbers<[1], [0], [0], [1], [0, 0, 1, 1], [], []>} : vector<8x8xf32>, vector<8x8xf32>, vector<8x8xf32> -> vector<8x8xf32>
    %c8_589 = arith.constant 8 : index
    %c16_590 = arith.constant 16 : index
    %1353 = vector.load %arg40[%c8_589, %c16_590] : memref<16x32xf32, #tpu.memory_space<vmem>>, vector<8x8xf32>
    tpu.vector_store %arg40[%c8_589, %c16_590], %1352 {strides = array<i32>} : memref<16x32xf32, #tpu.memory_space<vmem>>, vector<8x8xf32>,
    %1354 = vector.extract_strided_slice %1211 {offsets = [8, 24], sizes = [8, 8], strides = [1, 1]} : vector<16x32xf32> to vector<8x8xf32>
    %1355 = vector.extract_strided_slice %1219 {offsets = [8, 24], sizes = [8, 8], strides = [1, 1]} : vector<16x32xf32> to vector<8x8xf32>
    %1356 = vector.extract_strided_slice %1220 {offsets = [8, 24], sizes = [8, 8], strides = [1, 1]} : vector<16x32xf32> to vector<8x8xf32>
    %cst_591 = arith.constant dense<0.000000e+00> : vector<8x8xf32>
    %1357 = tpu.matmul %1354, %1355, %cst_591 {dimension_numbers = #tpu.dot_dimension_numbers<[1], [1], [0], [0], [0, 0, 1, 0], [], []>} : vector<8x8xf32>, vector<8x8xf32>, vector<8x8xf32> -> vector<8x8xf32>
    %cst_592 = arith.constant 0.353553385 : f32
    %1358 = vector.broadcast %cst_592 : f32 to vector<8x8xf32>
    %1359 = arith.mulf %1357, %1358 : vector<8x8xf32>
    %1360 = arith.addf %1359, %1 : vector<8x8xf32>
    %cst_593 = arith.constant dense<0xFF800000> : vector<8xf32>
    %1361 = vector.multi_reduction <maximumf>, %1360, %cst_593 [1] : vector<8x8xf32> to vector<8xf32>
    %1362 = vector.shape_cast %1361 : vector<8xf32> to vector<8x1xf32>
    %1363 = vector.broadcast %1362 : vector<8x1xf32> to vector<8x8xf32>
    %1364 = arith.subf %1360, %1363 : vector<8x8xf32>
    %1365 = math.exp %1364 : vector<8x8xf32>
    %cst_594 = arith.constant dense<0.000000e+00> : vector<8xf32>
    %1366 = vector.multi_reduction <add>, %1365, %cst_594 [1] : vector<8x8xf32> to vector<8xf32>
    %1367 = vector.shape_cast %1366 : vector<8xf32> to vector<8x1xf32>
    %1368 = tpu.reciprocal %1367 : vector<8x1xf32> -> vector<8x1xf32>
    %1369 = vector.broadcast %1368 : vector<8x1xf32> to vector<8x8xf32>
    %1370 = arith.mulf %1365, %1369 : vector<8x8xf32>
    %cst_595 = arith.constant dense<0.000000e+00> : vector<8x8xf32>
    %1371 = tpu.matmul %1370, %1356, %cst_595 {dimension_numbers = #tpu.dot_dimension_numbers<[1], [0], [0], [1], [0, 0, 1, 1], [], []>} : vector<8x8xf32>, vector<8x8xf32>, vector<8x8xf32> -> vector<8x8xf32>
    %c8_596 = arith.constant 8 : index
    %c24_597 = arith.constant 24 : index
    %1372 = vector.load %arg40[%c8_596, %c24_597] : memref<16x32xf32, #tpu.memory_space<vmem>>, vector<8x8xf32>
    tpu.vector_store %arg40[%c8_596, %c24_597], %1371 {strides = array<i32>} : memref<16x32xf32, #tpu.memory_space<vmem>>, vector<8x8xf32>,
    %c0_598 = arith.constant 0 : index
    %c0_599 = arith.constant 0 : index
    %1373 = vector.load %arg40[%c0_598, %c0_599] : memref<16x32xf32, #tpu.memory_space<vmem>>, vector<16x32xf32>
    %c1_600 = arith.constant 1 : index
    %c0_601 = arith.constant 0 : index
    %c0_602 = arith.constant 0 : index
    %1374 = vector.load %arg29[%c1_600, %c0_601, %c0_602] : memref<2x32x32xf32, #tpu.memory_space<vmem>>, vector<1x32x32xf32>
    %1375 = vector.shape_cast %1374 : vector<1x32x32xf32> to vector<32x32xf32>
    %cst_603 = arith.constant dense<0.000000e+00> : vector<16x32xf32>
    %1376 = tpu.matmul %1373, %1375, %cst_603 {dimension_numbers = #tpu.dot_dimension_numbers<[1], [0], [0], [1], [0, 0, 1, 1], [], []>} : vector<16x32xf32>, vector<32x32xf32>, vector<16x32xf32> -> vector<16x32xf32>
    %c1_604 = arith.constant 1 : index
    %c0_605 = arith.constant 0 : index
    %c0_606 = arith.constant 0 : index
    %1377 = vector.load %arg30[%c1_604, %c0_605, %c0_606] : memref<2x1x32xf32, #tpu.memory_space<vmem>>, vector<1x1x32xf32>
    %1378 = vector.shape_cast %1377 : vector<1x1x32xf32> to vector<1x32xf32>
    %1379 = vector.broadcast %1378 : vector<1x32xf32> to vector<16x32xf32>
    %1380 = arith.addf %1376, %1379 : vector<16x32xf32>
    %1381 = arith.addf %1204, %1380 : vector<16x32xf32>
    %c1_607 = arith.constant 1 : index
    %c0_608 = arith.constant 0 : index
    %c0_609 = arith.constant 0 : index
    %1382 = vector.load %arg31[%c1_607, %c0_608, %c0_609] : memref<2x1x32xf32, #tpu.memory_space<vmem>>, vector<1x1x32xf32>
    %1383 = vector.shape_cast %1382 : vector<1x1x32xf32> to vector<1x32xf32>
    %c1_610 = arith.constant 1 : index
    %c0_611 = arith.constant 0 : index
    %c0_612 = arith.constant 0 : index
    %1384 = vector.load %arg32[%c1_610, %c0_611, %c0_612] : memref<2x1x32xf32, #tpu.memory_space<vmem>>, vector<1x1x32xf32>
    %1385 = vector.shape_cast %1384 : vector<1x1x32xf32> to vector<1x32xf32>
    %cst_613 = arith.constant dense<0.000000e+00> : vector<16xf32>
    %1386 = vector.multi_reduction <add>, %1381, %cst_613 [1] : vector<16x32xf32> to vector<16xf32>
    %1387 = vector.shape_cast %1386 : vector<16xf32> to vector<16x1xf32>
    %cst_614 = arith.constant 3.200000e+01 : f32
    %1388 = vector.broadcast %cst_614 : f32 to vector<16x1xf32>
    %1389 = arith.divf %1387, %1388 : vector<16x1xf32>
    %1390 = vector.broadcast %1389 : vector<16x1xf32> to vector<16x32xf32>
    %1391 = arith.subf %1381, %1390 : vector<16x32xf32>
    %1392 = arith.mulf %1391, %1391 : vector<16x32xf32>
    %cst_615 = arith.constant dense<0.000000e+00> : vector<16xf32>
    %1393 = vector.multi_reduction <add>, %1392, %cst_615 [1] : vector<16x32xf32> to vector<16xf32>
    %1394 = vector.shape_cast %1393 : vector<16xf32> to vector<16x1xf32>
    %cst_616 = arith.constant 3.200000e+01 : f32
    %1395 = vector.broadcast %cst_616 : f32 to vector<16x1xf32>
    %1396 = arith.divf %1394, %1395 : vector<16x1xf32>
    %1397 = vector.broadcast %1389 : vector<16x1xf32> to vector<16x32xf32>
    %1398 = arith.subf %1381, %1397 : vector<16x32xf32>
    %cst_617 = arith.constant 9.99999974E-6 : f32
    %1399 = vector.broadcast %cst_617 : f32 to vector<16x1xf32>
    %1400 = arith.addf %1396, %1399 : vector<16x1xf32>
    %1401 = math.rsqrt %1400 : vector<16x1xf32>
    %1402 = vector.broadcast %1401 : vector<16x1xf32> to vector<16x32xf32>
    %1403 = arith.mulf %1398, %1402 : vector<16x32xf32>
    %1404 = vector.broadcast %1383 : vector<1x32xf32> to vector<16x32xf32>
    %1405 = arith.mulf %1403, %1404 : vector<16x32xf32>
    %1406 = vector.broadcast %1385 : vector<1x32xf32> to vector<16x32xf32>
    %1407 = arith.addf %1405, %1406 : vector<16x32xf32>
    %c1_618 = arith.constant 1 : index
    %c0_619 = arith.constant 0 : index
    %c0_620 = arith.constant 0 : index
    %1408 = vector.load %arg33[%c1_618, %c0_619, %c0_620] : memref<2x32x64xf32, #tpu.memory_space<vmem>>, vector<1x32x64xf32>
    %1409 = vector.shape_cast %1408 : vector<1x32x64xf32> to vector<32x64xf32>
    %c1_621 = arith.constant 1 : index
    %c0_622 = arith.constant 0 : index
    %c0_623 = arith.constant 0 : index
    %1410 = vector.load %arg34[%c1_621, %c0_622, %c0_623] : memref<2x1x64xf32, #tpu.memory_space<vmem>>, vector<1x1x64xf32>
    %1411 = vector.shape_cast %1410 : vector<1x1x64xf32> to vector<1x64xf32>
    %c1_624 = arith.constant 1 : index
    %c0_625 = arith.constant 0 : index
    %c0_626 = arith.constant 0 : index
    %1412 = vector.load %arg35[%c1_624, %c0_625, %c0_626] : memref<2x64x32xf32, #tpu.memory_space<vmem>>, vector<1x64x32xf32>
    %1413 = vector.shape_cast %1412 : vector<1x64x32xf32> to vector<64x32xf32>
    %c1_627 = arith.constant 1 : index
    %c0_628 = arith.constant 0 : index
    %c0_629 = arith.constant 0 : index
    %1414 = vector.load %arg36[%c1_627, %c0_628, %c0_629] : memref<2x1x32xf32, #tpu.memory_space<vmem>>, vector<1x1x32xf32>
    %1415 = vector.shape_cast %1414 : vector<1x1x32xf32> to vector<1x32xf32>
    %c1_630 = arith.constant 1 : index
    %c0_631 = arith.constant 0 : index
    %c0_632 = arith.constant 0 : index
    %1416 = vector.load %arg37[%c1_630, %c0_631, %c0_632] : memref<2x1x32xf32, #tpu.memory_space<vmem>>, vector<1x1x32xf32>
    %1417 = vector.shape_cast %1416 : vector<1x1x32xf32> to vector<1x32xf32>
    %c1_633 = arith.constant 1 : index
    %c0_634 = arith.constant 0 : index
    %c0_635 = arith.constant 0 : index
    %1418 = vector.load %arg38[%c1_633, %c0_634, %c0_635] : memref<2x1x32xf32, #tpu.memory_space<vmem>>, vector<1x1x32xf32>
    %1419 = vector.shape_cast %1418 : vector<1x1x32xf32> to vector<1x32xf32>
    %cst_636 = arith.constant dense<0.000000e+00> : vector<16x64xf32>
    %1420 = tpu.matmul %1407, %1409, %cst_636 {dimension_numbers = #tpu.dot_dimension_numbers<[1], [0], [0], [1], [0, 0, 1, 1], [], []>} : vector<16x32xf32>, vector<32x64xf32>, vector<16x64xf32> -> vector<16x64xf32>
    %1421 = vector.broadcast %1411 : vector<1x64xf32> to vector<16x64xf32>
    %1422 = arith.addf %1420, %1421 : vector<16x64xf32>
    %1423 = arith.mulf %1422, %1422 : vector<16x64xf32>
    %1424 = arith.mulf %1422, %1423 : vector<16x64xf32>
    %cst_637 = arith.constant 4.471500e-02 : f32
    %1425 = vector.broadcast %cst_637 : f32 to vector<16x64xf32>
    %1426 = arith.mulf %1425, %1424 : vector<16x64xf32>
    %1427 = arith.addf %1422, %1426 : vector<16x64xf32>
    %cst_638 = arith.constant 0.797884583 : f32
    %1428 = vector.broadcast %cst_638 : f32 to vector<16x64xf32>
    %1429 = arith.mulf %1428, %1427 : vector<16x64xf32>
    %1430 = math.tanh %1429 : vector<16x64xf32>
    %cst_639 = arith.constant 1.000000e+00 : f32
    %1431 = vector.broadcast %cst_639 : f32 to vector<16x64xf32>
    %1432 = arith.addf %1431, %1430 : vector<16x64xf32>
    %cst_640 = arith.constant 5.000000e-01 : f32
    %1433 = vector.broadcast %cst_640 : f32 to vector<16x64xf32>
    %1434 = arith.mulf %1433, %1432 : vector<16x64xf32>
    %1435 = arith.mulf %1422, %1434 : vector<16x64xf32>
    %cst_641 = arith.constant dense<0.000000e+00> : vector<16x32xf32>
    %1436 = tpu.matmul %1435, %1413, %cst_641 {dimension_numbers = #tpu.dot_dimension_numbers<[1], [0], [0], [1], [0, 0, 1, 1], [], []>} : vector<16x64xf32>, vector<64x32xf32>, vector<16x32xf32> -> vector<16x32xf32>
    %1437 = vector.broadcast %1415 : vector<1x32xf32> to vector<16x32xf32>
    %1438 = arith.addf %1436, %1437 : vector<16x32xf32>
    %1439 = arith.addf %1407, %1438 : vector<16x32xf32>
    %cst_642 = arith.constant dense<0.000000e+00> : vector<16xf32>
    %1440 = vector.multi_reduction <add>, %1439, %cst_642 [1] : vector<16x32xf32> to vector<16xf32>
    %1441 = vector.shape_cast %1440 : vector<16xf32> to vector<16x1xf32>
    %cst_643 = arith.constant 3.200000e+01 : f32
    %1442 = vector.broadcast %cst_643 : f32 to vector<16x1xf32>
    %1443 = arith.divf %1441, %1442 : vector<16x1xf32>
    %1444 = vector.broadcast %1443 : vector<16x1xf32> to vector<16x32xf32>
    %1445 = arith.subf %1439, %1444 : vector<16x32xf32>
    %1446 = arith.mulf %1445, %1445 : vector<16x32xf32>
    %cst_644 = arith.constant dense<0.000000e+00> : vector<16xf32>
    %1447 = vector.multi_reduction <add>, %1446, %cst_644 [1] : vector<16x32xf32> to vector<16xf32>
    %1448 = vector.shape_cast %1447 : vector<16xf32> to vector<16x1xf32>
    %cst_645 = arith.constant 3.200000e+01 : f32
    %1449 = vector.broadcast %cst_645 : f32 to vector<16x1xf32>
    %1450 = arith.divf %1448, %1449 : vector<16x1xf32>
    %1451 = vector.broadcast %1443 : vector<16x1xf32> to vector<16x32xf32>
    %1452 = arith.subf %1439, %1451 : vector<16x32xf32>
    %cst_646 = arith.constant 9.99999974E-6 : f32
    %1453 = vector.broadcast %cst_646 : f32 to vector<16x1xf32>
    %1454 = arith.addf %1450, %1453 : vector<16x1xf32>
    %1455 = math.rsqrt %1454 : vector<16x1xf32>
    %1456 = vector.broadcast %1455 : vector<16x1xf32> to vector<16x32xf32>
    %1457 = arith.mulf %1452, %1456 : vector<16x32xf32>
    %1458 = vector.broadcast %1417 : vector<1x32xf32> to vector<16x32xf32>
    %1459 = arith.mulf %1457, %1458 : vector<16x32xf32>
    %1460 = vector.broadcast %1419 : vector<1x32xf32> to vector<16x32xf32>
    %1461 = arith.addf %1459, %1460 : vector<16x32xf32>
    %c0_647 = arith.constant 0 : index
    %c0_648 = arith.constant 0 : index
    %1462 = vector.load %arg39[%c0_647, %c0_648] : memref<16x32xf32, #tpu.memory_space<vmem>>, vector<16x32xf32>
    tpu.vector_store %arg39[%c0_647, %c0_648], %1461 {strides = array<i32>} : memref<16x32xf32, #tpu.memory_space<vmem>>, vector<16x32xf32>,
    return
  }
}

</mosaic_0001>

<bundles_post_ra>
// kernel: bart_forward.3
= control target key start
LH: loop header
LB: loop body
LE: loop exit
PB: predicated region body
PF: predicated region fallthrough
CT: control target
= control target key end

     0   :  { %s1210_s12 = smov 0   ;;  %s1212_s13 = smov 0   ;;  %s1558_s0 = inlined_call_operand.vmem [shape: f32[16,32], index: 0, kind: input, shape index: {}]   ;;  %s1559_s1 = inlined_call_operand.vmem [shape: bf16[32,51200], index: 1, kind: input, shape index: {}]   ;;  %s1560_s2 = inlined_call_operand.vmem [shape: f32[1,51200], index: 2, kind: input, shape index: {}]   ;;  %s1561_s3 = inlined_call_operand.vmem [shape: f32[16,51200], index: 3, kind: output, shape index: {}]  }
   0x1   :  { %s1214_s14 = smov 0  }
   0x2 LB: > { %s1226_s15 = sadd.s32 4294967295, %s1187_s14   ;;  %s1229_s16 = sadd.s32 1, %s1187_s14   ;;  %s1187_s14 = sphi %s1214_s14, %s1565_s14   ;;  %s1183_s13 = sphi %s1212_s13, %s1564_s13   ;;  %s1179_s12 = sphi %s1210_s12, %s1563_s12  }
   0x3   : > { %s38_s17 = ssub.s32 %s1187_s14, %s1229_s16  ;;  %s41_s18 = sadd.s32 1, %s1183_s13 }
   0x4   : > { %p39_p0 = scmp.eq.s32.totalorder %s38_s17, 0  ;;  %p48_p1 = scmp.ne.s32.totalorder %s1183_s13, %s1179_s12 }
   0x5   : > { %p49_p2 = scmp.eq.s32.totalorder %s1187_s14, 0  ;;  %p104_p3 = scmp.eq.s32.totalorder %s1226_s15, 24 }
   0x6   : > { %s1239_s19 = scalar_select %p39_p0, %s1183_s13, %s41_s18  }
   0x7   : > { %p50_p4 = por %p49_p2, %p48_p1  ;;  %p1241_p5 = por %p104_p3, %p48_p1 }
   0x8   : > { %p1085_p6 = scmp.ge.s32.totalorder %s1187_s14, 25 }
   0xa   : > { %129 = sbr.rel (%p1085_p6) target bundleno = 37 (0x25), region = 20 }
  0x11   : > { %132 = sbr.rel (!%p50_p4) target bundleno = 37 (0x25), region = 24  ;;  %s134_s21 = sand.u32 (%p50_p4), 1, %s1183_s13  }
  0x12   : > { %s1138_s22 = sshll.u32 (%p50_p4), %s1187_s14, 6  ;;  %s1086_s23 = sshll.u32 (%p50_p4), %s134_s21, 8 }
  0x13   : > { %s1251_s26 = scalar_lea.vmem (%p50_p4), %s1559_s1, %s1138_s22  ;;  %s1256_s27 = scalar_lea.vmem (%p50_p4), [#allocation2], %s1086_s23 }
  0x14   : > { %v152_v0 = vld [vmem:[%s1251_s26] sm:$0xff] (%p50_p4)  ;;  %v154_v1 = vld [vmem:[%s1251_s26 + $0x8] sm:$0xff] (%p50_p4)  ;;  %v156_v2 = vld [vmem:[%s1251_s26 + $0x10] sm:$0xff] (%p50_p4) }
  0x15   : > { %153 = vst [vmem:[%s1256_s27] sm:$0xff] (%p50_p4), %v152_v0  ;;  %155 = vst [vmem:[%s1256_s27 + $0x8] sm:$0xff] (%p50_p4), %v154_v1  ;;  %v158_v3 = vld [vmem:[%s1251_s26 + $0x18] sm:$0xff] (%p50_p4)  ;;  %v160_v4 = vld [vmem:[%s1251_s26 + $0x20] sm:$0xff] (%p50_p4) }
  0x16   : > { %157 = vst [vmem:[%s1256_s27 + $0x10] sm:$0xff] (%p50_p4), %v156_v2  ;;  %v162_v5 = vld [vmem:[%s1251_s26 + $0x28] sm:$0xff] (%p50_p4)  ;;  %159 = vst [vmem:[%s1256_s27 + $0x18] sm:$0xff] (%p50_p4), %v158_v3  ;;  %v164_v6 = vld [vmem:[%s1251_s26 + $0x30] sm:$0xff] (%p50_p4) }
  0x17   : > { %161 = vst [vmem:[%s1256_s27 + $0x20] sm:$0xff] (%p50_p4), %v160_v4  ;;  %163 = vst [vmem:[%s1256_s27 + $0x28] sm:$0xff] (%p50_p4), %v162_v5  ;;  %v166_v7 = vld [vmem:[%s1251_s26 + $0x38] sm:$0xff] (%p50_p4)  ;;  %v168_v8 = vld [vmem:[%s1251_s26 + $0x640] sm:$0xff] (%p50_p4) }
  0x18   : > { %165 = vst [vmem:[%s1256_s27 + $0x30] sm:$0xff] %v164_v6  ;;  %167 = vst [vmem:[%s1256_s27 + $0x38] sm:$0xff] %v166_v7  ;;  %v170_v9 = vld [vmem:[%s1251_s26 + $0x648] sm:$0xff]  ;;  %v172_v10 = vld [vmem:[%s1251_s26 + $0x650] sm:$0xff] }
  0x19   : > { %169 = vst [vmem:[%s1256_s27 + $0x40] sm:$0xff] %v168_v8  ;;  %v174_v11 = vld [vmem:[%s1251_s26 + $0x658] sm:$0xff]  ;;  %171 = vst [vmem:[%s1256_s27 + $0x48] sm:$0xff] %v170_v9  ;;  %v176_v12 = vld [vmem:[%s1251_s26 + $0x660] sm:$0xff] }
  0x1a   : > { %173 = vst [vmem:[%s1256_s27 + $0x50] sm:$0xff] %v172_v10  ;;  %175 = vst [vmem:[%s1256_s27 + $0x58] sm:$0xff] %v174_v11  ;;  %v178_v13 = vld [vmem:[%s1251_s26 + $0x668] sm:$0xff]  ;;  %v180_v14 = vld [vmem:[%s1251_s26 + $0x670] sm:$0xff] }
  0x1b   : > { %177 = vst [vmem:[%s1256_s27 + $0x60] sm:$0xff] %v176_v12  ;;  %179 = vst [vmem:[%s1256_s27 + $0x68] sm:$0xff] %v178_v13  ;;  %v182_v15 = vld [vmem:[%s1251_s26 + $0x678] sm:$0xff]  ;;  %v184_v16 = vld [vmem:[%s1251_s26 + $0xc80] sm:$0xff] }
  0x1c   : > { %181 = vst [vmem:[%s1256_s27 + $0x70] sm:$0xff] %v180_v14  ;;  %v186_v17 = vld [vmem:[%s1251_s26 + $0xc88] sm:$0xff]  ;;  %183 = vst [vmem:[%s1256_s27 + $0x78] sm:$0xff] %v182_v15  ;;  %v188_v18 = vld [vmem:[%s1251_s26 + $0xc90] sm:$0xff] }
  0x1d   : > { %185 = vst [vmem:[%s1256_s27 + $0x80] sm:$0xff] %v184_v16  ;;  %187 = vst [vmem:[%s1256_s27 + $0x88] sm:$0xff] %v186_v17  ;;  %v190_v19 = vld [vmem:[%s1251_s26 + $0xc98] sm:$0xff]  ;;  %v192_v20 = vld [vmem:[%s1251_s26 + $0xca0] sm:$0xff] }
  0x1e   : > { %189 = vst [vmem:[%s1256_s27 + $0x90] sm:$0xff] %v188_v18  ;;  %191 = vst [vmem:[%s1256_s27 + $0x98] sm:$0xff] %v190_v19  ;;  %v194_v21 = vld [vmem:[%s1251_s26 + $0xca8] sm:$0xff]  ;;  %v196_v22 = vld [vmem:[%s1251_s26 + $0xcb0] sm:$0xff] }
  0x1f   : > { %193 = vst [vmem:[%s1256_s27 + $0xa0] sm:$0xff] %v192_v20  ;;  %v198_v23 = vld [vmem:[%s1251_s26 + $0xcb8] sm:$0xff]  ;;  %195 = vst [vmem:[%s1256_s27 + $0xa8] sm:$0xff] %v194_v21  ;;  %v200_v24 = vld [vmem:[%s1251_s26 + $0x12c0] sm:$0xff] }
  0x20   : > { %197 = vst [vmem:[%s1256_s27 + $0xb0] sm:$0xff] %v196_v22  ;;  %199 = vst [vmem:[%s1256_s27 + $0xb8] sm:$0xff] %v198_v23  ;;  %v202_v25 = vld [vmem:[%s1251_s26 + $0x12c8] sm:$0xff]  ;;  %v204_v26 = vld [vmem:[%s1251_s26 + $0x12d0] sm:$0xff] }
  0x21   : > { %201 = vst [vmem:[%s1256_s27 + $0xc0] sm:$0xff] %v200_v24  ;;  %203 = vst [vmem:[%s1256_s27 + $0xc8] sm:$0xff] %v202_v25  ;;  %v206_v27 = vld [vmem:[%s1251_s26 + $0x12d8] sm:$0xff]  ;;  %v208_v28 = vld [vmem:[%s1251_s26 + $0x12e0] sm:$0xff] }
  0x22   : > { %205 = vst [vmem:[%s1256_s27 + $0xd0] sm:$0xff] %v204_v26  ;;  %v210_v29 = vld [vmem:[%s1251_s26 + $0x12e8] sm:$0xff]  ;;  %207 = vst [vmem:[%s1256_s27 + $0xd8] sm:$0xff] %v206_v27  ;;  %v212_v30 = vld [vmem:[%s1251_s26 + $0x12f0] sm:$0xff] }
  0x23   : > { %209 = vst [vmem:[%s1256_s27 + $0xe0] sm:$0xff] %v208_v28  ;;  %211 = vst [vmem:[%s1256_s27 + $0xe8] sm:$0xff] %v210_v29  ;;  %v214_v31 = vld [vmem:[%s1251_s26 + $0x12f8] sm:$0xff] }
  0x24   : > { %213 = vst [vmem:[%s1256_s27 + $0xf0] sm:$0xff] %v212_v30  ;;  %215 = vst [vmem:[%s1256_s27 + $0xf8] sm:$0xff] %v214_v31 }
  0x25 PF: > { %p1089_p7 = scmp.ge.s32.totalorder %s1187_s14, 1  ;;  %p228_p8 = scmp.lt.s32.totalorder %s1187_s14, 26 }
  0x27   : > { %p229_p9 = pnand %p1089_p7, %p228_p8 }
  0x28   : > { %s235_s28 = sand.u32 (!%p229_p9), 1, %s1179_s12   ;;  %v1189_v32 = vmov (!%p229_p9), 0   ;;  %v269_v52 = vld [vmem:[%s1558_s0] sm:$0xff] (!%p229_p9)  ;;  %v270_v53 = vld [vmem:[%s1558_s0 + $0x8] sm:$0xff] (!%p229_p9)  ;;  %vm548_vm0 = vcmask (!%p229_p9), 261120   ;;  %s1092_s8 = sshll.u32 (!%p229_p9), %s1226_s15, 4 }
  0x29   : > { %232 = sbr.rel (%p229_p9) target bundleno = 305 (0x131), region = 51  ;;  %s1322_s29 = sshll.u32 (!%p229_p9), %s235_s28, 8  ;;  %584 = vmatprep.mubr.bf16.mxu0 (!%p229_p9), %v1189_v32  ;;  %627 = vmatprep.mubr.bf16.mxu1 (!%p229_p9), %v1189_v32  ;;  %v1349_v59 = vpack.c.bf16 (!%p229_p9), %v270_v53, %v269_v52 }
  0x2a   : > { %s1327_s30 = scalar_lea.vmem (!%p229_p9), [#allocation2], %s1322_s29  ;;  %p263_p10 = scmp.lt.s32.totalorder (!%p229_p9), %s1092_s8, 399 }
  0x2b   : > { %v272_v33 = vld [vmem:[%s1327_s30] sm:$0xff] (!%p229_p9)  ;;  %v273_v35 = vld [vmem:[%s1327_s30 + $0x8] sm:$0xff] (!%p229_p9)  ;;  %v274_v46 = vld [vmem:[%s1327_s30 + $0x10] sm:$0xff] (!%p229_p9)  ;;  %s1416_s12 = scalar_lea.vmem (!%p229_p9), [#allocation3], %s1322_s29 }
  0x2c   : > { %v280_v34 = vld [vmem:[%s1327_s30 + $0x40] sm:$0xff] (!%p229_p9)  ;;  %v281_v37 = vld [vmem:[%s1327_s30 + $0x48] sm:$0xff] (!%p229_p9)  ;;  %v282_v48 = vld [vmem:[%s1327_s30 + $0x50] sm:$0xff] (!%p229_p9) }
  0x2d   : > { %v1094_v36 = vcombine.high (!%p229_p9), %v272_v33, %v280_v34  ;;  %v1093_v38 = vcombine.low (!%p229_p9), %v272_v33, %v280_v34  ;;  %v288_v39 = vld [vmem:[%s1327_s30 + $0x80] sm:$0xff] (!%p229_p9)  ;;  %v1096_v41 = vcombine.high (!%p229_p9), %v273_v35, %v281_v37  ;;  %v1095_v42 = vcombine.low (!%p229_p9), %v273_v35, %v281_v37  ;;  %v289_v44 = vld [vmem:[%s1327_s30 + $0x88] sm:$0xff] (!%p229_p9)  ;;  %v275_v49 = vld [vmem:[%s1327_s30 + $0x18] sm:$0xff] (!%p229_p9) }
  0x2e   : > { %v296_v40 = vld [vmem:[%s1327_s30 + $0xc0] sm:$0xff] (!%p229_p9)  ;;  %v297_v45 = vld [vmem:[%s1327_s30 + $0xc8] sm:$0xff] (!%p229_p9)  ;;  %v283_v50 = vld [vmem:[%s1327_s30 + $0x58] sm:$0xff] (!%p229_p9)  ;;  %v1098_v55 = vcombine.high (!%p229_p9), %v274_v46, %v282_v48  ;;  %v1097_v62 = vcombine.low (!%p229_p9), %v274_v46, %v282_v48  ;;  %v308_v37 = vlaneseq (!%p229_p9) }
  0x2f   : > { %v1110_v43 = vcombine.high (!%p229_p9), %v288_v39, %v296_v40  ;;  %552 = vmatprep.subr.bf16.mxu0 (!%p229_p9), %v1094_v36  ;;  %v1112_v47 = vcombine.high (!%p229_p9), %v289_v44, %v297_v45  ;;  %595 = vmatprep.subr.bf16.mxu1 (!%p229_p9), %v1096_v41  ;;  %v1109_v51 = vcombine.low (!%p229_p9), %v288_v39, %v296_v40  ;;  %v290_v57 = vld [vmem:[%s1327_s30 + $0x90] sm:$0xff] (!%p229_p9)  ;;  %v291_v60 = vld [vmem:[%s1327_s30 + $0x98] sm:$0xff] (!%p229_p9)  ;;  %v276_v2 = vld [vmem:[%s1327_s30 + $0x20] sm:$0xff] (!%p229_p9) }
  0x30   : > { %553 = vmatpush1.bf16.msra.mxu0 %v1093_v38  ;;  %596 = vmatpush1.bf16.msra.mxu1 %v1095_v42  ;;  %v1111_v54 = vcombine.low %v289_v44, %v297_v45  ;;  %v1100_v56 = vcombine.high %v275_v49, %v283_v50  ;;  %v298_v58 = vld [vmem:[%s1327_s30 + $0xd0] sm:$0xff]  ;;  %v299_v61 = vld [vmem:[%s1327_s30 + $0xd8] sm:$0xff]  ;;  %v1099_v63 = vcombine.low %v275_v49, %v283_v50  ;;  %v284_v3 = vld [vmem:[%s1327_s30 + $0x60] sm:$0xff]  ;;  %s1567_s8 = smov (!%p263_p10, %s1092_s8), 399  ;;  %v1392_v38 = vshrl.u32 %v308_v37, 7  ;;  %s1139_s14 = sshll.u32 (%p1241_p5), %s1226_s15, 7 }
  0x31   : > { %554 = vmatprep.subr.bf16.mxu0 %v1110_v43  ;;  %597 = vmatprep.subr.bf16.mxu1 %v1112_v47  ;;  %v1114_v0 = vcombine.high %v290_v57, %v298_v58  ;;  %v1116_v1 = vcombine.high %v291_v60, %v299_v61  ;;  %v277_v4 = vld [vmem:[%s1327_s30 + $0x28] sm:$0xff]  ;;  %v1113_v6 = vcombine.low %v290_v57, %v298_v58  ;;  %v292_v10 = vld [vmem:[%s1327_s30 + $0xa0] sm:$0xff]  ;;  %v278_v18 = vld [vmem:[%s1327_s30 + $0x30] sm:$0xff]  ;;  %s1397_s11 = scalar_lea.vmem %s1560_s2, %s1567_s8  ;;  %s1485_s21 = scalar_lea.vmem (%p1241_p5), %s1561_s3, %s1139_s14 }
  0x32   : > { %v285_v5 = vld [vmem:[%s1327_s30 + $0x68] sm:$0xff]  ;;  %v1115_v7 = vcombine.low %v291_v60, %v299_v61  ;;  %v1102_v8 = vcombine.high %v276_v2, %v284_v3  ;;  %v300_v11 = vld [vmem:[%s1327_s30 + $0xe0] sm:$0xff]  ;;  %v1101_v14 = vcombine.low %v276_v2, %v284_v3  ;;  %v286_v19 = vld [vmem:[%s1327_s30 + $0x70] sm:$0xff]  ;;  %v318_v40 = vsub.s32 2, %v1392_v38 }
  0x33   : > { %v1104_v9 = vcombine.high %v277_v4, %v285_v5  ;;  %v293_v12 = vld [vmem:[%s1327_s30 + $0xa8] sm:$0xff]  ;;  %v1103_v15 = vcombine.low %v277_v4, %v285_v5  ;;  %v1118_v16 = vcombine.high %v292_v10, %v300_v11  ;;  %v279_v20 = vld [vmem:[%s1327_s30 + $0x38] sm:$0xff]  ;;  %v1117_v22 = vcombine.low %v292_v10, %v300_v11  ;;  %v294_v26 = vld [vmem:[%s1327_s30 + $0xb0] sm:$0xff] }
  0x34   : > { %555 = vmatpush1.bf16.msra.mxu0 %v1109_v51  ;;  %598 = vmatpush1.bf16.msra.mxu1 %v1111_v54  ;;  %v301_v13 = vld [vmem:[%s1327_s30 + $0xe8] sm:$0xff]  ;;  %v287_v21 = vld [vmem:[%s1327_s30 + $0x78] sm:$0xff]  ;;  %v1106_v24 = vcombine.high %v278_v18, %v286_v19  ;;  %v302_v27 = vld [vmem:[%s1327_s30 + $0xf0] sm:$0xff]  ;;  %v1105_v30 = vcombine.low %v278_v18, %v286_v19  ;;  %v314_v41 = vsub.s32 1, %v1392_v38  ;;  %v322_v42 = vsub.s32 3, %v1392_v38 }
  0x35   : > { %638 = vmatprep.subr.bf16.mxu0 %v1098_v55  ;;  %681 = vmatprep.subr.bf16.mxu1 %v1100_v56  ;;  %v1120_v17 = vcombine.high %v293_v12, %v301_v13  ;;  %v1119_v23 = vcombine.low %v293_v12, %v301_v13  ;;  %v1108_v25 = vcombine.high %v279_v20, %v287_v21  ;;  %v295_v28 = vld [vmem:[%s1327_s30 + $0xb8] sm:$0xff]  ;;  %v304_v39 = vld [vmem:[%s1397_s11] sm:$0xff]  ;;  %v326_v51 = vsub.s32 4, %v1392_v38 }
  0x36   : > { %v303_v29 = vld [vmem:[%s1327_s30 + $0xf8] sm:$0xff]  ;;  %v1107_v31 = vcombine.low %v279_v20, %v287_v21  ;;  %v1122_v33 = vcombine.high %v294_v26, %v302_v27  ;;  %v1121_v35 = vcombine.low %v294_v26, %v302_v27  ;;  %v319_v44 = vrot.slane %v304_v39, %v318_v40 }
  0x37   : > { %1125 = vmatmul.mubr.msk.bf16.vlgmr.msra.gmra.mrb[0].mxu0 %vm548_vm0, %v1349_v59  ;;  %1126 = vmatmul.mubr.msk.bf16.vlgmr.msra.gmra.mrb[0].mxu1 %vm548_vm0, %v1349_v59  ;;  %v1124_v34 = vcombine.high %v295_v28, %v303_v29  ;;  %v1123_v36 = vcombine.low %v295_v28, %v303_v29  ;;  %v315_v45 = vrot.slane %v304_v39, %v314_v41  ;;  %v334_v56 = vsub.s32 6, %v1392_v38 }
  0x38   : > { %639 = vmatpush1.bf16.msra.mxu0 %v1097_v62  ;;  %682 = vmatpush1.bf16.msra.mxu1 %v1099_v63  ;;  %v323_v46 = vrot.slane %v304_v39, %v322_v42  ;;  %v330_v57 = vsub.s32 5, %v1392_v38  ;;  %v338_v62 = vsub.s32 7, %v1392_v38  ;;  %v327_v3 = vrot.slane %v304_v39, %v326_v51 }
  0x39   : > { %640 = vmatprep.subr.bf16.mxu0 %v1114_v0  ;;  %683 = vmatprep.subr.bf16.mxu1 %v1116_v1  ;;  %v335_v4 = vrot.slane %v304_v39, %v334_v56 }
  0x3a   : > { %670 = vmatprep.mubr.bf16.mxu0 %v1189_v32  ;;  %713 = vmatprep.mubr.bf16.mxu1 %v1189_v32  ;;  %v331_v5 = vrot.slane %v304_v39, %v330_v57 }
  0x3c   : > { %641 = vmatpush1.bf16.msra.mxu0 %v1113_v6  ;;  %684 = vmatpush1.bf16.msra.mxu1 %v1115_v7  ;;  %v339_v6 = vrot.slane %v304_v39, %v338_v62 }
  0x3d   : > { %724 = vmatprep.subr.bf16.mxu0 %v1102_v8  ;;  %767 = vmatprep.subr.bf16.mxu1 %v1104_v9 }
  0x3f   : > { %1127 = vmatmul.mubr.msk.bf16.vlgmr.msra.gmra.mrb[4].mxu0 %vm548_vm0, %v1349_v59  ;;  %1128 = vmatmul.mubr.msk.bf16.vlgmr.msra.gmra.mrb[4].mxu1 %vm548_vm0, %v1349_v59 }
  0x40   : > { %725 = vmatpush1.bf16.msra.mxu0 %v1101_v14  ;;  %768 = vmatpush1.bf16.msra.mxu1 %v1103_v15  ;;  %v305_v15 = vld [vmem:[%s1397_s11 + $0x8] sm:$0xff] }
  0x41   : > { %726 = vmatprep.subr.bf16.mxu0 %v1118_v16  ;;  %769 = vmatprep.subr.bf16.mxu1 %v1120_v17  ;;  %v347_v26 = vrot.slane %v305_v15, %v314_v41  ;;  %v355_v27 = vrot.slane %v305_v15, %v322_v42 }
  0x42   : > { %756 = vmatprep.mubr.bf16.mxu0 %v1189_v32  ;;  %799 = vmatprep.mubr.bf16.mxu1 %v1189_v32 }
  0x44   : > { %727 = vmatpush1.bf16.msra.mxu0 %v1117_v22  ;;  %770 = vmatpush1.bf16.msra.mxu1 %v1119_v23 }
  0x45   : > { %810 = vmatprep.subr.bf16.mxu0 %v1106_v24  ;;  %853 = vmatprep.subr.bf16.mxu1 %v1108_v25  ;;  %v351_v25 = vrot.slane %v305_v15, %v318_v40 }
  0x47   : > { %1129 = vmatmul.mubr.msk.bf16.vlgmr.msra.gmra.mrb[8].mxu0 %vm548_vm0, %v1349_v59  ;;  %1130 = vmatmul.mubr.msk.bf16.vlgmr.msra.gmra.mrb[8].mxu1 %vm548_vm0, %v1349_v59 }
  0x48   : > { %811 = vmatpush1.bf16.msra.mxu0 %v1105_v30  ;;  %854 = vmatpush1.bf16.msra.mxu1 %v1107_v31 }
  0x49   : > { %812 = vmatprep.subr.bf16.mxu0 %v1122_v33  ;;  %855 = vmatprep.subr.bf16.mxu1 %v1124_v34 }
  0x4a   : > { %842 = vmatprep.mubr.bf16.mxu0 %v1189_v32  ;;  %885 = vmatprep.mubr.bf16.mxu1 %v1189_v32  ;;  %v310_v32 = vsub.s32 0, %v1392_v38 }
  0x4c   : > { %813 = vmatpush1.bf16.msra.mxu0 %v1121_v35  ;;  %856 = vmatpush1.bf16.msra.mxu1 %v1123_v36  ;;  %v311_v43 = vrot.slane %v304_v39, %v310_v32  ;;  %v343_v24 = vrot.slane %v305_v15, %v310_v32 }
  0x4f   : > { %1131 = vmatmul.mubr.msk.bf16.vlgmr.msra.gmra.mrb[12].mxu0 %vm548_vm0, %v1349_v59  ;;  %1132 = vmatmul.mubr.msk.bf16.vlgmr.msra.gmra.mrb[12].mxu1 %vm548_vm0, %v1349_v59 }
 0x10a   : > { %v586_v47 = vpop.f32.mrb[0].mxu0  ;;  %v629_v49 = vpop.f32.mrb[0].mxu1 }
 0x10b   : > { %v587_v48 = vadd.f32 %v586_v47, %v311_v43  ;;  %v588_v50 = vpop.f32.mrb[1].mxu0  ;;  %v630_v52 = vadd.f32 %v629_v49, %v319_v44  ;;  %v631_v54 = vpop.f32.mrb[1].mxu1  ;;  %v363_v47 = vrot.slane %v305_v15, %v330_v57 }
 0x10c   : > { %v589_v53 = vadd.f32 %v588_v50, %v315_v45  ;;  %v590_v55 = vpop.f32.mrb[2].mxu0  ;;  %v632_v58 = vadd.f32 %v631_v54, %v323_v46  ;;  %v633_v60 = vpop.f32.mrb[2].mxu1 }
 0x10d   : > { %896 = vst [vmem:[%s1416_s12] sm:$0xff] %v587_v48  ;;  %v591_v59 = vadd.f32 %v590_v55, %v311_v43  ;;  %v592_v61 = vpop.f32.mrb[3].mxu0  ;;  %898 = vst [vmem:[%s1416_s12 + $0x10] sm:$0xff] %v630_v52  ;;  %v634_v63 = vadd.f32 %v633_v60, %v319_v44  ;;  %v635_v1 = vpop.f32.mrb[3].mxu1  ;;  %v371_v48 = vrot.slane %v305_v15, %v338_v62 }
 0x10e   : > { %897 = vst [vmem:[%s1416_s12 + $0x8] sm:$0xff] %v589_v53  ;;  %v593_v0 = vadd.f32 %v592_v61, %v315_v45  ;;  %899 = vst [vmem:[%s1416_s12 + $0x18] sm:$0xff] %v632_v58  ;;  %v636_v2 = vadd.f32 %v635_v1, %v323_v46  ;;  %v359_v45 = vrot.slane %v305_v15, %v326_v51 }
 0x10f   : > { %912 = vst [vmem:[%s1416_s12 + $0x80] sm:$0xff] %v591_v59  ;;  %914 = vst [vmem:[%s1416_s12 + $0x90] sm:$0xff] %v634_v63  ;;  %v367_v46 = vrot.slane %v305_v15, %v334_v56 }
 0x110   : > { %913 = vst [vmem:[%s1416_s12 + $0x88] sm:$0xff] %v593_v0  ;;  %915 = vst [vmem:[%s1416_s12 + $0x98] sm:$0xff] %v636_v2 }
 0x112   : > { %v672_v7 = vpop.f32.mrb[4].mxu0  ;;  %v715_v9 = vpop.f32.mrb[4].mxu1 }
 0x113   : > { %v673_v8 = vadd.f32 %v672_v7, %v327_v3  ;;  %v674_v10 = vpop.f32.mrb[5].mxu0  ;;  %v716_v11 = vadd.f32 %v715_v9, %v335_v4  ;;  %v717_v13 = vpop.f32.mrb[5].mxu1 }
 0x114   : > { %v675_v12 = vadd.f32 %v674_v10, %v331_v5  ;;  %v676_v14 = vpop.f32.mrb[6].mxu0  ;;  %v718_v16 = vadd.f32 %v717_v13, %v339_v6  ;;  %v719_v18 = vpop.f32.mrb[6].mxu1  ;;  %v950_v0 = vld [vmem:[%s1416_s12] sm:$0xff] (%p1241_p5)  ;;  %v954_v2 = vld [vmem:[%s1416_s12 + $0x10] sm:$0xff] (%p1241_p5) }
 0x115   : > { %900 = vst [vmem:[%s1416_s12 + $0x20] sm:$0xff] %v673_v8  ;;  %v677_v17 = vadd.f32 %v676_v14, %v327_v3  ;;  %v678_v19 = vpop.f32.mrb[7].mxu0  ;;  %902 = vst [vmem:[%s1416_s12 + $0x30] sm:$0xff] %v716_v11  ;;  %v720_v20 = vadd.f32 %v719_v18, %v335_v4  ;;  %v721_v22 = vpop.f32.mrb[7].mxu1  ;;  %v952_v1 = vld [vmem:[%s1416_s12 + $0x8] sm:$0xff] (%p1241_p5)  ;;  %v956_v3 = vld [vmem:[%s1416_s12 + $0x18] sm:$0xff] (%p1241_p5) }
 0x116   : > { %901 = vst [vmem:[%s1416_s12 + $0x28] sm:$0xff] %v675_v12  ;;  %v679_v21 = vadd.f32 %v678_v19, %v331_v5  ;;  %903 = vst [vmem:[%s1416_s12 + $0x38] sm:$0xff] %v718_v16  ;;  %v722_v23 = vadd.f32 %v721_v22, %v339_v6  ;;  %v982_v16 = vld [vmem:[%s1416_s12 + $0x80] sm:$0xff] (%p1241_p5)  ;;  %v986_v18 = vld [vmem:[%s1416_s12 + $0x90] sm:$0xff] (%p1241_p5) }
 0x117   : > { %916 = vst [vmem:[%s1416_s12 + $0xa0] sm:$0xff] %v677_v17  ;;  %918 = vst [vmem:[%s1416_s12 + $0xb0] sm:$0xff] %v720_v20  ;;  %v984_v17 = vld [vmem:[%s1416_s12 + $0x88] sm:$0xff] (%p1241_p5)  ;;  %v988_v19 = vld [vmem:[%s1416_s12 + $0x98] sm:$0xff] (%p1241_p5) }
 0x118   : > { %917 = vst [vmem:[%s1416_s12 + $0xa8] sm:$0xff] %v679_v21  ;;  %919 = vst [vmem:[%s1416_s12 + $0xb8] sm:$0xff] %v722_v23 }
 0x119   : > { %951 = vst [vmem:[%s1485_s21] sm:$0xff] (%p1241_p5), %v950_v0  ;;  %953 = vst [vmem:[%s1485_s21 + $0x8] sm:$0xff] (%p1241_p5), %v952_v1 }
 0x11a   : > { %v758_v28 = vpop.f32.mrb[8].mxu0  ;;  %v801_v30 = vpop.f32.mrb[8].mxu1  ;;  %955 = vst [vmem:[%s1485_s21 + $0x10] sm:$0xff] (%p1241_p5), %v954_v2  ;;  %957 = vst [vmem:[%s1485_s21 + $0x18] sm:$0xff] (%p1241_p5), %v956_v3 }
 0x11b   : > { %v759_v29 = vadd.f32 %v758_v28, %v343_v24  ;;  %v760_v31 = vpop.f32.mrb[9].mxu0  ;;  %v802_v33 = vadd.f32 %v801_v30, %v351_v25  ;;  %v803_v35 = vpop.f32.mrb[9].mxu1  ;;  %983 = vst [vmem:[%s1485_s21 + $0xc80] sm:$0xff] (%p1241_p5), %v982_v16  ;;  %985 = vst [vmem:[%s1485_s21 + $0xc88] sm:$0xff] (%p1241_p5), %v984_v17 }
 0x11c   : > { %v761_v34 = vadd.f32 %v760_v31, %v347_v26  ;;  %v762_v36 = vpop.f32.mrb[10].mxu0  ;;  %v804_v37 = vadd.f32 %v803_v35, %v355_v27  ;;  %v805_v39 = vpop.f32.mrb[10].mxu1  ;;  %v958_v4 = vld [vmem:[%s1416_s12 + $0x20] sm:$0xff] (%p1241_p5)  ;;  %v962_v6 = vld [vmem:[%s1416_s12 + $0x30] sm:$0xff] (%p1241_p5)  ;;  %987 = vst [vmem:[%s1485_s21 + $0xc90] sm:$0xff] (%p1241_p5), %v986_v18  ;;  %989 = vst [vmem:[%s1485_s21 + $0xc98] sm:$0xff] (%p1241_p5), %v988_v19 }
 0x11d   : > { %904 = vst [vmem:[%s1416_s12 + $0x40] sm:$0xff] %v759_v29  ;;  %v763_v32 = vadd.f32 %v762_v36, %v343_v24  ;;  %v764_v40 = vpop.f32.mrb[11].mxu0  ;;  %906 = vst [vmem:[%s1416_s12 + $0x50] sm:$0xff] %v802_v33  ;;  %v806_v41 = vadd.f32 %v805_v39, %v351_v25  ;;  %v807_v43 = vpop.f32.mrb[11].mxu1  ;;  %v960_v5 = vld [vmem:[%s1416_s12 + $0x28] sm:$0xff] (%p1241_p5)  ;;  %v964_v7 = vld [vmem:[%s1416_s12 + $0x38] sm:$0xff] (%p1241_p5) }
 0x11e   : > { %905 = vst [vmem:[%s1416_s12 + $0x48] sm:$0xff] %v761_v34  ;;  %v765_v42 = vadd.f32 %v764_v40, %v347_v26  ;;  %907 = vst [vmem:[%s1416_s12 + $0x58] sm:$0xff] %v804_v37  ;;  %v808_v44 = vadd.f32 %v807_v43, %v355_v27  ;;  %v990_v20 = vld [vmem:[%s1416_s12 + $0xa0] sm:$0xff] (%p1241_p5)  ;;  %v994_v22 = vld [vmem:[%s1416_s12 + $0xb0] sm:$0xff] (%p1241_p5) }
 0x11f   : > { %920 = vst [vmem:[%s1416_s12 + $0xc0] sm:$0xff] %v763_v32  ;;  %922 = vst [vmem:[%s1416_s12 + $0xd0] sm:$0xff] %v806_v41  ;;  %v992_v21 = vld [vmem:[%s1416_s12 + $0xa8] sm:$0xff] (%p1241_p5)  ;;  %v996_v23 = vld [vmem:[%s1416_s12 + $0xb8] sm:$0xff] (%p1241_p5) }
 0x120   : > { %921 = vst [vmem:[%s1416_s12 + $0xc8] sm:$0xff] %v765_v42  ;;  %923 = vst [vmem:[%s1416_s12 + $0xd8] sm:$0xff] %v808_v44 }
 0x121   : > { %959 = vst [vmem:[%s1485_s21 + $0x20] sm:$0xff] (%p1241_p5), %v958_v4  ;;  %961 = vst [vmem:[%s1485_s21 + $0x28] sm:$0xff] (%p1241_p5), %v960_v5 }
 0x122   : > { %v844_v49 = vpop.f32.mrb[12].mxu0  ;;  %v887_v52 = vpop.f32.mrb[12].mxu1  ;;  %934 = sbr.rel (!%p1241_p5) target bundleno = 305 (0x131), region = 59  ;;  %963 = vst [vmem:[%s1485_s21 + $0x30] sm:$0xff] (%p1241_p5), %v962_v6  ;;  %965 = vst [vmem:[%s1485_s21 + $0x38] sm:$0xff] (%p1241_p5), %v964_v7 }
 0x123   : > { %v845_v50 = vadd.f32 %v844_v49, %v359_v45  ;;  %v846_v53 = vpop.f32.mrb[13].mxu0  ;;  %v888_v51 = vadd.f32 %v887_v52, %v367_v46  ;;  %v889_v55 = vpop.f32.mrb[13].mxu1  ;;  %991 = vst [vmem:[%s1485_s21 + $0xca0] sm:$0xff] (%p1241_p5), %v990_v20  ;;  %993 = vst [vmem:[%s1485_s21 + $0xca8] sm:$0xff] (%p1241_p5), %v992_v21 }
 0x124   : > { %v847_v54 = vadd.f32 %v846_v53, %v363_v47  ;;  %v848_v56 = vpop.f32.mrb[14].mxu0  ;;  %v890_v57 = vadd.f32 %v889_v55, %v371_v48  ;;  %v891_v59 = vpop.f32.mrb[14].mxu1  ;;  %v966_v8 = vld [vmem:[%s1416_s12 + $0x40] sm:$0xff] (%p1241_p5)  ;;  %v970_v10 = vld [vmem:[%s1416_s12 + $0x50] sm:$0xff] (%p1241_p5)  ;;  %995 = vst [vmem:[%s1485_s21 + $0xcb0] sm:$0xff] (%p1241_p5), %v994_v22  ;;  %997 = vst [vmem:[%s1485_s21 + $0xcb8] sm:$0xff] (%p1241_p5), %v996_v23 }
 0x125   : > { %908 = vst [vmem:[%s1416_s12 + $0x60] sm:$0xff] %v845_v50  ;;  %v849_v58 = vadd.f32 %v848_v56, %v359_v45  ;;  %v850_v38 = vpop.f32.mrb[15].mxu0  ;;  %910 = vst [vmem:[%s1416_s12 + $0x70] sm:$0xff] %v888_v51  ;;  %v892_v60 = vadd.f32 %v891_v59, %v367_v46  ;;  %v893_v62 = vpop.f32.mrb[15].mxu1  ;;  %v968_v9 = vld [vmem:[%s1416_s12 + $0x48] sm:$0xff] (%p1241_p5)  ;;  %v972_v11 = vld [vmem:[%s1416_s12 + $0x58] sm:$0xff] (%p1241_p5) }
 0x126   : > { %909 = vst [vmem:[%s1416_s12 + $0x68] sm:$0xff] %v847_v54  ;;  %v851_v61 = vadd.f32 %v850_v38, %v363_v47  ;;  %911 = vst [vmem:[%s1416_s12 + $0x78] sm:$0xff] %v890_v57  ;;  %v894_v63 = vadd.f32 %v893_v62, %v371_v48  ;;  %v998_v24 = vld [vmem:[%s1416_s12 + $0xc0] sm:$0xff] (%p1241_p5)  ;;  %v1002_v26 = vld [vmem:[%s1416_s12 + $0xd0] sm:$0xff] (%p1241_p5) }
 0x127   : > { %924 = vst [vmem:[%s1416_s12 + $0xe0] sm:$0xff] %v849_v58  ;;  %926 = vst [vmem:[%s1416_s12 + $0xf0] sm:$0xff] %v892_v60  ;;  %v1000_v25 = vld [vmem:[%s1416_s12 + $0xc8] sm:$0xff] (%p1241_p5)  ;;  %v1004_v27 = vld [vmem:[%s1416_s12 + $0xd8] sm:$0xff] (%p1241_p5) }
 0x128   : > { %925 = vst [vmem:[%s1416_s12 + $0xe8] sm:$0xff] %v851_v61  ;;  %927 = vst [vmem:[%s1416_s12 + $0xf8] sm:$0xff] %v894_v63 }
 0x129   : > { %967 = vst [vmem:[%s1485_s21 + $0x40] sm:$0xff] %v966_v8  ;;  %969 = vst [vmem:[%s1485_s21 + $0x48] sm:$0xff] %v968_v9 }
 0x12a   : > { %971 = vst [vmem:[%s1485_s21 + $0x50] sm:$0xff] %v970_v10  ;;  %973 = vst [vmem:[%s1485_s21 + $0x58] sm:$0xff] %v972_v11 }
 0x12b   : > { %999 = vst [vmem:[%s1485_s21 + $0xcc0] sm:$0xff] %v998_v24  ;;  %1001 = vst [vmem:[%s1485_s21 + $0xcc8] sm:$0xff] %v1000_v25 }
 0x12c   : > { %v974_v12 = vld [vmem:[%s1416_s12 + $0x60] sm:$0xff]  ;;  %v978_v14 = vld [vmem:[%s1416_s12 + $0x70] sm:$0xff]  ;;  %1003 = vst [vmem:[%s1485_s21 + $0xcd0] sm:$0xff] %v1002_v26  ;;  %1005 = vst [vmem:[%s1485_s21 + $0xcd8] sm:$0xff] %v1004_v27 }
 0x12d   : > { %v976_v13 = vld [vmem:[%s1416_s12 + $0x68] sm:$0xff]  ;;  %975 = vst [vmem:[%s1485_s21 + $0x60] sm:$0xff] %v974_v12  ;;  %979 = vst [vmem:[%s1485_s21 + $0x70] sm:$0xff] %v978_v14  ;;  %v980_v15 = vld [vmem:[%s1416_s12 + $0x78] sm:$0xff] }
 0x12e   : > { %977 = vst [vmem:[%s1485_s21 + $0x68] sm:$0xff] %v976_v13  ;;  %981 = vst [vmem:[%s1485_s21 + $0x78] sm:$0xff] %v980_v15  ;;  %v1006_v28 = vld [vmem:[%s1416_s12 + $0xe0] sm:$0xff]  ;;  %v1010_v30 = vld [vmem:[%s1416_s12 + $0xf0] sm:$0xff] }
 0x12f   : > { %v1008_v29 = vld [vmem:[%s1416_s12 + $0xe8] sm:$0xff]  ;;  %1007 = vst [vmem:[%s1485_s21 + $0xce0] sm:$0xff] %v1006_v28  ;;  %v1012_v31 = vld [vmem:[%s1416_s12 + $0xf8] sm:$0xff]  ;;  %1011 = vst [vmem:[%s1485_s21 + $0xcf0] sm:$0xff] %v1010_v30 }
 0x130   : > { %1009 = vst [vmem:[%s1485_s21 + $0xce8] sm:$0xff] %v1008_v29  ;;  %1013 = vst [vmem:[%s1485_s21 + $0xcf8] sm:$0xff] %v1012_v31 }
 0x131 PF: > { %p10_p11 = scmp.ge.s32.totalorder %s1229_s16, 27   ;;  %s1563_s12 = smov %s1183_s13 }
 0x132   : > { %s1564_s13 = smov %s1239_s19  ;;  %s1565_s14 = smov %s1229_s16 }
 0x133   :  { %12 = sbr.rel (!%p10_p11) target bundleno = 2 (0x2), region = 116 }

// kernel: bart_forward.2
= control target key start
LH: loop header
LB: loop body
LE: loop exit
PB: predicated region body
PF: predicated region fallthrough
CT: control target
= control target key end

     0   :  { %s13068_s6 = smov 1   ;;  %s13069_s10 = smov 2   ;;  %s14666_s0 = inlined_call_operand.smem [shape: u32[40], index: -1, kind: input, shape index: {}] }
   0x1   :  { %s13132_s5 = sld [smem:[%s14666_s0]]   ;;  %s13070_s14 = smov 3  }
   0x2   :  { %s13137_s9 = sld [smem:[%s14666_s0 + %s13068_s6]]   ;;  %s13071_s18 = smov 4  }
   0x3   :  { %s13142_s13 = sld [smem:[%s14666_s0 + %s13069_s10]]   ;;  %s13072_s22 = smov 5  }
   0x4   :  { %s13147_s17 = sld [smem:[%s14666_s0 + %s13070_s14]]   ;;  %s13073_s26 = smov 6  }
   0x5   :  { %s13152_s21 = sld [smem:[%s14666_s0 + %s13071_s18]]   ;;  %s13074_s30 = smov 7  }
   0x6   :  { %s13157_s25 = sld [smem:[%s14666_s0 + %s13072_s22]]   ;;  %s13075_s4 = smov 8  }
   0x7   :  { %s13162_s29 = sld [smem:[%s14666_s0 + %s13073_s26]]   ;;  %s13076_s10 = smov 9  }
   0x8   :  { %14698 = sst [smem:[#allocation6_spill]] %s13137_s9  ;;  %s13077_s15 = smov 10  }
   0x9   :  { %14699 = sst [smem:[#allocation7_spill]] %s13142_s13  ;;  %s13078_s20 = smov 11  }
   0xa   :  { %s13167_s3 = sld [smem:[%s14666_s0 + %s13074_s30]]   ;;  %s13079_s26 = smov 12  }
   0xb   :  { %s13172_s8 = sld [smem:[%s14666_s0 + %s13075_s4]]   ;;  %s13080_s1 = smov 13  }
   0xc   :  { %14700 = sst [smem:[#allocation8_spill]] %s13157_s25  ;;  %s13081_s7 = smov 14  }
   0xd   :  { %s13177_s14 = sld [smem:[%s14666_s0 + %s13076_s10]]   ;;  %s13083_s22 = smov 16  }
   0xe   :  { %s13182_s19 = sld [smem:[%s14666_s0 + %s13077_s15]]   ;;  %s13082_s15 = smov 15  }
   0xf   :  { %s13187_s24 = sld [smem:[%s14666_s0 + %s13078_s20]]   ;;  %s13084_s28 = smov 17  }
  0x10   :  { %s13192_s30 = sld [smem:[%s14666_s0 + %s13079_s26]]  }
  0x11   :  { %s13197_s6 = sld [smem:[%s14666_s0 + %s13080_s1]]  }
  0x12   :  { %s13202_s12 = sld [smem:[%s14666_s0 + %s13081_s7]]   ;;  %s13085_s7 = smov 18  }
  0x13   :  { %s13207_s20 = sld [smem:[%s14666_s0 + %s13082_s15]]   ;;  %s13086_s15 = smov 19  }
  0x14   :  { %s13212_s27 = sld [smem:[%s14666_s0 + %s13083_s22]]   ;;  %s13087_s22 = smov 20  }
  0x15   :  { %s13217_s4 = sld [smem:[%s14666_s0 + %s13084_s28]]   ;;  %s13088_s28 = smov 21  }
  0x16   :  { %s13222_s13 = sld [smem:[%s14666_s0 + %s13085_s7]]   ;;  %s13089_s7 = smov 22  }
  0x17   :  { %s13227_s25 = sld [smem:[%s14666_s0 + %s13086_s15]]   ;;  %s13090_s15 = smov 23  }
  0x18   :  { %s13232_s9 = sld [smem:[%s14666_s0 + %s13087_s22]]   ;;  %s13091_s22 = smov 24  }
  0x1b   :  { %14701 = sst [smem:[#allocation9_spill]] %s13217_s4 }
  0x1c   :  { %14702 = sst [smem:[#allocation10_spill]] %s13222_s13 }
  0x1d   :  { %14703 = sst [smem:[#allocation11_spill]] %s13227_s25 }
  0x1e   :  { %14704 = sst [smem:[#allocation12_spill]] %s13232_s9 }
  0x1f   :  { %s13237_s4 = sld [smem:[%s14666_s0 + %s13088_s28]]   ;;  %s13092_s28 = smov 25  }
  0x20   :  { %s13242_s13 = sld [smem:[%s14666_s0 + %s13089_s7]]   ;;  %s13093_s7 = smov 26  }
  0x21   :  { %s13247_s25 = sld [smem:[%s14666_s0 + %s13090_s15]]   ;;  %s13094_s15 = smov 27  }
  0x22   :  { %s13252_s9 = sld [smem:[%s14666_s0 + %s13091_s22]]   ;;  %s13095_s22 = smov 28  }
  0x25   :  { %14705 = sst [smem:[#allocation13_spill]] %s13237_s4 }
  0x26   :  { %14706 = sst [smem:[#allocation14_spill]] %s13242_s13 }
  0x27   :  { %14707 = sst [smem:[#allocation15_spill]] %s13247_s25 }
  0x28   :  { %14708 = sst [smem:[#allocation16_spill]] %s13252_s9 }
  0x29   :  { %s13257_s4 = sld [smem:[%s14666_s0 + %s13092_s28]]   ;;  %s13096_s28 = smov 29  }
  0x2a   :  { %s13262_s13 = sld [smem:[%s14666_s0 + %s13093_s7]]   ;;  %s13097_s7 = smov 30  }
  0x2b   :  { %s13267_s25 = sld [smem:[%s14666_s0 + %s13094_s15]]   ;;  %s13098_s15 = smov 31  }
  0x2c   :  { %s13272_s9 = sld [smem:[%s14666_s0 + %s13095_s22]]   ;;  %s13099_s22 = smov 32  }
  0x2f   :  { %14709 = sst [smem:[#allocation17_spill]] %s13257_s4 }
  0x30   :  { %14710 = sst [smem:[#allocation18_spill]] %s13262_s13 }
  0x31   :  { %14711 = sst [smem:[#allocation19_spill]] %s13267_s25 }
  0x32   :  { %14712 = sst [smem:[#allocation20_spill]] %s13272_s9 }
  0x33   :  { %s13277_s4 = sld [smem:[%s14666_s0 + %s13096_s28]]   ;;  %s13100_s28 = smov 33  }
  0x34   :  { %s13282_s13 = sld [smem:[%s14666_s0 + %s13097_s7]]   ;;  %s13101_s7 = smov 34  }
  0x35   :  { %s13287_s25 = sld [smem:[%s14666_s0 + %s13098_s15]]   ;;  %s13102_s15 = smov 35  }
  0x36   :  { %s13292_s9 = sld [smem:[%s14666_s0 + %s13099_s22]]   ;;  %s13103_s22 = smov 36  }
  0x39   :  { %14713 = sst [smem:[#allocation21_spill]] %s13277_s4 }
  0x3a   :  { %14714 = sst [smem:[#allocation22_spill]] %s13282_s13 }
  0x3b   :  { %14715 = sst [smem:[#allocation23_spill]] %s13287_s25 }
  0x3c   :  { %14716 = sst [smem:[#allocation24_spill]] %s13292_s9 }
  0x3d   :  { %s13297_s4 = sld [smem:[%s14666_s0 + %s13100_s28]]   ;;  %s13104_s28 = smov 37  }
  0x3e   :  { %s13302_s13 = sld [smem:[%s14666_s0 + %s13101_s7]]   ;;  %s13105_s7 = smov 38  }
  0x3f   :  { %s13307_s25 = sld [smem:[%s14666_s0 + %s13102_s15]]   ;;  %s13106_s15 = smov 39  }
  0x40   :  { %s13312_s9 = sld [smem:[%s14666_s0 + %s13103_s22]]  }
  0x43   :  { %14717 = sst [smem:[#allocation25_spill]] %s13297_s4 }
  0x44   :  { %14718 = sst [smem:[#allocation26_spill]] %s13302_s13 }
  0x45   :  { %14719 = sst [smem:[#allocation27_spill]] %s13307_s25 }
  0x46   :  { %s13317_s4 = sld [smem:[%s14666_s0 + %s13104_s28]]  }
  0x47   :  { %s13322_s13 = sld [smem:[%s14666_s0 + %s13105_s7]]  }
  0x48   :  { %s13327_s25 = sld [smem:[%s14666_s0 + %s13106_s15]]  }
  0x49   :  { %84 = vsyncpa [#allocation4], 0  ;;  %s13107_s22 = smov [#allocation3]   ;;  %s13044_s26 = scalar_lea.hbm %s13162_s29, 16 }
  0x4a   :  { %s103_s23 = sshll.u32 %s13107_s22, 4  ;;  %p13045_p0 = scmp.ne.s32.totalorder %s13162_s29, %s13044_s26  ;;  %s104_s23 = int_to_ptr.vmem [resolvable:$true] %s103_s23 }
  0x4b   :  { %p13048_p1 = scmp.lt.u32.totalorder %s13044_s26, %s13162_s29 }
  0x4d   :  { %p13050_p2 = pnand %p13048_p1, %p13045_p0 }
  0x4f   :  { %13053 = shalt.err (!%p13050_p2)
}
  0x50   :  { %s13054_s28 = scalar_lea.vmem %s104_s23, 16  ;;  %s13058_s1 = scalar_lea.vmem %s104_s23, 32 }
  0x51   :  { %p13055_p3 = scmp.ne.s32.totalorder %s104_s23, %s13054_s28  ;;  %p13059_p4 = scmp.lt.s32.totalorder %s104_s23, %s104_s23 }
  0x52   :  { %p13060_p5 = scmp.lt.s32.totalorder %s13058_s1, %s13054_s28 }
  0x54   :  { %p13061_p6 = por %p13060_p5, %p13059_p4 }
  0x56   :  { %p13062_p7 = pnand %p13061_p6, %p13055_p3 }
  0x58   :  { %13065 = shalt.err (!%p13062_p7)
}
  0x59   :  { %106 = dma.hbm_to_vmem [thread:$0]  %s13162_s29, 16, %s104_s23, [#allocation4]  }
  0x5a   :  { %13066 = dma.done.wait [#allocation4], 16  }
  0x5b   :  { %13067 = vsyncadd [#allocation4], 4294967280  ;;  %vm179_vm0 = vcmask 261120   ;;  %v175_v0 = vld [vmem:[%s13132_s5] sm:$0xff]  ;;  %v176_v1 = vld [vmem:[%s13132_s5 + $0x8] sm:$0xff]  ;;  %v13108_v36 = vmov 0.0  }
  0x5c   :  { %v180_v2 = vsel %vm179_vm0, %v175_v0, 0.0  ;;  %v183_v3 = vsel %vm179_vm0, %v176_v1, 0.0  ;;  %v223_v14 = vld [vmem:[%s13167_s3] sm:$0xff]  ;;  %v224_v15 = vld [vmem:[%s13167_s3 + $0x8] sm:$0xff]  ;;  %v225_v16 = vld [vmem:[%s13167_s3 + $0x10] sm:$0xff]  ;;  %11790 = vmatprep.subr.mxu0 %v13108_v36  ;;  %vm13109_vm1 = vmmov 0  }
  0x5d   :  { %181 = vadd.xlane.f32.xlu0 %v180_v2  ;;  %v12523_v17 = vpack.c.bf16 %v224_v15, %v223_v14  ;;  %v226_v18 = vld [vmem:[%s13167_s3 + $0x18] sm:$0xff]  ;;  %v11122_v27 = vld [vmem:[%s13147_s17] ss:$0 sm:$0xff]  ;;  %11792 = vmatprep.mubr.msk.f32.mxu0 %vm13109_vm1, %v13108_v36  ;;  %s13110_s0 = smov 88   ;;  %s13111_s5 = smov 96   ;;  %vm325_vm2 = vcmask 64512  }
  0x5e   :  { %v12527_v19 = vpack.c.bf16 %v226_v18, %v225_v16  ;;  %v11123_v29 = vld [vmem:[%s13152_s21] ss:$0 sm:$0xff]  ;;  %s13112_s17 = smov 120   ;;  %s13113_s21 = smov 112   ;;  %vm661_vm3 = vcmask 130112   ;;  %vm834_vm4 = vcmask 195712  }
  0x5f   :  { %12524 = vmatprep.subr.bf16.mxu1 %v12523_v17  ;;  %v11124_v37 = vld [vmem:[%s13172_s8] ss:$0 sm:$0xff]  ;;  %s13114_s29 = smov 80   ;;  %s13115_s2 = smov 104   ;;  %vm1007_vm5 = vcmask 261312   ;;  %vm1952_vm6 = vcmask 523264  }
  0x60   :  { %12526 = vmatpush3.bf16.msra.mxu1 %v12523_v17  ;;  %s13116_s7 = smov 72   ;;  %s13117_s10 = smov 64  }
  0x61   :  { %184 = vadd.xlane.f32.xlu0 %v183_v3  ;;  %12528 = vmatprep.subr.bf16.mxu1 %v12527_v19  ;;  %s13118_s11 = smov 48   ;;  %s14696_s15 = smov 40  }
  0x62   :  { %s14694_s16 = smov 56   ;;  %s14692_s18 = smov 8  }
  0x63   :  { %s14690_s22 = smov 16   ;;  %s14688_s23 = smov 24  }
  0x64   :  { %12530 = vmatpush3.bf16.msra.mxu1 %v12527_v19  ;;  %s14720_s26 = sld [smem:[#allocation9_spill]]  ;;  %s14721_s28 = sld [smem:[#allocation10_spill]] }
  0x65   :  { %11780 = vmatprep.subr.mxu1 %v13108_v36  ;;  %s14732_s1 = sld [smem:[#allocation16_spill]] }
  0xea   :  { %v182_v4 = vpop.xlane.xlu0 %181 }
  0xeb   :  { %v187_v5 = vmul.f32 0.03125, %v182_v4 }
  0xed   :  { %v189_v6 = vsub.f32 %v175_v0, %v187_v5 }
  0xee   :  { %v185_v7 = vpop.xlane.xlu0 %184 }
  0xef   :  { %v188_v8 = vmul.f32 0.03125, %v185_v7  ;;  %v191_v9 = vmul.f32 %v189_v6, %v189_v6 }
  0xf1   :  { %v190_v10 = vsub.f32 %v176_v1, %v188_v8  ;;  %v193_v11 = vsel %vm179_vm0, %v191_v9, 0.0 }
  0xf2   :  { %194 = vadd.xlane.f32.xlu1 %v193_v11 }
  0xf3   :  { %v192_v12 = vmul.f32 %v190_v10, %v190_v10 }
  0xf5   :  { %v196_v13 = vsel %vm179_vm0, %v192_v12, 0.0 }
  0xf6   :  { %197 = vadd.xlane.f32.xlu1 %v196_v13 }
 0x17f   :  { %v195_v20 = vpop.xlane.xlu1 %194 }
 0x180   :  { %v199_v21 = vmul.f32 0.03125, %v195_v20 }
 0x182   :  { %v201_v22 = vadd.f32 1e-05, %v199_v21 }
 0x183   :  { %v198_v23 = vpop.xlane.xlu1 %197 }
 0x184   :  { %12787 = vrsqrt.f32 %v201_v22  ;;  %v200_v24 = vmul.f32 0.03125, %v198_v23 }
 0x186   :  { %v202_v25 = vadd.f32 1e-05, %v200_v24 }
 0x188   :  { %12789 = vrsqrt.f32 %v202_v25 }
 0x18e   :  { %v12788_v26 = vpop.eup %12787 }
 0x18f   :  { %v205_v28 = vmul.f32 %v12788_v26, %v189_v6 }
 0x191   :  { %v213_v30 = vmul.f32 %v11122_v27, %v205_v28 }
 0x192   :  { %v12790_v31 = vpop.eup %12789 }
 0x193   :  { %v206_v32 = vmul.f32 %v12790_v31, %v190_v10  ;;  %v13345_v33 = vadd.f32 %v11123_v29, %v213_v30 }
 0x195   :  { %v214_v34 = vmul.f32 %v11122_v27, %v206_v32  ;;  %11777 = vmatprep.mubr.msk.f32.mxu1 %vm179_vm0, %v13345_v33 }
 0x197   :  { %v13349_v35 = vadd.f32 %v11123_v29, %v214_v34 }
 0x199   :  { %11778 = vmatmul.mubr.msk.f32.vlgmr.msra.gmra.mrb[0].mxu1 %vm179_vm0, %v13349_v35 }
 0x19a   :  { %11782 = vmatprep.mubr.msk.f32.mxu1 %vm13109_vm1, %v13108_v36 }
 0x26c   :  { %v11779_v38 = vpop.f32.mrb[0].mxu1 }
 0x26d   :  { %v313_v39 = vpop.f32.mrb[1].mxu1  ;;  %v13374_v41 = vadd.f32 %v11779_v38, %v11124_v37 }
 0x26e   :  { %v13360_v40 = vadd.f32 %v11124_v37, %v313_v39 }
 0x270   :  { %492 = vrot.lane.b32.xlu1 %v13360_v40, %s13110_s0  ;;  %323 = vrot.lane.b32.xlu0 %v13360_v40, %s13111_s5 }
 0x274   :  { %490 = vrot.lane.b32.xlu1 %v13360_v40, %s13112_s17  ;;  %663 = vrot.lane.b32.xlu0 %v13360_v40, %s13113_s21 }
 0x278   :  { %665 = vrot.lane.b32.xlu1 %v13360_v40, %s13114_s29  ;;  %836 = vrot.lane.b32.xlu0 %v13360_v40, %s13115_s2 }
 0x27c   :  { %838 = vrot.lane.b32.xlu1 %v13360_v40, %s13116_s7  ;;  %1178 = vrot.lane.b32.xlu0 %v13374_v41, %s13110_s0 }
 0x280   :  { %1010 = vrot.lane.b32.xlu1 %v13374_v41, %s13111_s5  ;;  %1350 = vrot.lane.b32.xlu0 %v13374_v41, %s13114_s29 }
 0x284   :  { %1176 = vrot.lane.b32.xlu1 %v13374_v41, %s13112_s17  ;;  %1522 = vrot.lane.b32.xlu0 %v13374_v41, %s13116_s7 }
 0x288   :  { %1348 = vrot.lane.b32.xlu1 %v13374_v41, %s13113_s21 }
 0x28c   :  { %1520 = vrot.lane.b32.xlu1 %v13374_v41, %s13115_s2 }
 0x2e2   :  { %v493_v42 = vpop.permute.xlu1 %492  ;;  %v324_v43 = vpop.permute.xlu0 %323 }
 0x2e3   :  { %11781 = vmatpush3.xpose.msk.msra.mxu1 %vm325_vm2, %v324_v43  ;;  %11791 = vmatpush3.xpose.msk.msra.mxu0 %vm325_vm2, %v493_v42 }
 0x2e4   :  { %11800 = vmatprep.subr.mxu0 %v13108_v36  ;;  %11785 = vmatprep.subr.mxu1 %v13108_v36 }
 0x2e6   :  { %v491_v44 = vpop.permute.xlu1 %490  ;;  %11783 = vmatmul.mubr.msk.f32.vlgmr.msra.gmra.mrb[2].mxu1 %vm325_vm2, %v13360_v40  ;;  %v664_v45 = vpop.permute.xlu0 %663 }
 0x2e7   :  { %11793 = vmatmul.mubr.msk.f32.vlgmr.msra.gmra.mrb[0].mxu0 %vm325_vm2, %v491_v44  ;;  %11787 = vmatprep.mubr.msk.f32.mxu1 %vm13109_vm1, %v13108_v36 }
 0x2e8   :  { %11802 = vmatprep.mubr.msk.f32.mxu0 %vm13109_vm1, %v13108_v36 }
 0x2ea   :  { %v666_v46 = vpop.permute.xlu1 %665  ;;  %v837_v47 = vpop.permute.xlu0 %836 }
 0x2eb   :  { %11801 = vmatpush3.xpose.msk.msra.mxu0 %vm325_vm2, %v666_v46 }
 0x2ec   :  { %11810 = vmatprep.subr.mxu0 %v13108_v36 }
 0x2ee   :  { %v839_v48 = vpop.permute.xlu1 %838  ;;  %11803 = vmatmul.mubr.msk.f32.vlgmr.msra.gmra.mrb[2].mxu0 %vm325_vm2, %v664_v45  ;;  %v1179_v49 = vpop.permute.xlu0 %1178 }
 0x2ef   :  { %11811 = vmatpush3.xpose.msk.msra.mxu0 %vm325_vm2, %v839_v48  ;;  %11812 = vmatprep.mubr.msk.f32.mxu0 %vm13109_vm1, %v13108_v36 }
 0x2f0   :  { %11820 = vmatprep.subr.mxu0 %v13108_v36 }
 0x2f2   :  { %v1011_v50 = vpop.permute.xlu1 %1010  ;;  %11813 = vmatmul.mubr.msk.f32.vlgmr.msra.gmra.mrb[4].mxu0 %vm325_vm2, %v837_v47  ;;  %v1351_v52 = vpop.permute.xlu0 %1350 }
 0x2f3   :  { %11821 = vmatpush3.xpose.msk.msra.mxu0 %vm325_vm2, %v1011_v50  ;;  %11822 = vmatprep.mubr.msk.f32.mxu0 %vm13109_vm1, %v13108_v36 }
 0x2f4   :  { %11830 = vmatprep.subr.mxu0 %v13108_v36 }
 0x2f6   :  { %v1177_v51 = vpop.permute.xlu1 %1176  ;;  %11823 = vmatmul.mubr.msk.f32.vlgmr.msra.gmra.mrb[6].mxu0 %vm325_vm2, %v13374_v41  ;;  %v1523_v54 = vpop.permute.xlu0 %1522 }
 0x2f7   :  { %11831 = vmatpush3.xpose.msk.msra.mxu0 %vm325_vm2, %v1179_v49  ;;  %11832 = vmatprep.mubr.msk.f32.mxu0 %vm13109_vm1, %v13108_v36 }
 0x2f8   :  { %11840 = vmatprep.subr.mxu0 %v13108_v36 }
 0x2fa   :  { %11833 = vmatmul.mubr.msk.f32.vlgmr.msra.gmra.mrb[8].mxu0 %vm325_vm2, %v1177_v51  ;;  %v1349_v53 = vpop.permute.xlu1 %1348 }
 0x2fb   :  { %11841 = vmatpush3.xpose.msk.msra.mxu0 %vm325_vm2, %v1351_v52  ;;  %11842 = vmatprep.mubr.msk.f32.mxu0 %vm13109_vm1, %v13108_v36 }
 0x2fc   :  { %11850 = vmatprep.subr.mxu0 %v13108_v36 }
 0x2fe   :  { %11843 = vmatmul.mubr.msk.f32.vlgmr.msra.gmra.mrb[10].mxu0 %vm325_vm2, %v1349_v53  ;;  %v1521_v55 = vpop.permute.xlu1 %1520 }
 0x2ff   :  { %11851 = vmatpush3.xpose.msk.msra.mxu0 %vm325_vm2, %v1523_v54  ;;  %11852 = vmatprep.mubr.msk.f32.mxu0 %vm13109_vm1, %v13108_v36 }
 0x302   :  { %11853 = vmatmul.mubr.msk.f32.vlgmr.msra.gmra.mrb[12].mxu0 %vm325_vm2, %v1521_v55 }
 0x3b9   :  { %v396_v56 = vpop.f32.mrb[2].mxu1 }
 0x3ba   :  { %v400_v57 = vmul.f32 0.35355338, %v396_v56  ;;  %v11784_v58 = vpop.f32.mrb[3].mxu1  ;;  %v564_v59 = vpop.f32.mrb[0].mxu0 }
 0x3bb   :  { %v568_v60 = vmul.f32 0.35355338, %v564_v59  ;;  %v11794_v61 = vpop.f32.mrb[1].mxu0 }
 0x3bc   :  { %v402_v62 = vsel %vm325_vm2, %v400_v57, -inf }
 0x3bd   :  { %403 = vmax.xlane.f32.xlu0 %v402_v62  ;;  %v570_v63 = vsel %vm325_vm2, %v568_v60, -inf }
 0x3be   :  { %571 = vmax.xlane.f32.xlu1 %v570_v63 }
 0x3c1   :  { %v737_v0 = vpop.f32.mrb[2].mxu0 }
 0x3c2   :  { %v13433_v1 = vmul.f32 0.35355338, %v737_v0  ;;  %v11804_v2 = vpop.f32.mrb[3].mxu0 }
 0x3c4   :  { %v743_v3 = vsel %vm325_vm2, %v13433_v1, -inf }
 0x3c5   :  { %744 = vmax.xlane.f32.xlu0 %v743_v3  ;;  %v910_v4 = vpop.f32.mrb[4].mxu0 }
 0x3c6   :  { %v914_v5 = vmul.f32 0.35355338, %v910_v4  ;;  %v11814_v6 = vpop.f32.mrb[5].mxu0 }
 0x3c8   :  { %v916_v7 = vsel %vm325_vm2, %v914_v5, -inf }
 0x3c9   :  { %917 = vmax.xlane.f32.xlu0 %v916_v7  ;;  %v1082_v8 = vpop.f32.mrb[6].mxu0 }
 0x3ca   :  { %v1086_v9 = vmul.f32 0.35355338, %v1082_v8  ;;  %v11824_v10 = vpop.f32.mrb[7].mxu0 }
 0x3cc   :  { %v1088_v11 = vsel %vm325_vm2, %v1086_v9, -inf }
 0x3cd   :  { %1089 = vmax.xlane.f32.xlu0 %v1088_v11  ;;  %v1250_v12 = vpop.f32.mrb[8].mxu0 }
 0x3ce   :  { %v1254_v13 = vmul.f32 0.35355338, %v1250_v12  ;;  %v11834_v14 = vpop.f32.mrb[9].mxu0 }
 0x3d0   :  { %v1256_v15 = vsel %vm325_vm2, %v1254_v13, -inf }
 0x3d1   :  { %1257 = vmax.xlane.f32.xlu1 %v1256_v15  ;;  %v1422_v16 = vpop.f32.mrb[10].mxu0 }
 0x3d2   :  { %v1426_v17 = vmul.f32 0.35355338, %v1422_v16  ;;  %v11844_v18 = vpop.f32.mrb[11].mxu0 }
 0x3d4   :  { %v1428_v19 = vsel %vm325_vm2, %v1426_v17, -inf }
 0x3d5   :  { %1429 = vmax.xlane.f32.xlu0 %v1428_v19  ;;  %v1594_v20 = vpop.f32.mrb[12].mxu0 }
 0x3d6   :  { %v11854_v21 = vpop.f32.mrb[13].mxu0  ;;  %v1598_v22 = vmul.f32 0.35355338, %v1594_v20 }
 0x3d8   :  { %v1600_v23 = vsel %vm325_vm2, %v1598_v22, -inf }
 0x3e2   :  { %413 = vrot.lane.b32.xlu1 %v13360_v40, %s13117_s10 }
 0x406   :  { %1601 = vmax.xlane.f32.xlu1 %v1600_v23 }
 0x417   :  { %754 = vrot.lane.b32.xlu1 %v13360_v40, %s13118_s11 }
 0x41b   :  { %927 = vrot.lane.b32.xlu1 %v13360_v40, %s14696_s15 }
 0x41f   :  { %1099 = vrot.lane.b32.xlu1 %v13374_v41, %s13117_s10 }
 0x44a   :  { %v404_v24 = vpop.xlane.xlu0 %403 }
 0x44b   :  { %v405_v25 = vsub.f32 %v400_v57, %v404_v24  ;;  %v572_v26 = vpop.xlane.xlu1 %571 }
 0x44c   :  { %v573_v27 = vsub.f32 %v568_v60, %v572_v26 }
 0x44d   :  { %v406_v28 = vmul.f32 1.442695, %v405_v25 }
 0x44e   :  { %v574_v29 = vmul.f32 1.442695, %v573_v27 }
 0x44f   :  { %12791 = vpow2.f32 %v406_v28 }
 0x450   :  { %12793 = vpow2.f32 %v574_v29 }
 0x452   :  { %v745_v30 = vpop.xlane.xlu0 %744 }
 0x453   :  { %v746_v47 = vsub.f32 %v13433_v1, %v745_v30 }
 0x455   :  { %v747_v49 = vmul.f32 1.442695, %v746_v47 }
 0x456   :  { %v918_v31 = vpop.xlane.xlu0 %917 }
 0x457   :  { %v919_v32 = vsub.f32 %v914_v5, %v918_v31 }
 0x459   :  { %v12792_v34 = vpop.eup %12791  ;;  %v920_v37 = vmul.f32 1.442695, %v919_v32 }
 0x45a   :  { %v13450_v38 = vpop.eup %12793  ;;  %v408_v39 = vsel %vm325_vm2, %v12792_v34, 0.0  ;;  %v1090_v48 = vpop.xlane.xlu0 %1089 }
 0x45b   :  { %12795 = vpow2.f32 %v920_v37  ;;  %409 = vadd.xlane.f32.xlu0 %v408_v39  ;;  %v576_v42 = vsel %vm325_vm2, %v13450_v38, 0.0  ;;  %v1091_v50 = vsub.f32 %v1086_v9, %v1090_v48  ;;  %v228_v48 = vld [vmem:[%s13177_s14] sm:$0xff] }
 0x45c   :  { %577 = vadd.xlane.f32.xlu1 %v576_v42  ;;  %12797 = vpow2.f32 %v747_v49  ;;  %v229_v49 = vld [vmem:[%s13177_s14 + $0x8] sm:$0xff] }
 0x45d   :  { %v1092_v52 = vmul.f32 1.442695, %v1091_v50  ;;  %v12531_v50 = vpack.c.bf16 %v229_v49, %v228_v48  ;;  %v1830_v48 = vld [vmem:[%s13207_s20] sm:$0xff]  ;;  %v1831_v49 = vld [vmem:[%s13207_s20 + $0x8] sm:$0xff] }
 0x45e   :  { %v1258_v43 = vpop.xlane.xlu1 %1257 }
 0x45f   :  { %12799 = vpow2.f32 %v1092_v52  ;;  %v1259_v54 = vsub.f32 %v1254_v13, %v1258_v43  ;;  %v230_v52 = vld [vmem:[%s13177_s14 + $0x10] sm:$0xff]  ;;  %12532 = vmatprep.subr.bf16.mxu0 %v12531_v50 }
 0x460   :  { %12534 = vmatpush3.bf16.msra.mxu0 %v12531_v50  ;;  %v12547_v50 = vpack.c.bf16 %v1831_v49, %v1830_v48 }
 0x461   :  { %v1260_v56 = vmul.f32 1.442695, %v1259_v54 }
 0x462   :  { %v414_v44 = vpop.permute.xlu1 %413  ;;  %v1430_v51 = vpop.xlane.xlu0 %1429 }
 0x463   :  { %11786 = vmatpush3.msra.mxu1 %v414_v44  ;;  %v1431_v53 = vsub.f32 %v1426_v17, %v1430_v51 }
 0x464   :  { %11795 = vmatprep.subr.mxu1 %v13108_v36 }
 0x465   :  { %v13456_v45 = vpop.eup %12795  ;;  %v1432_v55 = vmul.f32 1.442695, %v1431_v53  ;;  %v231_v53 = vld [vmem:[%s13177_s14 + $0x18] sm:$0xff] }
 0x466   :  { %v922_v46 = vsel %vm325_vm2, %v13456_v45, 0.0  ;;  %v12798_v57 = vpop.eup %12797 }
 0x467   :  { %923 = vadd.xlane.f32.xlu1 %v922_v46  ;;  %12801 = vpow2.f32 %v1432_v55  ;;  %v12535_v55 = vpack.c.bf16 %v231_v53, %v230_v52  ;;  %v1833_v52 = vld [vmem:[%s13207_s20 + $0x18] sm:$0xff] }
 0x468   :  { %12803 = vpow2.f32 %v1260_v56 }
 0x469   :  { %v13466_v58 = vpop.eup %12799  ;;  %12536 = vmatprep.subr.bf16.mxu0 %v12535_v55 }
 0x46a   :  { %v1094_v60 = vsel %vm325_vm2, %v13466_v58, 0.0  ;;  %12538 = vmatpush3.bf16.msra.mxu0 %v12535_v55  ;;  %v1835_v55 = vld [vmem:[%s13207_s20 + $0x28] sm:$0xff] }
 0x46b   :  { %12548 = vmatprep.subr.bf16.mxu0 %v12547_v50 }
 0x471   :  { %581 = vrot.lane.b32.xlu0 %v13360_v40, %s14694_s16  ;;  %v749_v40 = vsel %vm325_vm2, %v12798_v57, 0.0  ;;  %v13470_v61 = vpop.eup %12801 }
 0x472   :  { %v1434_v0 = vsel %vm325_vm2, %v13470_v61, 0.0  ;;  %v13474_v1 = vpop.eup %12803 }
 0x473   :  { %v1262_v2 = vsel %vm325_vm2, %v13474_v1, 0.0 }
 0x478   :  { %1267 = vrot.lane.b32.xlu1 %v13374_v41, %s14694_s16 }
 0x490   :  { %750 = vadd.xlane.f32.xlu0 %v749_v40 }
 0x493   :  { %v1602_v59 = vpop.xlane.xlu1 %1601 }
 0x494   :  { %v1603_v62 = vsub.f32 %v1598_v22, %v1602_v59  ;;  %1095 = vadd.xlane.f32.xlu0 %v1094_v60 }
 0x496   :  { %v1604_v63 = vmul.f32 1.442695, %v1603_v62 }
 0x497   :  { %v755_v5 = vpop.permute.xlu1 %754 }
 0x498   :  { %12805 = vpow2.f32 %v1604_v63  ;;  %1435 = vadd.xlane.f32.xlu0 %v1434_v0 }
 0x49b   :  { %v928_v6 = vpop.permute.xlu1 %927 }
 0x49c   :  { %1263 = vadd.xlane.f32.xlu1 %v1262_v2 }
 0x49f   :  { %v1100_v7 = vpop.permute.xlu1 %1099 }
 0x4a2   :  { %v13478_v3 = vpop.eup %12805 }
 0x4a3   :  { %v1606_v4 = vsel %vm325_vm2, %v13478_v3, 0.0 }
 0x4a4   :  { %1607 = vadd.xlane.f32.xlu0 %v1606_v4 }
 0x4ad   :  { %1611 = vrot.lane.b32.xlu1 %v13374_v41, %s14696_s15 }
 0x4ba   :  { %1439 = vrot.lane.b32.xlu0 %v13374_v41, %s13118_s11 }
 0x4e8   :  { %v410_v8 = vpop.xlane.xlu0 %409 }
 0x4e9   :  { %12807 = vrcp.f32 %v410_v8  ;;  %v578_v9 = vpop.xlane.xlu1 %577 }
 0x4ea   :  { %12809 = vrcp.f32 %v578_v9 }
 0x4ec   :  { %v582_v13 = vpop.permute.xlu0 %581 }
 0x4f3   :  { %v12808_v10 = vpop.eup %12807 }
 0x4f4   :  { %v412_v11 = vmul.f32 %v12808_v10, %v12792_v34  ;;  %v12810_v12 = vpop.eup %12809  ;;  %v924_v14 = vpop.xlane.xlu1 %923 }
 0x4f5   :  { %v580_v41 = vmul.f32 %v12810_v12, %v13450_v38 }
 0x4f6   :  { %11788 = vmatmul.mubr.msk.f32.vlgmr.msra.gmra.mrb[4].mxu1 %vm325_vm2, %v412_v11 }
 0x4f7   :  { %11796 = vmatpush3.msra.mxu1 %v582_v13  ;;  %11797 = vmatprep.mubr.msk.f32.mxu1 %vm13109_vm1, %v13108_v36 }
 0x4f8   :  { %11805 = vmatprep.subr.mxu1 %v13108_v36  ;;  %v1268_v17 = vpop.permute.xlu1 %1267 }
 0x4fa   :  { %11798 = vmatmul.mubr.msk.f32.vlgmr.msra.gmra.mrb[6].mxu1 %vm325_vm2, %v580_v41 }
 0x4fb   :  { %11806 = vmatpush3.msra.mxu1 %v755_v5  ;;  %11807 = vmatprep.mubr.msk.f32.mxu1 %vm13109_vm1, %v13108_v36  ;;  %v11151_v5 = vld [vmem:[%s13182_s19] ss:$0 sm:$0xff] }
 0x4fc   :  { %11815 = vmatprep.subr.mxu1 %v13108_v36 }
 0x51d   :  { %v751_v15 = vpop.xlane.xlu0 %750 }
 0x51e   :  { %12811 = vrcp.f32 %v751_v15 }
 0x51f   :  { %12813 = vrcp.f32 %v924_v14 }
 0x521   :  { %v1096_v16 = vpop.xlane.xlu0 %1095 }
 0x522   :  { %12815 = vrcp.f32 %v1096_v16 }
 0x525   :  { %v1436_v19 = vpop.xlane.xlu0 %1435 }
 0x528   :  { %v12812_v18 = vpop.eup %12811 }
 0x529   :  { %v1264_v20 = vpop.xlane.xlu1 %1263  ;;  %v753_v21 = vmul.f32 %v12812_v18, %v12798_v57  ;;  %v12814_v22 = vpop.eup %12813 }
 0x52a   :  { %12817 = vrcp.f32 %v1264_v20  ;;  %v926_v23 = vmul.f32 %v12814_v22, %v13456_v45  ;;  %v1826_v22 = vld [vmem:[%s13197_s6 + $0x8] sm:$0xff] }
 0x52b   :  { %11808 = vmatmul.mubr.msk.f32.vlgmr.msra.gmra.mrb[8].mxu1 %vm325_vm2, %v753_v21  ;;  %12819 = vrcp.f32 %v1436_v19  ;;  %v1825_v21 = vld [vmem:[%s13197_s6] sm:$0xff] }
 0x52c   :  { %11816 = vmatpush3.msra.mxu1 %v928_v6  ;;  %11817 = vmatprep.mubr.msk.f32.mxu1 %vm13109_vm1, %v13108_v36  ;;  %v12816_v24 = vpop.eup %12815 }
 0x52d   :  { %11825 = vmatprep.subr.mxu1 %v13108_v36  ;;  %v1098_v26 = vmul.f32 %v12816_v24, %v13466_v58  ;;  %v1612_v32 = vpop.permute.xlu1 %1611  ;;  %v12539_v24 = vpack.c.bf16 %v1826_v22, %v1825_v21 }
 0x52f   :  { %11818 = vmatmul.mubr.msk.f32.vlgmr.msra.gmra.mrb[10].mxu1 %vm325_vm2, %v926_v23  ;;  %v1827_v23 = vld [vmem:[%s13197_s6 + $0x10] sm:$0xff] }
 0x530   :  { %11826 = vmatpush3.msra.mxu1 %v1100_v7  ;;  %11827 = vmatprep.mubr.msk.f32.mxu1 %vm13109_vm1, %v13108_v36 }
 0x531   :  { %v1608_v25 = vpop.xlane.xlu0 %1607  ;;  %11835 = vmatprep.subr.mxu1 %v13108_v36 }
 0x532   :  { %12821 = vrcp.f32 %v1608_v25  ;;  %v1828_v25 = vld [vmem:[%s13197_s6 + $0x18] sm:$0xff] }
 0x533   :  { %11828 = vmatmul.mubr.msk.f32.vlgmr.msra.gmra.mrb[12].mxu1 %vm325_vm2, %v1098_v26  ;;  %v12543_v26 = vpack.c.bf16 %v1828_v25, %v1827_v23 }
 0x534   :  { %v12818_v27 = vpop.eup %12817  ;;  %11836 = vmatpush3.msra.mxu1 %v1268_v17  ;;  %11837 = vmatprep.mubr.msk.f32.mxu1 %vm13109_vm1, %v13108_v36 }
 0x535   :  { %v1440_v28 = vpop.permute.xlu0 %1439  ;;  %11845 = vmatprep.subr.mxu1 %v13108_v36  ;;  %v1266_v29 = vmul.f32 %v12818_v27, %v13474_v1  ;;  %v12820_v30 = vpop.eup %12819 }
 0x536   :  { %v1438_v31 = vmul.f32 %v12820_v30, %v13470_v61 }
 0x537   :  { %11838 = vmatmul.mubr.msk.f32.vlgmr.msra.gmra.mrb[14].mxu1 %vm325_vm2, %v1266_v29 }
 0x538   :  { %11846 = vmatpush3.msra.mxu1 %v1440_v28  ;;  %11847 = vmatprep.mubr.msk.f32.mxu1 %vm13109_vm1, %v13108_v36 }
 0x539   :  { %11855 = vmatprep.subr.mxu1 %v13108_v36 }
 0x53b   :  { %11848 = vmatmul.mubr.msk.f32.vlgmr.msra.gmra.mrb[16].mxu1 %vm325_vm2, %v1438_v31 }
 0x53c   :  { %v12822_v34 = vpop.eup %12821  ;;  %11856 = vmatpush3.msra.mxu1 %v1612_v32  ;;  %11857 = vmatprep.mubr.msk.f32.mxu1 %vm13109_vm1, %v13108_v36 }
 0x53d   :  { %v1610_v37 = vmul.f32 %v12822_v34, %v13478_v3  ;;  %12540 = vmatprep.subr.bf16.mxu1 %v12539_v24 }
 0x53f   :  { %11858 = vmatmul.mubr.msk.f32.vlgmr.msra.gmra.mrb[18].mxu1 %vm325_vm2, %v1610_v37  ;;  %v11154_v37 = vld [vmem:[%s13187_s24] ss:$0 sm:$0xff] }
 0x540   :  { %12542 = vmatpush3.bf16.msra.mxu1 %v12539_v24 }
 0x541   :  { %12544 = vmatprep.subr.bf16.mxu1 %v12543_v26 }
 0x544   :  { %12546 = vmatpush3.bf16.msra.mxu1 %v12543_v26 }
 0x5c9   :  { %v485_v38 = vpop.f32.mrb[4].mxu1 }
 0x5ca   :  { %489 = vst.msk [vmem:[#allocation2] sm:$0xff] %vm325_vm2, %v485_v38  ;;  %v11789_v39 = vpop.f32.mrb[5].mxu1 }
 0x5cb   :  { %v11155_v39 = vld [vmem:[%s13192_s30] ss:$0 sm:$0xff] }
 0x5cd   :  { %v653_v42 = vpop.f32.mrb[6].mxu1 }
 0x5ce   :  { %658 = vrot.lane.b32.xlu0 %v653_v42, %s14692_s18  ;;  %v11799_v43 = vpop.f32.mrb[7].mxu1 }
 0x5fe   :  { %v826_v44 = vpop.f32.mrb[8].mxu1 }
 0x5ff   :  { %831 = vrot.lane.b32.xlu1 %v826_v44, %s14690_s22  ;;  %v11809_v45 = vpop.f32.mrb[9].mxu1 }
 0x602   :  { %v999_v46 = vpop.f32.mrb[10].mxu1 }
 0x603   :  { %1004 = vrot.lane.b32.xlu1 %v999_v46, %s14688_s23  ;;  %v11819_v47 = vpop.f32.mrb[11].mxu1 }
 0x606   :  { %v1171_v51 = vpop.f32.mrb[12].mxu1 }
 0x607   :  { %1175 = vst.msk [vmem:[#allocation2 + $0x8] sm:$0xff] %vm325_vm2, %v1171_v51  ;;  %v11829_v54 = vpop.f32.mrb[13].mxu1  ;;  %v1832_v51 = vld [vmem:[%s13207_s20 + $0x10] sm:$0xff] }
 0x608   :  { %v12551_v53 = vpack.c.bf16 %v1833_v52, %v1832_v51  ;;  %v1834_v54 = vld [vmem:[%s13207_s20 + $0x20] sm:$0xff] }
 0x609   :  { %v11162_v52 = vld [vmem:[%s14720_s26] ss:$0 sm:$0xff] }
 0x60a   :  { %v1339_v56 = vpop.f32.mrb[14].mxu1 }
 0x60b   :  { %1344 = vrot.lane.b32.xlu0 %v1339_v56, %s14692_s18  ;;  %v11839_v57 = vpop.f32.mrb[15].mxu1  ;;  %v12555_v56 = vpack.c.bf16 %v1835_v55, %v1834_v54 }
 0x60c   :  { %v1836_v57 = vld [vmem:[%s13207_s20 + $0x30] sm:$0xff] }
 0x60e   :  { %v1511_v40 = vpop.f32.mrb[16].mxu1 }
 0x60f   :  { %1516 = vrot.lane.b32.xlu0 %v1511_v40, %s14690_s22  ;;  %v11849_v58 = vpop.f32.mrb[17].mxu1  ;;  %v1837_v40 = vld [vmem:[%s13207_s20 + $0x38] sm:$0xff] }
 0x610   :  { %v12559_v58 = vpack.c.bf16 %v1837_v40, %v1836_v57 }
 0x612   :  { %v1683_v59 = vpop.f32.mrb[18].mxu1 }
 0x613   :  { %1688 = vrot.lane.b32.xlu1 %v1683_v59, %s14688_s23  ;;  %v11859_v60 = vpop.f32.mrb[19].mxu1  ;;  %v11156_v59 = vld [vmem:[%s13202_s12] ss:$0 sm:$0xff] }
 0x640   :  { %v659_v61 = vpop.permute.xlu0 %658 }
 0x641   :  { %662 = vst.msk [vmem:[#allocation2] sm:$0xff] %vm661_vm3, %v659_v61 }
 0x671   :  { %v832_v62 = vpop.permute.xlu1 %831 }
 0x672   :  { %835 = vst.msk [vmem:[#allocation2] sm:$0xff] %vm834_vm4, %v832_v62 }
 0x675   :  { %v1005_v63 = vpop.permute.xlu1 %1004 }
 0x676   :  { %1008 = vst.msk [vmem:[#allocation2] sm:$0xff] %vm1007_vm5, %v1005_v63 }
 0x67d   :  { %v1345_v0 = vpop.permute.xlu0 %1344  ;;  %v1692_v1 = vld [vmem:[#allocation2] sm:$0xff] }
 0x67e   :  { %1347 = vst.msk [vmem:[#allocation2 + $0x8] sm:$0xff] %vm661_vm3, %v1345_v0  ;;  %11868 = vmatprep.mubr.msk.f32.mxu0 %vm179_vm0, %v1692_v1 }
 0x681   :  { %v1517_v2 = vpop.permute.xlu0 %1516 }
 0x682   :  { %1519 = vst.msk [vmem:[#allocation2 + $0x8] sm:$0xff] %vm834_vm4, %v1517_v2 }
 0x685   :  { %v1689_v3 = vpop.permute.xlu1 %1688 }
 0x686   :  { %1691 = vst.msk [vmem:[#allocation2 + $0x8] sm:$0xff] %vm1007_vm5, %v1689_v3 }
 0x68d   :  { %v1693_v4 = vld [vmem:[#allocation2 + $0x8] sm:$0xff] }
 0x68e   :  { %11869 = vmatmul.mubr.msk.f32.vlgmr.msra.gmra.mrb[14].mxu0 %vm179_vm0, %v1693_v4 }
 0x68f   :  { %12550 = vmatpush3.bf16.msra.mxu0 %v12547_v50 }
 0x690   :  { %12552 = vmatprep.subr.bf16.mxu0 %v12551_v53 }
 0x693   :  { %12554 = vmatpush3.bf16.msra.mxu0 %v12551_v53 }
 0x694   :  { %12556 = vmatprep.subr.bf16.mxu0 %v12555_v56 }
 0x697   :  { %12558 = vmatpush3.bf16.msra.mxu0 %v12555_v56  ;;  %v11163_v56 = vld [vmem:[%s14721_s28] ss:$0 sm:$0xff] }
 0x698   :  { %12560 = vmatprep.subr.bf16.mxu0 %v12559_v58 }
 0x69b   :  { %12562 = vmatpush3.bf16.msra.mxu0 %v12559_v58 }
 0x69c   :  { %11922 = vmatprep.subr.mxu0 %v13108_v36 }
 0x761   :  { %v11870_v6 = vpop.f32.mrb[14].mxu0 }
 0x762   :  { %v1778_v7 = vadd.f32 %v11870_v6, %v11151_v5  ;;  %v1772_v8 = vpop.f32.mrb[15].mxu0 }
 0x763   :  { %v1773_v9 = vadd.f32 %v11151_v5, %v1772_v8 }
 0x764   :  { %v1782_v10 = vadd.f32 %v1778_v7, %v13349_v35 }
 0x765   :  { %v1781_v11 = vadd.f32 %v1773_v9, %v13345_v33 }
 0x766   :  { %v1786_v12 = vsel %vm179_vm0, %v1782_v10, 0.0 }
 0x767   :  { %1787 = vadd.xlane.f32.xlu1 %v1786_v12  ;;  %v1783_v13 = vsel %vm179_vm0, %v1781_v11, 0.0 }
 0x768   :  { %1784 = vadd.xlane.f32.xlu0 %v1783_v13 }
 0x7f4   :  { %v1788_v41 = vpop.xlane.xlu1 %1787 }
 0x7f5   :  { %v1790_v14 = vmul.f32 0.03125, %v1788_v41  ;;  %v1785_v15 = vpop.xlane.xlu0 %1784 }
 0x7f6   :  { %v1789_v16 = vmul.f32 0.03125, %v1785_v15 }
 0x7f7   :  { %v1792_v17 = vsub.f32 %v1782_v10, %v1790_v14 }
 0x7f8   :  { %v1791_v18 = vsub.f32 %v1781_v11, %v1789_v16 }
 0x7f9   :  { %v1794_v33 = vmul.f32 %v1792_v17, %v1792_v17 }
 0x7fa   :  { %v1793_v19 = vmul.f32 %v1791_v18, %v1791_v18 }
 0x7fb   :  { %v1798_v20 = vsel %vm179_vm0, %v1794_v33, 0.0 }
 0x7fc   :  { %v1795_v35 = vsel %vm179_vm0, %v1793_v19, 0.0 }
 0x7fd   :  { %1796 = vadd.xlane.f32.xlu0 %v1795_v35 }
 0x801   :  { %1799 = vadd.xlane.f32.xlu0 %v1798_v20 }
 0x88a   :  { %v1797_v27 = vpop.xlane.xlu0 %1796 }
 0x88b   :  { %v1801_v28 = vmul.f32 0.03125, %v1797_v27 }
 0x88d   :  { %v1803_v29 = vadd.f32 1e-05, %v1801_v28 }
 0x88e   :  { %v1800_v30 = vpop.xlane.xlu0 %1799 }
 0x88f   :  { %12823 = vrsqrt.f32 %v1803_v29  ;;  %v1802_v31 = vmul.f32 0.03125, %v1800_v30 }
 0x891   :  { %v1804_v32 = vadd.f32 1e-05, %v1802_v31 }
 0x893   :  { %12825 = vrsqrt.f32 %v1804_v32 }
 0x899   :  { %v12824_v34 = vpop.eup %12823 }
 0x89a   :  { %v1807_v38 = vmul.f32 %v12824_v34, %v1791_v18 }
 0x89c   :  { %v1815_v42 = vmul.f32 %v11154_v37, %v1807_v38  ;;  %v11165_v38 = vld [vmem:[%s13167_s3 + $0x28] sm:$0xff] }
 0x89d   :  { %v12826_v43 = vpop.eup %12825 }
 0x89e   :  { %v1808_v44 = vmul.f32 %v12826_v43, %v1792_v17  ;;  %v1823_v45 = vadd.f32 %v11155_v39, %v1815_v42  ;;  %v11159_v17 = vld [vmem:[%s13212_s27] ss:$0 sm:$0xff]  ;;  %v11167_v43 = vld [vmem:[%s13167_s3 + $0x38] sm:$0xff] }
 0x8a0   :  { %v1816_v46 = vmul.f32 %v11154_v37, %v1808_v44  ;;  %11879 = vmatprep.mubr.msk.f32.mxu1 %vm179_vm0, %v1823_v45  ;;  %v11164_v37 = vld [vmem:[%s13167_s3 + $0x20] sm:$0xff] }
 0x8a1   :  { %v12563_v42 = vpack.c.bf16 %v11165_v38, %v11164_v37 }
 0x8a2   :  { %v1824_v47 = vadd.f32 %v11155_v39, %v1816_v46  ;;  %v11166_v39 = vld [vmem:[%s13167_s3 + $0x30] sm:$0xff]  ;;  %s14722_s3 = sld [smem:[#allocation6_spill]] }
 0x8a3   :  { %v12567_v44 = vpack.c.bf16 %v11167_v43, %v11166_v39  ;;  %12564 = vmatprep.subr.bf16.mxu1 %v12563_v42 }
 0x8a4   :  { %11880 = vmatmul.mubr.msk.f32.vlgmr.msra.gmra.mrb[20].mxu1 %vm179_vm0, %v1824_v47 }
 0x8a5   :  { %12566 = vmatpush3.bf16.msra.mxu1 %v12563_v42 }
 0x8a6   :  { %12568 = vmatprep.subr.bf16.mxu1 %v12567_v44 }
 0x8a9   :  { %12570 = vmatpush3.bf16.msra.mxu1 %v12567_v44 }
 0x8aa   :  { %11912 = vmatprep.subr.mxu1 %v13108_v36 }
 0x977   :  { %v11881_v60 = vpop.f32.mrb[20].mxu1 }
 0x978   :  { %v1925_v61 = vadd.f32 %v11881_v60, %v11156_v59  ;;  %v1919_v62 = vpop.f32.mrb[21].mxu1  ;;  %v11176_v60 = vld [vmem:[%s13172_s8 + $0x1] ss:$0 sm:$0xff]  ;;  %s14723_s8 = sld [smem:[#allocation11_spill]] }
 0x979   :  { %v1920_v63 = vadd.f32 %v11156_v59, %v1919_v62 }
 0x97a   :  { %v1929_v0 = vmul.f32 %v1925_v61, %v1925_v61 }
 0x97b   :  { %v1928_v1 = vmul.f32 %v1920_v63, %v1920_v63 }
 0x97c   :  { %v1931_v2 = vmul.f32 %v1929_v0, %v1925_v61 }
 0x97d   :  { %v1930_v3 = vmul.f32 %v1928_v1, %v1920_v63 }
 0x97e   :  { %v1933_v4 = vmul.f32 0.044715, %v1931_v2 }
 0x97f   :  { %v1932_v5 = vmul.f32 0.044715, %v1930_v3 }
 0x980   :  { %v1935_v6 = vadd.f32 %v1933_v4, %v1925_v61 }
 0x981   :  { %v1934_v7 = vadd.f32 %v1932_v5, %v1920_v63 }
 0x982   :  { %v1937_v8 = vmul.f32 0.7978846, %v1935_v6 }
 0x983   :  { %v1936_v9 = vmul.f32 0.7978846, %v1934_v7 }
 0x984   :  { %12827 = vtanh.f32 %v1937_v8 }
 0x985   :  { %12829 = vtanh.f32 %v1936_v9 }
 0x98e   :  { %v12828_v10 = vpop.eup %12827 }
 0x98f   :  { %v12830_v11 = vpop.eup %12829  ;;  %v1941_v12 = vadd.f32 1.0, %v12828_v10 }
 0x990   :  { %v1940_v13 = vadd.f32 1.0, %v12830_v11 }
 0x991   :  { %v1943_v41 = vmul.f32 0.5, %v1941_v12 }
 0x992   :  { %v1942_v14 = vmul.f32 0.5, %v1940_v13 }
 0x993   :  { %v1945_v16 = vmul.f32 %v1943_v41, %v1925_v61 }
 0x994   :  { %v1944_v15 = vmul.f32 %v1942_v14, %v1920_v63 }
 0x996   :  { %11898 = vmatprep.mubr.msk.f32.mxu0 %vm1952_vm6, %v1944_v15 }
 0x997   :  { %11899 = vmatmul.mubr.msk.f32.vlgmr.msra.gmra.mrb[16].mxu0 %vm1952_vm6, %v1945_v16 }
 0x998   :  { %11924 = vmatprep.mubr.msk.f32.mxu0 %vm13109_vm1, %v13108_v36 }
 0xa6a   :  { %v11900_v18 = vpop.f32.mrb[16].mxu0 }
 0xa6b   :  { %v2031_v19 = vadd.f32 %v11900_v18, %v11159_v17  ;;  %v2025_v35 = vpop.f32.mrb[17].mxu0 }
 0xa6c   :  { %v2026_v33 = vadd.f32 %v11159_v17, %v2025_v35 }
 0xa6d   :  { %v2035_v20 = vadd.f32 %v2031_v19, %v1824_v47 }
 0xa6e   :  { %v2034_v21 = vadd.f32 %v2026_v33, %v1823_v45 }
 0xa6f   :  { %v2039_v22 = vsel %vm179_vm0, %v2035_v20, 0.0 }
 0xa70   :  { %2040 = vadd.xlane.f32.xlu1 %v2039_v22  ;;  %v2036_v23 = vsel %vm179_vm0, %v2034_v21, 0.0 }
 0xa71   :  { %2037 = vadd.xlane.f32.xlu0 %v2036_v23 }
 0xafd   :  { %v2041_v24 = vpop.xlane.xlu1 %2040 }
 0xafe   :  { %v2043_v25 = vmul.f32 0.03125, %v2041_v24  ;;  %v2038_v26 = vpop.xlane.xlu0 %2037 }
 0xaff   :  { %v2042_v27 = vmul.f32 0.03125, %v2038_v26 }
 0xb00   :  { %v2045_v28 = vsub.f32 %v2035_v20, %v2043_v25 }
 0xb01   :  { %v2044_v29 = vsub.f32 %v2034_v21, %v2042_v27 }
 0xb02   :  { %v2047_v30 = vmul.f32 %v2045_v28, %v2045_v28 }
 0xb03   :  { %v2046_v31 = vmul.f32 %v2044_v29, %v2044_v29 }
 0xb04   :  { %v2051_v32 = vsel %vm179_vm0, %v2047_v30, 0.0 }
 0xb05   :  { %2052 = vadd.xlane.f32.xlu1 %v2051_v32  ;;  %v2048_v34 = vsel %vm179_vm0, %v2046_v31, 0.0 }
 0xb06   :  { %2049 = vadd.xlane.f32.xlu0 %v2048_v34 }
 0xb92   :  { %v2053_v45 = vpop.xlane.xlu1 %2052 }
 0xb93   :  { %v2055_v46 = vmul.f32 0.03125, %v2053_v45  ;;  %v2050_v47 = vpop.xlane.xlu0 %2049 }
 0xb94   :  { %v2054_v48 = vmul.f32 0.03125, %v2050_v47 }
 0xb95   :  { %v2057_v49 = vadd.f32 1e-05, %v2055_v46 }
 0xb96   :  { %v2056_v50 = vadd.f32 1e-05, %v2054_v48 }
 0xb97   :  { %12831 = vrsqrt.f32 %v2057_v49 }
 0xb98   :  { %12833 = vrsqrt.f32 %v2056_v50 }
 0xba1   :  { %v12832_v51 = vpop.eup %12831 }
 0xba2   :  { %v12834_v53 = vpop.eup %12833  ;;  %v2061_v54 = vmul.f32 %v12832_v51, %v2045_v28 }
 0xba3   :  { %v2060_v55 = vmul.f32 %v12834_v53, %v2044_v29 }
 0xba4   :  { %v2069_v57 = vmul.f32 %v11162_v52, %v2061_v54 }
 0xba5   :  { %v2068_v40 = vmul.f32 %v11162_v52, %v2060_v55 }
 0xba6   :  { %v13583_v59 = vadd.f32 %v11163_v56, %v2069_v57 }
 0xba7   :  { %v13581_v58 = vadd.f32 %v11163_v56, %v2068_v40 }
 0xba9   :  { %11909 = vmatprep.mubr.msk.f32.mxu1 %vm179_vm0, %v13581_v58 }
 0xbaa   :  { %11910 = vmatmul.mubr.msk.f32.vlgmr.msra.gmra.mrb[22].mxu1 %vm179_vm0, %v13583_v59 }
 0xbab   :  { %11914 = vmatprep.mubr.msk.f32.mxu1 %vm13109_vm1, %v13108_v36 }
 0xc7d   :  { %v11911_v61 = vpop.f32.mrb[22].mxu1 }
 0xc7e   :  { %v2174_v62 = vpop.f32.mrb[23].mxu1  ;;  %v13606_v0 = vadd.f32 %v11911_v61, %v11176_v60 }
 0xc7f   :  { %v13592_v63 = vadd.f32 %v11176_v60, %v2174_v62 }
 0xc81   :  { %2352 = vrot.lane.b32.xlu1 %v13592_v63, %s13110_s0  ;;  %2184 = vrot.lane.b32.xlu0 %v13592_v63, %s13111_s5 }
 0xc85   :  { %2350 = vrot.lane.b32.xlu1 %v13592_v63, %s13112_s17  ;;  %2522 = vrot.lane.b32.xlu0 %v13592_v63, %s13113_s21 }
 0xc89   :  { %2524 = vrot.lane.b32.xlu1 %v13592_v63, %s13114_s29  ;;  %2694 = vrot.lane.b32.xlu0 %v13592_v63, %s13115_s2 }
 0xc8d   :  { %2696 = vrot.lane.b32.xlu1 %v13592_v63, %s13116_s7  ;;  %3035 = vrot.lane.b32.xlu0 %v13606_v0, %s13110_s0 }
 0xc91   :  { %2867 = vrot.lane.b32.xlu1 %v13606_v0, %s13111_s5  ;;  %3207 = vrot.lane.b32.xlu0 %v13606_v0, %s13114_s29 }
 0xc95   :  { %3033 = vrot.lane.b32.xlu1 %v13606_v0, %s13112_s17  ;;  %3379 = vrot.lane.b32.xlu0 %v13606_v0, %s13116_s7 }
 0xc99   :  { %3205 = vrot.lane.b32.xlu1 %v13606_v0, %s13113_s21 }
 0xc9d   :  { %3377 = vrot.lane.b32.xlu1 %v13606_v0, %s13115_s2 }
 0xcf3   :  { %v2353_v1 = vpop.permute.xlu1 %2352  ;;  %v2185_v2 = vpop.permute.xlu0 %2184 }
 0xcf4   :  { %11913 = vmatpush3.xpose.msk.msra.mxu1 %vm325_vm2, %v2185_v2  ;;  %11923 = vmatpush3.xpose.msk.msra.mxu0 %vm325_vm2, %v2353_v1 }
 0xcf5   :  { %11932 = vmatprep.subr.mxu0 %v13108_v36  ;;  %11917 = vmatprep.subr.mxu1 %v13108_v36 }
 0xcf7   :  { %v2351_v3 = vpop.permute.xlu1 %2350  ;;  %11915 = vmatmul.mubr.msk.f32.vlgmr.msra.gmra.mrb[24].mxu1 %vm325_vm2, %v13592_v63  ;;  %v2523_v4 = vpop.permute.xlu0 %2522 }
 0xcf8   :  { %11925 = vmatmul.mubr.msk.f32.vlgmr.msra.gmra.mrb[18].mxu0 %vm325_vm2, %v2351_v3  ;;  %11919 = vmatprep.mubr.msk.f32.mxu1 %vm13109_vm1, %v13108_v36 }
 0xcf9   :  { %11934 = vmatprep.mubr.msk.f32.mxu0 %vm13109_vm1, %v13108_v36 }
 0xcfb   :  { %v2525_v5 = vpop.permute.xlu1 %2524  ;;  %v2695_v6 = vpop.permute.xlu0 %2694 }
 0xcfc   :  { %11933 = vmatpush3.xpose.msk.msra.mxu0 %vm325_vm2, %v2525_v5 }
 0xcfd   :  { %11942 = vmatprep.subr.mxu0 %v13108_v36 }
 0xcff   :  { %v2697_v7 = vpop.permute.xlu1 %2696  ;;  %11935 = vmatmul.mubr.msk.f32.vlgmr.msra.gmra.mrb[20].mxu0 %vm325_vm2, %v2523_v4  ;;  %v3036_v8 = vpop.permute.xlu0 %3035 }
 0xd00   :  { %11943 = vmatpush3.xpose.msk.msra.mxu0 %vm325_vm2, %v2697_v7  ;;  %11944 = vmatprep.mubr.msk.f32.mxu0 %vm13109_vm1, %v13108_v36 }
 0xd01   :  { %11952 = vmatprep.subr.mxu0 %v13108_v36 }
 0xd03   :  { %v2868_v9 = vpop.permute.xlu1 %2867  ;;  %11945 = vmatmul.mubr.msk.f32.vlgmr.msra.gmra.mrb[22].mxu0 %vm325_vm2, %v2695_v6  ;;  %v3208_v11 = vpop.permute.xlu0 %3207 }
 0xd04   :  { %11953 = vmatpush3.xpose.msk.msra.mxu0 %vm325_vm2, %v2868_v9  ;;  %11954 = vmatprep.mubr.msk.f32.mxu0 %vm13109_vm1, %v13108_v36 }
 0xd05   :  { %11962 = vmatprep.subr.mxu0 %v13108_v36 }
 0xd07   :  { %v3034_v10 = vpop.permute.xlu1 %3033  ;;  %11955 = vmatmul.mubr.msk.f32.vlgmr.msra.gmra.mrb[24].mxu0 %vm325_vm2, %v13606_v0  ;;  %v3380_v13 = vpop.permute.xlu0 %3379 }
 0xd08   :  { %11963 = vmatpush3.xpose.msk.msra.mxu0 %vm325_vm2, %v3036_v8  ;;  %11964 = vmatprep.mubr.msk.f32.mxu0 %vm13109_vm1, %v13108_v36 }
 0xd09   :  { %11972 = vmatprep.subr.mxu0 %v13108_v36 }
 0xd0b   :  { %11965 = vmatmul.mubr.msk.f32.vlgmr.msra.gmra.mrb[26].mxu0 %vm325_vm2, %v3034_v10  ;;  %v3206_v12 = vpop.permute.xlu1 %3205 }
 0xd0c   :  { %11973 = vmatpush3.xpose.msk.msra.mxu0 %vm325_vm2, %v3208_v11  ;;  %11974 = vmatprep.mubr.msk.f32.mxu0 %vm13109_vm1, %v13108_v36 }
 0xd0d   :  { %11982 = vmatprep.subr.mxu0 %v13108_v36 }
 0xd0f   :  { %11975 = vmatmul.mubr.msk.f32.vlgmr.msra.gmra.mrb[28].mxu0 %vm325_vm2, %v3206_v12  ;;  %v3378_v41 = vpop.permute.xlu1 %3377 }
 0xd10   :  { %11983 = vmatpush3.xpose.msk.msra.mxu0 %vm325_vm2, %v3380_v13  ;;  %11984 = vmatprep.mubr.msk.f32.mxu0 %vm13109_vm1, %v13108_v36 }
 0xd13   :  { %11985 = vmatmul.mubr.msk.f32.vlgmr.msra.gmra.mrb[30].mxu0 %vm325_vm2, %v3378_v41 }
 0xdca   :  { %v2256_v14 = vpop.f32.mrb[24].mxu1 }
 0xdcb   :  { %v2260_v15 = vmul.f32 0.35355338, %v2256_v14  ;;  %v11916_v16 = vpop.f32.mrb[25].mxu1  ;;  %v2424_v17 = vpop.f32.mrb[18].mxu0 }
 0xdcc   :  { %v2428_v18 = vmul.f32 0.35355338, %v2424_v17  ;;  %v11926_v19 = vpop.f32.mrb[19].mxu0 }
 0xdcd   :  { %v2262_v35 = vsel %vm325_vm2, %v2260_v15, -inf }
 0xdce   :  { %2263 = vmax.xlane.f32.xlu0 %v2262_v35  ;;  %v2430_v33 = vsel %vm325_vm2, %v2428_v18, -inf }
 0xdcf   :  { %2431 = vmax.xlane.f32.xlu1 %v2430_v33 }
 0xdd2   :  { %v2596_v20 = vpop.f32.mrb[20].mxu0 }
 0xdd3   :  { %v13665_v21 = vmul.f32 0.35355338, %v2596_v20  ;;  %v11936_v22 = vpop.f32.mrb[21].mxu0 }
 0xdd5   :  { %v2602_v23 = vsel %vm325_vm2, %v13665_v21, -inf }
 0xdd6   :  { %2603 = vmax.xlane.f32.xlu0 %v2602_v23  ;;  %v2768_v24 = vpop.f32.mrb[22].mxu0 }
 0xdd7   :  { %v2772_v25 = vmul.f32 0.35355338, %v2768_v24  ;;  %v11946_v26 = vpop.f32.mrb[23].mxu0 }
 0xdd9   :  { %v2774_v27 = vsel %vm325_vm2, %v2772_v25, -inf }
 0xdda   :  { %2775 = vmax.xlane.f32.xlu0 %v2774_v27  ;;  %v2939_v28 = vpop.f32.mrb[24].mxu0 }
 0xddb   :  { %v2943_v29 = vmul.f32 0.35355338, %v2939_v28  ;;  %v11956_v30 = vpop.f32.mrb[25].mxu0 }
 0xddd   :  { %v2945_v31 = vsel %vm325_vm2, %v2943_v29, -inf }
 0xdde   :  { %2946 = vmax.xlane.f32.xlu0 %v2945_v31  ;;  %v3107_v32 = vpop.f32.mrb[26].mxu0 }
 0xddf   :  { %v3111_v34 = vmul.f32 0.35355338, %v3107_v32  ;;  %v11966_v37 = vpop.f32.mrb[27].mxu0 }
 0xde1   :  { %v3113_v38 = vsel %vm325_vm2, %v3111_v34, -inf }
 0xde2   :  { %3114 = vmax.xlane.f32.xlu1 %v3113_v38  ;;  %v3279_v39 = vpop.f32.mrb[28].mxu0 }
 0xde3   :  { %v3283_v42 = vmul.f32 0.35355338, %v3279_v39  ;;  %v11976_v43 = vpop.f32.mrb[29].mxu0 }
 0xde5   :  { %v3285_v44 = vsel %vm325_vm2, %v3283_v42, -inf }
 0xde6   :  { %3286 = vmax.xlane.f32.xlu0 %v3285_v44  ;;  %v3451_v45 = vpop.f32.mrb[30].mxu0 }
 0xde7   :  { %v11986_v46 = vpop.f32.mrb[31].mxu0  ;;  %v3455_v47 = vmul.f32 0.35355338, %v3451_v45 }
 0xde9   :  { %v3457_v48 = vsel %vm325_vm2, %v3455_v47, -inf }
 0xdf3   :  { %2273 = vrot.lane.b32.xlu1 %v13592_v63, %s13117_s10 }
 0xe17   :  { %3458 = vmax.xlane.f32.xlu1 %v3457_v48 }
 0xe28   :  { %2613 = vrot.lane.b32.xlu1 %v13592_v63, %s13118_s11 }
 0xe2c   :  { %2785 = vrot.lane.b32.xlu1 %v13592_v63, %s14696_s15 }
 0xe30   :  { %2956 = vrot.lane.b32.xlu1 %v13606_v0, %s13117_s10 }
 0xe5b   :  { %v2264_v49 = vpop.xlane.xlu0 %2263 }
 0xe5c   :  { %v2265_v50 = vsub.f32 %v2260_v15, %v2264_v49  ;;  %v2432_v51 = vpop.xlane.xlu1 %2431 }
 0xe5d   :  { %v2433_v52 = vsub.f32 %v2428_v18, %v2432_v51 }
 0xe5e   :  { %v2266_v53 = vmul.f32 1.442695, %v2265_v50 }
 0xe5f   :  { %v2434_v54 = vmul.f32 1.442695, %v2433_v52 }
 0xe60   :  { %12835 = vpow2.f32 %v2266_v53 }
 0xe61   :  { %12837 = vpow2.f32 %v2434_v54 }
 0xe63   :  { %v2604_v55 = vpop.xlane.xlu0 %2603 }
 0xe64   :  { %v2605_v6 = vsub.f32 %v13665_v21, %v2604_v55 }
 0xe66   :  { %v2606_v8 = vmul.f32 1.442695, %v2605_v6 }
 0xe67   :  { %v2776_v56 = vpop.xlane.xlu0 %2775 }
 0xe68   :  { %v2777_v57 = vsub.f32 %v2772_v25, %v2776_v56 }
 0xe6a   :  { %v12836_v40 = vpop.eup %12835  ;;  %v2778_v60 = vmul.f32 1.442695, %v2777_v57 }
 0xe6b   :  { %v13682_v61 = vpop.eup %12837  ;;  %v2268_v62 = vsel %vm325_vm2, %v12836_v40, 0.0  ;;  %v2947_v7 = vpop.xlane.xlu0 %2946 }
 0xe6c   :  { %12839 = vpow2.f32 %v2778_v60  ;;  %2269 = vadd.xlane.f32.xlu0 %v2268_v62  ;;  %v2436_v1 = vsel %vm325_vm2, %v13682_v61, 0.0  ;;  %v2948_v9 = vsub.f32 %v2943_v29, %v2947_v7  ;;  %v11169_v7 = vld [vmem:[%s13177_s14 + $0x20] sm:$0xff] }
 0xe6d   :  { %2437 = vadd.xlane.f32.xlu1 %v2436_v1  ;;  %12841 = vpow2.f32 %v2606_v8  ;;  %v11170_v8 = vld [vmem:[%s13177_s14 + $0x28] sm:$0xff] }
 0xe6e   :  { %v2949_v11 = vmul.f32 1.442695, %v2948_v9  ;;  %v12571_v9 = vpack.c.bf16 %v11170_v8, %v11169_v7 }
 0xe6f   :  { %v3115_v2 = vpop.xlane.xlu1 %3114 }
 0xe70   :  { %12843 = vpow2.f32 %v2949_v11  ;;  %v3116_v13 = vsub.f32 %v3111_v34, %v3115_v2  ;;  %v11171_v11 = vld [vmem:[%s13177_s14 + $0x30] sm:$0xff]  ;;  %12572 = vmatprep.subr.bf16.mxu0 %v12571_v9 }
 0xe71   :  { %12574 = vmatpush3.bf16.msra.mxu0 %v12571_v9 }
 0xe72   :  { %v3117_v14 = vmul.f32 1.442695, %v3116_v13 }
 0xe73   :  { %v2274_v3 = vpop.permute.xlu1 %2273  ;;  %v3287_v10 = vpop.xlane.xlu0 %3286 }
 0xe74   :  { %11918 = vmatpush3.msra.mxu1 %v2274_v3  ;;  %v3288_v12 = vsub.f32 %v3283_v42, %v3287_v10 }
 0xe75   :  { %11927 = vmatprep.subr.mxu1 %v13108_v36 }
 0xe76   :  { %v13688_v4 = vpop.eup %12839  ;;  %v3289_v41 = vmul.f32 1.442695, %v3288_v12  ;;  %v11172_v12 = vld [vmem:[%s13177_s14 + $0x38] sm:$0xff]  ;;  %s14724_s14 = sld [smem:[#allocation8_spill]] }
 0xe77   :  { %v2780_v5 = vsel %vm325_vm2, %v13688_v4, 0.0  ;;  %v12842_v15 = vpop.eup %12841 }
 0xe78   :  { %2781 = vadd.xlane.f32.xlu1 %v2780_v5  ;;  %12845 = vpow2.f32 %v3289_v41  ;;  %v12575_v41 = vpack.c.bf16 %v11172_v12, %v11171_v11 }
 0xe79   :  { %12847 = vpow2.f32 %v3117_v14 }
 0xe7a   :  { %v13698_v16 = vpop.eup %12843  ;;  %12576 = vmatprep.subr.bf16.mxu0 %v12575_v41 }
 0xe7b   :  { %v2951_v18 = vsel %vm325_vm2, %v13698_v16, 0.0  ;;  %12578 = vmatpush3.bf16.msra.mxu0 %v12575_v41 }
 0xe82   :  { %2441 = vrot.lane.b32.xlu0 %v13592_v63, %s14694_s16  ;;  %v2608_v63 = vsel %vm325_vm2, %v12842_v15, 0.0  ;;  %v13702_v19 = vpop.eup %12845 }
 0xe83   :  { %v3291_v20 = vsel %vm325_vm2, %v13702_v19, 0.0  ;;  %v13706_v21 = vpop.eup %12847 }
 0xe84   :  { %v3119_v22 = vsel %vm325_vm2, %v13706_v21, 0.0 }
 0xe89   :  { %3124 = vrot.lane.b32.xlu1 %v13606_v0, %s14694_s16 }
 0xea1   :  { %2609 = vadd.xlane.f32.xlu0 %v2608_v63 }
 0xea4   :  { %v3459_v17 = vpop.xlane.xlu1 %3458 }
 0xea5   :  { %v3460_v35 = vsub.f32 %v3455_v47, %v3459_v17  ;;  %2952 = vadd.xlane.f32.xlu0 %v2951_v18 }
 0xea7   :  { %v3461_v33 = vmul.f32 1.442695, %v3460_v35 }
 0xea8   :  { %v2614_v25 = vpop.permute.xlu1 %2613 }
 0xea9   :  { %12849 = vpow2.f32 %v3461_v33  ;;  %3292 = vadd.xlane.f32.xlu0 %v3291_v20 }
 0xeac   :  { %v2786_v26 = vpop.permute.xlu1 %2785 }
 0xead   :  { %3120 = vadd.xlane.f32.xlu1 %v3119_v22 }
 0xeb0   :  { %v2957_v27 = vpop.permute.xlu1 %2956 }
 0xeb3   :  { %v13710_v23 = vpop.eup %12849 }
 0xeb4   :  { %v3463_v24 = vsel %vm325_vm2, %v13710_v23, 0.0 }
 0xeb5   :  { %3464 = vadd.xlane.f32.xlu0 %v3463_v24 }
 0xebe   :  { %3468 = vrot.lane.b32.xlu1 %v13606_v0, %s14696_s15 }
 0xecb   :  { %3296 = vrot.lane.b32.xlu0 %v13606_v0, %s13118_s11 }
 0xef9   :  { %v2270_v28 = vpop.xlane.xlu0 %2269 }
 0xefa   :  { %12851 = vrcp.f32 %v2270_v28  ;;  %v2438_v29 = vpop.xlane.xlu1 %2437 }
 0xefb   :  { %12853 = vrcp.f32 %v2438_v29 }
 0xefd   :  { %v2442_v34 = vpop.permute.xlu0 %2441 }
 0xf04   :  { %v12852_v30 = vpop.eup %12851 }
 0xf05   :  { %v2272_v31 = vmul.f32 %v12852_v30, %v12836_v40  ;;  %v12854_v32 = vpop.eup %12853  ;;  %v2782_v37 = vpop.xlane.xlu1 %2781 }
 0xf06   :  { %v2440_v0 = vmul.f32 %v12854_v32, %v13682_v61 }
 0xf07   :  { %11920 = vmatmul.mubr.msk.f32.vlgmr.msra.gmra.mrb[26].mxu1 %vm325_vm2, %v2272_v31 }
 0xf08   :  { %11928 = vmatpush3.msra.mxu1 %v2442_v34  ;;  %11929 = vmatprep.mubr.msk.f32.mxu1 %vm13109_vm1, %v13108_v36  ;;  %v3940_v34 = vld [vmem:[%s14722_s3] sm:$0xff] }
 0xf09   :  { %11937 = vmatprep.subr.mxu1 %v13108_v36  ;;  %v3125_v42 = vpop.permute.xlu1 %3124 }
 0xf0b   :  { %11930 = vmatmul.mubr.msk.f32.vlgmr.msra.gmra.mrb[28].mxu1 %vm325_vm2, %v2440_v0 }
 0xf0c   :  { %11938 = vmatpush3.msra.mxu1 %v2614_v25  ;;  %11939 = vmatprep.mubr.msk.f32.mxu1 %vm13109_vm1, %v13108_v36  ;;  %v11203_v25 = vld [vmem:[%s13182_s19 + $0x1] ss:$0 sm:$0xff]  ;;  %s14725_s19 = sld [smem:[#allocation12_spill]] }
 0xf0d   :  { %11947 = vmatprep.subr.mxu1 %v13108_v36 }
 0xf2e   :  { %v2610_v38 = vpop.xlane.xlu0 %2609 }
 0xf2f   :  { %12855 = vrcp.f32 %v2610_v38  ;;  %v3941_v38 = vld [vmem:[%s14722_s3 + $0x8] sm:$0xff]  ;;  %s14735_s3 = sld [smem:[#allocation21_spill]] }
 0xf30   :  { %12857 = vrcp.f32 %v2782_v37  ;;  %v3944_v37 = vsel %vm179_vm0, %v3940_v34, 0.0 }
 0xf32   :  { %v2953_v39 = vpop.xlane.xlu0 %2952 }
 0xf33   :  { %12859 = vrcp.f32 %v2953_v39  ;;  %v3947_v39 = vsel %vm179_vm0, %v3941_v38, 0.0 }
 0xf36   :  { %v3293_v44 = vpop.xlane.xlu0 %3292 }
 0xf39   :  { %v12856_v43 = vpop.eup %12855 }
 0xf3a   :  { %v3121_v45 = vpop.xlane.xlu1 %3120  ;;  %v2612_v46 = vmul.f32 %v12856_v43, %v12842_v15  ;;  %v12858_v47 = vpop.eup %12857 }
 0xf3b   :  { %12861 = vrcp.f32 %v3121_v45  ;;  %v2784_v48 = vmul.f32 %v12858_v47, %v13688_v4 }
 0xf3c   :  { %11940 = vmatmul.mubr.msk.f32.vlgmr.msra.gmra.mrb[30].mxu1 %vm325_vm2, %v2612_v46  ;;  %12863 = vrcp.f32 %v3293_v44 }
 0xf3d   :  { %11948 = vmatpush3.msra.mxu1 %v2786_v26  ;;  %11949 = vmatprep.mubr.msk.f32.mxu1 %vm13109_vm1, %v13108_v36  ;;  %v12860_v49 = vpop.eup %12859 }
 0xf3e   :  { %11957 = vmatprep.subr.mxu1 %v13108_v36  ;;  %v2955_v51 = vmul.f32 %v12860_v49, %v13698_v16  ;;  %v3469_v57 = vpop.permute.xlu1 %3468 }
 0xf40   :  { %11950 = vmatmul.mubr.msk.f32.vlgmr.msra.gmra.mrb[32].mxu1 %vm325_vm2, %v2784_v48 }
 0xf41   :  { %11958 = vmatpush3.msra.mxu1 %v2957_v27  ;;  %11959 = vmatprep.mubr.msk.f32.mxu1 %vm13109_vm1, %v13108_v36 }
 0xf42   :  { %v3465_v50 = vpop.xlane.xlu0 %3464  ;;  %11967 = vmatprep.subr.mxu1 %v13108_v36 }
 0xf43   :  { %12865 = vrcp.f32 %v3465_v50 }
 0xf44   :  { %11960 = vmatmul.mubr.msk.f32.vlgmr.msra.gmra.mrb[34].mxu1 %vm325_vm2, %v2955_v51 }
 0xf45   :  { %v12862_v52 = vpop.eup %12861  ;;  %11968 = vmatpush3.msra.mxu1 %v3125_v42  ;;  %11969 = vmatprep.mubr.msk.f32.mxu1 %vm13109_vm1, %v13108_v36 }
 0xf46   :  { %v3297_v53 = vpop.permute.xlu0 %3296  ;;  %11977 = vmatprep.subr.mxu1 %v13108_v36  ;;  %v3123_v54 = vmul.f32 %v12862_v52, %v13706_v21  ;;  %v12864_v55 = vpop.eup %12863 }
 0xf47   :  { %v3295_v56 = vmul.f32 %v12864_v55, %v13702_v19 }
 0xf48   :  { %11970 = vmatmul.mubr.msk.f32.vlgmr.msra.gmra.mrb[36].mxu1 %vm325_vm2, %v3123_v54 }
 0xf49   :  { %11978 = vmatpush3.msra.mxu1 %v3297_v53  ;;  %11979 = vmatprep.mubr.msk.f32.mxu1 %vm13109_vm1, %v13108_v36 }
 0xf4a   :  { %11987 = vmatprep.subr.mxu1 %v13108_v36 }
 0xf4c   :  { %11980 = vmatmul.mubr.msk.f32.vlgmr.msra.gmra.mrb[38].mxu1 %vm325_vm2, %v3295_v56 }
 0xf4d   :  { %v12866_v40 = vpop.eup %12865  ;;  %11988 = vmatpush3.msra.mxu1 %v3469_v57  ;;  %11989 = vmatprep.mubr.msk.f32.mxu1 %vm13109_vm1, %v13108_v36 }
 0xf4e   :  { %v3467_v60 = vmul.f32 %v12866_v40, %v13710_v23 }
 0xf50   :  { %11990 = vmatmul.mubr.msk.f32.vlgmr.msra.gmra.mrb[40].mxu1 %vm325_vm2, %v3467_v60 }
 0xfda   :  { %v2345_v61 = vpop.f32.mrb[26].mxu1 }
 0xfdb   :  { %2349 = vst.msk [vmem:[#allocation2] sm:$0xff] %vm325_vm2, %v2345_v61  ;;  %v11921_v62 = vpop.f32.mrb[27].mxu1  ;;  %v11208_v61 = vld [vmem:[%s13197_s6 + $0x20] sm:$0xff] }
 0xfdc   :  { %v11209_v62 = vld [vmem:[%s13197_s6 + $0x28] sm:$0xff] }
 0xfde   :  { %v2513_v1 = vpop.f32.mrb[28].mxu1 }
 0xfdf   :  { %2518 = vrot.lane.b32.xlu0 %v2513_v1, %s14692_s18  ;;  %v11931_v2 = vpop.f32.mrb[29].mxu1  ;;  %v12579_v1 = vpack.c.bf16 %v11209_v62, %v11208_v61 }
 0xfe0   :  { %v11210_v2 = vld [vmem:[%s13197_s6 + $0x30] sm:$0xff] }
 0xfe1   :  { %12580 = vmatprep.subr.bf16.mxu1 %v12579_v1 }
 0xfe2   :  { %12582 = vmatpush3.bf16.msra.mxu1 %v12579_v1 }
0x100f   :  { %v2685_v3 = vpop.f32.mrb[30].mxu1 }
0x1010   :  { %2690 = vrot.lane.b32.xlu1 %v2685_v3, %s14690_s22  ;;  %v11941_v4 = vpop.f32.mrb[31].mxu1  ;;  %v11211_v3 = vld [vmem:[%s13197_s6 + $0x38] sm:$0xff]  ;;  %s14728_s6 = sld [smem:[#allocation14_spill]] }
0x1011   :  { %v12583_v4 = vpack.c.bf16 %v11211_v3, %v11210_v2  ;;  %v11234_v2 = vld [vmem:[%s14725_s19] ss:$0 sm:$0xff] }
0x1013   :  { %v2857_v5 = vpop.f32.mrb[32].mxu1  ;;  %12584 = vmatprep.subr.bf16.mxu1 %v12583_v4 }
0x1014   :  { %2862 = vrot.lane.b32.xlu1 %v2857_v5, %s14688_s23  ;;  %v11951_v6 = vpop.f32.mrb[33].mxu1  ;;  %12586 = vmatpush3.bf16.msra.mxu1 %v12583_v4  ;;  %v3986_v5 = vld [vmem:[%s14723_s8] sm:$0xff] }
0x1015   :  { %v3987_v6 = vld [vmem:[%s14723_s8 + $0x8] sm:$0xff] }
0x1016   :  { %v12603_v7 = vpack.c.bf16 %v3987_v6, %v3986_v5 }
0x1017   :  { %v3028_v10 = vpop.f32.mrb[34].mxu1 }
0x1018   :  { %3032 = vst.msk [vmem:[#allocation2 + $0x8] sm:$0xff] %vm325_vm2, %v3028_v10  ;;  %v11961_v13 = vpop.f32.mrb[35].mxu1  ;;  %12604 = vmatprep.subr.bf16.mxu1 %v12603_v7 }
0x101b   :  { %v3196_v14 = vpop.f32.mrb[36].mxu1 }
0x101c   :  { %3201 = vrot.lane.b32.xlu0 %v3196_v14, %s14692_s18  ;;  %v11971_v15 = vpop.f32.mrb[37].mxu1 }
0x101f   :  { %v3368_v63 = vpop.f32.mrb[38].mxu1 }
0x1020   :  { %3373 = vrot.lane.b32.xlu0 %v3368_v63, %s14690_s22  ;;  %v11981_v16 = vpop.f32.mrb[39].mxu1 }
0x1023   :  { %v3540_v17 = vpop.f32.mrb[40].mxu1 }
0x1024   :  { %3545 = vrot.lane.b32.xlu1 %v3540_v17, %s14688_s23  ;;  %v11991_v18 = vpop.f32.mrb[41].mxu1 }
0x1051   :  { %v2519_v19 = vpop.permute.xlu0 %2518 }
0x1052   :  { %2521 = vst.msk [vmem:[#allocation2] sm:$0xff] %vm661_vm3, %v2519_v19  ;;  %v11206_v19 = vld [vmem:[%s13187_s24 + $0x1] ss:$0 sm:$0xff]  ;;  %s14726_s24 = sld [smem:[#allocation7_spill]] }
0x1082   :  { %v2691_v35 = vpop.permute.xlu1 %2690 }
0x1083   :  { %2693 = vst.msk [vmem:[#allocation2] sm:$0xff] %vm834_vm4, %v2691_v35 }
0x1086   :  { %v2863_v33 = vpop.permute.xlu1 %2862 }
0x1087   :  { %2865 = vst.msk [vmem:[#allocation2] sm:$0xff] %vm1007_vm5, %v2863_v33 }
0x108e   :  { %v3202_v20 = vpop.permute.xlu0 %3201  ;;  %v3549_v21 = vld [vmem:[#allocation2] sm:$0xff] }
0x108f   :  { %3204 = vst.msk [vmem:[#allocation2 + $0x8] sm:$0xff] %vm661_vm3, %v3202_v20  ;;  %12000 = vmatprep.mubr.msk.f32.mxu0 %vm179_vm0, %v3549_v21  ;;  %v11207_v21 = vld [vmem:[%s13192_s30 + $0x1] ss:$0 sm:$0xff]  ;;  %s14727_s30 = sld [smem:[#allocation13_spill]] }
0x1092   :  { %v3374_v22 = vpop.permute.xlu0 %3373 }
0x1093   :  { %3376 = vst.msk [vmem:[#allocation2 + $0x8] sm:$0xff] %vm834_vm4, %v3374_v22 }
0x1096   :  { %v3546_v23 = vpop.permute.xlu1 %3545 }
0x1097   :  { %3548 = vst.msk [vmem:[#allocation2 + $0x8] sm:$0xff] %vm1007_vm5, %v3546_v23 }
0x109e   :  { %v3550_v24 = vld [vmem:[#allocation2 + $0x8] sm:$0xff] }
0x109f   :  { %12001 = vmatmul.mubr.msk.f32.vlgmr.msra.gmra.mrb[32].mxu0 %vm179_vm0, %v3550_v24  ;;  %v3988_v24 = vld [vmem:[%s14723_s8 + $0x10] sm:$0xff] }
0x1172   :  { %v12002_v26 = vpop.f32.mrb[32].mxu0 }
0x1173   :  { %v3635_v27 = vadd.f32 %v12002_v26, %v11203_v25  ;;  %v3629_v28 = vpop.f32.mrb[33].mxu0 }
0x1174   :  { %v3630_v29 = vadd.f32 %v11203_v25, %v3629_v28  ;;  %v3989_v25 = vld [vmem:[%s14723_s8 + $0x18] sm:$0xff] }
0x1175   :  { %v3639_v30 = vadd.f32 %v3635_v27, %v13583_v59  ;;  %v11232_v27 = vld [vmem:[%s14724_s14] ss:$0 sm:$0xff]  ;;  %s14736_s14 = sld [smem:[#allocation22_spill]] }
0x1176   :  { %v3638_v31 = vadd.f32 %v3630_v29, %v13581_v58 }
0x1177   :  { %v3643_v32 = vsel %vm179_vm0, %v3639_v30, 0.0 }
0x1178   :  { %3644 = vadd.xlane.f32.xlu1 %v3643_v32  ;;  %v3640_v0 = vsel %vm179_vm0, %v3638_v31, 0.0  ;;  %v11233_v32 = vld [vmem:[#allocation3] ss:$0 sm:$0xff] }
0x1179   :  { %3641 = vadd.xlane.f32.xlu0 %v3640_v0 }
0x117d   :  { %3945 = vadd.xlane.f32.xlu0 %v3944_v37 }
0x1181   :  { %3948 = vadd.xlane.f32.xlu0 %v3947_v39 }
0x1205   :  { %v3645_v42 = vpop.xlane.xlu1 %3644 }
0x1206   :  { %v3647_v43 = vmul.f32 0.03125, %v3645_v42  ;;  %v3642_v44 = vpop.xlane.xlu0 %3641 }
0x1207   :  { %v3646_v59 = vmul.f32 0.03125, %v3642_v44  ;;  %v11214_v44 = vld [vmem:[%s13207_s20 + $0x48] sm:$0xff] }
0x1208   :  { %v3649_v45 = vsub.f32 %v3639_v30, %v3647_v43  ;;  %v11213_v43 = vld [vmem:[%s13207_s20 + $0x40] sm:$0xff] }
0x1209   :  { %v3648_v58 = vsub.f32 %v3638_v31, %v3646_v59  ;;  %v12607_v31 = vpack.c.bf16 %v3989_v25, %v3988_v24  ;;  %v12587_v59 = vpack.c.bf16 %v11214_v44, %v11213_v43 }
0x120a   :  { %v3946_v46 = vpop.xlane.xlu0 %3945  ;;  %v3651_v47 = vmul.f32 %v3649_v45, %v3649_v45 }
0x120b   :  { %v3950_v48 = vmul.f32 0.03125, %v3946_v46  ;;  %v3650_v49 = vmul.f32 %v3648_v58, %v3648_v58  ;;  %12588 = vmatprep.subr.bf16.mxu0 %v12587_v59 }
0x120c   :  { %v3655_v50 = vsel %vm179_vm0, %v3651_v47, 0.0  ;;  %12590 = vmatpush3.bf16.msra.mxu0 %v12587_v59  ;;  %v11217_v47 = vld [vmem:[%s13207_s20 + $0x60] sm:$0xff] }
0x120d   :  { %v3952_v51 = vsub.f32 %v3940_v34, %v3950_v48  ;;  %3656 = vadd.xlane.f32.xlu1 %v3655_v50  ;;  %v3652_v52 = vsel %vm179_vm0, %v3650_v49, 0.0  ;;  %v11218_v48 = vld [vmem:[%s13207_s20 + $0x68] sm:$0xff]  ;;  %v11219_v50 = vld [vmem:[%s13207_s20 + $0x70] sm:$0xff] }
0x120e   :  { %3653 = vadd.xlane.f32.xlu0 %v3652_v52  ;;  %v3949_v53 = vpop.xlane.xlu0 %3948  ;;  %v12595_v49 = vpack.c.bf16 %v11218_v48, %v11217_v47 }
0x120f   :  { %v3951_v54 = vmul.f32 0.03125, %v3949_v53  ;;  %v3954_v55 = vmul.f32 %v3952_v51, %v3952_v51  ;;  %v11224_v53 = vld [vmem:[%s13202_s12 + $0x1] ss:$0 sm:$0xff]  ;;  %s14729_s12 = sld [smem:[#allocation19_spill]] }
0x1211   :  { %v3953_v56 = vsub.f32 %v3941_v38, %v3951_v54  ;;  %v3956_v57 = vsel %vm179_vm0, %v3954_v55, 0.0 }
0x1212   :  { %3957 = vadd.xlane.f32.xlu0 %v3956_v57 }
0x1213   :  { %v3955_v40 = vmul.f32 %v3953_v56, %v3953_v56 }
0x1215   :  { %v3959_v60 = vsel %vm179_vm0, %v3955_v40, 0.0 }
0x1216   :  { %3960 = vadd.xlane.f32.xlu1 %v3959_v60 }
0x129a   :  { %v3657_v8 = vpop.xlane.xlu1 %3656 }
0x129b   :  { %v3659_v9 = vmul.f32 0.03125, %v3657_v8  ;;  %v3654_v10 = vpop.xlane.xlu0 %3653 }
0x129c   :  { %v3658_v11 = vmul.f32 0.03125, %v3654_v10 }
0x129d   :  { %v3661_v12 = vadd.f32 1e-05, %v3659_v9 }
0x129e   :  { %v3660_v13 = vadd.f32 1e-05, %v3658_v11 }
0x129f   :  { %12867 = vrsqrt.f32 %v3661_v12  ;;  %v3958_v41 = vpop.xlane.xlu0 %3957 }
0x12a0   :  { %12869 = vrsqrt.f32 %v3660_v13  ;;  %v3962_v14 = vmul.f32 0.03125, %v3958_v41 }
0x12a2   :  { %v3964_v15 = vadd.f32 1e-05, %v3962_v14 }
0x12a3   :  { %v3961_v63 = vpop.xlane.xlu1 %3960 }
0x12a4   :  { %12871 = vrsqrt.f32 %v3964_v15  ;;  %v3963_v16 = vmul.f32 0.03125, %v3961_v63 }
0x12a6   :  { %v3965_v17 = vadd.f32 1e-05, %v3963_v16 }
0x12a8   :  { %12873 = vrsqrt.f32 %v3965_v17 }
0x12a9   :  { %v12868_v18 = vpop.eup %12867 }
0x12aa   :  { %v12870_v35 = vpop.eup %12869  ;;  %v3665_v33 = vmul.f32 %v12868_v18, %v3649_v45  ;;  %v11215_v45 = vld [vmem:[%s13207_s20 + $0x50] sm:$0xff] }
0x12ab   :  { %v3664_v20 = vmul.f32 %v12870_v35, %v3648_v58  ;;  %v11216_v58 = vld [vmem:[%s13207_s20 + $0x58] sm:$0xff] }
0x12ac   :  { %v3673_v22 = vmul.f32 %v11206_v19, %v3665_v33  ;;  %v12591_v46 = vpack.c.bf16 %v11216_v58, %v11215_v45 }
0x12ad   :  { %v3672_v23 = vmul.f32 %v11206_v19, %v3664_v20 }
0x12ae   :  { %v12872_v26 = vpop.eup %12871  ;;  %v13798_v30 = vadd.f32 %v11207_v21, %v3673_v22  ;;  %12592 = vmatprep.subr.bf16.mxu0 %v12591_v46 }
0x12af   :  { %v13796_v28 = vadd.f32 %v11207_v21, %v3672_v23  ;;  %v3968_v29 = vmul.f32 %v12872_v26, %v3952_v51  ;;  %12594 = vmatpush3.bf16.msra.mxu0 %v12591_v46  ;;  %v11220_v51 = vld [vmem:[%s13207_s20 + $0x78] sm:$0xff]  ;;  %s14730_s20 = sld [smem:[#allocation17_spill]] }
0x12b0   :  { %12596 = vmatprep.subr.bf16.mxu0 %v12595_v49  ;;  %v12599_v52 = vpack.c.bf16 %v11220_v51, %v11219_v50 }
0x12b1   :  { %12011 = vmatprep.mubr.msk.f32.mxu1 %vm179_vm0, %v13796_v28  ;;  %v3976_v34 = vmul.f32 %v11232_v27, %v3968_v29 }
0x12b2   :  { %v12874_v0 = vpop.eup %12873  ;;  %12012 = vmatmul.mubr.msk.f32.vlgmr.msra.gmra.mrb[42].mxu1 %vm179_vm0, %v13798_v30 }
0x12b3   :  { %12606 = vmatpush3.bf16.msra.mxu1 %v12603_v7  ;;  %v3969_v37 = vmul.f32 %v12874_v0, %v3953_v56  ;;  %v13804_v38 = vadd.f32 %v11233_v32, %v3976_v34  ;;  %12598 = vmatpush3.bf16.msra.mxu0 %v12595_v49  ;;  %v174_v0 = vld [vmem:[%s14726_s24] sm:$0xff] }
0x12b4   :  { %12608 = vmatprep.subr.bf16.mxu1 %v12607_v31  ;;  %12600 = vmatprep.subr.bf16.mxu0 %v12599_v52 }
0x12b5   :  { %v3977_v39 = vmul.f32 %v11232_v27, %v3969_v37  ;;  %12041 = vmatprep.mubr.msk.f32.mxu1 %vm179_vm0, %v13804_v38 }
0x12b7   :  { %v13808_v42 = vadd.f32 %v11233_v32, %v3977_v39  ;;  %12610 = vmatpush3.bf16.msra.mxu1 %v12607_v31  ;;  %12602 = vmatpush3.bf16.msra.mxu0 %v12599_v52 }
0x12b8   :  { %12044 = vmatprep.subr.mxu1 %v13108_v36  ;;  %12054 = vmatprep.subr.mxu0 %v13108_v36 }
0x12ba   :  { %12042 = vmatmul.mubr.msk.f32.vlgmr.msra.gmra.mrb[44].mxu1 %vm179_vm0, %v13808_v42 }
0x12bb   :  { %12046 = vmatprep.mubr.msk.f32.mxu1 %vm13109_vm1, %v13108_v36 }
0x1385   :  { %v12013_v54 = vpop.f32.mrb[42].mxu1 }
0x1386   :  { %v3788_v55 = vadd.f32 %v12013_v54, %v11224_v53  ;;  %v3782_v56 = vpop.f32.mrb[43].mxu1 }
0x1387   :  { %v3783_v57 = vadd.f32 %v11224_v53, %v3782_v56 }
0x1388   :  { %v3792_v40 = vmul.f32 %v3788_v55, %v3788_v55 }
0x1389   :  { %v3791_v60 = vmul.f32 %v3783_v57, %v3783_v57 }
0x138a   :  { %v3794_v61 = vmul.f32 %v3792_v40, %v3788_v55 }
0x138b   :  { %v3793_v62 = vmul.f32 %v3791_v60, %v3783_v57 }
0x138c   :  { %v3796_v1 = vmul.f32 0.044715, %v3794_v61 }
0x138d   :  { %v3795_v3 = vmul.f32 0.044715, %v3793_v62  ;;  %v12043_v4 = vpop.f32.mrb[44].mxu1 }
0x138e   :  { %v3798_v5 = vadd.f32 %v3796_v1, %v3788_v55  ;;  %v4076_v6 = vpop.f32.mrb[45].mxu1  ;;  %v13840_v11 = vadd.f32 %v12043_v4, %v11234_v2 }
0x138f   :  { %v3797_v7 = vadd.f32 %v3795_v3, %v3783_v57  ;;  %v13826_v8 = vadd.f32 %v11234_v2, %v4076_v6 }
0x1390   :  { %v3800_v9 = vmul.f32 0.7978846, %v3798_v5 }
0x1391   :  { %v3799_v10 = vmul.f32 0.7978846, %v3797_v7  ;;  %4254 = vrot.lane.b32.xlu1 %v13826_v8, %s13110_s0  ;;  %4086 = vrot.lane.b32.xlu0 %v13826_v8, %s13111_s5 }
0x1392   :  { %12875 = vtanh.f32 %v3800_v9 }
0x1393   :  { %12877 = vtanh.f32 %v3799_v10 }
0x1395   :  { %4252 = vrot.lane.b32.xlu1 %v13826_v8, %s13112_s17  ;;  %4424 = vrot.lane.b32.xlu0 %v13826_v8, %s13113_s21 }
0x1399   :  { %4426 = vrot.lane.b32.xlu1 %v13826_v8, %s13114_s29  ;;  %4596 = vrot.lane.b32.xlu0 %v13826_v8, %s13115_s2 }
0x139c   :  { %v12876_v12 = vpop.eup %12875 }
0x139d   :  { %v12878_v13 = vpop.eup %12877  ;;  %v3804_v41 = vadd.f32 1.0, %v12876_v12  ;;  %4598 = vrot.lane.b32.xlu1 %v13826_v8, %s13116_s7  ;;  %4937 = vrot.lane.b32.xlu0 %v13840_v11, %s13110_s0 }
0x139e   :  { %v3803_v14 = vadd.f32 1.0, %v12878_v13 }
0x139f   :  { %v3806_v15 = vmul.f32 0.5, %v3804_v41 }
0x13a0   :  { %v3805_v63 = vmul.f32 0.5, %v3803_v14 }
0x13a1   :  { %4769 = vrot.lane.b32.xlu1 %v13840_v11, %s13111_s5  ;;  %5109 = vrot.lane.b32.xlu0 %v13840_v11, %s13114_s29  ;;  %v3808_v17 = vmul.f32 %v3806_v15, %v3788_v55 }
0x13a2   :  { %v3807_v16 = vmul.f32 %v3805_v63, %v3783_v57 }
0x13a4   :  { %12030 = vmatprep.mubr.msk.f32.mxu0 %vm1952_vm6, %v3807_v16 }
0x13a5   :  { %4935 = vrot.lane.b32.xlu1 %v13840_v11, %s13112_s17  ;;  %5281 = vrot.lane.b32.xlu0 %v13840_v11, %s13116_s7 }
0x13a6   :  { %12031 = vmatmul.mubr.msk.f32.vlgmr.msra.gmra.mrb[34].mxu0 %vm1952_vm6, %v3808_v17 }
0x13a7   :  { %12056 = vmatprep.mubr.msk.f32.mxu0 %vm13109_vm1, %v13108_v36 }
0x13a9   :  { %5107 = vrot.lane.b32.xlu1 %v13840_v11, %s13113_s21 }
0x13ad   :  { %5279 = vrot.lane.b32.xlu1 %v13840_v11, %s13115_s2 }
0x1403   :  { %v4255_v18 = vpop.permute.xlu1 %4254  ;;  %v4087_v19 = vpop.permute.xlu0 %4086 }
0x1404   :  { %12045 = vmatpush3.xpose.msk.msra.mxu1 %vm325_vm2, %v4087_v19  ;;  %12055 = vmatpush3.xpose.msk.msra.mxu0 %vm325_vm2, %v4255_v18 }
0x1405   :  { %12064 = vmatprep.subr.mxu0 %v13108_v36  ;;  %12049 = vmatprep.subr.mxu1 %v13108_v36 }
0x1407   :  { %v4253_v35 = vpop.permute.xlu1 %4252  ;;  %12047 = vmatmul.mubr.msk.f32.vlgmr.msra.gmra.mrb[46].mxu1 %vm325_vm2, %v13826_v8  ;;  %v4425_v33 = vpop.permute.xlu0 %4424 }
0x1408   :  { %12057 = vmatmul.mubr.msk.f32.vlgmr.msra.gmra.mrb[36].mxu0 %vm325_vm2, %v4253_v35  ;;  %12051 = vmatprep.mubr.msk.f32.mxu1 %vm13109_vm1, %v13108_v36 }
0x1409   :  { %12066 = vmatprep.mubr.msk.f32.mxu0 %vm13109_vm1, %v13108_v36 }
0x140b   :  { %v4427_v20 = vpop.permute.xlu1 %4426  ;;  %v4597_v21 = vpop.permute.xlu0 %4596 }
0x140c   :  { %12065 = vmatpush3.xpose.msk.msra.mxu0 %vm325_vm2, %v4427_v20 }
0x140d   :  { %12074 = vmatprep.subr.mxu0 %v13108_v36 }
0x140f   :  { %v4599_v22 = vpop.permute.xlu1 %4598  ;;  %12067 = vmatmul.mubr.msk.f32.vlgmr.msra.gmra.mrb[38].mxu0 %vm325_vm2, %v4425_v33  ;;  %v4938_v23 = vpop.permute.xlu0 %4937 }
0x1410   :  { %12075 = vmatpush3.xpose.msk.msra.mxu0 %vm325_vm2, %v4599_v22  ;;  %12076 = vmatprep.mubr.msk.f32.mxu0 %vm13109_vm1, %v13108_v36 }
0x1411   :  { %12084 = vmatprep.subr.mxu0 %v13108_v36 }
0x1413   :  { %v4770_v24 = vpop.permute.xlu1 %4769  ;;  %12077 = vmatmul.mubr.msk.f32.vlgmr.msra.gmra.mrb[40].mxu0 %vm325_vm2, %v4597_v21  ;;  %v5110_v26 = vpop.permute.xlu0 %5109 }
0x1414   :  { %12085 = vmatpush3.xpose.msk.msra.mxu0 %vm325_vm2, %v4770_v24  ;;  %12086 = vmatprep.mubr.msk.f32.mxu0 %vm13109_vm1, %v13108_v36 }
0x1415   :  { %12094 = vmatprep.subr.mxu0 %v13108_v36 }
0x1417   :  { %v4936_v25 = vpop.permute.xlu1 %4935  ;;  %12087 = vmatmul.mubr.msk.f32.vlgmr.msra.gmra.mrb[42].mxu0 %vm325_vm2, %v13840_v11  ;;  %v5282_v29 = vpop.permute.xlu0 %5281 }
0x1418   :  { %12095 = vmatpush3.xpose.msk.msra.mxu0 %vm325_vm2, %v4938_v23  ;;  %12096 = vmatprep.mubr.msk.f32.mxu0 %vm13109_vm1, %v13108_v36 }
0x1419   :  { %12104 = vmatprep.subr.mxu0 %v13108_v36 }
0x141b   :  { %12097 = vmatmul.mubr.msk.f32.vlgmr.msra.gmra.mrb[44].mxu0 %vm325_vm2, %v4936_v25  ;;  %v5108_v27 = vpop.permute.xlu1 %5107 }
0x141c   :  { %12105 = vmatpush3.xpose.msk.msra.mxu0 %vm325_vm2, %v5110_v26  ;;  %12106 = vmatprep.mubr.msk.f32.mxu0 %vm13109_vm1, %v13108_v36 }
0x141d   :  { %12114 = vmatprep.subr.mxu0 %v13108_v36 }
0x141f   :  { %12107 = vmatmul.mubr.msk.f32.vlgmr.msra.gmra.mrb[46].mxu0 %vm325_vm2, %v5108_v27  ;;  %v5280_v31 = vpop.permute.xlu1 %5279 }
0x1420   :  { %12115 = vmatpush3.xpose.msk.msra.mxu0 %vm325_vm2, %v5282_v29  ;;  %12116 = vmatprep.mubr.msk.f32.mxu0 %vm13109_vm1, %v13108_v36 }
0x1423   :  { %12117 = vmatmul.mubr.msk.f32.vlgmr.msra.gmra.mrb[48].mxu0 %vm325_vm2, %v5280_v31 }
0x1479   :  { %v13901_v32 = vpop.f32.mrb[34].mxu0 }
0x147a   :  { %v13903_v34 = vpop.f32.mrb[35].mxu0 }
0x14da   :  { %v4158_v37 = vpop.f32.mrb[46].mxu1 }
0x14db   :  { %v4162_v39 = vmul.f32 0.35355338, %v4158_v37  ;;  %v12048_v43 = vpop.f32.mrb[47].mxu1  ;;  %v4326_v44 = vpop.f32.mrb[36].mxu0 }
0x14dc   :  { %v4330_v59 = vmul.f32 0.35355338, %v4326_v44  ;;  %v12058_v45 = vpop.f32.mrb[37].mxu0 }
0x14dd   :  { %v4163_v58 = vadd.f32 %v4162_v39, %v174_v0 }
0x14de   :  { %v4331_v46 = vadd.f32 %v4330_v59, %v174_v0 }
0x14df   :  { %v4164_v47 = vsel %vm325_vm2, %v4163_v58, -inf }
0x14e0   :  { %4165 = vmax.xlane.f32.xlu0 %v4164_v47  ;;  %v4332_v48 = vsel %vm325_vm2, %v4331_v46, -inf }
0x14e1   :  { %4333 = vmax.xlane.f32.xlu1 %v4332_v48 }
0x14e2   :  { %v4498_v49 = vpop.f32.mrb[38].mxu0 }
0x14e3   :  { %v4502_v50 = vmul.f32 0.35355338, %v4498_v49  ;;  %v12068_v51 = vpop.f32.mrb[39].mxu0 }
0x14e5   :  { %v13908_v52 = vadd.f32 %v4502_v50, %v174_v0 }
0x14e6   :  { %v4670_v53 = vpop.f32.mrb[40].mxu0 }
0x14e7   :  { %v4674_v54 = vmul.f32 0.35355338, %v4670_v53  ;;  %v12078_v55 = vpop.f32.mrb[41].mxu0  ;;  %v4504_v56 = vsel %vm325_vm2, %v13908_v52, -inf }
0x14e8   :  { %4505 = vmax.xlane.f32.xlu0 %v4504_v56 }
0x14e9   :  { %v4675_v57 = vadd.f32 %v4674_v54, %v174_v0 }
0x14ea   :  { %v4841_v40 = vpop.f32.mrb[42].mxu0 }
0x14eb   :  { %v4845_v60 = vmul.f32 0.35355338, %v4841_v40  ;;  %v12088_v61 = vpop.f32.mrb[43].mxu0  ;;  %v4676_v62 = vsel %vm325_vm2, %v4675_v57, -inf }
0x14ec   :  { %4677 = vmax.xlane.f32.xlu0 %v4676_v62 }
0x14ed   :  { %v4846_v1 = vadd.f32 %v4845_v60, %v174_v0 }
0x14ee   :  { %v5009_v2 = vpop.f32.mrb[44].mxu0 }
0x14ef   :  { %v5013_v3 = vmul.f32 0.35355338, %v5009_v2  ;;  %v12098_v4 = vpop.f32.mrb[45].mxu0  ;;  %v4847_v5 = vsel %vm325_vm2, %v4846_v1, -inf }
0x14f0   :  { %4848 = vmax.xlane.f32.xlu0 %v4847_v5 }
0x14f1   :  { %v5014_v6 = vadd.f32 %v5013_v3, %v174_v0 }
0x14f2   :  { %v5181_v7 = vpop.f32.mrb[46].mxu0 }
0x14f3   :  { %v5185_v9 = vmul.f32 0.35355338, %v5181_v7  ;;  %v12108_v10 = vpop.f32.mrb[47].mxu0  ;;  %v5015_v12 = vsel %vm325_vm2, %v5014_v6, -inf }
0x14f4   :  { %5016 = vmax.xlane.f32.xlu1 %v5015_v12 }
0x14f5   :  { %v5186_v13 = vadd.f32 %v5185_v9, %v174_v0 }
0x14f6   :  { %v5353_v41 = vpop.f32.mrb[48].mxu0 }
0x14f7   :  { %v12118_v14 = vpop.f32.mrb[49].mxu0  ;;  %v5187_v15 = vsel %vm325_vm2, %v5186_v13, -inf  ;;  %v5357_v63 = vmul.f32 0.35355338, %v5353_v41 }
0x14f8   :  { %5188 = vmax.xlane.f32.xlu0 %v5187_v15 }
0x14f9   :  { %v5358_v16 = vadd.f32 %v5357_v63, %v174_v0 }
0x14fb   :  { %v5359_v17 = vsel %vm325_vm2, %v5358_v16, -inf }
0x1505   :  { %4175 = vrot.lane.b32.xlu1 %v13826_v8, %s13117_s10 }
0x1529   :  { %5360 = vmax.xlane.f32.xlu1 %v5359_v17 }
0x153a   :  { %4515 = vrot.lane.b32.xlu1 %v13826_v8, %s13118_s11 }
0x153e   :  { %4687 = vrot.lane.b32.xlu1 %v13826_v8, %s14696_s15 }
0x1542   :  { %4858 = vrot.lane.b32.xlu1 %v13840_v11, %s13117_s10 }
0x156d   :  { %v4166_v18 = vpop.xlane.xlu0 %4165 }
0x156e   :  { %v4167_v19 = vsub.f32 %v4163_v58, %v4166_v18  ;;  %v4334_v35 = vpop.xlane.xlu1 %4333 }
0x156f   :  { %v4335_v33 = vsub.f32 %v4331_v46, %v4334_v35 }
0x1570   :  { %v4168_v20 = vmul.f32 1.442695, %v4167_v19 }
0x1571   :  { %v4336_v21 = vmul.f32 1.442695, %v4335_v33 }
0x1572   :  { %12879 = vpow2.f32 %v4168_v20 }
0x1573   :  { %12881 = vpow2.f32 %v4336_v21 }
0x1575   :  { %v4506_v22 = vpop.xlane.xlu0 %4505 }
0x1576   :  { %v4507_v44 = vsub.f32 %v13908_v52, %v4506_v22 }
0x1578   :  { %v4508_v45 = vmul.f32 1.442695, %v4507_v44 }
0x1579   :  { %v4678_v23 = vpop.xlane.xlu0 %4677 }
0x157a   :  { %v4679_v24 = vsub.f32 %v4675_v57, %v4678_v23 }
0x157c   :  { %v12880_v25 = vpop.eup %12879  ;;  %v4680_v26 = vmul.f32 1.442695, %v4679_v24 }
0x157d   :  { %v13925_v27 = vpop.eup %12881  ;;  %v4170_v29 = vsel %vm325_vm2, %v12880_v25, 0.0  ;;  %v4849_v59 = vpop.xlane.xlu0 %4848 }
0x157e   :  { %12883 = vpow2.f32 %v4680_v26  ;;  %4171 = vadd.xlane.f32.xlu0 %v4170_v29  ;;  %v4338_v31 = vsel %vm325_vm2, %v13925_v27, 0.0  ;;  %v4850_v58 = vsub.f32 %v4846_v1, %v4849_v59 }
0x157f   :  { %4339 = vadd.xlane.f32.xlu1 %v4338_v31  ;;  %12885 = vpow2.f32 %v4508_v45 }
0x1580   :  { %v4851_v47 = vmul.f32 1.442695, %v4850_v58 }
0x1581   :  { %v5017_v0 = vpop.xlane.xlu1 %5016 }
0x1582   :  { %12887 = vpow2.f32 %v4851_v47  ;;  %v5018_v49 = vsub.f32 %v5014_v6, %v5017_v0  ;;  %v3991_v47 = vld [vmem:[%s14727_s30] sm:$0xff] }
0x1584   :  { %v5019_v51 = vmul.f32 1.442695, %v5018_v49 }
0x1585   :  { %v4176_v37 = vpop.permute.xlu1 %4175  ;;  %v5189_v46 = vpop.xlane.xlu0 %5188 }
0x1586   :  { %12050 = vmatpush3.msra.mxu1 %v4176_v37  ;;  %v5190_v48 = vsub.f32 %v5186_v13, %v5189_v46 }
0x1587   :  { %12059 = vmatprep.subr.mxu1 %v13108_v36 }
0x1588   :  { %v13931_v39 = vpop.eup %12883  ;;  %v5191_v50 = vmul.f32 1.442695, %v5190_v48  ;;  %v3992_v48 = vld [vmem:[%s14727_s30 + $0x8] sm:$0xff] }
0x1589   :  { %v4682_v43 = vsel %vm325_vm2, %v13931_v39, 0.0  ;;  %v12886_v53 = vpop.eup %12885  ;;  %v12611_v49 = vpack.c.bf16 %v3992_v48, %v3991_v47 }
0x158a   :  { %4683 = vadd.xlane.f32.xlu1 %v4682_v43  ;;  %12889 = vpow2.f32 %v5191_v50 }
0x158b   :  { %12891 = vpow2.f32 %v5019_v51  ;;  %v3993_v51 = vld [vmem:[%s14727_s30 + $0x10] sm:$0xff]  ;;  %12612 = vmatprep.subr.bf16.mxu0 %v12611_v49 }
0x158c   :  { %v13941_v54 = vpop.eup %12887  ;;  %12614 = vmatpush3.bf16.msra.mxu0 %v12611_v49 }
0x158d   :  { %v4853_v55 = vsel %vm325_vm2, %v13941_v54, 0.0 }
0x1594   :  { %4343 = vrot.lane.b32.xlu0 %v13826_v8, %s14694_s16  ;;  %v4510_v8 = vsel %vm325_vm2, %v12886_v53, 0.0  ;;  %v13945_v56 = vpop.eup %12889 }
0x1595   :  { %v5193_v60 = vsel %vm325_vm2, %v13945_v56, 0.0  ;;  %v13949_v61 = vpop.eup %12891 }
0x1596   :  { %v5021_v62 = vsel %vm325_vm2, %v13949_v61, 0.0 }
0x159b   :  { %5026 = vrot.lane.b32.xlu1 %v13840_v11, %s14694_s16  ;;  %s14740_s16 = sld [smem:[#allocation27_spill]] }
0x15b3   :  { %4511 = vadd.xlane.f32.xlu0 %v4510_v8 }
0x15b6   :  { %v5361_v52 = vpop.xlane.xlu1 %5360 }
0x15b7   :  { %v5362_v57 = vsub.f32 %v5358_v16, %v5361_v52  ;;  %4854 = vadd.xlane.f32.xlu0 %v4853_v55 }
0x15b9   :  { %v5363_v40 = vmul.f32 1.442695, %v5362_v57 }
0x15ba   :  { %v4516_v3 = vpop.permute.xlu1 %4515 }
0x15bb   :  { %12893 = vpow2.f32 %v5363_v40  ;;  %5194 = vadd.xlane.f32.xlu0 %v5193_v60 }
0x15be   :  { %v4688_v4 = vpop.permute.xlu1 %4687 }
0x15bf   :  { %5022 = vadd.xlane.f32.xlu1 %v5021_v62 }
0x15c2   :  { %v4859_v5 = vpop.permute.xlu1 %4858 }
0x15c5   :  { %v13953_v1 = vpop.eup %12893 }
0x15c6   :  { %v5365_v2 = vsel %vm325_vm2, %v13953_v1, 0.0 }
0x15c7   :  { %5366 = vadd.xlane.f32.xlu0 %v5365_v2 }
0x15d0   :  { %5370 = vrot.lane.b32.xlu1 %v13840_v11, %s14696_s15  ;;  %s14741_s15 = sld [smem:[#allocation26_spill]] }
0x15dd   :  { %5198 = vrot.lane.b32.xlu0 %v13840_v11, %s13118_s11 }
0x160b   :  { %v4172_v6 = vpop.xlane.xlu0 %4171 }
0x160c   :  { %12895 = vrcp.f32 %v4172_v6  ;;  %v4340_v7 = vpop.xlane.xlu1 %4339 }
0x160d   :  { %12897 = vrcp.f32 %v4340_v7 }
0x160f   :  { %v4344_v13 = vpop.permute.xlu0 %4343 }
0x1616   :  { %v12896_v9 = vpop.eup %12895 }
0x1617   :  { %v4174_v10 = vmul.f32 %v12896_v9, %v12880_v25  ;;  %v12898_v12 = vpop.eup %12897  ;;  %v4684_v41 = vpop.xlane.xlu1 %4683 }
0x1618   :  { %v4342_v11 = vmul.f32 %v12898_v12, %v13925_v27 }
0x1619   :  { %12052 = vmatmul.mubr.msk.f32.vlgmr.msra.gmra.mrb[48].mxu1 %vm325_vm2, %v4174_v10 }
0x161a   :  { %12060 = vmatpush3.msra.mxu1 %v4344_v13  ;;  %12061 = vmatprep.mubr.msk.f32.mxu1 %vm13109_vm1, %v13108_v36 }
0x161b   :  { %12069 = vmatprep.subr.mxu1 %v13108_v36  ;;  %v5027_v63 = vpop.permute.xlu1 %5026 }
0x161d   :  { %12062 = vmatmul.mubr.msk.f32.vlgmr.msra.gmra.mrb[50].mxu1 %vm325_vm2, %v4342_v11 }
0x161e   :  { %12070 = vmatpush3.msra.mxu1 %v4516_v3  ;;  %12071 = vmatprep.mubr.msk.f32.mxu1 %vm13109_vm1, %v13108_v36 }
0x161f   :  { %12079 = vmatprep.subr.mxu1 %v13108_v36 }
0x1640   :  { %v4512_v14 = vpop.xlane.xlu0 %4511 }
0x1641   :  { %12899 = vrcp.f32 %v4512_v14 }
0x1642   :  { %12901 = vrcp.f32 %v4684_v41 }
0x1644   :  { %v4855_v15 = vpop.xlane.xlu0 %4854 }
0x1645   :  { %12903 = vrcp.f32 %v4855_v15 }
0x1648   :  { %v5195_v17 = vpop.xlane.xlu0 %5194 }
0x164b   :  { %v12900_v16 = vpop.eup %12899 }
0x164c   :  { %v5023_v18 = vpop.xlane.xlu1 %5022  ;;  %v4514_v19 = vmul.f32 %v12900_v16, %v12886_v53  ;;  %v12902_v35 = vpop.eup %12901  ;;  %v3994_v53 = vld [vmem:[%s14727_s30 + $0x18] sm:$0xff] }
0x164d   :  { %12905 = vrcp.f32 %v5023_v18  ;;  %v4686_v33 = vmul.f32 %v12902_v35, %v13931_v39 }
0x164e   :  { %12072 = vmatmul.mubr.msk.f32.vlgmr.msra.gmra.mrb[52].mxu1 %vm325_vm2, %v4514_v19  ;;  %12907 = vrcp.f32 %v5195_v17 }
0x164f   :  { %12080 = vmatpush3.msra.mxu1 %v4688_v4  ;;  %12081 = vmatprep.mubr.msk.f32.mxu1 %vm13109_vm1, %v13108_v36  ;;  %v12904_v20 = vpop.eup %12903 }
0x1650   :  { %12089 = vmatprep.subr.mxu1 %v13108_v36  ;;  %v4857_v22 = vmul.f32 %v12904_v20, %v13941_v54  ;;  %v5371_v29 = vpop.permute.xlu1 %5370  ;;  %v12615_v54 = vpack.c.bf16 %v3994_v53, %v3993_v51 }
0x1652   :  { %12082 = vmatmul.mubr.msk.f32.vlgmr.msra.gmra.mrb[54].mxu1 %vm325_vm2, %v4686_v33  ;;  %12616 = vmatprep.subr.bf16.mxu0 %v12615_v54 }
0x1653   :  { %12090 = vmatpush3.msra.mxu1 %v4859_v5  ;;  %12091 = vmatprep.mubr.msk.f32.mxu1 %vm13109_vm1, %v13108_v36 }
0x1654   :  { %v5367_v21 = vpop.xlane.xlu0 %5366  ;;  %12099 = vmatprep.subr.mxu1 %v13108_v36  ;;  %12618 = vmatpush3.bf16.msra.mxu0 %v12615_v54 }
0x1655   :  { %12909 = vrcp.f32 %v5367_v21 }
0x1656   :  { %12092 = vmatmul.mubr.msk.f32.vlgmr.msra.gmra.mrb[56].mxu1 %vm325_vm2, %v4857_v22 }
0x1657   :  { %v12906_v23 = vpop.eup %12905  ;;  %12100 = vmatpush3.msra.mxu1 %v5027_v63  ;;  %12101 = vmatprep.mubr.msk.f32.mxu1 %vm13109_vm1, %v13108_v36  ;;  %v11261_v63 = vld [vmem:[%s14728_s6] ss:$0 sm:$0xff] }
0x1658   :  { %v5199_v24 = vpop.permute.xlu0 %5198  ;;  %12109 = vmatprep.subr.mxu1 %v13108_v36  ;;  %v5025_v25 = vmul.f32 %v12906_v23, %v13949_v61  ;;  %v12908_v26 = vpop.eup %12907  ;;  %v11227_v61 = vld [vmem:[%s13212_s27 + $0x1] ss:$0 sm:$0xff]  ;;  %s14731_s27 = sld [smem:[#allocation15_spill]] }
0x1659   :  { %v5197_v27 = vmul.f32 %v12908_v26, %v13945_v56  ;;  %v3888_v62 = vadd.f32 %v11227_v61, %v13903_v34  ;;  %v3893_v3 = vadd.f32 %v13901_v32, %v11227_v61  ;;  %v5676_v26 = vld [vmem:[%s14729_s12] sm:$0xff] }
0x165a   :  { %12102 = vmatmul.mubr.msk.f32.vlgmr.msra.gmra.mrb[58].mxu1 %vm325_vm2, %v5025_v25 }
0x165b   :  { %12110 = vmatpush3.msra.mxu1 %v5199_v24  ;;  %12111 = vmatprep.mubr.msk.f32.mxu1 %vm13109_vm1, %v13108_v36  ;;  %v3897_v4 = vadd.f32 %v3893_v3, %v13798_v30  ;;  %v5585_v3 = vld [vmem:[%s14730_s20 + $0x8] sm:$0xff] }
0x165c   :  { %12119 = vmatprep.subr.mxu1 %v13108_v36 }
0x165d   :  { %v3901_v5 = vsel %vm179_vm0, %v3897_v4, 0.0 }
0x165e   :  { %12112 = vmatmul.mubr.msk.f32.vlgmr.msra.gmra.mrb[60].mxu1 %vm325_vm2, %v5197_v27  ;;  %v5677_v27 = vld [vmem:[%s14729_s12 + $0x8] sm:$0xff] }
0x165f   :  { %v12910_v31 = vpop.eup %12909  ;;  %12120 = vmatpush3.msra.mxu1 %v5371_v29  ;;  %12121 = vmatprep.mubr.msk.f32.mxu1 %vm13109_vm1, %v13108_v36  ;;  %v5678_v29 = vld [vmem:[%s14729_s12 + $0x10] sm:$0xff] }
0x1660   :  { %v5369_v0 = vmul.f32 %v12910_v31, %v13953_v1  ;;  %v3896_v1 = vadd.f32 %v3888_v62, %v13796_v28  ;;  %v12627_v31 = vpack.c.bf16 %v5677_v27, %v5676_v26 }
0x1662   :  { %12122 = vmatmul.mubr.msk.f32.vlgmr.msra.gmra.mrb[62].mxu1 %vm325_vm2, %v5369_v0  ;;  %v3898_v2 = vsel %vm179_vm0, %v3896_v1, 0.0  ;;  %v5679_v0 = vld [vmem:[%s14729_s12 + $0x18] sm:$0xff]  ;;  %12628 = vmatprep.subr.bf16.mxu0 %v12627_v31 }
0x16ec   :  { %v4247_v37 = vpop.f32.mrb[48].mxu1 }
0x16ed   :  { %4251 = vst.msk [vmem:[#allocation2] sm:$0xff] %vm325_vm2, %v4247_v37  ;;  %v12053_v39 = vpop.f32.mrb[49].mxu1  ;;  %v12631_v37 = vpack.c.bf16 %v5679_v0, %v5678_v29 }
0x16f0   :  { %v4415_v43 = vpop.f32.mrb[50].mxu1 }
0x16f1   :  { %4420 = vrot.lane.b32.xlu0 %v4415_v43, %s14692_s18  ;;  %v12063_v44 = vpop.f32.mrb[51].mxu1 }
0x1721   :  { %v4587_v59 = vpop.f32.mrb[52].mxu1 }
0x1722   :  { %4592 = vrot.lane.b32.xlu1 %v4587_v59, %s14690_s22  ;;  %v12073_v45 = vpop.f32.mrb[53].mxu1 }
0x1725   :  { %v4759_v58 = vpop.f32.mrb[54].mxu1 }
0x1726   :  { %4764 = vrot.lane.b32.xlu1 %v4759_v58, %s14688_s23  ;;  %v12083_v46 = vpop.f32.mrb[55].mxu1 }
0x1729   :  { %v4930_v50 = vpop.f32.mrb[56].mxu1 }
0x172a   :  { %4934 = vst.msk [vmem:[#allocation2 + $0x8] sm:$0xff] %vm325_vm2, %v4930_v50  ;;  %v12093_v8 = vpop.f32.mrb[57].mxu1 }
0x172d   :  { %v5098_v52 = vpop.f32.mrb[58].mxu1 }
0x172e   :  { %5103 = vrot.lane.b32.xlu0 %v5098_v52, %s14692_s18  ;;  %v12103_v55 = vpop.f32.mrb[59].mxu1 }
0x172f   :  { %v11230_v55 = vld [vmem:[%s14720_s26 + $0x1] ss:$0 sm:$0xff]  ;;  %s14733_s26 = sld [smem:[#allocation20_spill]] }
0x1731   :  { %v5270_v56 = vpop.f32.mrb[60].mxu1 }
0x1732   :  { %5275 = vrot.lane.b32.xlu0 %v5270_v56, %s14690_s22  ;;  %v12113_v57 = vpop.f32.mrb[61].mxu1 }
0x1735   :  { %v5442_v40 = vpop.f32.mrb[62].mxu1 }
0x1736   :  { %5447 = vrot.lane.b32.xlu1 %v5442_v40, %s14688_s23  ;;  %v12123_v60 = vpop.f32.mrb[63].mxu1 }
0x1737   :  { %v11231_v60 = vld [vmem:[%s14721_s28 + $0x1] ss:$0 sm:$0xff]  ;;  %s14734_s28 = sld [smem:[#allocation18_spill]] }
0x1751   :  { %3899 = vadd.xlane.f32.xlu0 %v3898_v2  ;;  %v5584_v2 = vld [vmem:[%s14730_s20] sm:$0xff] }
0x175a   :  { %3902 = vadd.xlane.f32.xlu1 %v3901_v5  ;;  %v12619_v5 = vpack.c.bf16 %v5585_v3, %v5584_v2 }
0x175c   :  { %12620 = vmatprep.subr.bf16.mxu1 %v12619_v5 }
0x175d   :  { %12622 = vmatpush3.bf16.msra.mxu1 %v12619_v5 }
0x1763   :  { %v4421_v6 = vpop.permute.xlu0 %4420 }
0x1764   :  { %4423 = vst.msk [vmem:[#allocation2] sm:$0xff] %vm661_vm3, %v4421_v6  ;;  %v5587_v6 = vld [vmem:[%s14730_s20 + $0x18] sm:$0xff] }
0x1794   :  { %v4593_v7 = vpop.permute.xlu1 %4592 }
0x1795   :  { %4595 = vst.msk [vmem:[#allocation2] sm:$0xff] %vm834_vm4, %v4593_v7 }
0x1798   :  { %v4765_v9 = vpop.permute.xlu1 %4764 }
0x1799   :  { %4767 = vst.msk [vmem:[#allocation2] sm:$0xff] %vm1007_vm5, %v4765_v9 }
0x17a0   :  { %v5104_v28 = vpop.permute.xlu0 %5103  ;;  %v5451_v34 = vld [vmem:[#allocation2] sm:$0xff] }
0x17a1   :  { %5106 = vst.msk [vmem:[#allocation2 + $0x8] sm:$0xff] %vm661_vm3, %v5104_v28  ;;  %12132 = vmatprep.mubr.msk.f32.mxu0 %vm179_vm0, %v5451_v34 }
0x17a4   :  { %v5276_v30 = vpop.permute.xlu0 %5275 }
0x17a5   :  { %5278 = vst.msk [vmem:[#allocation2 + $0x8] sm:$0xff] %vm834_vm4, %v5276_v30 }
0x17a8   :  { %v5448_v32 = vpop.permute.xlu1 %5447 }
0x17a9   :  { %5450 = vst.msk [vmem:[#allocation2 + $0x8] sm:$0xff] %vm1007_vm5, %v5448_v32 }
0x17b0   :  { %v5452_v10 = vld [vmem:[#allocation2 + $0x8] sm:$0xff] }
0x17b1   :  { %12133 = vmatmul.mubr.msk.f32.vlgmr.msra.gmra.mrb[50].mxu0 %vm179_vm0, %v5452_v10 }
0x17b2   :  { %12630 = vmatpush3.bf16.msra.mxu0 %v12627_v31 }
0x17b3   :  { %12632 = vmatprep.subr.bf16.mxu0 %v12631_v37 }
0x17b6   :  { %12634 = vmatpush3.bf16.msra.mxu0 %v12631_v37 }
0x17b7   :  { %12167 = vmatprep.subr.mxu0 %v13108_v36 }
0x17de   :  { %v3900_v15 = vpop.xlane.xlu0 %3899 }
0x17df   :  { %v3904_v18 = vmul.f32 0.03125, %v3900_v15 }
0x17e1   :  { %v3906_v20 = vsub.f32 %v3896_v1, %v3904_v18 }
0x17e3   :  { %v3908_v24 = vmul.f32 %v3906_v20, %v3906_v20 }
0x17e5   :  { %v3910_v25 = vsel %vm179_vm0, %v3908_v24, 0.0 }
0x17e7   :  { %v3903_v12 = vpop.xlane.xlu1 %3902 }
0x17e8   :  { %v3905_v13 = vmul.f32 0.03125, %v3903_v12 }
0x17ea   :  { %v3907_v11 = vsub.f32 %v3897_v4, %v3905_v13  ;;  %v5586_v4 = vld [vmem:[%s14730_s20 + $0x10] sm:$0xff]  ;;  %v11264_v13 = vld [vmem:[%s14731_s27] ss:$0 sm:$0xff] }
0x17eb   :  { %v12623_v7 = vpack.c.bf16 %v5587_v6, %v5586_v4 }
0x17ec   :  { %v3909_v41 = vmul.f32 %v3907_v11, %v3907_v11 }
0x17ed   :  { %12624 = vmatprep.subr.bf16.mxu1 %v12623_v7 }
0x17ee   :  { %v3913_v14 = vsel %vm179_vm0, %v3909_v41, 0.0  ;;  %12626 = vmatpush3.bf16.msra.mxu1 %v12623_v7  ;;  %v11265_v41 = vld [vmem:[%s14732_s1] ss:$0 sm:$0xff] }
0x17ef   :  { %3914 = vadd.xlane.f32.xlu1 %v3913_v14  ;;  %12157 = vmatprep.subr.mxu1 %v13108_v36 }
0x1884   :  { %v12134_v16 = vpop.f32.mrb[50].mxu0 }
0x1885   :  { %v5531_v17 = vpop.f32.mrb[51].mxu0  ;;  %v5537_v19 = vadd.f32 %v12134_v16, %v11261_v63 }
0x1886   :  { %v5532_v35 = vadd.f32 %v11261_v63, %v5531_v17 }
0x1887   :  { %v5541_v21 = vadd.f32 %v5537_v19, %v13808_v42  ;;  %v11269_v19 = vld [vmem:[%s14733_s26] ss:$0 sm:$0xff] }
0x1888   :  { %v5540_v33 = vadd.f32 %v5532_v35, %v13804_v38  ;;  %v3915_v38 = vpop.xlane.xlu1 %3914 }
0x1889   :  { %v5545_v23 = vsel %vm179_vm0, %v5541_v21, 0.0  ;;  %v3917_v42 = vmul.f32 0.03125, %v3915_v38 }
0x188a   :  { %v5542_v22 = vsel %vm179_vm0, %v5540_v33, 0.0 }
0x188b   :  { %5543 = vadd.xlane.f32.xlu0 %v5542_v22  ;;  %v3919_v59 = vadd.f32 1e-05, %v3917_v42 }
0x188d   :  { %12911 = vrsqrt.f32 %v3919_v59 }
0x188f   :  { %5546 = vadd.xlane.f32.xlu0 %v5545_v23  ;;  %v11266_v23 = vld [vmem:[%s14734_s28] ss:$0 sm:$0xff] }
0x1893   :  { %3911 = vadd.xlane.f32.xlu0 %v3910_v25 }
0x1897   :  { %v12912_v54 = vpop.eup %12911 }
0x1898   :  { %v3923_v52 = vmul.f32 %v12912_v54, %v3907_v11 }
0x189a   :  { %v3931_v40 = vmul.f32 %v11230_v55, %v3923_v52 }
0x189c   :  { %v14040_v1 = vadd.f32 %v11231_v60, %v3931_v40 }
0x1918   :  { %v5544_v39 = vpop.xlane.xlu0 %5543 }
0x1919   :  { %v5548_v43 = vmul.f32 0.03125, %v5544_v39 }
0x191b   :  { %v5550_v44 = vsub.f32 %v5540_v33, %v5548_v43 }
0x191c   :  { %v5547_v45 = vpop.xlane.xlu0 %5546 }
0x191d   :  { %v5549_v58 = vmul.f32 0.03125, %v5547_v45  ;;  %v5552_v46 = vmul.f32 %v5550_v44, %v5550_v44 }
0x191f   :  { %v5551_v47 = vsub.f32 %v5541_v21, %v5549_v58  ;;  %v5554_v48 = vsel %vm179_vm0, %v5552_v46, 0.0 }
0x1920   :  { %5555 = vadd.xlane.f32.xlu0 %v5554_v48  ;;  %v3912_v49 = vpop.xlane.xlu0 %3911 }
0x1921   :  { %v3916_v50 = vmul.f32 0.03125, %v3912_v49  ;;  %v5553_v51 = vmul.f32 %v5551_v47, %v5551_v47 }
0x1923   :  { %v3918_v53 = vadd.f32 1e-05, %v3916_v50  ;;  %v5557_v8 = vsel %vm179_vm0, %v5553_v51, 0.0 }
0x1924   :  { %5558 = vadd.xlane.f32.xlu1 %v5557_v8 }
0x1925   :  { %12913 = vrsqrt.f32 %v3918_v53 }
0x192f   :  { %v12914_v56 = vpop.eup %12913 }
0x1930   :  { %v3922_v57 = vmul.f32 %v12914_v56, %v3906_v20 }
0x1932   :  { %v3930_v61 = vmul.f32 %v11230_v55, %v3922_v57 }
0x1934   :  { %v14038_v62 = vadd.f32 %v11231_v60, %v3930_v61 }
0x1936   :  { %12154 = vmatprep.mubr.msk.f32.mxu0 %vm179_vm0, %v14038_v62 }
0x1937   :  { %12155 = vmatmul.mubr.msk.f32.vlgmr.msra.gmra.mrb[52].mxu0 %vm179_vm0, %v14040_v1 }
0x1938   :  { %12169 = vmatprep.mubr.msk.f32.mxu0 %vm13109_vm1, %v13108_v36 }
0x19ad   :  { %v5556_v9 = vpop.xlane.xlu0 %5555 }
0x19ae   :  { %v5560_v28 = vmul.f32 0.03125, %v5556_v9 }
0x19b0   :  { %v5562_v34 = vadd.f32 1e-05, %v5560_v28 }
0x19b1   :  { %v5559_v30 = vpop.xlane.xlu1 %5558 }
0x19b2   :  { %12915 = vrsqrt.f32 %v5562_v34  ;;  %v5561_v32 = vmul.f32 0.03125, %v5559_v30 }
0x19b4   :  { %v5563_v10 = vadd.f32 1e-05, %v5561_v32 }
0x19b6   :  { %12917 = vrsqrt.f32 %v5563_v10 }
0x19bc   :  { %v12916_v12 = vpop.eup %12915 }
0x19bd   :  { %v5566_v11 = vmul.f32 %v12916_v12, %v5550_v44 }
0x19bf   :  { %v5574_v14 = vmul.f32 %v11264_v13, %v5566_v11 }
0x19c0   :  { %v12918_v15 = vpop.eup %12917 }
0x19c1   :  { %v5567_v63 = vmul.f32 %v12918_v15, %v5551_v47  ;;  %v14055_v16 = vadd.f32 %v11265_v41, %v5574_v14 }
0x19c3   :  { %v5575_v17 = vmul.f32 %v11264_v13, %v5567_v63  ;;  %12143 = vmatprep.mubr.msk.f32.mxu1 %vm179_vm0, %v14055_v16 }
0x19c5   :  { %v14059_v18 = vadd.f32 %v11265_v41, %v5575_v17 }
0x19c7   :  { %12144 = vmatmul.mubr.msk.f32.vlgmr.msra.gmra.mrb[64].mxu1 %vm179_vm0, %v14059_v18 }
0x19c8   :  { %12159 = vmatprep.mubr.msk.f32.mxu1 %vm13109_vm1, %v13108_v36 }
0x1a0a   :  { %v12156_v35 = vpop.f32.mrb[52].mxu0 }
0x1a0b   :  { %v5759_v33 = vpop.f32.mrb[53].mxu0  ;;  %v14077_v21 = vadd.f32 %v12156_v35, %v11269_v19 }
0x1a0c   :  { %v14066_v20 = vadd.f32 %v11269_v19, %v5759_v33 }
0x1a0e   :  { %6108 = vrot.lane.b32.xlu1 %v14066_v20, %s13113_s21  ;;  %5936 = vrot.lane.b32.xlu0 %v14066_v20, %s13112_s17 }
0x1a0f   :  { %12158 = vmatpush3.xpose.msk.msra.mxu1 %vm325_vm2, %v14066_v20 }
0x1a10   :  { %12162 = vmatprep.subr.mxu1 %v13108_v36 }
0x1a12   :  { %6280 = vrot.lane.b32.xlu0 %v14066_v20, %s13115_s2 }
0x1a16   :  { %6618 = vrot.lane.b32.xlu0 %v14077_v21, %s13112_s17 }
0x1a1a   :  { %6790 = vrot.lane.b32.xlu0 %v14077_v21, %s13113_s21 }
0x1a1e   :  { %6962 = vrot.lane.b32.xlu0 %v14077_v21, %s13115_s2 }
0x1a80   :  { %v5937_v22 = vpop.permute.xlu0 %5936  ;;  %v6109_v29 = vpop.permute.xlu1 %6108 }
0x1a81   :  { %12168 = vmatpush3.xpose.msk.msra.mxu0 %vm325_vm2, %v5937_v22 }
0x1a82   :  { %12177 = vmatprep.subr.mxu0 %v13108_v36 }
0x1a84   :  { %v6281_v0 = vpop.permute.xlu0 %6280 }
0x1a88   :  { %v6619_v42 = vpop.permute.xlu0 %6618 }
0x1a8c   :  { %v6791_v43 = vpop.permute.xlu0 %6790 }
0x1a90   :  { %v6963_v59 = vpop.permute.xlu0 %6962 }
0x1a9a   :  { %v12145_v24 = vpop.f32.mrb[64].mxu1 }
0x1a9b   :  { %v5667_v25 = vpop.f32.mrb[65].mxu1  ;;  %v5673_v27 = vadd.f32 %v12145_v24, %v11266_v23 }
0x1a9c   :  { %v5668_v26 = vadd.f32 %v11266_v23, %v5667_v25 }
0x1a9e   :  { %5934 = vrot.lane.b32.xlu1 %v5668_v26, %s13112_s17  ;;  %12160 = vmatmul.mubr.msk.f32.vlgmr.msra.gmra.mrb[66].mxu1 %vm325_vm2, %v5668_v26 }
0x1a9f   :  { %12164 = vmatprep.mubr.msk.f32.mxu1 %vm13109_vm1, %v13108_v36 }
0x1aa2   :  { %6106 = vrot.lane.b32.xlu1 %v5668_v26, %s13113_s21 }
0x1aa6   :  { %6278 = vrot.lane.b32.xlu1 %v5668_v26, %s13115_s2 }
0x1aaa   :  { %6616 = vrot.lane.b32.xlu1 %v5673_v27, %s13112_s17 }
0x1aae   :  { %6788 = vrot.lane.b32.xlu1 %v5673_v27, %s13113_s21 }
0x1ab2   :  { %6960 = vrot.lane.b32.xlu1 %v5673_v27, %s13115_s2 }
0x1b10   :  { %v5935_v31 = vpop.permute.xlu1 %5934 }
0x1b11   :  { %12170 = vmatmul.mubr.msk.f32.vlgmr.msra.gmra.mrb[54].mxu0 %vm325_vm2, %v5935_v31 }
0x1b12   :  { %12178 = vmatpush3.xpose.msk.msra.mxu0 %vm325_vm2, %v6109_v29  ;;  %12179 = vmatprep.mubr.msk.f32.mxu0 %vm13109_vm1, %v13108_v36 }
0x1b13   :  { %12187 = vmatprep.subr.mxu0 %v13108_v36 }
0x1b14   :  { %v6107_v37 = vpop.permute.xlu1 %6106 }
0x1b15   :  { %12180 = vmatmul.mubr.msk.f32.vlgmr.msra.gmra.mrb[56].mxu0 %vm325_vm2, %v6107_v37 }
0x1b16   :  { %12188 = vmatpush3.xpose.msk.msra.mxu0 %vm325_vm2, %v6281_v0  ;;  %12189 = vmatprep.mubr.msk.f32.mxu0 %vm13109_vm1, %v13108_v36 }
0x1b17   :  { %12197 = vmatprep.subr.mxu0 %v13108_v36 }
0x1b18   :  { %v6279_v38 = vpop.permute.xlu1 %6278 }
0x1b19   :  { %12190 = vmatmul.mubr.msk.f32.vlgmr.msra.gmra.mrb[58].mxu0 %vm325_vm2, %v6279_v38 }
0x1b1a   :  { %12198 = vmatpush3.xpose.msk.msra.mxu0 %vm325_vm2, %v14077_v21  ;;  %12199 = vmatprep.mubr.msk.f32.mxu0 %vm13109_vm1, %v13108_v36 }
0x1b1b   :  { %12207 = vmatprep.subr.mxu0 %v13108_v36 }
0x1b1c   :  { %v6617_v39 = vpop.permute.xlu1 %6616 }
0x1b1d   :  { %12200 = vmatmul.mubr.msk.f32.vlgmr.msra.gmra.mrb[60].mxu0 %vm325_vm2, %v5673_v27 }
0x1b1e   :  { %12208 = vmatpush3.xpose.msk.msra.mxu0 %vm325_vm2, %v6619_v42  ;;  %12209 = vmatprep.mubr.msk.f32.mxu0 %vm13109_vm1, %v13108_v36 }
0x1b1f   :  { %12217 = vmatprep.subr.mxu0 %v13108_v36 }
0x1b20   :  { %v6789_v44 = vpop.permute.xlu1 %6788 }
0x1b21   :  { %12210 = vmatmul.mubr.msk.f32.vlgmr.msra.gmra.mrb[62].mxu0 %vm325_vm2, %v6617_v39 }
0x1b22   :  { %12218 = vmatpush3.xpose.msk.msra.mxu0 %vm325_vm2, %v6791_v43  ;;  %12219 = vmatprep.mubr.msk.f32.mxu0 %vm13109_vm1, %v13108_v36 }
0x1b23   :  { %12227 = vmatprep.subr.mxu0 %v13108_v36 }
0x1b24   :  { %v6961_v45 = vpop.permute.xlu1 %6960 }
0x1b25   :  { %12220 = vmatmul.mubr.msk.f32.vlgmr.msra.gmra.mrb[64].mxu0 %vm325_vm2, %v6789_v44 }
0x1b26   :  { %12228 = vmatpush3.xpose.msk.msra.mxu0 %vm325_vm2, %v6963_v59  ;;  %12229 = vmatprep.mubr.msk.f32.mxu0 %vm13109_vm1, %v13108_v36 }
0x1b29   :  { %12230 = vmatmul.mubr.msk.f32.vlgmr.msra.gmra.mrb[66].mxu0 %vm325_vm2, %v6961_v45 }
0x1b71   :  { %v5840_v58 = vpop.f32.mrb[66].mxu1 }
0x1b72   :  { %v5844_v46 = vmul.f32 0.35355338, %v5840_v58  ;;  %v12161_v47 = vpop.f32.mrb[67].mxu1 }
0x1b74   :  { %v5846_v48 = vsel %vm325_vm2, %v5844_v46, -inf }
0x1b75   :  { %5847 = vmax.xlane.f32.xlu0 %v5846_v48 }
0x1be4   :  { %v6008_v49 = vpop.f32.mrb[54].mxu0 }
0x1be5   :  { %v6012_v50 = vmul.f32 0.35355338, %v6008_v49  ;;  %v12171_v51 = vpop.f32.mrb[55].mxu0 }
0x1be7   :  { %v6014_v53 = vsel %vm325_vm2, %v6012_v50, -inf }
0x1be8   :  { %6015 = vmax.xlane.f32.xlu1 %v6014_v53  ;;  %v6180_v8 = vpop.f32.mrb[56].mxu0 }
0x1be9   :  { %v6184_v54 = vmul.f32 0.35355338, %v6180_v8  ;;  %v12181_v52 = vpop.f32.mrb[57].mxu0 }
0x1beb   :  { %v6186_v55 = vsel %vm325_vm2, %v6184_v54, -inf }
0x1bec   :  { %6187 = vmax.xlane.f32.xlu0 %v6186_v55  ;;  %v6352_v56 = vpop.f32.mrb[58].mxu0 }
0x1bed   :  { %v6356_v57 = vmul.f32 0.35355338, %v6352_v56  ;;  %v12191_v40 = vpop.f32.mrb[59].mxu0 }
0x1bef   :  { %v6358_v60 = vsel %vm325_vm2, %v6356_v57, -inf }
0x1bf0   :  { %6359 = vmax.xlane.f32.xlu0 %v6358_v60  ;;  %v6522_v61 = vpop.f32.mrb[60].mxu0 }
0x1bf1   :  { %v6526_v2 = vmul.f32 0.35355338, %v6522_v61  ;;  %v12201_v3 = vpop.f32.mrb[61].mxu0 }
0x1bf3   :  { %v6528_v4 = vsel %vm325_vm2, %v6526_v2, -inf }
0x1bf4   :  { %6529 = vmax.xlane.f32.xlu0 %v6528_v4  ;;  %v6690_v5 = vpop.f32.mrb[62].mxu0 }
0x1bf5   :  { %v14133_v6 = vmul.f32 0.35355338, %v6690_v5  ;;  %v12211_v7 = vpop.f32.mrb[63].mxu0 }
0x1bf7   :  { %v6696_v9 = vsel %vm325_vm2, %v14133_v6, -inf }
0x1bf8   :  { %6697 = vmax.xlane.f32.xlu1 %v6696_v9  ;;  %v6862_v28 = vpop.f32.mrb[64].mxu0 }
0x1bf9   :  { %v6866_v34 = vmul.f32 0.35355338, %v6862_v28  ;;  %v12221_v30 = vpop.f32.mrb[65].mxu0 }
0x1bfb   :  { %v6868_v32 = vsel %vm325_vm2, %v6866_v34, -inf }
0x1bfc   :  { %6869 = vmax.xlane.f32.xlu0 %v6868_v32  ;;  %v7034_v10 = vpop.f32.mrb[66].mxu0 }
0x1bfd   :  { %v12231_v12 = vpop.f32.mrb[67].mxu0  ;;  %v7038_v63 = vmul.f32 0.35355338, %v7034_v10 }
0x1bff   :  { %v7040_v17 = vsel %vm325_vm2, %v7038_v63, -inf }
0x1c02   :  { %v5848_v13 = vpop.xlane.xlu0 %5847 }
0x1c03   :  { %v5849_v11 = vsub.f32 %v5844_v46, %v5848_v13 }
0x1c05   :  { %v5850_v41 = vmul.f32 1.442695, %v5849_v11 }
0x1c07   :  { %12919 = vpow2.f32 %v5850_v41 }
0x1c09   :  { %5857 = vrot.lane.b32.xlu1 %v14066_v20, %s13111_s5 }
0x1c11   :  { %v12920_v14 = vpop.eup %12919 }
0x1c12   :  { %v5852_v15 = vsel %vm325_vm2, %v12920_v14, 0.0 }
0x1c13   :  { %5853 = vadd.xlane.f32.xlu0 %v5852_v15 }
0x1c29   :  { %6025 = vrot.lane.b32.xlu0 %v14066_v20, %s13110_s0 }
0x1c2d   :  { %7041 = vmax.xlane.f32.xlu1 %v7040_v17 }
0x1c3e   :  { %6197 = vrot.lane.b32.xlu1 %v14066_v20, %s13114_s29 }
0x1c42   :  { %6369 = vrot.lane.b32.xlu1 %v14066_v20, %s13116_s7 }
0x1c46   :  { %6539 = vrot.lane.b32.xlu1 %v14077_v21, %s13111_s5 }
0x1c75   :  { %v6016_v19 = vpop.xlane.xlu1 %6015 }
0x1c76   :  { %v6017_v35 = vsub.f32 %v6012_v50, %v6016_v19 }
0x1c78   :  { %v6018_v33 = vmul.f32 1.442695, %v6017_v35 }
0x1c79   :  { %v6188_v22 = vpop.xlane.xlu0 %6187 }
0x1c7a   :  { %12921 = vpow2.f32 %v6018_v33  ;;  %v6189_v23 = vsub.f32 %v6184_v54, %v6188_v22 }
0x1c7c   :  { %v6190_v24 = vmul.f32 1.442695, %v6189_v23 }
0x1c7d   :  { %v6360_v25 = vpop.xlane.xlu0 %6359 }
0x1c7e   :  { %12923 = vpow2.f32 %v6190_v24  ;;  %v6361_v26 = vsub.f32 %v6356_v57, %v6360_v25 }
0x1c80   :  { %v6362_v27 = vmul.f32 1.442695, %v6361_v26 }
0x1c81   :  { %v6530_v29 = vpop.xlane.xlu0 %6529 }
0x1c82   :  { %12925 = vpow2.f32 %v6362_v27  ;;  %v6531_v31 = vsub.f32 %v6526_v2, %v6530_v29 }
0x1c84   :  { %v12922_v0 = vpop.eup %12921  ;;  %v6532_v37 = vmul.f32 1.442695, %v6531_v31 }
0x1c85   :  { %v6698_v20 = vpop.xlane.xlu1 %6697  ;;  %v6020_v38 = vsel %vm325_vm2, %v12922_v0, 0.0 }
0x1c86   :  { %12927 = vpow2.f32 %v6532_v37  ;;  %6021 = vadd.xlane.f32.xlu1 %v6020_v38  ;;  %v6699_v54 = vsub.f32 %v14133_v6, %v6698_v20 }
0x1c88   :  { %v12924_v42 = vpop.eup %12923  ;;  %v6700_v55 = vmul.f32 1.442695, %v6699_v54 }
0x1c89   :  { %v5858_v39 = vpop.permute.xlu1 %5857  ;;  %v6870_v43 = vpop.xlane.xlu0 %6869  ;;  %v6192_v44 = vsel %vm325_vm2, %v12924_v42, 0.0 }
0x1c8a   :  { %v6871_v59 = vsub.f32 %v6866_v34, %v6870_v43  ;;  %12163 = vmatpush3.msra.mxu1 %v5858_v39  ;;  %6193 = vadd.xlane.f32.xlu0 %v6192_v44  ;;  %v7134_v44 = vld [vmem:[%s14735_s3] sm:$0xff] }
0x1c8b   :  { %12172 = vmatprep.subr.mxu1 %v13108_v36 }
0x1c8c   :  { %v12926_v45 = vpop.eup %12925  ;;  %v6872_v58 = vmul.f32 1.442695, %v6871_v59  ;;  %v7135_v59 = vld [vmem:[%s14735_s3 + $0x8] sm:$0xff] }
0x1c8d   :  { %v6364_v46 = vsel %vm325_vm2, %v12926_v45, 0.0 }
0x1c8e   :  { %12929 = vpow2.f32 %v6872_v58  ;;  %6365 = vadd.xlane.f32.xlu1 %v6364_v46  ;;  %v7136_v58 = vld [vmem:[%s14735_s3 + $0x10] sm:$0xff]  ;;  %v7137_v46 = vld [vmem:[%s14735_s3 + $0x18] sm:$0xff] }
0x1c90   :  { %v12928_v47 = vpop.eup %12927 }
0x1c91   :  { %v6534_v48 = vsel %vm325_vm2, %v12928_v47, 0.0 }
0x1c92   :  { %6535 = vadd.xlane.f32.xlu0 %v6534_v48 }
0x1c98   :  { %v14155_v49 = vpop.eup %12929 }
0x1c99   :  { %v6874_v50 = vsel %vm325_vm2, %v14155_v49, 0.0 }
0x1c9a   :  { %6875 = vadd.xlane.f32.xlu0 %v6874_v50 }
0x1c9f   :  { %6707 = vrot.lane.b32.xlu1 %v14077_v21, %s13110_s0 }
0x1ca0   :  { %v5854_v51 = vpop.xlane.xlu0 %5853 }
0x1ca1   :  { %12931 = vrcp.f32 %v5854_v51 }
0x1ca2   :  { %12933 = vpow2.f32 %v6700_v55 }
0x1ca4   :  { %v6026_v52 = vpop.permute.xlu0 %6025 }
0x1cab   :  { %v12932_v53 = vpop.eup %12931 }
0x1cac   :  { %v5856_v8 = vmul.f32 %v12932_v53, %v12920_v14  ;;  %v12934_v60 = vpop.eup %12933 }
0x1cad   :  { %v6702_v61 = vsel %vm325_vm2, %v12934_v60, 0.0 }
0x1cae   :  { %12165 = vmatmul.mubr.msk.f32.vlgmr.msra.gmra.mrb[68].mxu1 %vm325_vm2, %v5856_v8 }
0x1caf   :  { %12173 = vmatpush3.msra.mxu1 %v6026_v52  ;;  %12174 = vmatprep.mubr.msk.f32.mxu1 %vm13109_vm1, %v13108_v36 }
0x1cb0   :  { %12182 = vmatprep.subr.mxu1 %v13108_v36 }
0x1cba   :  { %v7042_v56 = vpop.xlane.xlu1 %7041 }
0x1cbb   :  { %v7043_v57 = vsub.f32 %v7038_v63, %v7042_v56 }
0x1cbd   :  { %v7044_v40 = vmul.f32 1.442695, %v7043_v57 }
0x1cbe   :  { %v6198_v4 = vpop.permute.xlu1 %6197 }
0x1cbf   :  { %12935 = vpow2.f32 %v7044_v40 }
0x1cc2   :  { %v6370_v5 = vpop.permute.xlu1 %6369 }
0x1cc3   :  { %6703 = vadd.xlane.f32.xlu1 %v6702_v61 }
0x1cc6   :  { %v6540_v6 = vpop.permute.xlu1 %6539 }
0x1cc9   :  { %v12936_v2 = vpop.eup %12935 }
0x1cca   :  { %v7046_v3 = vsel %vm325_vm2, %v12936_v2, 0.0 }
0x1ccb   :  { %7047 = vadd.xlane.f32.xlu0 %v7046_v3 }
0x1cd4   :  { %7051 = vrot.lane.b32.xlu1 %v14077_v21, %s13116_s7 }
0x1ce1   :  { %6879 = vrot.lane.b32.xlu0 %v14077_v21, %s13114_s29 }
0x1d13   :  { %v6022_v7 = vpop.xlane.xlu1 %6021 }
0x1d14   :  { %12937 = vrcp.f32 %v6022_v7 }
0x1d17   :  { %v6194_v9 = vpop.xlane.xlu0 %6193 }
0x1d18   :  { %12939 = vrcp.f32 %v6194_v9 }
0x1d1b   :  { %v6366_v28 = vpop.xlane.xlu1 %6365 }
0x1d1c   :  { %12941 = vrcp.f32 %v6366_v28 }
0x1d1e   :  { %v12938_v34 = vpop.eup %12937 }
0x1d1f   :  { %v6536_v30 = vpop.xlane.xlu0 %6535  ;;  %v6024_v32 = vmul.f32 %v12938_v34, %v12922_v0  ;;  %v6708_v14 = vpop.permute.xlu1 %6707 }
0x1d20   :  { %12943 = vrcp.f32 %v6536_v30 }
0x1d21   :  { %12175 = vmatmul.mubr.msk.f32.vlgmr.msra.gmra.mrb[70].mxu1 %vm325_vm2, %v6024_v32 }
0x1d22   :  { %v12940_v10 = vpop.eup %12939  ;;  %12183 = vmatpush3.msra.mxu1 %v6198_v4  ;;  %12184 = vmatprep.mubr.msk.f32.mxu1 %vm13109_vm1, %v13108_v36 }
0x1d23   :  { %12192 = vmatprep.subr.mxu1 %v13108_v36  ;;  %v6196_v21 = vmul.f32 %v12940_v10, %v12924_v42 }
0x1d25   :  { %12185 = vmatmul.mubr.msk.f32.vlgmr.msra.gmra.mrb[72].mxu1 %vm325_vm2, %v6196_v21 }
0x1d26   :  { %v12942_v12 = vpop.eup %12941  ;;  %12193 = vmatpush3.msra.mxu1 %v6370_v5  ;;  %12194 = vmatprep.mubr.msk.f32.mxu1 %vm13109_vm1, %v13108_v36 }
0x1d27   :  { %12202 = vmatprep.subr.mxu1 %v13108_v36  ;;  %v6368_v13 = vmul.f32 %v12942_v12, %v12926_v45  ;;  %v6876_v15 = vpop.xlane.xlu0 %6875  ;;  %v12635_v45 = vpack.c.bf16 %v7135_v59, %v7134_v44  ;;  %v7277_v44 = vld [vmem:[%s14740_s16] sm:$0xff]  ;;  %v7278_v59 = vld [vmem:[%s14740_s16 + $0x8] sm:$0xff] }
0x1d29   :  { %12195 = vmatmul.mubr.msk.f32.vlgmr.msra.gmra.mrb[74].mxu1 %vm325_vm2, %v6368_v13  ;;  %12636 = vmatprep.subr.bf16.mxu0 %v12635_v45 }
0x1d2a   :  { %v12944_v11 = vpop.eup %12943  ;;  %12203 = vmatpush3.msra.mxu1 %v6540_v6  ;;  %12204 = vmatprep.mubr.msk.f32.mxu1 %vm13109_vm1, %v13108_v36 }
0x1d2b   :  { %12212 = vmatprep.subr.mxu1 %v13108_v36  ;;  %v6538_v41 = vmul.f32 %v12944_v11, %v12928_v47  ;;  %v12639_v47 = vpack.c.bf16 %v7137_v46, %v7136_v58  ;;  %12638 = vmatpush3.bf16.msra.mxu0 %v12635_v45  ;;  %v12651_v45 = vpack.c.bf16 %v7278_v59, %v7277_v44  ;;  %v7279_v58 = vld [vmem:[%s14740_s16 + $0x10] sm:$0xff]  ;;  %v7280_v46 = vld [vmem:[%s14740_s16 + $0x18] sm:$0xff] }
0x1d2d   :  { %12205 = vmatmul.mubr.msk.f32.vlgmr.msra.gmra.mrb[76].mxu1 %vm325_vm2, %v6538_v41  ;;  %12640 = vmatprep.subr.bf16.mxu0 %v12639_v47 }
0x1d2e   :  { %12213 = vmatpush3.msra.mxu1 %v6708_v14  ;;  %12214 = vmatprep.mubr.msk.f32.mxu1 %vm13109_vm1, %v13108_v36 }
0x1d2f   :  { %12222 = vmatprep.subr.mxu1 %v13108_v36  ;;  %12642 = vmatpush3.bf16.msra.mxu0 %v12639_v47  ;;  %v12655_v47 = vpack.c.bf16 %v7280_v46, %v7279_v58 }
0x1d30   :  { %12652 = vmatprep.subr.bf16.mxu0 %v12651_v45 }
0x1d50   :  { %v6704_v63 = vpop.xlane.xlu1 %6703 }
0x1d51   :  { %12945 = vrcp.f32 %v6704_v63 }
0x1d52   :  { %12947 = vrcp.f32 %v6876_v15 }
0x1d54   :  { %v7052_v24 = vpop.permute.xlu1 %7051 }
0x1d58   :  { %v7048_v17 = vpop.xlane.xlu0 %7047 }
0x1d59   :  { %12949 = vrcp.f32 %v7048_v17 }
0x1d5b   :  { %v12946_v19 = vpop.eup %12945 }
0x1d5c   :  { %v6880_v35 = vpop.permute.xlu0 %6879  ;;  %v6706_v33 = vmul.f32 %v12946_v19, %v12934_v60  ;;  %v12948_v22 = vpop.eup %12947 }
0x1d5d   :  { %v6878_v23 = vmul.f32 %v12948_v22, %v14155_v49 }
0x1d5e   :  { %12215 = vmatmul.mubr.msk.f32.vlgmr.msra.gmra.mrb[78].mxu1 %vm325_vm2, %v6706_v33 }
0x1d5f   :  { %12223 = vmatpush3.msra.mxu1 %v6880_v35  ;;  %12224 = vmatprep.mubr.msk.f32.mxu1 %vm13109_vm1, %v13108_v36 }
0x1d60   :  { %12232 = vmatprep.subr.mxu1 %v13108_v36 }
0x1d62   :  { %12225 = vmatmul.mubr.msk.f32.vlgmr.msra.gmra.mrb[80].mxu1 %vm325_vm2, %v6878_v23 }
0x1d63   :  { %v12950_v25 = vpop.eup %12949  ;;  %12233 = vmatpush3.msra.mxu1 %v7052_v24  ;;  %12234 = vmatprep.mubr.msk.f32.mxu1 %vm13109_vm1, %v13108_v36 }
0x1d64   :  { %v7050_v26 = vmul.f32 %v12950_v25, %v12936_v2  ;;  %v11296_v2 = vld [vmem:[%s14736_s14] ss:$0 sm:$0xff] }
0x1d66   :  { %12235 = vmatmul.mubr.msk.f32.vlgmr.msra.gmra.mrb[82].mxu1 %vm325_vm2, %v7050_v26 }
0x1d81   :  { %v5929_v27 = vpop.f32.mrb[68].mxu1 }
0x1d82   :  { %5933 = vst.msk [vmem:[#allocation2] sm:$0xff] %vm325_vm2, %v5929_v27  ;;  %v12166_v29 = vpop.f32.mrb[69].mxu1 }
0x1df4   :  { %v6097_v31 = vpop.f32.mrb[70].mxu1 }
0x1df5   :  { %6102 = vrot.lane.b32.xlu0 %v6097_v31, %s14692_s18  ;;  %v12176_v0 = vpop.f32.mrb[71].mxu1 }
0x1df8   :  { %v6269_v37 = vpop.f32.mrb[72].mxu1 }
0x1df9   :  { %6274 = vrot.lane.b32.xlu1 %v6269_v37, %s14690_s22  ;;  %v12186_v20 = vpop.f32.mrb[73].mxu1 }
0x1dfc   :  { %v6441_v38 = vpop.f32.mrb[74].mxu1 }
0x1dfd   :  { %6446 = vrot.lane.b32.xlu1 %v6441_v38, %s14688_s23  ;;  %v12196_v42 = vpop.f32.mrb[75].mxu1 }
0x1e00   :  { %v6611_v39 = vpop.f32.mrb[76].mxu1 }
0x1e01   :  { %6615 = vst.msk [vmem:[#allocation2 + $0x8] sm:$0xff] %vm325_vm2, %v6611_v39  ;;  %v12206_v43 = vpop.f32.mrb[77].mxu1 }
0x1e31   :  { %v6779_v48 = vpop.f32.mrb[78].mxu1 }
0x1e32   :  { %6784 = vrot.lane.b32.xlu0 %v6779_v48, %s14692_s18  ;;  %v12216_v49 = vpop.f32.mrb[79].mxu1  ;;  %s14739_s18 = sld [smem:[#allocation24_spill]]  ;;  %v7281_v48 = vld [vmem:[%s14740_s16 + $0x20] sm:$0xff] }
0x1e33   :  { %v7282_v49 = vld [vmem:[%s14740_s16 + $0x28] sm:$0xff] }
0x1e35   :  { %v6951_v50 = vpop.f32.mrb[80].mxu1 }
0x1e36   :  { %6956 = vrot.lane.b32.xlu0 %v6951_v50, %s14690_s22  ;;  %v12226_v51 = vpop.f32.mrb[81].mxu1  ;;  %s14738_s22 = sld [smem:[#allocation23_spill]]  ;;  %v12659_v50 = vpack.c.bf16 %v7282_v49, %v7281_v48  ;;  %v11307_v48 = vld [vmem:[%s13317_s4] ss:$0 sm:$0xff] }
0x1e37   :  { %v7283_v51 = vld [vmem:[%s14740_s16 + $0x30] sm:$0xff] }
0x1e38   :  { %v11300_v0 = vld [vmem:[%s14739_s18] ss:$0 sm:$0xff] }
0x1e39   :  { %v7123_v53 = vpop.f32.mrb[82].mxu1 }
0x1e3a   :  { %7128 = vrot.lane.b32.xlu1 %v7123_v53, %s14688_s23  ;;  %v12236_v8 = vpop.f32.mrb[83].mxu1  ;;  %s14737_s23 = sld [smem:[#allocation25_spill]]  ;;  %v7284_v53 = vld [vmem:[%s14740_s16 + $0x38] sm:$0xff] }
0x1e3b   :  { %v12663_v8 = vpack.c.bf16 %v7284_v53, %v7283_v51  ;;  %v11308_v53 = vld [vmem:[%s13322_s13] ss:$0 sm:$0xff] }
0x1e3c   :  { %v11299_v29 = vld [vmem:[%s14738_s22] ss:$0 sm:$0xff] }
0x1e40   :  { %v7272_v14 = vld [vmem:[%s14737_s23] sm:$0xff]  ;;  %v7273_v15 = vld [vmem:[%s14737_s23 + $0x8] sm:$0xff]  ;;  %v7274_v63 = vld [vmem:[%s14737_s23 + $0x10] sm:$0xff] }
0x1e41   :  { %v12643_v17 = vpack.c.bf16 %v7273_v15, %v7272_v14  ;;  %v7275_v19 = vld [vmem:[%s14737_s23 + $0x18] sm:$0xff] }
0x1e42   :  { %v12647_v35 = vpack.c.bf16 %v7275_v19, %v7274_v63 }
0x1e43   :  { %12644 = vmatprep.subr.bf16.mxu1 %v12643_v17 }
0x1e44   :  { %12646 = vmatpush3.bf16.msra.mxu1 %v12643_v17 }
0x1e45   :  { %12648 = vmatprep.subr.bf16.mxu1 %v12647_v35 }
0x1e48   :  { %12650 = vmatpush3.bf16.msra.mxu1 %v12647_v35 }
0x1e67   :  { %v6103_v54 = vpop.permute.xlu0 %6102 }
0x1e68   :  { %6105 = vst.msk [vmem:[#allocation2] sm:$0xff] %vm661_vm3, %v6103_v54  ;;  %v11301_v54 = vld [vmem:[%s14741_s15] ss:$0 sm:$0xff] }
0x1e6b   :  { %v6275_v52 = vpop.permute.xlu1 %6274 }
0x1e6c   :  { %6277 = vst.msk [vmem:[#allocation2] sm:$0xff] %vm834_vm4, %v6275_v52 }
0x1e6f   :  { %v6447_v55 = vpop.permute.xlu1 %6446 }
0x1e70   :  { %6449 = vst.msk [vmem:[#allocation2] sm:$0xff] %vm1007_vm5, %v6447_v55 }
0x1e77   :  { %v7132_v56 = vld [vmem:[#allocation2] sm:$0xff] }
0x1e78   :  { %12245 = vmatprep.mubr.msk.f32.mxu0 %vm179_vm0, %v7132_v56 }
0x1ea4   :  { %v6785_v57 = vpop.permute.xlu0 %6784 }
0x1ea5   :  { %6787 = vst.msk [vmem:[#allocation2 + $0x8] sm:$0xff] %vm661_vm3, %v6785_v57 }
0x1ea8   :  { %v6957_v40 = vpop.permute.xlu0 %6956 }
0x1ea9   :  { %6959 = vst.msk [vmem:[#allocation2 + $0x8] sm:$0xff] %vm834_vm4, %v6957_v40 }
0x1eac   :  { %v7129_v60 = vpop.permute.xlu1 %7128 }
0x1ead   :  { %7131 = vst.msk [vmem:[#allocation2 + $0x8] sm:$0xff] %vm1007_vm5, %v7129_v60 }
0x1eb4   :  { %v7133_v61 = vld [vmem:[#allocation2 + $0x8] sm:$0xff] }
0x1eb5   :  { %12246 = vmatmul.mubr.msk.f32.vlgmr.msra.gmra.mrb[68].mxu0 %vm179_vm0, %v7133_v61 }
0x1eb6   :  { %12654 = vmatpush3.bf16.msra.mxu0 %v12651_v45 }
0x1eb7   :  { %12656 = vmatprep.subr.bf16.mxu0 %v12655_v47 }
0x1eba   :  { %12658 = vmatpush3.bf16.msra.mxu0 %v12655_v47 }
0x1ebb   :  { %12660 = vmatprep.subr.bf16.mxu0 %v12659_v50 }
0x1ebe   :  { %12662 = vmatpush3.bf16.msra.mxu0 %v12659_v50 }
0x1ebf   :  { %12664 = vmatprep.subr.bf16.mxu0 %v12663_v8 }
0x1ec2   :  { %12666 = vmatpush3.bf16.msra.mxu0 %v12663_v8 }
0x1ec3   :  { %12299 = vmatprep.subr.mxu0 %v13108_v36 }
0x1f88   :  { %v12247_v3 = vpop.f32.mrb[68].mxu0 }
0x1f89   :  { %v7223_v4 = vadd.f32 %v12247_v3, %v11296_v2  ;;  %v7217_v5 = vpop.f32.mrb[69].mxu0 }
0x1f8a   :  { %v7218_v6 = vadd.f32 %v11296_v2, %v7217_v5 }
0x1f8b   :  { %v7227_v7 = vadd.f32 %v7223_v4, %v14059_v18 }
0x1f8c   :  { %v7226_v9 = vadd.f32 %v7218_v6, %v14055_v16 }
0x1f8d   :  { %v7233_v28 = vsel %vm179_vm0, %v7227_v7, 0.0 }
0x1f8e   :  { %7234 = vadd.xlane.f32.xlu1 %v7233_v28  ;;  %v7230_v34 = vsel %vm179_vm0, %v7226_v9, 0.0 }
0x1f8f   :  { %7231 = vadd.xlane.f32.xlu0 %v7230_v34 }
0x201b   :  { %v7235_v30 = vpop.xlane.xlu1 %7234 }
0x201c   :  { %v7237_v32 = vmul.f32 0.03125, %v7235_v30  ;;  %v7232_v10 = vpop.xlane.xlu0 %7231 }
0x201d   :  { %v7236_v21 = vmul.f32 0.03125, %v7232_v10 }
0x201e   :  { %v7239_v12 = vsub.f32 %v7227_v7, %v7237_v32 }
0x201f   :  { %v7238_v13 = vsub.f32 %v7226_v9, %v7236_v21 }
0x2020   :  { %v7241_v16 = vmul.f32 %v7239_v12, %v7239_v12 }
0x2021   :  { %v7240_v11 = vmul.f32 %v7238_v13, %v7238_v13 }
0x2022   :  { %v7245_v41 = vsel %vm179_vm0, %v7241_v16, 0.0 }
0x2023   :  { %v7242_v18 = vsel %vm179_vm0, %v7240_v11, 0.0  ;;  %v11304_v11 = vld [vmem:[%s13312_s9] ss:$0 sm:$0xff] }
0x2024   :  { %7243 = vadd.xlane.f32.xlu0 %v7242_v18 }
0x2028   :  { %7246 = vadd.xlane.f32.xlu0 %v7245_v41 }
0x20b1   :  { %v7244_v33 = vpop.xlane.xlu0 %7243 }
0x20b2   :  { %v7248_v22 = vmul.f32 0.03125, %v7244_v33 }
0x20b4   :  { %v7250_v23 = vadd.f32 1e-05, %v7248_v22 }
0x20b5   :  { %v7247_v24 = vpop.xlane.xlu0 %7246 }
0x20b6   :  { %12951 = vrsqrt.f32 %v7250_v23  ;;  %v7249_v25 = vmul.f32 0.03125, %v7247_v24 }
0x20b8   :  { %v7251_v26 = vadd.f32 1e-05, %v7249_v25 }
0x20ba   :  { %12953 = vrsqrt.f32 %v7251_v26 }
0x20c0   :  { %v12952_v27 = vpop.eup %12951 }
0x20c1   :  { %v7254_v31 = vmul.f32 %v12952_v27, %v7238_v13 }
0x20c3   :  { %v7262_v37 = vmul.f32 %v11299_v29, %v7254_v31 }
0x20c4   :  { %v12954_v20 = vpop.eup %12953 }
0x20c5   :  { %v7255_v38 = vmul.f32 %v12954_v20, %v7239_v12  ;;  %v7270_v42 = vadd.f32 %v11300_v0, %v7262_v37  ;;  %v11310_v37 = vld [vmem:[%s14723_s8 + $0x28] sm:$0xff]  ;;  %v11311_v20 = vld [vmem:[%s14723_s8 + $0x30] sm:$0xff] }
0x20c7   :  { %v7263_v39 = vmul.f32 %v11299_v29, %v7255_v38  ;;  %12256 = vmatprep.mubr.msk.f32.mxu1 %vm179_vm0, %v7270_v42 }
0x20c9   :  { %v7271_v43 = vadd.f32 %v11300_v0, %v7263_v39  ;;  %v11309_v0 = vld [vmem:[%s14723_s8 + $0x20] sm:$0xff] }
0x20ca   :  { %v12667_v38 = vpack.c.bf16 %v11310_v37, %v11309_v0 }
0x20cb   :  { %12257 = vmatmul.mubr.msk.f32.vlgmr.msra.gmra.mrb[84].mxu1 %vm179_vm0, %v7271_v43 }
0x20cc   :  { %12668 = vmatprep.subr.bf16.mxu1 %v12667_v38 }
0x20cd   :  { %12670 = vmatpush3.bf16.msra.mxu1 %v12667_v38 }
0x219e   :  { %v12258_v52 = vpop.f32.mrb[84].mxu1 }
0x219f   :  { %v7372_v55 = vadd.f32 %v12258_v52, %v11301_v54  ;;  %v7366_v56 = vpop.f32.mrb[85].mxu1 }
0x21a0   :  { %v7367_v57 = vadd.f32 %v11301_v54, %v7366_v56  ;;  %v11321_v56 = vld [vmem:[%s14725_s19 + $0x1] ss:$0 sm:$0xff]  ;;  %s14745_s19 = smov 16  }
0x21a1   :  { %v7376_v40 = vmul.f32 %v7372_v55, %v7372_v55 }
0x21a2   :  { %v7375_v60 = vmul.f32 %v7367_v57, %v7367_v57 }
0x21a3   :  { %v7378_v61 = vmul.f32 %v7376_v40, %v7372_v55 }
0x21a4   :  { %v7377_v2 = vmul.f32 %v7375_v60, %v7367_v57 }
0x21a5   :  { %v7380_v3 = vmul.f32 0.044715, %v7378_v61 }
0x21a6   :  { %v7379_v4 = vmul.f32 0.044715, %v7377_v2 }
0x21a7   :  { %v7382_v5 = vadd.f32 %v7380_v3, %v7372_v55 }
0x21a8   :  { %v7381_v6 = vadd.f32 %v7379_v4, %v7367_v57 }
0x21a9   :  { %v7384_v7 = vmul.f32 0.7978846, %v7382_v5 }
0x21aa   :  { %v7383_v9 = vmul.f32 0.7978846, %v7381_v6 }
0x21ab   :  { %12955 = vtanh.f32 %v7384_v7 }
0x21ac   :  { %12957 = vtanh.f32 %v7383_v9 }
0x21b5   :  { %v12956_v28 = vpop.eup %12955 }
0x21b6   :  { %v12958_v34 = vpop.eup %12957  ;;  %v7388_v30 = vadd.f32 1.0, %v12956_v28 }
0x21b7   :  { %v7387_v32 = vadd.f32 1.0, %v12958_v34 }
0x21b8   :  { %v7390_v10 = vmul.f32 0.5, %v7388_v30 }
0x21b9   :  { %v7389_v21 = vmul.f32 0.5, %v7387_v32 }
0x21ba   :  { %v7392_v13 = vmul.f32 %v7390_v10, %v7372_v55 }
0x21bb   :  { %v7391_v12 = vmul.f32 %v7389_v21, %v7367_v57 }
0x21bd   :  { %12275 = vmatprep.mubr.msk.f32.mxu0 %vm1952_vm6, %v7391_v12 }
0x21be   :  { %12276 = vmatmul.mubr.msk.f32.vlgmr.msra.gmra.mrb[70].mxu0 %vm1952_vm6, %v7392_v13 }
0x21bf   :  { %12301 = vmatprep.mubr.msk.f32.mxu0 %vm13109_vm1, %v13108_v36 }
0x2291   :  { %v12277_v18 = vpop.f32.mrb[70].mxu0 }
0x2292   :  { %v7477_v16 = vadd.f32 %v12277_v18, %v11304_v11  ;;  %v7471_v41 = vpop.f32.mrb[71].mxu0 }
0x2293   :  { %v7472_v14 = vadd.f32 %v11304_v11, %v7471_v41 }
0x2294   :  { %v7481_v15 = vadd.f32 %v7477_v16, %v7271_v43 }
0x2295   :  { %v7480_v63 = vadd.f32 %v7472_v14, %v7270_v42  ;;  %v11312_v42 = vld [vmem:[%s14723_s8 + $0x38] sm:$0xff]  ;;  %s14742_s8 = smov 40  }
0x2296   :  { %v7485_v17 = vsel %vm179_vm0, %v7481_v15, 0.0  ;;  %v12671_v39 = vpack.c.bf16 %v11312_v42, %v11311_v20 }
0x2297   :  { %7486 = vadd.xlane.f32.xlu1 %v7485_v17  ;;  %v7482_v19 = vsel %vm179_vm0, %v7480_v63, 0.0 }
0x2298   :  { %7483 = vadd.xlane.f32.xlu0 %v7482_v19  ;;  %12672 = vmatprep.subr.bf16.mxu1 %v12671_v39 }
0x2299   :  { %12674 = vmatpush3.bf16.msra.mxu1 %v12671_v39 }
0x229a   :  { %12289 = vmatprep.subr.mxu1 %v13108_v36 }
0x2324   :  { %v7487_v35 = vpop.xlane.xlu1 %7486 }
0x2325   :  { %v7489_v33 = vmul.f32 0.03125, %v7487_v35  ;;  %v7484_v22 = vpop.xlane.xlu0 %7483 }
0x2326   :  { %v7488_v23 = vmul.f32 0.03125, %v7484_v22 }
0x2327   :  { %v7491_v24 = vsub.f32 %v7481_v15, %v7489_v33  ;;  %v13043_v15 = vld [vmem:[%s14726_s24] sm:$0xff]  ;;  %s14746_s24 = smov 24  }
0x2328   :  { %v7490_v25 = vsub.f32 %v7480_v63, %v7488_v23 }
0x2329   :  { %v7493_v26 = vmul.f32 %v7491_v24, %v7491_v24 }
0x232a   :  { %v7492_v27 = vmul.f32 %v7490_v25, %v7490_v25 }
0x232b   :  { %v7497_v29 = vsel %vm179_vm0, %v7493_v26, 0.0 }
0x232c   :  { %7498 = vadd.xlane.f32.xlu1 %v7497_v29  ;;  %v7494_v31 = vsel %vm179_vm0, %v7492_v27, 0.0 }
0x232d   :  { %7495 = vadd.xlane.f32.xlu0 %v7494_v31 }
0x23b9   :  { %v7499_v43 = vpop.xlane.xlu1 %7498 }
0x23ba   :  { %v7501_v44 = vmul.f32 0.03125, %v7499_v43  ;;  %v7496_v59 = vpop.xlane.xlu0 %7495 }
0x23bb   :  { %v7500_v45 = vmul.f32 0.03125, %v7496_v59 }
0x23bc   :  { %v7503_v58 = vadd.f32 1e-05, %v7501_v44 }
0x23bd   :  { %v7502_v46 = vadd.f32 1e-05, %v7500_v45 }
0x23be   :  { %12959 = vrsqrt.f32 %v7503_v58 }
0x23bf   :  { %12961 = vrsqrt.f32 %v7502_v46 }
0x23c8   :  { %v12960_v47 = vpop.eup %12959 }
0x23c9   :  { %v12962_v49 = vpop.eup %12961  ;;  %v7507_v50 = vmul.f32 %v12960_v47, %v7491_v24 }
0x23ca   :  { %v7506_v51 = vmul.f32 %v12962_v49, %v7490_v25 }
0x23cb   :  { %v7515_v8 = vmul.f32 %v11307_v48, %v7507_v50 }
0x23cc   :  { %v7514_v54 = vmul.f32 %v11307_v48, %v7506_v51 }
0x23cd   :  { %v14260_v55 = vadd.f32 %v11308_v53, %v7515_v8 }
0x23ce   :  { %v14258_v52 = vadd.f32 %v11308_v53, %v7514_v54 }
0x23d0   :  { %12286 = vmatprep.mubr.msk.f32.mxu1 %vm179_vm0, %v14258_v52 }
0x23d1   :  { %12287 = vmatmul.mubr.msk.f32.vlgmr.msra.gmra.mrb[86].mxu1 %vm179_vm0, %v14260_v55 }
0x23d2   :  { %12291 = vmatprep.mubr.msk.f32.mxu1 %vm13109_vm1, %v13108_v36 }
0x24a4   :  { %v12288_v57 = vpop.f32.mrb[86].mxu1 }
0x24a5   :  { %v7620_v40 = vpop.f32.mrb[87].mxu1  ;;  %v14283_v61 = vadd.f32 %v12288_v57, %v11321_v56 }
0x24a6   :  { %v14269_v60 = vadd.f32 %v11321_v56, %v7620_v40 }
0x24a8   :  { %7798 = vrot.lane.b32.xlu1 %v14269_v60, %s13110_s0  ;;  %7630 = vrot.lane.b32.xlu0 %v14269_v60, %s13111_s5 }
0x24ac   :  { %7796 = vrot.lane.b32.xlu1 %v14269_v60, %s13112_s17  ;;  %7968 = vrot.lane.b32.xlu0 %v14269_v60, %s13113_s21 }
0x24b0   :  { %7970 = vrot.lane.b32.xlu1 %v14269_v60, %s13114_s29  ;;  %8140 = vrot.lane.b32.xlu0 %v14269_v60, %s13115_s2 }
0x24b4   :  { %8142 = vrot.lane.b32.xlu1 %v14269_v60, %s13116_s7  ;;  %8481 = vrot.lane.b32.xlu0 %v14283_v61, %s13110_s0 }
0x24b8   :  { %8313 = vrot.lane.b32.xlu1 %v14283_v61, %s13111_s5  ;;  %8653 = vrot.lane.b32.xlu0 %v14283_v61, %s13114_s29 }
0x24bc   :  { %8479 = vrot.lane.b32.xlu1 %v14283_v61, %s13112_s17  ;;  %8825 = vrot.lane.b32.xlu0 %v14283_v61, %s13116_s7 }
0x24c0   :  { %8651 = vrot.lane.b32.xlu1 %v14283_v61, %s13113_s21 }
0x24c4   :  { %8823 = vrot.lane.b32.xlu1 %v14283_v61, %s13115_s2 }
0x251a   :  { %v7799_v2 = vpop.permute.xlu1 %7798  ;;  %v7631_v3 = vpop.permute.xlu0 %7630 }
0x251b   :  { %12290 = vmatpush3.xpose.msk.msra.mxu1 %vm325_vm2, %v7631_v3  ;;  %12300 = vmatpush3.xpose.msk.msra.mxu0 %vm325_vm2, %v7799_v2 }
0x251c   :  { %12309 = vmatprep.subr.mxu0 %v13108_v36  ;;  %12294 = vmatprep.subr.mxu1 %v13108_v36 }
0x251e   :  { %v7797_v4 = vpop.permute.xlu1 %7796  ;;  %12292 = vmatmul.mubr.msk.f32.vlgmr.msra.gmra.mrb[88].mxu1 %vm325_vm2, %v14269_v60  ;;  %v7969_v5 = vpop.permute.xlu0 %7968 }
0x251f   :  { %12302 = vmatmul.mubr.msk.f32.vlgmr.msra.gmra.mrb[72].mxu0 %vm325_vm2, %v7797_v4  ;;  %12296 = vmatprep.mubr.msk.f32.mxu1 %vm13109_vm1, %v13108_v36 }
0x2520   :  { %12311 = vmatprep.mubr.msk.f32.mxu0 %vm13109_vm1, %v13108_v36 }
0x2522   :  { %v7971_v6 = vpop.permute.xlu1 %7970  ;;  %v8141_v7 = vpop.permute.xlu0 %8140 }
0x2523   :  { %12310 = vmatpush3.xpose.msk.msra.mxu0 %vm325_vm2, %v7971_v6 }
0x2524   :  { %12319 = vmatprep.subr.mxu0 %v13108_v36 }
0x2526   :  { %v8143_v9 = vpop.permute.xlu1 %8142  ;;  %12312 = vmatmul.mubr.msk.f32.vlgmr.msra.gmra.mrb[74].mxu0 %vm325_vm2, %v7969_v5  ;;  %v8482_v28 = vpop.permute.xlu0 %8481 }
0x2527   :  { %12320 = vmatpush3.xpose.msk.msra.mxu0 %vm325_vm2, %v8143_v9  ;;  %12321 = vmatprep.mubr.msk.f32.mxu0 %vm13109_vm1, %v13108_v36 }
0x2528   :  { %12329 = vmatprep.subr.mxu0 %v13108_v36 }
0x252a   :  { %v8314_v34 = vpop.permute.xlu1 %8313  ;;  %12322 = vmatmul.mubr.msk.f32.vlgmr.msra.gmra.mrb[76].mxu0 %vm325_vm2, %v8141_v7  ;;  %v8654_v32 = vpop.permute.xlu0 %8653 }
0x252b   :  { %12330 = vmatpush3.xpose.msk.msra.mxu0 %vm325_vm2, %v8314_v34  ;;  %12331 = vmatprep.mubr.msk.f32.mxu0 %vm13109_vm1, %v13108_v36 }
0x252c   :  { %12339 = vmatprep.subr.mxu0 %v13108_v36 }
0x252e   :  { %v8480_v30 = vpop.permute.xlu1 %8479  ;;  %12332 = vmatmul.mubr.msk.f32.vlgmr.msra.gmra.mrb[78].mxu0 %vm325_vm2, %v14283_v61  ;;  %v8826_v21 = vpop.permute.xlu0 %8825 }
0x252f   :  { %12340 = vmatpush3.xpose.msk.msra.mxu0 %vm325_vm2, %v8482_v28  ;;  %12341 = vmatprep.mubr.msk.f32.mxu0 %vm13109_vm1, %v13108_v36 }
0x2530   :  { %12349 = vmatprep.subr.mxu0 %v13108_v36 }
0x2532   :  { %12342 = vmatmul.mubr.msk.f32.vlgmr.msra.gmra.mrb[80].mxu0 %vm325_vm2, %v8480_v30  ;;  %v8652_v10 = vpop.permute.xlu1 %8651 }
0x2533   :  { %12350 = vmatpush3.xpose.msk.msra.mxu0 %vm325_vm2, %v8654_v32  ;;  %12351 = vmatprep.mubr.msk.f32.mxu0 %vm13109_vm1, %v13108_v36 }
0x2534   :  { %12359 = vmatprep.subr.mxu0 %v13108_v36 }
0x2536   :  { %12352 = vmatmul.mubr.msk.f32.vlgmr.msra.gmra.mrb[82].mxu0 %vm325_vm2, %v8652_v10  ;;  %v8824_v12 = vpop.permute.xlu1 %8823 }
0x2537   :  { %12360 = vmatpush3.xpose.msk.msra.mxu0 %vm325_vm2, %v8826_v21  ;;  %12361 = vmatprep.mubr.msk.f32.mxu0 %vm13109_vm1, %v13108_v36 }
0x253a   :  { %12362 = vmatmul.mubr.msk.f32.vlgmr.msra.gmra.mrb[84].mxu0 %vm325_vm2, %v8824_v12 }
0x25f1   :  { %v7702_v13 = vpop.f32.mrb[88].mxu1 }
0x25f2   :  { %v7706_v11 = vmul.f32 0.35355338, %v7702_v13  ;;  %v12293_v18 = vpop.f32.mrb[89].mxu1  ;;  %v7870_v16 = vpop.f32.mrb[72].mxu0 }
0x25f3   :  { %v7874_v41 = vmul.f32 0.35355338, %v7870_v16  ;;  %v12303_v14 = vpop.f32.mrb[73].mxu0 }
0x25f4   :  { %v7707_v63 = vadd.f32 %v13043_v15, %v7706_v11 }
0x25f5   :  { %v7875_v17 = vadd.f32 %v13043_v15, %v7874_v41 }
0x25f6   :  { %v7708_v19 = vsel %vm325_vm2, %v7707_v63, -inf }
0x25f7   :  { %7709 = vmax.xlane.f32.xlu0 %v7708_v19  ;;  %v7876_v35 = vsel %vm325_vm2, %v7875_v17, -inf }
0x25f8   :  { %7877 = vmax.xlane.f32.xlu1 %v7876_v35 }
0x25f9   :  { %v8042_v33 = vpop.f32.mrb[74].mxu0 }
0x25fa   :  { %v8046_v22 = vmul.f32 0.35355338, %v8042_v33  ;;  %v12313_v23 = vpop.f32.mrb[75].mxu0 }
0x25fc   :  { %v14343_v24 = vadd.f32 %v13043_v15, %v8046_v22 }
0x25fd   :  { %v8214_v25 = vpop.f32.mrb[76].mxu0 }
0x25fe   :  { %v8218_v26 = vmul.f32 0.35355338, %v8214_v25  ;;  %v12323_v27 = vpop.f32.mrb[77].mxu0  ;;  %v8048_v29 = vsel %vm325_vm2, %v14343_v24, -inf }
0x25ff   :  { %8049 = vmax.xlane.f32.xlu0 %v8048_v29 }
0x2600   :  { %v8219_v31 = vadd.f32 %v13043_v15, %v8218_v26 }
0x2601   :  { %v8385_v0 = vpop.f32.mrb[78].mxu0 }
0x2602   :  { %v8389_v37 = vmul.f32 0.35355338, %v8385_v0  ;;  %v12333_v20 = vpop.f32.mrb[79].mxu0  ;;  %v8220_v38 = vsel %vm325_vm2, %v8219_v31, -inf }
0x2603   :  { %8221 = vmax.xlane.f32.xlu0 %v8220_v38 }
0x2604   :  { %v8390_v42 = vadd.f32 %v13043_v15, %v8389_v37 }
0x2605   :  { %v8553_v39 = vpop.f32.mrb[80].mxu0 }
0x2606   :  { %v8557_v43 = vmul.f32 0.35355338, %v8553_v39  ;;  %v12343_v44 = vpop.f32.mrb[81].mxu0  ;;  %v8391_v59 = vsel %vm325_vm2, %v8390_v42, -inf }
0x2607   :  { %8392 = vmax.xlane.f32.xlu0 %v8391_v59 }
0x2608   :  { %v8558_v45 = vadd.f32 %v13043_v15, %v8557_v43 }
0x2609   :  { %v8725_v58 = vpop.f32.mrb[82].mxu0 }
0x260a   :  { %v8729_v46 = vmul.f32 0.35355338, %v8725_v58  ;;  %v12353_v47 = vpop.f32.mrb[83].mxu0  ;;  %v8559_v48 = vsel %vm325_vm2, %v8558_v45, -inf }
0x260b   :  { %8560 = vmax.xlane.f32.xlu1 %v8559_v48 }
0x260c   :  { %v8730_v49 = vadd.f32 %v13043_v15, %v8729_v46 }
0x260d   :  { %v8897_v50 = vpop.f32.mrb[84].mxu0 }
0x260e   :  { %v12363_v51 = vpop.f32.mrb[85].mxu0  ;;  %v8731_v53 = vsel %vm325_vm2, %v8730_v49, -inf  ;;  %v8901_v8 = vmul.f32 0.35355338, %v8897_v50 }
0x260f   :  { %8732 = vmax.xlane.f32.xlu0 %v8731_v53 }
0x2610   :  { %v8902_v54 = vadd.f32 %v13043_v15, %v8901_v8 }
0x2612   :  { %v8903_v56 = vsel %vm325_vm2, %v8902_v54, -inf }
0x261c   :  { %7719 = vrot.lane.b32.xlu1 %v14269_v60, %s13117_s10 }
0x2640   :  { %8904 = vmax.xlane.f32.xlu1 %v8903_v56 }
0x2651   :  { %8059 = vrot.lane.b32.xlu1 %v14269_v60, %s13118_s11 }
0x2655   :  { %8231 = vrot.lane.b32.xlu1 %v14269_v60, %s14742_s8 }
0x2659   :  { %8402 = vrot.lane.b32.xlu1 %v14283_v61, %s13117_s10  ;;  %s14743_s10 = smov 56  }
0x2684   :  { %v7710_v57 = vpop.xlane.xlu0 %7709 }
0x2685   :  { %v7711_v40 = vsub.f32 %v7707_v63, %v7710_v57  ;;  %v7878_v2 = vpop.xlane.xlu1 %7877 }
0x2686   :  { %v7879_v3 = vsub.f32 %v7875_v17, %v7878_v2 }
0x2687   :  { %v7712_v4 = vmul.f32 1.442695, %v7711_v40 }
0x2688   :  { %v7880_v5 = vmul.f32 1.442695, %v7879_v3 }
0x2689   :  { %12963 = vpow2.f32 %v7712_v4 }
0x268a   :  { %12965 = vpow2.f32 %v7880_v5 }
0x268c   :  { %v8050_v6 = vpop.xlane.xlu0 %8049 }
0x268d   :  { %v8051_v18 = vsub.f32 %v14343_v24, %v8050_v6 }
0x268f   :  { %v8052_v41 = vmul.f32 1.442695, %v8051_v18 }
0x2690   :  { %v8222_v7 = vpop.xlane.xlu0 %8221 }
0x2691   :  { %v8223_v9 = vsub.f32 %v8219_v31, %v8222_v7 }
0x2693   :  { %v12964_v28 = vpop.eup %12963  ;;  %v8224_v34 = vmul.f32 1.442695, %v8223_v9 }
0x2694   :  { %v14360_v30 = vpop.eup %12965  ;;  %v7714_v32 = vsel %vm325_vm2, %v12964_v28, 0.0  ;;  %v8393_v16 = vpop.xlane.xlu0 %8392 }
0x2695   :  { %12967 = vpow2.f32 %v8224_v34  ;;  %7715 = vadd.xlane.f32.xlu0 %v7714_v32  ;;  %v7882_v10 = vsel %vm325_vm2, %v14360_v30, 0.0  ;;  %v8394_v14 = vsub.f32 %v8390_v42, %v8393_v16 }
0x2696   :  { %7883 = vadd.xlane.f32.xlu1 %v7882_v10  ;;  %12969 = vpow2.f32 %v8052_v41  ;;  %v11314_v41 = vld [vmem:[%s14727_s30 + $0x20] sm:$0xff] }
0x2697   :  { %v8395_v63 = vmul.f32 1.442695, %v8394_v14  ;;  %v11315_v14 = vld [vmem:[%s14727_s30 + $0x28] sm:$0xff] }
0x2698   :  { %v8561_v21 = vpop.xlane.xlu1 %8560 }
0x2699   :  { %12971 = vpow2.f32 %v8395_v63  ;;  %v8562_v19 = vsub.f32 %v8558_v45, %v8561_v21  ;;  %v12675_v63 = vpack.c.bf16 %v11315_v14, %v11314_v41 }
0x269b   :  { %v8563_v33 = vmul.f32 1.442695, %v8562_v19  ;;  %12676 = vmatprep.subr.bf16.mxu0 %v12675_v63  ;;  %v11316_v19 = vld [vmem:[%s14727_s30 + $0x30] sm:$0xff] }
0x269c   :  { %v7720_v12 = vpop.permute.xlu1 %7719  ;;  %v8733_v15 = vpop.xlane.xlu0 %8732  ;;  %12678 = vmatpush3.bf16.msra.mxu0 %v12675_v63 }
0x269d   :  { %12295 = vmatpush3.msra.mxu1 %v7720_v12  ;;  %v8734_v17 = vsub.f32 %v8730_v49, %v8733_v15 }
0x269e   :  { %12304 = vmatprep.subr.mxu1 %v13108_v36 }
0x269f   :  { %v14366_v13 = vpop.eup %12967  ;;  %v8735_v35 = vmul.f32 1.442695, %v8734_v17 }
0x26a0   :  { %v8226_v11 = vsel %vm325_vm2, %v14366_v13, 0.0  ;;  %v12970_v22 = vpop.eup %12969 }
0x26a1   :  { %8227 = vadd.xlane.f32.xlu1 %v8226_v11  ;;  %12973 = vpow2.f32 %v8735_v35  ;;  %v11317_v35 = vld [vmem:[%s14727_s30 + $0x38] sm:$0xff] }
0x26a2   :  { %12975 = vpow2.f32 %v8563_v33  ;;  %v11361_v33 = vld [vmem:[%s14729_s12 + $0x20] sm:$0xff] }
0x26a3   :  { %v12972_v23 = vpop.eup %12971 }
0x26a4   :  { %v8397_v24 = vsel %vm325_vm2, %v12972_v23, 0.0 }
0x26ab   :  { %7887 = vrot.lane.b32.xlu0 %v14269_v60, %s14743_s10  ;;  %v8054_v60 = vsel %vm325_vm2, %v12970_v22, 0.0  ;;  %v14377_v26 = vpop.eup %12973 }
0x26ac   :  { %v8737_v31 = vsel %vm325_vm2, %v14377_v26, 0.0  ;;  %v12976_v0 = vpop.eup %12975 }
0x26ad   :  { %v8565_v37 = vsel %vm325_vm2, %v12976_v0, 0.0 }
0x26b2   :  { %8570 = vrot.lane.b32.xlu1 %v14283_v61, %s14743_s10 }
0x26ca   :  { %8055 = vadd.xlane.f32.xlu0 %v8054_v60  ;;  %v12679_v60 = vpack.c.bf16 %v11317_v35, %v11316_v19  ;;  %v11352_v35 = vld [vmem:[%s14732_s1 + $0x1] ss:$0 sm:$0xff] }
0x26cc   :  { %12680 = vmatprep.subr.bf16.mxu0 %v12679_v60 }
0x26cd   :  { %v8905_v25 = vpop.xlane.xlu1 %8904  ;;  %12682 = vmatpush3.bf16.msra.mxu0 %v12679_v60 }
0x26ce   :  { %v8906_v27 = vsub.f32 %v8902_v54, %v8905_v25  ;;  %8398 = vadd.xlane.f32.xlu0 %v8397_v24 }
0x26d0   :  { %v8907_v29 = vmul.f32 1.442695, %v8906_v27 }
0x26d1   :  { %v8060_v42 = vpop.permute.xlu1 %8059 }
0x26d2   :  { %12977 = vpow2.f32 %v8907_v29  ;;  %8738 = vadd.xlane.f32.xlu0 %v8737_v31 }
0x26d5   :  { %v8232_v39 = vpop.permute.xlu1 %8231 }
0x26d6   :  { %8566 = vadd.xlane.f32.xlu1 %v8565_v37 }
0x26d9   :  { %v8403_v43 = vpop.permute.xlu1 %8402 }
0x26dc   :  { %v14382_v20 = vpop.eup %12977 }
0x26dd   :  { %v8909_v38 = vsel %vm325_vm2, %v14382_v20, 0.0 }
0x26de   :  { %8910 = vadd.xlane.f32.xlu0 %v8909_v38 }
0x26e7   :  { %8914 = vrot.lane.b32.xlu1 %v14283_v61, %s14742_s8 }
0x26f4   :  { %8742 = vrot.lane.b32.xlu0 %v14283_v61, %s13118_s11  ;;  %s14744_s11 = smov 8  }
0x2722   :  { %v7716_v44 = vpop.xlane.xlu0 %7715 }
0x2723   :  { %12979 = vrcp.f32 %v7716_v44  ;;  %v7884_v59 = vpop.xlane.xlu1 %7883 }
0x2724   :  { %12981 = vrcp.f32 %v7884_v59  ;;  %v11363_v59 = vld [vmem:[%s14729_s12 + $0x30] sm:$0xff] }
0x2726   :  { %v7888_v47 = vpop.permute.xlu0 %7887 }
0x272d   :  { %v12980_v45 = vpop.eup %12979 }
0x272e   :  { %v7718_v58 = vmul.f32 %v12980_v45, %v12964_v28  ;;  %v12982_v46 = vpop.eup %12981  ;;  %v8228_v61 = vpop.xlane.xlu1 %8227  ;;  %v11364_v45 = vld [vmem:[%s14729_s12 + $0x38] sm:$0xff] }
0x272f   :  { %v7886_v48 = vmul.f32 %v12982_v46, %v14360_v30 }
0x2730   :  { %12297 = vmatmul.mubr.msk.f32.vlgmr.msra.gmra.mrb[90].mxu1 %vm325_vm2, %v7718_v58  ;;  %v12695_v58 = vpack.c.bf16 %v11364_v45, %v11363_v59 }
0x2731   :  { %12305 = vmatpush3.msra.mxu1 %v7888_v47  ;;  %12306 = vmatprep.mubr.msk.f32.mxu1 %vm13109_vm1, %v13108_v36  ;;  %v11348_v47 = vld [vmem:[%s14728_s6 + $0x1] ss:$0 sm:$0xff] }
0x2732   :  { %12314 = vmatprep.subr.mxu1 %v13108_v36  ;;  %v8571_v51 = vpop.permute.xlu1 %8570 }
0x2734   :  { %12307 = vmatmul.mubr.msk.f32.vlgmr.msra.gmra.mrb[92].mxu1 %vm325_vm2, %v7886_v48 }
0x2735   :  { %12315 = vmatpush3.msra.mxu1 %v8060_v42  ;;  %12316 = vmatprep.mubr.msk.f32.mxu1 %vm13109_vm1, %v13108_v36 }
0x2736   :  { %12324 = vmatprep.subr.mxu1 %v13108_v36 }
0x2757   :  { %v8056_v49 = vpop.xlane.xlu0 %8055 }
0x2758   :  { %12983 = vrcp.f32 %v8056_v49 }
0x2759   :  { %12985 = vrcp.f32 %v8228_v61 }
0x275b   :  { %v8399_v50 = vpop.xlane.xlu0 %8398 }
0x275c   :  { %12987 = vrcp.f32 %v8399_v50 }
0x275f   :  { %v8739_v54 = vpop.xlane.xlu0 %8738 }
0x2762   :  { %v12984_v53 = vpop.eup %12983 }
0x2763   :  { %v8058_v8 = vmul.f32 %v12984_v53, %v12970_v22  ;;  %v8567_v56 = vpop.xlane.xlu1 %8566  ;;  %v12986_v57 = vpop.eup %12985 }
0x2764   :  { %12989 = vrcp.f32 %v8567_v56  ;;  %v8230_v40 = vmul.f32 %v12986_v57, %v14366_v13 }
0x2765   :  { %12317 = vmatmul.mubr.msk.f32.vlgmr.msra.gmra.mrb[94].mxu1 %vm325_vm2, %v8058_v8  ;;  %12991 = vrcp.f32 %v8739_v54  ;;  %v11366_v8 = vld [vmem:[%s14733_s26 + $0x1] ss:$0 sm:$0xff] }
0x2766   :  { %12325 = vmatpush3.msra.mxu1 %v8232_v39  ;;  %12326 = vmatprep.mubr.msk.f32.mxu1 %vm13109_vm1, %v13108_v36  ;;  %v12988_v2 = vpop.eup %12987 }
0x2767   :  { %12334 = vmatprep.subr.mxu1 %v13108_v36  ;;  %v8401_v3 = vmul.f32 %v12988_v2, %v12972_v23  ;;  %v8915_v34 = vpop.permute.xlu1 %8914  ;;  %v11362_v23 = vld [vmem:[%s14729_s12 + $0x28] sm:$0xff] }
0x2768   :  { %v12691_v25 = vpack.c.bf16 %v11362_v23, %v11361_v33 }
0x2769   :  { %12327 = vmatmul.mubr.msk.f32.vlgmr.msra.gmra.mrb[96].mxu1 %vm325_vm2, %v8230_v40 }
0x276a   :  { %12335 = vmatpush3.msra.mxu1 %v8403_v43  ;;  %12336 = vmatprep.mubr.msk.f32.mxu1 %vm13109_vm1, %v13108_v36 }
0x276b   :  { %v8911_v4 = vpop.xlane.xlu0 %8910  ;;  %12344 = vmatprep.subr.mxu1 %v13108_v36  ;;  %12692 = vmatprep.subr.bf16.mxu0 %v12691_v25 }
0x276c   :  { %12993 = vrcp.f32 %v8911_v4 }
0x276d   :  { %12337 = vmatmul.mubr.msk.f32.vlgmr.msra.gmra.mrb[98].mxu1 %vm325_vm2, %v8401_v3 }
0x276e   :  { %v12990_v5 = vpop.eup %12989  ;;  %12345 = vmatpush3.msra.mxu1 %v8571_v51  ;;  %12346 = vmatprep.mubr.msk.f32.mxu1 %vm13109_vm1, %v13108_v36 }
0x276f   :  { %v8569_v6 = vmul.f32 %v12990_v5, %v12976_v0  ;;  %v8743_v7 = vpop.permute.xlu0 %8742  ;;  %12354 = vmatprep.subr.mxu1 %v13108_v36  ;;  %v12992_v9 = vpop.eup %12991 }
0x2770   :  { %v8741_v28 = vmul.f32 %v12992_v9, %v14377_v26 }
0x2771   :  { %12347 = vmatmul.mubr.msk.f32.vlgmr.msra.gmra.mrb[100].mxu1 %vm325_vm2, %v8569_v6 }
0x2772   :  { %12355 = vmatpush3.msra.mxu1 %v8743_v7  ;;  %12356 = vmatprep.mubr.msk.f32.mxu1 %vm13109_vm1, %v13108_v36 }
0x2773   :  { %12364 = vmatprep.subr.mxu1 %v13108_v36 }
0x2775   :  { %12357 = vmatmul.mubr.msk.f32.vlgmr.msra.gmra.mrb[102].mxu1 %vm325_vm2, %v8741_v28 }
0x2776   :  { %v12994_v30 = vpop.eup %12993  ;;  %12365 = vmatpush3.msra.mxu1 %v8915_v34  ;;  %12366 = vmatprep.mubr.msk.f32.mxu1 %vm13109_vm1, %v13108_v36  ;;  %v11353_v34 = vld [vmem:[%s14730_s20 + $0x20] sm:$0xff] }
0x2777   :  { %v8913_v32 = vmul.f32 %v12994_v30, %v14382_v20  ;;  %v11354_v30 = vld [vmem:[%s14730_s20 + $0x28] sm:$0xff] }
0x2779   :  { %12367 = vmatmul.mubr.msk.f32.vlgmr.msra.gmra.mrb[104].mxu1 %vm325_vm2, %v8913_v32  ;;  %v12683_v32 = vpack.c.bf16 %v11354_v30, %v11353_v34 }
0x277b   :  { %12684 = vmatprep.subr.bf16.mxu1 %v12683_v32 }
0x277c   :  { %12686 = vmatpush3.bf16.msra.mxu1 %v12683_v32 }
0x2803   :  { %v7791_v10 = vpop.f32.mrb[90].mxu1 }
0x2804   :  { %7795 = vst.msk [vmem:[#allocation2] sm:$0xff] %vm325_vm2, %v7791_v10  ;;  %v12298_v21 = vpop.f32.mrb[91].mxu1  ;;  %v11355_v10 = vld [vmem:[%s14730_s20 + $0x30] sm:$0xff] }
0x2805   :  { %v11356_v21 = vld [vmem:[%s14730_s20 + $0x38] sm:$0xff] }
0x2807   :  { %v7959_v12 = vpop.f32.mrb[92].mxu1 }
0x2808   :  { %7964 = vrot.lane.b32.xlu0 %v7959_v12, %s14744_s11  ;;  %v12308_v13 = vpop.f32.mrb[93].mxu1  ;;  %v12687_v12 = vpack.c.bf16 %v11356_v21, %v11355_v10 }
0x280a   :  { %12688 = vmatprep.subr.bf16.mxu1 %v12687_v12 }
0x280b   :  { %12690 = vmatpush3.bf16.msra.mxu1 %v12687_v12 }
0x280c   :  { %12402 = vmatprep.subr.mxu1 %v13108_v36 }
0x2838   :  { %v8131_v11 = vpop.f32.mrb[94].mxu1 }
0x2839   :  { %8136 = vrot.lane.b32.xlu1 %v8131_v11, %s14745_s19  ;;  %v12318_v18 = vpop.f32.mrb[95].mxu1 }
0x283c   :  { %v8303_v16 = vpop.f32.mrb[96].mxu1 }
0x283d   :  { %8308 = vrot.lane.b32.xlu1 %v8303_v16, %s14746_s24  ;;  %v12328_v15 = vpop.f32.mrb[97].mxu1 }
0x2840   :  { %v8474_v17 = vpop.f32.mrb[98].mxu1 }
0x2841   :  { %8478 = vst.msk [vmem:[#allocation2 + $0x8] sm:$0xff] %vm325_vm2, %v8474_v17  ;;  %v12338_v22 = vpop.f32.mrb[99].mxu1  ;;  %v11351_v17 = vld [vmem:[%s14731_s27 + $0x1] ss:$0 sm:$0xff] }
0x2844   :  { %v8642_v24 = vpop.f32.mrb[100].mxu1 }
0x2845   :  { %8647 = vrot.lane.b32.xlu0 %v8642_v24, %s14744_s11  ;;  %v12348_v26 = vpop.f32.mrb[101].mxu1 }
0x2846   :  { %v11358_v26 = vld [vmem:[%s14734_s28 + $0x1] ss:$0 sm:$0xff] }
0x2848   :  { %v8814_v27 = vpop.f32.mrb[102].mxu1 }
0x2849   :  { %8819 = vrot.lane.b32.xlu0 %v8814_v27, %s14745_s19  ;;  %v12358_v29 = vpop.f32.mrb[103].mxu1 }
0x284c   :  { %v8986_v31 = vpop.f32.mrb[104].mxu1 }
0x284d   :  { %8991 = vrot.lane.b32.xlu1 %v8986_v31, %s14746_s24  ;;  %v12368_v0 = vpop.f32.mrb[105].mxu1 }
0x287a   :  { %v7965_v37 = vpop.permute.xlu0 %7964 }
0x287b   :  { %7967 = vst.msk [vmem:[#allocation2] sm:$0xff] %vm661_vm3, %v7965_v37 }
0x28ab   :  { %v8137_v20 = vpop.permute.xlu1 %8136 }
0x28ac   :  { %8139 = vst.msk [vmem:[#allocation2] sm:$0xff] %vm834_vm4, %v8137_v20 }
0x28af   :  { %v8309_v38 = vpop.permute.xlu1 %8308 }
0x28b0   :  { %8311 = vst.msk [vmem:[#allocation2] sm:$0xff] %vm1007_vm5, %v8309_v38 }
0x28b7   :  { %v8648_v42 = vpop.permute.xlu0 %8647  ;;  %v8995_v39 = vld [vmem:[#allocation2] sm:$0xff] }
0x28b8   :  { %8650 = vst.msk [vmem:[#allocation2 + $0x8] sm:$0xff] %vm661_vm3, %v8648_v42  ;;  %12377 = vmatprep.mubr.msk.f32.mxu0 %vm179_vm0, %v8995_v39 }
0x28bb   :  { %v8820_v43 = vpop.permute.xlu0 %8819 }
0x28bc   :  { %8822 = vst.msk [vmem:[#allocation2 + $0x8] sm:$0xff] %vm834_vm4, %v8820_v43 }
0x28bf   :  { %v8992_v44 = vpop.permute.xlu1 %8991 }
0x28c0   :  { %8994 = vst.msk [vmem:[#allocation2 + $0x8] sm:$0xff] %vm1007_vm5, %v8992_v44 }
0x28c7   :  { %v8996_v46 = vld [vmem:[#allocation2 + $0x8] sm:$0xff] }
0x28c8   :  { %12378 = vmatmul.mubr.msk.f32.vlgmr.msra.gmra.mrb[86].mxu0 %vm179_vm0, %v8996_v46 }
0x28c9   :  { %12694 = vmatpush3.bf16.msra.mxu0 %v12691_v25  ;;  %12399 = vmatprep.mubr.msk.f32.mxu0 %vm179_vm0, %v14038_v62 }
0x28ca   :  { %12696 = vmatprep.subr.bf16.mxu0 %v12695_v58 }
0x28cd   :  { %12698 = vmatpush3.bf16.msra.mxu0 %v12695_v58 }
0x28ce   :  { %12412 = vmatprep.subr.mxu0 %v13108_v36 }
0x28d0   :  { %12400 = vmatmul.mubr.msk.f32.vlgmr.msra.gmra.mrb[88].mxu0 %vm179_vm0, %v14040_v1 }
0x28d1   :  { %12414 = vmatprep.mubr.msk.f32.mxu0 %vm13109_vm1, %v13108_v36 }
0x299b   :  { %v12379_v48 = vpop.f32.mrb[86].mxu0 }
0x299c   :  { %v9081_v61 = vadd.f32 %v12379_v48, %v11348_v47  ;;  %v9075_v49 = vpop.f32.mrb[87].mxu0 }
0x299d   :  { %v9076_v50 = vadd.f32 %v11348_v47, %v9075_v49 }
0x299e   :  { %v9085_v51 = vadd.f32 %v9081_v61, %v14260_v55 }
0x299f   :  { %v9084_v53 = vadd.f32 %v9076_v50, %v14258_v52 }
0x29a0   :  { %v9089_v62 = vsel %vm179_vm0, %v9085_v51, 0.0 }
0x29a1   :  { %9090 = vadd.xlane.f32.xlu1 %v9089_v62  ;;  %v9086_v54 = vsel %vm179_vm0, %v9084_v53, 0.0 }
0x29a2   :  { %9087 = vadd.xlane.f32.xlu0 %v9086_v54 }
0x29a3   :  { %v12401_v1 = vpop.f32.mrb[88].mxu0 }
0x29a4   :  { %v14459_v56 = vadd.f32 %v12401_v1, %v11366_v8  ;;  %v9301_v57 = vpop.f32.mrb[89].mxu0 }
0x29a5   :  { %v14461_v40 = vadd.f32 %v11366_v8, %v9301_v57 }
0x29b2   :  { %9650 = vrot.lane.b32.xlu1 %v14461_v40, %s13113_s21 }
0x2a2e   :  { %v9091_v55 = vpop.xlane.xlu1 %9090 }
0x2a2f   :  { %v9093_v52 = vmul.f32 0.03125, %v9091_v55  ;;  %v9088_v2 = vpop.xlane.xlu0 %9087 }
0x2a30   :  { %v9092_v3 = vmul.f32 0.03125, %v9088_v2 }
0x2a31   :  { %v9095_v4 = vsub.f32 %v9085_v51, %v9093_v52 }
0x2a32   :  { %v9094_v5 = vsub.f32 %v9084_v53, %v9092_v3  ;;  %v9651_v37 = vpop.permute.xlu1 %9650 }
0x2a33   :  { %v9097_v9 = vmul.f32 %v9095_v4, %v9095_v4 }
0x2a34   :  { %v9096_v6 = vmul.f32 %v9094_v5, %v9094_v5 }
0x2a35   :  { %v9101_v28 = vsel %vm179_vm0, %v9097_v9, 0.0 }
0x2a36   :  { %v9098_v7 = vsel %vm179_vm0, %v9096_v6, 0.0 }
0x2a37   :  { %9099 = vadd.xlane.f32.xlu0 %v9098_v7 }
0x2a3b   :  { %9102 = vadd.xlane.f32.xlu0 %v9101_v28 }
0x2a51   :  { %9478 = vrot.lane.b32.xlu0 %v14461_v40, %s13112_s17 }
0x2a55   :  { %9822 = vrot.lane.b32.xlu0 %v14461_v40, %s13115_s2 }
0x2a59   :  { %10160 = vrot.lane.b32.xlu0 %v14459_v56, %s13112_s17 }
0x2a5d   :  { %10332 = vrot.lane.b32.xlu0 %v14459_v56, %s13113_s21 }
0x2a61   :  { %10504 = vrot.lane.b32.xlu0 %v14459_v56, %s13115_s2 }
0x2ac4   :  { %v9100_v13 = vpop.xlane.xlu0 %9099 }
0x2ac5   :  { %v9104_v11 = vmul.f32 0.03125, %v9100_v13 }
0x2ac7   :  { %v9106_v18 = vadd.f32 1e-05, %v9104_v11 }
0x2ac8   :  { %v9103_v16 = vpop.xlane.xlu0 %9102 }
0x2ac9   :  { %12995 = vrsqrt.f32 %v9106_v18  ;;  %v9105_v41 = vmul.f32 0.03125, %v9103_v16 }
0x2acb   :  { %v9107_v14 = vadd.f32 1e-05, %v9105_v41 }
0x2acc   :  { %v9479_v15 = vpop.permute.xlu0 %9478 }
0x2acd   :  { %12997 = vrsqrt.f32 %v9107_v14  ;;  %12413 = vmatpush3.xpose.msk.msra.mxu0 %vm325_vm2, %v9479_v15 }
0x2ace   :  { %12422 = vmatprep.subr.mxu0 %v13108_v36 }
0x2ad0   :  { %v9823_v38 = vpop.permute.xlu0 %9822 }
0x2ad3   :  { %v12996_v63 = vpop.eup %12995 }
0x2ad4   :  { %v9110_v19 = vmul.f32 %v12996_v63, %v9094_v5  ;;  %v10161_v43 = vpop.permute.xlu0 %10160 }
0x2ad6   :  { %v9118_v33 = vmul.f32 %v11351_v17, %v9110_v19 }
0x2ad7   :  { %v12998_v22 = vpop.eup %12997 }
0x2ad8   :  { %v9111_v60 = vmul.f32 %v12998_v22, %v9095_v4  ;;  %v14486_v23 = vadd.f32 %v11352_v35, %v9118_v33  ;;  %v10333_v59 = vpop.permute.xlu0 %10332 }
0x2ada   :  { %v9119_v25 = vmul.f32 %v11351_v17, %v9111_v60  ;;  %12388 = vmatprep.mubr.msk.f32.mxu1 %vm179_vm0, %v14486_v23 }
0x2adc   :  { %v14490_v24 = vadd.f32 %v11352_v35, %v9119_v25  ;;  %v10505_v58 = vpop.permute.xlu0 %10504 }
0x2ade   :  { %12389 = vmatmul.mubr.msk.f32.vlgmr.msra.gmra.mrb[106].mxu1 %vm179_vm0, %v14490_v24 }
0x2adf   :  { %12403 = vmatpush3.xpose.msk.msra.mxu1 %vm325_vm2, %v14461_v40  ;;  %12404 = vmatprep.mubr.msk.f32.mxu1 %vm13109_vm1, %v13108_v36 }
0x2ae0   :  { %12407 = vmatprep.subr.mxu1 %v13108_v36 }
0x2bb1   :  { %v12390_v27 = vpop.f32.mrb[106].mxu1 }
0x2bb2   :  { %v9213_v29 = vpop.f32.mrb[107].mxu1  ;;  %v9219_v0 = vadd.f32 %v12390_v27, %v11358_v26 }
0x2bb3   :  { %v9214_v31 = vadd.f32 %v11358_v26, %v9213_v29 }
0x2bb5   :  { %9476 = vrot.lane.b32.xlu1 %v9214_v31, %s13112_s17  ;;  %12405 = vmatmul.mubr.msk.f32.vlgmr.msra.gmra.mrb[108].mxu1 %vm325_vm2, %v9214_v31 }
0x2bb6   :  { %12409 = vmatprep.mubr.msk.f32.mxu1 %vm13109_vm1, %v13108_v36 }
0x2bb9   :  { %9648 = vrot.lane.b32.xlu1 %v9214_v31, %s13113_s21 }
0x2bbd   :  { %9820 = vrot.lane.b32.xlu1 %v9214_v31, %s13115_s2 }
0x2bc1   :  { %10158 = vrot.lane.b32.xlu1 %v9219_v0, %s13112_s17 }
0x2bc5   :  { %10330 = vrot.lane.b32.xlu1 %v9219_v0, %s13113_s21 }
0x2bc9   :  { %10502 = vrot.lane.b32.xlu1 %v9219_v0, %s13115_s2 }
0x2c27   :  { %v9477_v20 = vpop.permute.xlu1 %9476 }
0x2c28   :  { %12415 = vmatmul.mubr.msk.f32.vlgmr.msra.gmra.mrb[90].mxu0 %vm325_vm2, %v9477_v20 }
0x2c29   :  { %12423 = vmatpush3.xpose.msk.msra.mxu0 %vm325_vm2, %v9651_v37  ;;  %12424 = vmatprep.mubr.msk.f32.mxu0 %vm13109_vm1, %v13108_v36 }
0x2c2a   :  { %12432 = vmatprep.subr.mxu0 %v13108_v36 }
0x2c2b   :  { %v9649_v42 = vpop.permute.xlu1 %9648 }
0x2c2c   :  { %12425 = vmatmul.mubr.msk.f32.vlgmr.msra.gmra.mrb[92].mxu0 %vm325_vm2, %v9649_v42 }
0x2c2d   :  { %12433 = vmatpush3.xpose.msk.msra.mxu0 %vm325_vm2, %v9823_v38  ;;  %12434 = vmatprep.mubr.msk.f32.mxu0 %vm13109_vm1, %v13108_v36 }
0x2c2e   :  { %12442 = vmatprep.subr.mxu0 %v13108_v36 }
0x2c2f   :  { %v9821_v39 = vpop.permute.xlu1 %9820 }
0x2c30   :  { %12435 = vmatmul.mubr.msk.f32.vlgmr.msra.gmra.mrb[94].mxu0 %vm325_vm2, %v9821_v39 }
0x2c31   :  { %12443 = vmatpush3.xpose.msk.msra.mxu0 %vm325_vm2, %v14459_v56  ;;  %12444 = vmatprep.mubr.msk.f32.mxu0 %vm13109_vm1, %v13108_v36 }
0x2c32   :  { %12452 = vmatprep.subr.mxu0 %v13108_v36 }
0x2c33   :  { %v10159_v44 = vpop.permute.xlu1 %10158 }
0x2c34   :  { %12445 = vmatmul.mubr.msk.f32.vlgmr.msra.gmra.mrb[96].mxu0 %vm325_vm2, %v9219_v0 }
0x2c35   :  { %12453 = vmatpush3.xpose.msk.msra.mxu0 %vm325_vm2, %v10161_v43  ;;  %12454 = vmatprep.mubr.msk.f32.mxu0 %vm13109_vm1, %v13108_v36 }
0x2c36   :  { %12462 = vmatprep.subr.mxu0 %v13108_v36 }
0x2c37   :  { %v10331_v45 = vpop.permute.xlu1 %10330 }
0x2c38   :  { %12455 = vmatmul.mubr.msk.f32.vlgmr.msra.gmra.mrb[98].mxu0 %vm325_vm2, %v10159_v44 }
0x2c39   :  { %12463 = vmatpush3.xpose.msk.msra.mxu0 %vm325_vm2, %v10333_v59  ;;  %12464 = vmatprep.mubr.msk.f32.mxu0 %vm13109_vm1, %v13108_v36 }
0x2c3a   :  { %12472 = vmatprep.subr.mxu0 %v13108_v36 }
0x2c3b   :  { %v10503_v46 = vpop.permute.xlu1 %10502 }
0x2c3c   :  { %12465 = vmatmul.mubr.msk.f32.vlgmr.msra.gmra.mrb[100].mxu0 %vm325_vm2, %v10331_v45 }
0x2c3d   :  { %12473 = vmatpush3.xpose.msk.msra.mxu0 %vm325_vm2, %v10505_v58  ;;  %12474 = vmatprep.mubr.msk.f32.mxu0 %vm13109_vm1, %v13108_v36 }
0x2c40   :  { %12475 = vmatmul.mubr.msk.f32.vlgmr.msra.gmra.mrb[102].mxu0 %vm325_vm2, %v10503_v46 }
0x2c88   :  { %v9382_v47 = vpop.f32.mrb[108].mxu1 }
0x2c89   :  { %v9386_v48 = vmul.f32 0.35355338, %v9382_v47  ;;  %v12406_v61 = vpop.f32.mrb[109].mxu1 }
0x2c8b   :  { %v9388_v49 = vsel %vm325_vm2, %v9386_v48, -inf }
0x2c8c   :  { %9389 = vmax.xlane.f32.xlu0 %v9388_v49 }
0x2cfb   :  { %v9550_v50 = vpop.f32.mrb[90].mxu0 }
0x2cfc   :  { %v9554_v51 = vmul.f32 0.35355338, %v9550_v50  ;;  %v12416_v53 = vpop.f32.mrb[91].mxu0 }
0x2cfe   :  { %v9556_v62 = vsel %vm325_vm2, %v9554_v51, -inf }
0x2cff   :  { %9557 = vmax.xlane.f32.xlu1 %v9556_v62  ;;  %v9722_v8 = vpop.f32.mrb[92].mxu0 }
0x2d00   :  { %v9726_v54 = vmul.f32 0.35355338, %v9722_v8  ;;  %v12426_v1 = vpop.f32.mrb[93].mxu0 }
0x2d02   :  { %v9728_v57 = vsel %vm325_vm2, %v9726_v54, -inf }
0x2d03   :  { %9729 = vmax.xlane.f32.xlu0 %v9728_v57  ;;  %v9894_v55 = vpop.f32.mrb[94].mxu0 }
0x2d04   :  { %v9898_v52 = vmul.f32 0.35355338, %v9894_v55  ;;  %v12436_v2 = vpop.f32.mrb[95].mxu0 }
0x2d06   :  { %v9900_v3 = vsel %vm325_vm2, %v9898_v52, -inf }
0x2d07   :  { %9901 = vmax.xlane.f32.xlu0 %v9900_v3  ;;  %v10064_v4 = vpop.f32.mrb[96].mxu0 }
0x2d08   :  { %v10068_v5 = vmul.f32 0.35355338, %v10064_v4  ;;  %v12446_v6 = vpop.f32.mrb[97].mxu0 }
0x2d0a   :  { %v10070_v7 = vsel %vm325_vm2, %v10068_v5, -inf }
0x2d0b   :  { %10071 = vmax.xlane.f32.xlu0 %v10070_v7  ;;  %v10232_v9 = vpop.f32.mrb[98].mxu0 }
0x2d0c   :  { %v14545_v28 = vmul.f32 0.35355338, %v10232_v9  ;;  %v12456_v34 = vpop.f32.mrb[99].mxu0 }
0x2d0e   :  { %v10238_v30 = vsel %vm325_vm2, %v14545_v28, -inf }
0x2d0f   :  { %10239 = vmax.xlane.f32.xlu1 %v10238_v30  ;;  %v10404_v32 = vpop.f32.mrb[100].mxu0 }
0x2d10   :  { %v10408_v10 = vmul.f32 0.35355338, %v10404_v32  ;;  %v12466_v21 = vpop.f32.mrb[101].mxu0 }
0x2d12   :  { %v10410_v12 = vsel %vm325_vm2, %v10408_v10, -inf }
0x2d13   :  { %10411 = vmax.xlane.f32.xlu0 %v10410_v12  ;;  %v10576_v13 = vpop.f32.mrb[102].mxu0 }
0x2d14   :  { %v12476_v11 = vpop.f32.mrb[103].mxu0  ;;  %v10580_v63 = vmul.f32 0.35355338, %v10576_v13 }
0x2d16   :  { %v10582_v17 = vsel %vm325_vm2, %v10580_v63, -inf }
0x2d19   :  { %v9390_v18 = vpop.xlane.xlu0 %9389 }
0x2d1a   :  { %v9391_v16 = vsub.f32 %v9386_v48, %v9390_v18 }
0x2d1c   :  { %v9392_v41 = vmul.f32 1.442695, %v9391_v16 }
0x2d1e   :  { %12999 = vpow2.f32 %v9392_v41 }
0x2d20   :  { %9399 = vrot.lane.b32.xlu1 %v14461_v40, %s13111_s5 }
0x2d28   :  { %v13000_v14 = vpop.eup %12999 }
0x2d29   :  { %v9394_v15 = vsel %vm325_vm2, %v13000_v14, 0.0 }
0x2d2a   :  { %9395 = vadd.xlane.f32.xlu0 %v9394_v15 }
0x2d40   :  { %9567 = vrot.lane.b32.xlu0 %v14461_v40, %s13110_s0 }
0x2d44   :  { %10583 = vmax.xlane.f32.xlu1 %v10582_v17 }
0x2d55   :  { %9739 = vrot.lane.b32.xlu1 %v14461_v40, %s13114_s29 }
0x2d59   :  { %9911 = vrot.lane.b32.xlu1 %v14461_v40, %s13116_s7 }
0x2d5d   :  { %10081 = vrot.lane.b32.xlu1 %v14459_v56, %s13111_s5 }
0x2d8c   :  { %v9558_v19 = vpop.xlane.xlu1 %9557 }
0x2d8d   :  { %v9559_v35 = vsub.f32 %v9554_v51, %v9558_v19 }
0x2d8f   :  { %v9560_v33 = vmul.f32 1.442695, %v9559_v35 }
0x2d90   :  { %v9730_v22 = vpop.xlane.xlu0 %9729 }
0x2d91   :  { %13001 = vpow2.f32 %v9560_v33  ;;  %v9731_v60 = vsub.f32 %v9726_v54, %v9730_v22 }
0x2d93   :  { %v9732_v25 = vmul.f32 1.442695, %v9731_v60 }
0x2d94   :  { %v9902_v26 = vpop.xlane.xlu0 %9901 }
0x2d95   :  { %13003 = vpow2.f32 %v9732_v25  ;;  %v9903_v27 = vsub.f32 %v9898_v52, %v9902_v26 }
0x2d97   :  { %v9904_v29 = vmul.f32 1.442695, %v9903_v27 }
0x2d98   :  { %v10072_v31 = vpop.xlane.xlu0 %10071 }
0x2d99   :  { %13005 = vpow2.f32 %v9904_v29  ;;  %v10073_v0 = vsub.f32 %v10068_v5, %v10072_v31 }
0x2d9b   :  { %v13002_v37 = vpop.eup %13001  ;;  %v10074_v20 = vmul.f32 1.442695, %v10073_v0 }
0x2d9c   :  { %v10240_v40 = vpop.xlane.xlu1 %10239  ;;  %v9562_v38 = vsel %vm325_vm2, %v13002_v37, 0.0 }
0x2d9d   :  { %13007 = vpow2.f32 %v10074_v20  ;;  %9563 = vadd.xlane.f32.xlu1 %v9562_v38  ;;  %v10241_v62 = vsub.f32 %v14545_v28, %v10240_v40 }
0x2d9f   :  { %v13004_v42 = vpop.eup %13003  ;;  %v10242_v54 = vmul.f32 1.442695, %v10241_v62 }
0x2da0   :  { %v9400_v39 = vpop.permute.xlu1 %9399  ;;  %v10412_v43 = vpop.xlane.xlu0 %10411  ;;  %v9734_v44 = vsel %vm325_vm2, %v13004_v42, 0.0 }
0x2da1   :  { %v10413_v59 = vsub.f32 %v10408_v10, %v10412_v43  ;;  %12408 = vmatpush3.msra.mxu1 %v9400_v39  ;;  %9735 = vadd.xlane.f32.xlu0 %v9734_v44  ;;  %v11394_v39 = vld [vmem:[%s14735_s3 + $0x28] sm:$0xff]  ;;  %v11395_v44 = vld [vmem:[%s14735_s3 + $0x30] sm:$0xff] }
0x2da2   :  { %12417 = vmatprep.subr.mxu1 %v13108_v36 }
0x2da3   :  { %v13006_v45 = vpop.eup %13005  ;;  %v10414_v58 = vmul.f32 1.442695, %v10413_v59  ;;  %v11396_v59 = vld [vmem:[%s14735_s3 + $0x38] sm:$0xff] }
0x2da4   :  { %v9906_v46 = vsel %vm325_vm2, %v13006_v45, 0.0 }
0x2da5   :  { %13009 = vpow2.f32 %v10414_v58  ;;  %9907 = vadd.xlane.f32.xlu1 %v9906_v46 }
0x2da7   :  { %v13008_v47 = vpop.eup %13007 }
0x2da8   :  { %v10076_v48 = vsel %vm325_vm2, %v13008_v47, 0.0 }
0x2da9   :  { %10077 = vadd.xlane.f32.xlu0 %v10076_v48 }
0x2daf   :  { %v14567_v61 = vpop.eup %13009 }
0x2db0   :  { %v10416_v49 = vsel %vm325_vm2, %v14567_v61, 0.0 }
0x2db1   :  { %10417 = vadd.xlane.f32.xlu0 %v10416_v49 }
0x2db6   :  { %10249 = vrot.lane.b32.xlu1 %v14459_v56, %s13110_s0 }
0x2db7   :  { %v9396_v50 = vpop.xlane.xlu0 %9395 }
0x2db8   :  { %13011 = vrcp.f32 %v9396_v50 }
0x2db9   :  { %13013 = vpow2.f32 %v10242_v54 }
0x2dbb   :  { %v9568_v8 = vpop.permute.xlu0 %9567 }
0x2dc2   :  { %v13012_v51 = vpop.eup %13011 }
0x2dc3   :  { %v9398_v53 = vmul.f32 %v13012_v51, %v13000_v14  ;;  %v13014_v52 = vpop.eup %13013 }
0x2dc4   :  { %v10244_v2 = vsel %vm325_vm2, %v13014_v52, 0.0 }
0x2dc5   :  { %12410 = vmatmul.mubr.msk.f32.vlgmr.msra.gmra.mrb[110].mxu1 %vm325_vm2, %v9398_v53 }
0x2dc6   :  { %12418 = vmatpush3.msra.mxu1 %v9568_v8  ;;  %12419 = vmatprep.mubr.msk.f32.mxu1 %vm13109_vm1, %v13108_v36 }
0x2dc7   :  { %12427 = vmatprep.subr.mxu1 %v13108_v36 }
0x2dd1   :  { %v10584_v1 = vpop.xlane.xlu1 %10583 }
0x2dd2   :  { %v10585_v57 = vsub.f32 %v10580_v63, %v10584_v1 }
0x2dd4   :  { %v10586_v55 = vmul.f32 1.442695, %v10585_v57 }
0x2dd5   :  { %v9740_v5 = vpop.permute.xlu1 %9739 }
0x2dd6   :  { %13015 = vpow2.f32 %v10586_v55  ;;  %v11398_v55 = vld [vmem:[%s14736_s14 + $0x1] ss:$0 sm:$0xff] }
0x2dd9   :  { %v9912_v6 = vpop.permute.xlu1 %9911 }
0x2dda   :  { %10245 = vadd.xlane.f32.xlu1 %v10244_v2 }
0x2ddd   :  { %v10082_v7 = vpop.permute.xlu1 %10081 }
0x2de0   :  { %v13016_v3 = vpop.eup %13015 }
0x2de1   :  { %v10588_v4 = vsel %vm325_vm2, %v13016_v3, 0.0 }
0x2de2   :  { %10589 = vadd.xlane.f32.xlu0 %v10588_v4 }
0x2deb   :  { %10593 = vrot.lane.b32.xlu1 %v14459_v56, %s13116_s7 }
0x2df8   :  { %10421 = vrot.lane.b32.xlu0 %v14459_v56, %s13114_s29 }
0x2e2a   :  { %v9564_v9 = vpop.xlane.xlu1 %9563 }
0x2e2b   :  { %13017 = vrcp.f32 %v9564_v9 }
0x2e2e   :  { %v9736_v28 = vpop.xlane.xlu0 %9735 }
0x2e2f   :  { %13019 = vrcp.f32 %v9736_v28 }
0x2e32   :  { %v9908_v34 = vpop.xlane.xlu1 %9907 }
0x2e33   :  { %13021 = vrcp.f32 %v9908_v34 }
0x2e35   :  { %v13018_v30 = vpop.eup %13017 }
0x2e36   :  { %v9566_v32 = vmul.f32 %v13018_v30, %v13002_v37  ;;  %v10078_v10 = vpop.xlane.xlu0 %10077  ;;  %v10250_v16 = vpop.permute.xlu1 %10249 }
0x2e37   :  { %13023 = vrcp.f32 %v10078_v10 }
0x2e38   :  { %12420 = vmatmul.mubr.msk.f32.vlgmr.msra.gmra.mrb[112].mxu1 %vm325_vm2, %v9566_v32 }
0x2e39   :  { %v13020_v21 = vpop.eup %13019  ;;  %12428 = vmatpush3.msra.mxu1 %v9740_v5  ;;  %12429 = vmatprep.mubr.msk.f32.mxu1 %vm13109_vm1, %v13108_v36 }
0x2e3a   :  { %v9738_v56 = vmul.f32 %v13020_v21, %v13004_v42  ;;  %12437 = vmatprep.subr.mxu1 %v13108_v36  ;;  %v11393_v42 = vld [vmem:[%s14735_s3 + $0x20] sm:$0xff] }
0x2e3b   :  { %v12699_v43 = vpack.c.bf16 %v11394_v39, %v11393_v42  ;;  %v11412_v42 = vld [vmem:[%s14740_s16 + $0x50] sm:$0xff]  ;;  %v11413_v39 = vld [vmem:[%s14740_s16 + $0x58] sm:$0xff] }
0x2e3c   :  { %12430 = vmatmul.mubr.msk.f32.vlgmr.msra.gmra.mrb[114].mxu1 %vm325_vm2, %v9738_v56 }
0x2e3d   :  { %v13022_v12 = vpop.eup %13021  ;;  %12438 = vmatpush3.msra.mxu1 %v9912_v6  ;;  %12439 = vmatprep.mubr.msk.f32.mxu1 %vm13109_vm1, %v13108_v36 }
0x2e3e   :  { %v9910_v13 = vmul.f32 %v13022_v12, %v13006_v45  ;;  %12447 = vmatprep.subr.mxu1 %v13108_v36  ;;  %v10418_v41 = vpop.xlane.xlu0 %10417  ;;  %12700 = vmatprep.subr.bf16.mxu0 %v12699_v43  ;;  %v12703_v45 = vpack.c.bf16 %v11396_v59, %v11395_v44  ;;  %v11414_v44 = vld [vmem:[%s14740_s16 + $0x60] sm:$0xff]  ;;  %v11415_v59 = vld [vmem:[%s14740_s16 + $0x68] sm:$0xff] }
0x2e3f   :  { %12702 = vmatpush3.bf16.msra.mxu0 %v12699_v43  ;;  %v12719_v43 = vpack.c.bf16 %v11413_v39, %v11412_v42 }
0x2e40   :  { %12440 = vmatmul.mubr.msk.f32.vlgmr.msra.gmra.mrb[116].mxu1 %vm325_vm2, %v9910_v13  ;;  %12704 = vmatprep.subr.bf16.mxu0 %v12703_v45  ;;  %v11405_v13 = vld [vmem:[%s14737_s23 + $0x20] sm:$0xff] }
0x2e41   :  { %v13024_v11 = vpop.eup %13023  ;;  %12448 = vmatpush3.msra.mxu1 %v10082_v7  ;;  %12449 = vmatprep.mubr.msk.f32.mxu1 %vm13109_vm1, %v13108_v36 }
0x2e42   :  { %v10080_v18 = vmul.f32 %v13024_v11, %v13008_v47  ;;  %12457 = vmatprep.subr.mxu1 %v13108_v36  ;;  %v11406_v11 = vld [vmem:[%s14737_s23 + $0x28] sm:$0xff] }
0x2e43   :  { %12706 = vmatpush3.bf16.msra.mxu0 %v12703_v45  ;;  %v12723_v45 = vpack.c.bf16 %v11415_v59, %v11414_v44 }
0x2e44   :  { %12450 = vmatmul.mubr.msk.f32.vlgmr.msra.gmra.mrb[118].mxu1 %vm325_vm2, %v10080_v18  ;;  %v12707_v18 = vpack.c.bf16 %v11406_v11, %v11405_v13 }
0x2e45   :  { %12458 = vmatpush3.msra.mxu1 %v10250_v16  ;;  %12459 = vmatprep.mubr.msk.f32.mxu1 %vm13109_vm1, %v13108_v36  ;;  %v11407_v16 = vld [vmem:[%s14737_s23 + $0x30] sm:$0xff] }
0x2e46   :  { %12467 = vmatprep.subr.mxu1 %v13108_v36 }
0x2e67   :  { %v10246_v14 = vpop.xlane.xlu1 %10245 }
0x2e68   :  { %13025 = vrcp.f32 %v10246_v14 }
0x2e69   :  { %13027 = vrcp.f32 %v10418_v41  ;;  %v11408_v41 = vld [vmem:[%s14737_s23 + $0x38] sm:$0xff] }
0x2e6a   :  { %v12711_v14 = vpack.c.bf16 %v11408_v41, %v11407_v16 }
0x2e6b   :  { %v10594_v22 = vpop.permute.xlu1 %10593 }
0x2e6f   :  { %v10590_v15 = vpop.xlane.xlu0 %10589 }
0x2e70   :  { %13029 = vrcp.f32 %v10590_v15 }
0x2e72   :  { %v13026_v63 = vpop.eup %13025 }
0x2e73   :  { %v10248_v17 = vmul.f32 %v13026_v63, %v13014_v52  ;;  %v10422_v19 = vpop.permute.xlu0 %10421  ;;  %v13028_v35 = vpop.eup %13027 }
0x2e74   :  { %v10420_v33 = vmul.f32 %v13028_v35, %v14567_v61 }
0x2e75   :  { %12460 = vmatmul.mubr.msk.f32.vlgmr.msra.gmra.mrb[120].mxu1 %vm325_vm2, %v10248_v17 }
0x2e76   :  { %12468 = vmatpush3.msra.mxu1 %v10422_v19  ;;  %12469 = vmatprep.mubr.msk.f32.mxu1 %vm13109_vm1, %v13108_v36 }
0x2e77   :  { %12477 = vmatprep.subr.mxu1 %v13108_v36 }
0x2e79   :  { %12470 = vmatmul.mubr.msk.f32.vlgmr.msra.gmra.mrb[122].mxu1 %vm325_vm2, %v10420_v33 }
0x2e7a   :  { %v13030_v60 = vpop.eup %13029  ;;  %12478 = vmatpush3.msra.mxu1 %v10594_v22  ;;  %12479 = vmatprep.mubr.msk.f32.mxu1 %vm13109_vm1, %v13108_v36 }
0x2e7b   :  { %v10592_v25 = vmul.f32 %v13030_v60, %v13016_v3  ;;  %12708 = vmatprep.subr.bf16.mxu1 %v12707_v18  ;;  %v11403_v60 = vld [vmem:[%s14738_s22 + $0x1] ss:$0 sm:$0xff] }
0x2e7d   :  { %12480 = vmatmul.mubr.msk.f32.vlgmr.msra.gmra.mrb[124].mxu1 %vm325_vm2, %v10592_v25 }
0x2e7e   :  { %12710 = vmatpush3.bf16.msra.mxu1 %v12707_v18 }
0x2e7f   :  { %12712 = vmatprep.subr.bf16.mxu1 %v12711_v14 }
0x2e82   :  { %12714 = vmatpush3.bf16.msra.mxu1 %v12711_v14 }
0x2e98   :  { %v9471_v26 = vpop.f32.mrb[110].mxu1 }
0x2e99   :  { %9475 = vst.msk [vmem:[#allocation2] sm:$0xff] %vm325_vm2, %v9471_v26  ;;  %v12411_v27 = vpop.f32.mrb[111].mxu1  ;;  %v11404_v26 = vld [vmem:[%s14739_s18 + $0x1] ss:$0 sm:$0xff] }
0x2f0b   :  { %v9639_v29 = vpop.f32.mrb[112].mxu1 }
0x2f0c   :  { %9644 = vrot.lane.b32.xlu0 %v9639_v29, %s14744_s11  ;;  %v12421_v31 = vpop.f32.mrb[113].mxu1 }
0x2f0f   :  { %v9811_v0 = vpop.f32.mrb[114].mxu1 }
0x2f10   :  { %9816 = vrot.lane.b32.xlu1 %v9811_v0, %s14745_s19  ;;  %v12431_v37 = vpop.f32.mrb[115].mxu1 }
0x2f13   :  { %v9983_v36 = vpop.f32.mrb[116].mxu1 }
0x2f14   :  { %9988 = vrot.lane.b32.xlu1 %v9983_v36, %s14746_s24  ;;  %v12441_v20 = vpop.f32.mrb[117].mxu1 }
0x2f15   :  { %v11410_v20 = vld [vmem:[%s14740_s16 + $0x40] sm:$0xff] }
0x2f17   :  { %v10153_v40 = vpop.f32.mrb[118].mxu1 }
0x2f18   :  { %10157 = vst.msk [vmem:[#allocation2 + $0x8] sm:$0xff] %vm325_vm2, %v10153_v40  ;;  %v12451_v38 = vpop.f32.mrb[119].mxu1  ;;  %v11411_v40 = vld [vmem:[%s14740_s16 + $0x48] sm:$0xff] }
0x2f19   :  { %v12715_v38 = vpack.c.bf16 %v11411_v40, %v11410_v20  ;;  %v11428_v20 = vld [vmem:[%s13322_s13 + $0x1] ss:$0 sm:$0xff] }
0x2f1b   :  { %12716 = vmatprep.subr.bf16.mxu0 %v12715_v38 }
0x2f48   :  { %v10321_v58 = vpop.f32.mrb[120].mxu1 }
0x2f49   :  { %10326 = vrot.lane.b32.xlu0 %v10321_v58, %s14744_s11  ;;  %v12461_v46 = vpop.f32.mrb[121].mxu1  ;;  %v11416_v58 = vld [vmem:[%s14740_s16 + $0x70] sm:$0xff] }
0x2f4a   :  { %v11417_v46 = vld [vmem:[%s14740_s16 + $0x78] sm:$0xff] }
0x2f4c   :  { %v10493_v47 = vpop.f32.mrb[122].mxu1 }
0x2f4d   :  { %10498 = vrot.lane.b32.xlu0 %v10493_v47, %s14745_s19  ;;  %v12471_v48 = vpop.f32.mrb[123].mxu1  ;;  %v12727_v47 = vpack.c.bf16 %v11417_v46, %v11416_v58 }
0x2f4e   :  { %v11421_v48 = vld [vmem:[%s14741_s15 + $0x1] ss:$0 sm:$0xff] }
0x2f50   :  { %v10665_v61 = vpop.f32.mrb[124].mxu1 }
0x2f51   :  { %10670 = vrot.lane.b32.xlu1 %v10665_v61, %s14746_s24  ;;  %v12481_v49 = vpop.f32.mrb[125].mxu1 }
0x2f7e   :  { %v9645_v50 = vpop.permute.xlu0 %9644 }
0x2f7f   :  { %9647 = vst.msk [vmem:[#allocation2] sm:$0xff] %vm661_vm3, %v9645_v50 }
0x2f82   :  { %v9817_v51 = vpop.permute.xlu1 %9816 }
0x2f83   :  { %9819 = vst.msk [vmem:[#allocation2] sm:$0xff] %vm834_vm4, %v9817_v51 }
0x2f86   :  { %v9989_v53 = vpop.permute.xlu1 %9988 }
0x2f87   :  { %9991 = vst.msk [vmem:[#allocation2] sm:$0xff] %vm1007_vm5, %v9989_v53 }
0x2f8e   :  { %v10674_v62 = vld [vmem:[#allocation2] sm:$0xff] }
0x2f8f   :  { %12490 = vmatprep.mubr.msk.f32.mxu0 %vm179_vm0, %v10674_v62 }
0x2fbb   :  { %v10327_v8 = vpop.permute.xlu0 %10326 }
0x2fbc   :  { %10329 = vst.msk [vmem:[#allocation2 + $0x8] sm:$0xff] %vm661_vm3, %v10327_v8 }
0x2fbf   :  { %v10499_v54 = vpop.permute.xlu0 %10498 }
0x2fc0   :  { %10501 = vst.msk [vmem:[#allocation2 + $0x8] sm:$0xff] %vm834_vm4, %v10499_v54 }
0x2fc3   :  { %v10671_v1 = vpop.permute.xlu1 %10670 }
0x2fc4   :  { %10673 = vst.msk [vmem:[#allocation2 + $0x8] sm:$0xff] %vm1007_vm5, %v10671_v1 }
0x2fcb   :  { %v10675_v57 = vld [vmem:[#allocation2 + $0x8] sm:$0xff] }
0x2fcc   :  { %12491 = vmatmul.mubr.msk.f32.vlgmr.msra.gmra.mrb[104].mxu0 %vm179_vm0, %v10675_v57 }
0x2fcd   :  { %12718 = vmatpush3.bf16.msra.mxu0 %v12715_v38 }
0x2fce   :  { %12720 = vmatprep.subr.bf16.mxu0 %v12719_v43 }
0x2fd1   :  { %12722 = vmatpush3.bf16.msra.mxu0 %v12719_v43 }
0x2fd2   :  { %12724 = vmatprep.subr.bf16.mxu0 %v12723_v45 }
0x2fd5   :  { %12726 = vmatpush3.bf16.msra.mxu0 %v12723_v45 }
0x2fd6   :  { %12728 = vmatprep.subr.bf16.mxu0 %v12727_v47 }
0x2fd9   :  { %12730 = vmatpush3.bf16.msra.mxu0 %v12727_v47 }
0x309f   :  { %v12492_v52 = vpop.f32.mrb[104].mxu0 }
0x30a0   :  { %v10767_v2 = vadd.f32 %v12492_v52, %v11398_v55  ;;  %v10761_v3 = vpop.f32.mrb[105].mxu0 }
0x30a1   :  { %v10762_v4 = vadd.f32 %v11398_v55, %v10761_v3 }
0x30a2   :  { %v10771_v5 = vadd.f32 %v10767_v2, %v14490_v24 }
0x30a3   :  { %v10770_v6 = vadd.f32 %v10762_v4, %v14486_v23 }
0x30a4   :  { %v10779_v7 = vsel %vm179_vm0, %v10771_v5, 0.0 }
0x30a5   :  { %10780 = vadd.xlane.f32.xlu1 %v10779_v7  ;;  %v10776_v9 = vsel %vm179_vm0, %v10770_v6, 0.0 }
0x30a6   :  { %10777 = vadd.xlane.f32.xlu0 %v10776_v9 }
0x3132   :  { %v10781_v28 = vpop.xlane.xlu1 %10780 }
0x3133   :  { %v10783_v34 = vmul.f32 0.03125, %v10781_v28  ;;  %v10778_v30 = vpop.xlane.xlu0 %10777 }
0x3134   :  { %v10782_v32 = vmul.f32 0.03125, %v10778_v30 }
0x3135   :  { %v10785_v10 = vsub.f32 %v10771_v5, %v10783_v34 }
0x3136   :  { %v10784_v21 = vsub.f32 %v10770_v6, %v10782_v32  ;;  %v11424_v32 = vld [vmem:[%s13312_s9 + $0x1] ss:$0 sm:$0xff] }
0x3137   :  { %v10787_v23 = vmul.f32 %v10785_v10, %v10785_v10 }
0x3138   :  { %v10786_v56 = vmul.f32 %v10784_v21, %v10784_v21 }
0x3139   :  { %v10791_v12 = vsel %vm179_vm0, %v10787_v23, 0.0 }
0x313a   :  { %v10788_v24 = vsel %vm179_vm0, %v10786_v56, 0.0 }
0x313b   :  { %10789 = vadd.xlane.f32.xlu0 %v10788_v24 }
0x313f   :  { %10792 = vadd.xlane.f32.xlu0 %v10791_v12 }
0x31c8   :  { %v10790_v15 = vpop.xlane.xlu0 %10789 }
0x31c9   :  { %v10794_v63 = vmul.f32 0.03125, %v10790_v15 }
0x31cb   :  { %v10796_v17 = vadd.f32 1e-05, %v10794_v63 }
0x31cc   :  { %v10793_v19 = vpop.xlane.xlu0 %10792 }
0x31cd   :  { %13031 = vrsqrt.f32 %v10796_v17  ;;  %v10795_v35 = vmul.f32 0.03125, %v10793_v19 }
0x31cf   :  { %v10797_v33 = vadd.f32 1e-05, %v10795_v35 }
0x31d1   :  { %13033 = vrsqrt.f32 %v10797_v33 }
0x31d7   :  { %v13032_v22 = vpop.eup %13031 }
0x31d8   :  { %v10800_v25 = vmul.f32 %v13032_v22, %v10784_v21 }
0x31da   :  { %v10808_v27 = vmul.f32 %v11403_v60, %v10800_v25 }
0x31db   :  { %v13034_v29 = vpop.eup %13033 }
0x31dc   :  { %v10801_v31 = vmul.f32 %v13034_v29, %v10785_v10  ;;  %v10816_v0 = vadd.f32 %v11404_v26, %v10808_v27 }
0x31de   :  { %v10809_v37 = vmul.f32 %v11403_v60, %v10801_v31  ;;  %12501 = vmatprep.mubr.msk.f32.mxu1 %vm179_vm0, %v10816_v0 }
0x31e0   :  { %v10817_v36 = vadd.f32 %v11404_v26, %v10809_v37 }
0x31e2   :  { %12502 = vmatmul.mubr.msk.f32.vlgmr.msra.gmra.mrb[126].mxu1 %vm179_vm0, %v10817_v36 }
0x32b5   :  { %v12503_v61 = vpop.f32.mrb[126].mxu1 }
0x32b6   :  { %v10924_v49 = vadd.f32 %v12503_v61, %v11421_v48  ;;  %v10918_v50 = vpop.f32.mrb[127].mxu1 }
0x32b7   :  { %v10919_v51 = vadd.f32 %v11421_v48, %v10918_v50 }
0x32b8   :  { %v10928_v53 = vmul.f32 %v10924_v49, %v10924_v49 }
0x32b9   :  { %v10927_v62 = vmul.f32 %v10919_v51, %v10919_v51 }
0x32ba   :  { %v10930_v8 = vmul.f32 %v10928_v53, %v10924_v49 }
0x32bb   :  { %v10929_v54 = vmul.f32 %v10927_v62, %v10919_v51 }
0x32bc   :  { %v10932_v1 = vmul.f32 0.044715, %v10930_v8 }
0x32bd   :  { %v10931_v57 = vmul.f32 0.044715, %v10929_v54 }
0x32be   :  { %v10934_v55 = vadd.f32 %v10932_v1, %v10924_v49 }
0x32bf   :  { %v10933_v52 = vadd.f32 %v10931_v57, %v10919_v51 }
0x32c0   :  { %v10936_v2 = vmul.f32 0.7978846, %v10934_v55 }
0x32c1   :  { %v10935_v3 = vmul.f32 0.7978846, %v10933_v52 }
0x32c2   :  { %13035 = vtanh.f32 %v10936_v2 }
0x32c3   :  { %13037 = vtanh.f32 %v10935_v3 }
0x32cc   :  { %v13036_v4 = vpop.eup %13035 }
0x32cd   :  { %v13038_v5 = vpop.eup %13037  ;;  %v10940_v6 = vadd.f32 1.0, %v13036_v4 }
0x32ce   :  { %v10939_v7 = vadd.f32 1.0, %v13038_v5 }
0x32cf   :  { %v10942_v9 = vmul.f32 0.5, %v10940_v6 }
0x32d0   :  { %v10941_v28 = vmul.f32 0.5, %v10939_v7 }
0x32d1   :  { %v10944_v30 = vmul.f32 %v10942_v9, %v10924_v49 }
0x32d2   :  { %v10943_v34 = vmul.f32 %v10941_v28, %v10919_v51 }
0x32d4   :  { %12520 = vmatprep.mubr.msk.f32.mxu0 %vm1952_vm6, %v10943_v34 }
0x32d5   :  { %12521 = vmatmul.mubr.msk.f32.vlgmr.msra.gmra.mrb[106].mxu0 %vm1952_vm6, %v10944_v30 }
0x33a8   :  { %v12522_v10 = vpop.f32.mrb[106].mxu0 }
0x33a9   :  { %v11029_v21 = vadd.f32 %v12522_v10, %v11424_v32  ;;  %v11023_v56 = vpop.f32.mrb[107].mxu0 }
0x33aa   :  { %v11024_v24 = vadd.f32 %v11424_v32, %v11023_v56 }
0x33ab   :  { %v11033_v23 = vadd.f32 %v11029_v21, %v10817_v36 }
0x33ac   :  { %v11032_v12 = vadd.f32 %v11024_v24, %v10816_v0  ;;  %v11427_v0 = vld [vmem:[%s13317_s4 + $0x1] ss:$0 sm:$0xff] }
0x33ad   :  { %v11037_v13 = vsel %vm179_vm0, %v11033_v23, 0.0 }
0x33ae   :  { %11038 = vadd.xlane.f32.xlu1 %v11037_v13  ;;  %v11034_v11 = vsel %vm179_vm0, %v11032_v12, 0.0 }
0x33af   :  { %11035 = vadd.xlane.f32.xlu0 %v11034_v11 }
0x343b   :  { %v11039_v18 = vpop.xlane.xlu1 %11038 }
0x343c   :  { %v11041_v16 = vmul.f32 0.03125, %v11039_v18  ;;  %v11036_v41 = vpop.xlane.xlu0 %11035 }
0x343d   :  { %v11040_v14 = vmul.f32 0.03125, %v11036_v41 }
0x343e   :  { %v11043_v15 = vsub.f32 %v11033_v23, %v11041_v16 }
0x343f   :  { %v11042_v63 = vsub.f32 %v11032_v12, %v11040_v14 }
0x3440   :  { %v11045_v17 = vmul.f32 %v11043_v15, %v11043_v15 }
0x3441   :  { %v11044_v19 = vmul.f32 %v11042_v63, %v11042_v63 }
0x3442   :  { %v11049_v35 = vsel %vm179_vm0, %v11045_v17, 0.0 }
0x3443   :  { %11050 = vadd.xlane.f32.xlu1 %v11049_v35  ;;  %v11046_v33 = vsel %vm179_vm0, %v11044_v19, 0.0 }
0x3444   :  { %11047 = vadd.xlane.f32.xlu0 %v11046_v33 }
0x34d0   :  { %v11051_v22 = vpop.xlane.xlu1 %11050 }
0x34d1   :  { %v11053_v60 = vmul.f32 0.03125, %v11051_v22  ;;  %v11048_v25 = vpop.xlane.xlu0 %11047 }
0x34d2   :  { %v11052_v26 = vmul.f32 0.03125, %v11048_v25 }
0x34d3   :  { %v11055_v27 = vadd.f32 1e-05, %v11053_v60 }
0x34d4   :  { %v11054_v29 = vadd.f32 1e-05, %v11052_v26 }
0x34d5   :  { %13039 = vrsqrt.f32 %v11055_v27 }
0x34d6   :  { %13041 = vrsqrt.f32 %v11054_v29 }
0x34df   :  { %v13040_v31 = vpop.eup %13039 }
0x34e0   :  { %v13042_v37 = vpop.eup %13041  ;;  %v11059_v36 = vmul.f32 %v13040_v31, %v11043_v15 }
0x34e1   :  { %v11058_v40 = vmul.f32 %v13042_v37, %v11042_v63 }
0x34e2   :  { %v11067_v38 = vmul.f32 %v11427_v0, %v11059_v36 }
0x34e3   :  { %v11066_v42 = vmul.f32 %v11427_v0, %v11058_v40 }
0x34e4   :  { %v11075_v39 = vadd.f32 %v11428_v20, %v11067_v38 }
0x34e5   :  { %v11074_v43 = vadd.f32 %v11428_v20, %v11066_v42 }
0x34e6   :  { %11077 = vst.msk [vmem:[%s13327_s25 + $0x8] sm:$0xff] %vm179_vm0, %v11075_v39 }
0x34e7   :  { %11076 = vst.msk [vmem:[%s13327_s25] sm:$0xff] %vm179_vm0, %v11074_v43 }
0x34e8   :  { %11082 = vsyncpa [#allocation4], 1 }

</bundles_post_ra>
